<compile_context>
chip_gen: v7x
topology: tpu7x:2x2x1
jax: 0.10.0
libtpu: 0.0.40
codegen_flags: <defaults>
</compile_context>

<pallas_src>
import functools

import jax
import jax.numpy as jnp
from jax.experimental import pallas as pl
from jax.experimental.pallas import tpu as pltpu


def _dncnn_fused_kernel(x_ref, w_ref, b_ref, o_ref, act_ref, *, H, W, C, L):
    """Entire DnCNN forward for one image.

    x_ref:   (1, H, W, C)      input (channels pre-padded to C), f32
    w_ref:   (L*9, C, C)       per-(layer, kh, kw) weight tiles, bf16,
                               BN scale already folded in
    b_ref:   (L, 1, C)         per-layer bias (folded BN shift), f32
    o_ref:   (1, H, W, C)      output (first `channels` lanes are valid), f32
    act_ref: (2, H+2, W+2, C)  ping-pong activation buffers w/ zero halo, bf16
    """
    # Zero both halo buffers once per image; only interiors are written after,
    # so the pad=1 border stays zero for every layer.
    act_ref[...] = jnp.zeros(act_ref.shape, act_ref.dtype)
    act_ref[0, 1:H + 1, 1:W + 1, :] = x_ref[0].astype(act_ref.dtype)

    def conv_layer(l, src_slot, apply_relu):
        """3x3 conv + bias (+ optional ReLU) reading ping-pong slot src_slot."""
        acc = jnp.zeros((H * W, C), jnp.float32)
        for kw in range(3):
            # One W-shifted view per kw; the kh taps then slice only the
            # leading axis (cheap), instead of 9 separate W-axis relayouts.
            xs = act_ref[src_slot, :, kw:kw + W, :]           # (H+2, W, C) bf16
            for kh in range(3):
                patch = xs[kh:kh + H].reshape(H * W, C)        # (H*W, C) bf16
                acc = acc + jnp.dot(patch, w_ref[l * 9 + kh * 3 + kw],
                                    preferred_element_type=jnp.float32)
        acc = acc + b_ref[l]
        if apply_relu:
            acc = jnp.maximum(acc, 0.0)
        return acc

    def store_act(dst_slot, val):
        act_ref[dst_slot, 1:H + 1, 1:W + 1, :] = (
            val.reshape(H, W, C).astype(act_ref.dtype))

    # Layers 0 .. L-2 all end in ReLU; run them as slot0 -> slot1 -> slot0
    # pairs so the ping-pong slot indices stay static inside the fori_loop
    # (only the weight/bias layer index is dynamic).
    n_relu = L - 1
    n_pairs = n_relu // 2

    def pair_body(i, carry):
        a = conv_layer(2 * i, 0, True)
        store_act(1, a)
        b = conv_layer(2 * i + 1, 1, True)
        store_act(0, b)
        return carry

    jax.lax.fori_loop(0, n_pairs, pair_body, 0)

    src = 0
    if n_relu % 2 == 1:                      # static branch; only if L is even
        store_act(1, conv_layer(n_relu - 1, 0, True))
        src = 1

    out = conv_layer(L - 1, src, False)      # final conv: no BN, no ReLU
    o_ref[0] = out.reshape(H, W, C).astype(o_ref.dtype)


def dncnn_forward(x_nchw, params):
    """x_nchw: (N, channels, H, W) float32, like the PyTorch module's input."""
    w = params["w"]                 # (L*9, C, C) bf16, scale-folded
    b = params["b"]                 # (L, 1, C) f32
    channels = params["channels"]
    C = params["features"]
    L = params["num_layers"]

    N, cin, H, W = x_nchw.shape
    assert cin == channels
    x = jnp.transpose(x_nchw, (0, 2, 3, 1))                      # NCHW -> NHWC
    x = jnp.pad(x, ((0, 0), (0, 0), (0, 0), (0, C - channels)))  # pad channels

    kernel = functools.partial(_dncnn_fused_kernel, H=H, W=W, C=C, L=L)

    # TODO(synk): for large H*W, add row-strip spatial tiling (2-row halo) so
    # the per-image block and the f32 accumulator stay within VMEM/vreg budgets
    # (needed on v7x's 64 MiB VMEM for realistic image sizes).
    out = pl.pallas_call(
        kernel,
        out_shape=jax.ShapeDtypeStruct((N, H, W, C), jnp.float32),
        grid_spec=pltpu.PrefetchScalarGridSpec(
            num_scalar_prefetch=0,
            grid=(N,),
            in_specs=[
                pl.BlockSpec((1, H, W, C), lambda n: (n, 0, 0, 0)),
                pl.BlockSpec((L * 9, C, C), lambda n: (0, 0, 0)),
                pl.BlockSpec((L, 1, C), lambda n: (0, 0, 0)),
            ],
            out_specs=pl.BlockSpec((1, H, W, C), lambda n: (n, 0, 0, 0)),
            scratch_shapes=[pltpu.VMEM((2, H + 2, W + 2, C), jnp.bfloat16)],
        ),
        compiler_params=pltpu.CompilerParams(
            dimension_semantics=("parallel",)),
    )(x, w, b)

    out = out[:, :, :, :channels]
    return jnp.transpose(out, (0, 3, 1, 2))                      # NHWC -> NCHW


def init_dncnn_params(key, channels=3, num_of_layers=17, features=64):
    """Deterministic params matching the PyTorch module's shapes, pre-fused for
    the Pallas kernel: inference-mode BN folded, BN scale multiplied into conv
    weights, first-layer Cin / last-layer Cout zero-padded to `features`, and
    all (layer, kh, kw) weight tiles stacked into one bf16 tensor."""
    eps = 1e-5
    C = features
    L = num_of_layers
    keys = jax.random.split(key, num_of_layers * 4)
    k_idx = 0

    def nk():
        nonlocal k_idx
        k = keys[k_idx]
        k_idx += 1
        return k

    def conv_w(cin, cout):
        # Kaiming-ish small init; stored as (3, 3, Cin, Cout) for NHWC kernel.
        std = (2.0 / (cin * 9)) ** 0.5
        return std * jax.random.normal(nk(), (3, 3, cin, cout), jnp.float32)

    w_list, b_list = [], []

    # Layer 0: conv(channels -> features) + ReLU (no BN). Pad Cin to C.
    w0 = jnp.zeros((3, 3, C, C), jnp.float32)
    w0 = w0.at[:, :, :channels, :].set(conv_w(channels, features))
    w_list.append(w0)
    b_list.append(jnp.zeros((C,), jnp.float32))

    # Middle layers: conv + BN(folded) + ReLU; BN scale folded into weights.
    for _ in range(num_of_layers - 2):
        w = conv_w(features, features)
        gamma = 1.0 + 0.1 * jax.random.normal(nk(), (features,), jnp.float32)
        beta = 0.1 * jax.random.normal(nk(), (features,), jnp.float32)
        running_mean = 0.1 * jax.random.normal(nk(), (features,), jnp.float32)
        running_var = jnp.ones((features,), jnp.float32)
        scale = gamma / jnp.sqrt(running_var + eps)
        bias = beta - running_mean * scale
        w_list.append(w * scale[None, None, None, :])
        b_list.append(bias)

    # Final layer: conv(features -> channels), no BN, no ReLU. Pad Cout to C.
    wl = jnp.zeros((3, 3, C, C), jnp.float32)
    wl = wl.at[:, :, :, :channels].set(conv_w(features, channels))
    w_list.append(wl)
    b_list.append(jnp.zeros((C,), jnp.float32))

    # (L, 3, 3, C, C) -> (L*9, C, C); row-major index = l*9 + kh*3 + kw.
    w_fused = jnp.stack(w_list).reshape(L * 9, C, C).astype(jnp.bfloat16)
    b_fused = jnp.stack(b_list).reshape(L, 1, C).astype(jnp.float32)
    return {"w": w_fused, "b": b_fused, "channels": channels,
            "features": features, "num_layers": L}


if __name__ == "__main__":
    key = jax.random.PRNGKey(0)
    k_params, k_x = jax.random.split(key)

    channels, num_of_layers = 3, 17
    params = init_dncnn_params(k_params, channels=channels,
                               num_of_layers=num_of_layers, features=64)

    x = jax.random.normal(k_x, (2, channels, 16, 16), jnp.float32)

    fwd = jax.jit(lambda inp: dncnn_forward(inp, params))
    out = fwd(x)
    jax.block_until_ready(out)

    assert out.shape == x.shape and out.dtype == jnp.float32
    assert bool(jnp.all(jnp.isfinite(out)))
    print("KERNEL_OK")
</pallas_src>

<mosaic_0001>
module attributes {stable_mosaic.version = 11 : i64} {
  func.func @_dncnn_fused_kernel(%arg0: i32, %arg1: memref<1x16x16x64xf32, #tpu.memory_space<vmem>>, %arg2: memref<153x64x64xbf16, #tpu.memory_space<vmem>>, %arg3: memref<17x1x64xf32, #tpu.memory_space<vmem>>, %arg4: memref<1x16x16x64xf32, #tpu.memory_space<vmem>>, %arg5: memref<2x18x18x64xbf16, #tpu.memory_space<vmem>>) attributes {dimension_semantics = [#tpu.dimension_semantics<parallel>], iteration_bounds = array<i64: 2>, scalar_prefetch = 0 : i64, scratch_operands = 1 : i64, tpu.core_type = #tpu.core_type<tc>, window_params = [{transform_indices = @transform_0, window_bounds = array<i64: 1, 16, 16, 64>}, {pipeline_mode = #tpu.pipeline_mode<synchronous>, transform_indices = @transform_1, window_bounds = array<i64: 153, 64, 64>}, {pipeline_mode = #tpu.pipeline_mode<synchronous>, transform_indices = @transform_2, window_bounds = array<i64: 17, 1, 64>}, {transform_indices = @transform_3, window_bounds = array<i64: 1, 16, 16, 64>}]} {
    %cst = arith.constant 0.000000e+00 : bf16
    %0 = vector.broadcast %cst : bf16 to vector<2x18x18x64xbf16>
    %c0 = arith.constant 0 : index
    %c0_0 = arith.constant 0 : index
    %c0_1 = arith.constant 0 : index
    %c0_2 = arith.constant 0 : index
    %1 = vector.load %arg5[%c0, %c0_0, %c0_1, %c0_2] : memref<2x18x18x64xbf16, #tpu.memory_space<vmem>>, vector<2x18x18x64xbf16>
    tpu.vector_store %arg5[%c0, %c0_0, %c0_1, %c0_2], %0 {strides = array<i32>} : memref<2x18x18x64xbf16, #tpu.memory_space<vmem>>, vector<2x18x18x64xbf16>,
    %c0_3 = arith.constant 0 : index
    %c0_4 = arith.constant 0 : index
    %c0_5 = arith.constant 0 : index
    %c0_6 = arith.constant 0 : index
    %2 = vector.load %arg1[%c0_3, %c0_4, %c0_5, %c0_6] : memref<1x16x16x64xf32, #tpu.memory_space<vmem>>, vector<1x16x16x64xf32>
    %3 = vector.shape_cast %2 : vector<1x16x16x64xf32> to vector<16x16x64xf32>
    %4 = arith.truncf %3 : vector<16x16x64xf32> to vector<16x16x64xbf16>
    %c0_7 = arith.constant 0 : index
    %c1 = arith.constant 1 : index
    %c1_8 = arith.constant 1 : index
    %c0_9 = arith.constant 0 : index
    %5 = vector.load %arg5[%c0_7, %c1, %c1_8, %c0_9] : memref<2x18x18x64xbf16, #tpu.memory_space<vmem>>, vector<1x16x16x64xbf16>
    %6 = vector.shape_cast %5 : vector<1x16x16x64xbf16> to vector<16x16x64xbf16>
    %7 = vector.shape_cast %4 : vector<16x16x64xbf16> to vector<1x16x16x64xbf16>
    tpu.vector_store %arg5[%c0_7, %c1, %c1_8, %c0_9], %7 {strides = array<i32>} : memref<2x18x18x64xbf16, #tpu.memory_space<vmem>>, vector<1x16x16x64xbf16>,
    %c0_i32 = arith.constant 0 : i32
    %c8_i32 = arith.constant 8 : i32
    %8 = arith.addi %c0_i32, %c8_i32 : i32
    %c1_i32 = arith.constant 1 : i32
    scf.for %arg6 = %c0_i32 to %8 step %c1_i32  : i32 {
      %c2_i32 = arith.constant 2 : i32
      %78 = arith.muli %c2_i32, %arg6 : i32
      %cst_56 = arith.constant 0.000000e+00 : f32
      %79 = vector.broadcast %cst_56 : f32 to vector<256x64xf32>
      %c0_57 = arith.constant 0 : index
      %c0_58 = arith.constant 0 : index
      %c0_59 = arith.constant 0 : index
      %c0_60 = arith.constant 0 : index
      %80 = vector.load %arg5[%c0_57, %c0_58, %c0_59, %c0_60] : memref<2x18x18x64xbf16, #tpu.memory_space<vmem>>, vector<1x18x16x64xbf16>
      %81 = vector.shape_cast %80 : vector<1x18x16x64xbf16> to vector<18x16x64xbf16>
      %82 = vector.extract_strided_slice %81 {offsets = [0, 0, 0], sizes = [16, 16, 64], strides = [1, 1, 1]} : vector<18x16x64xbf16> to vector<16x16x64xbf16>
      %83 = vector.shape_cast %82 : vector<16x16x64xbf16> to vector<256x64xbf16>
      %c9_i32 = arith.constant 9 : i32
      %84 = arith.muli %78, %c9_i32 : i32
      %c0_i32_61 = arith.constant 0 : i32
      %85 = arith.addi %84, %c0_i32_61 : i32
      %c0_i32_62 = arith.constant 0 : i32
      %86 = arith.addi %85, %c0_i32_62 : i32
      %87 = arith.index_cast %86 : i32 to index
      %c0_63 = arith.constant 0 : index
      %c0_64 = arith.constant 0 : index
      %88 = vector.load %arg2[%87, %c0_63, %c0_64] : memref<153x64x64xbf16, #tpu.memory_space<vmem>>, vector<1x64x64xbf16>
      %89 = vector.shape_cast %88 : vector<1x64x64xbf16> to vector<64x64xbf16>
      %cst_65 = arith.constant dense<0.000000e+00> : vector<256x64xf32>
      %90 = tpu.matmul %83, %89, %cst_65 {dimension_numbers = #tpu.dot_dimension_numbers<[1], [0], [0], [1], [0, 0, 1, 1], [], []>} : vector<256x64xbf16>, vector<64x64xbf16>, vector<256x64xf32> -> vector<256x64xf32>
      %91 = arith.addf %79, %90 : vector<256x64xf32>
      %92 = vector.extract_strided_slice %81 {offsets = [1, 0, 0], sizes = [16, 16, 64], strides = [1, 1, 1]} : vector<18x16x64xbf16> to vector<16x16x64xbf16>
      %93 = vector.shape_cast %92 : vector<16x16x64xbf16> to vector<256x64xbf16>
      %c9_i32_66 = arith.constant 9 : i32
      %94 = arith.muli %78, %c9_i32_66 : i32
      %c3_i32 = arith.constant 3 : i32
      %95 = arith.addi %94, %c3_i32 : i32
      %c0_i32_67 = arith.constant 0 : i32
      %96 = arith.addi %95, %c0_i32_67 : i32
      %97 = arith.index_cast %96 : i32 to index
      %c0_68 = arith.constant 0 : index
      %c0_69 = arith.constant 0 : index
      %98 = vector.load %arg2[%97, %c0_68, %c0_69] : memref<153x64x64xbf16, #tpu.memory_space<vmem>>, vector<1x64x64xbf16>
      %99 = vector.shape_cast %98 : vector<1x64x64xbf16> to vector<64x64xbf16>
      %cst_70 = arith.constant dense<0.000000e+00> : vector<256x64xf32>
      %100 = tpu.matmul %93, %99, %cst_70 {dimension_numbers = #tpu.dot_dimension_numbers<[1], [0], [0], [1], [0, 0, 1, 1], [], []>} : vector<256x64xbf16>, vector<64x64xbf16>, vector<256x64xf32> -> vector<256x64xf32>
      %101 = arith.addf %91, %100 : vector<256x64xf32>
      %102 = vector.extract_strided_slice %81 {offsets = [2, 0, 0], sizes = [16, 16, 64], strides = [1, 1, 1]} : vector<18x16x64xbf16> to vector<16x16x64xbf16>
      %103 = vector.shape_cast %102 : vector<16x16x64xbf16> to vector<256x64xbf16>
      %c9_i32_71 = arith.constant 9 : i32
      %104 = arith.muli %78, %c9_i32_71 : i32
      %c6_i32 = arith.constant 6 : i32
      %105 = arith.addi %104, %c6_i32 : i32
      %c0_i32_72 = arith.constant 0 : i32
      %106 = arith.addi %105, %c0_i32_72 : i32
      %107 = arith.index_cast %106 : i32 to index
      %c0_73 = arith.constant 0 : index
      %c0_74 = arith.constant 0 : index
      %108 = vector.load %arg2[%107, %c0_73, %c0_74] : memref<153x64x64xbf16, #tpu.memory_space<vmem>>, vector<1x64x64xbf16>
      %109 = vector.shape_cast %108 : vector<1x64x64xbf16> to vector<64x64xbf16>
      %cst_75 = arith.constant dense<0.000000e+00> : vector<256x64xf32>
      %110 = tpu.matmul %103, %109, %cst_75 {dimension_numbers = #tpu.dot_dimension_numbers<[1], [0], [0], [1], [0, 0, 1, 1], [], []>} : vector<256x64xbf16>, vector<64x64xbf16>, vector<256x64xf32> -> vector<256x64xf32>
      %111 = arith.addf %101, %110 : vector<256x64xf32>
      %c0_76 = arith.constant 0 : index
      %c0_77 = arith.constant 0 : index
      %c1_78 = arith.constant 1 : index
      %c0_79 = arith.constant 0 : index
      %112 = vector.load %arg5[%c0_76, %c0_77, %c1_78, %c0_79] : memref<2x18x18x64xbf16, #tpu.memory_space<vmem>>, vector<1x18x16x64xbf16>
      %113 = vector.shape_cast %112 : vector<1x18x16x64xbf16> to vector<18x16x64xbf16>
      %114 = vector.extract_strided_slice %113 {offsets = [0, 0, 0], sizes = [16, 16, 64], strides = [1, 1, 1]} : vector<18x16x64xbf16> to vector<16x16x64xbf16>
      %115 = vector.shape_cast %114 : vector<16x16x64xbf16> to vector<256x64xbf16>
      %c9_i32_80 = arith.constant 9 : i32
      %116 = arith.muli %78, %c9_i32_80 : i32
      %c0_i32_81 = arith.constant 0 : i32
      %117 = arith.addi %116, %c0_i32_81 : i32
      %c1_i32_82 = arith.constant 1 : i32
      %118 = arith.addi %117, %c1_i32_82 : i32
      %119 = arith.index_cast %118 : i32 to index
      %c0_83 = arith.constant 0 : index
      %c0_84 = arith.constant 0 : index
      %120 = vector.load %arg2[%119, %c0_83, %c0_84] : memref<153x64x64xbf16, #tpu.memory_space<vmem>>, vector<1x64x64xbf16>
      %121 = vector.shape_cast %120 : vector<1x64x64xbf16> to vector<64x64xbf16>
      %cst_85 = arith.constant dense<0.000000e+00> : vector<256x64xf32>
      %122 = tpu.matmul %115, %121, %cst_85 {dimension_numbers = #tpu.dot_dimension_numbers<[1], [0], [0], [1], [0, 0, 1, 1], [], []>} : vector<256x64xbf16>, vector<64x64xbf16>, vector<256x64xf32> -> vector<256x64xf32>
      %123 = arith.addf %111, %122 : vector<256x64xf32>
      %124 = vector.extract_strided_slice %113 {offsets = [1, 0, 0], sizes = [16, 16, 64], strides = [1, 1, 1]} : vector<18x16x64xbf16> to vector<16x16x64xbf16>
      %125 = vector.shape_cast %124 : vector<16x16x64xbf16> to vector<256x64xbf16>
      %c9_i32_86 = arith.constant 9 : i32
      %126 = arith.muli %78, %c9_i32_86 : i32
      %c3_i32_87 = arith.constant 3 : i32
      %127 = arith.addi %126, %c3_i32_87 : i32
      %c1_i32_88 = arith.constant 1 : i32
      %128 = arith.addi %127, %c1_i32_88 : i32
      %129 = arith.index_cast %128 : i32 to index
      %c0_89 = arith.constant 0 : index
      %c0_90 = arith.constant 0 : index
      %130 = vector.load %arg2[%129, %c0_89, %c0_90] : memref<153x64x64xbf16, #tpu.memory_space<vmem>>, vector<1x64x64xbf16>
      %131 = vector.shape_cast %130 : vector<1x64x64xbf16> to vector<64x64xbf16>
      %cst_91 = arith.constant dense<0.000000e+00> : vector<256x64xf32>
      %132 = tpu.matmul %125, %131, %cst_91 {dimension_numbers = #tpu.dot_dimension_numbers<[1], [0], [0], [1], [0, 0, 1, 1], [], []>} : vector<256x64xbf16>, vector<64x64xbf16>, vector<256x64xf32> -> vector<256x64xf32>
      %133 = arith.addf %123, %132 : vector<256x64xf32>
      %134 = vector.extract_strided_slice %113 {offsets = [2, 0, 0], sizes = [16, 16, 64], strides = [1, 1, 1]} : vector<18x16x64xbf16> to vector<16x16x64xbf16>
      %135 = vector.shape_cast %134 : vector<16x16x64xbf16> to vector<256x64xbf16>
      %c9_i32_92 = arith.constant 9 : i32
      %136 = arith.muli %78, %c9_i32_92 : i32
      %c6_i32_93 = arith.constant 6 : i32
      %137 = arith.addi %136, %c6_i32_93 : i32
      %c1_i32_94 = arith.constant 1 : i32
      %138 = arith.addi %137, %c1_i32_94 : i32
      %139 = arith.index_cast %138 : i32 to index
      %c0_95 = arith.constant 0 : index
      %c0_96 = arith.constant 0 : index
      %140 = vector.load %arg2[%139, %c0_95, %c0_96] : memref<153x64x64xbf16, #tpu.memory_space<vmem>>, vector<1x64x64xbf16>
      %141 = vector.shape_cast %140 : vector<1x64x64xbf16> to vector<64x64xbf16>
      %cst_97 = arith.constant dense<0.000000e+00> : vector<256x64xf32>
      %142 = tpu.matmul %135, %141, %cst_97 {dimension_numbers = #tpu.dot_dimension_numbers<[1], [0], [0], [1], [0, 0, 1, 1], [], []>} : vector<256x64xbf16>, vector<64x64xbf16>, vector<256x64xf32> -> vector<256x64xf32>
      %143 = arith.addf %133, %142 : vector<256x64xf32>
      %c0_98 = arith.constant 0 : index
      %c0_99 = arith.constant 0 : index
      %c2_100 = arith.constant 2 : index
      %c0_101 = arith.constant 0 : index
      %144 = vector.load %arg5[%c0_98, %c0_99, %c2_100, %c0_101] : memref<2x18x18x64xbf16, #tpu.memory_space<vmem>>, vector<1x18x16x64xbf16>
      %145 = vector.shape_cast %144 : vector<1x18x16x64xbf16> to vector<18x16x64xbf16>
      %146 = vector.extract_strided_slice %145 {offsets = [0, 0, 0], sizes = [16, 16, 64], strides = [1, 1, 1]} : vector<18x16x64xbf16> to vector<16x16x64xbf16>
      %147 = vector.shape_cast %146 : vector<16x16x64xbf16> to vector<256x64xbf16>
      %c9_i32_102 = arith.constant 9 : i32
      %148 = arith.muli %78, %c9_i32_102 : i32
      %c0_i32_103 = arith.constant 0 : i32
      %149 = arith.addi %148, %c0_i32_103 : i32
      %c2_i32_104 = arith.constant 2 : i32
      %150 = arith.addi %149, %c2_i32_104 : i32
      %151 = arith.index_cast %150 : i32 to index
      %c0_105 = arith.constant 0 : index
      %c0_106 = arith.constant 0 : index
      %152 = vector.load %arg2[%151, %c0_105, %c0_106] : memref<153x64x64xbf16, #tpu.memory_space<vmem>>, vector<1x64x64xbf16>
      %153 = vector.shape_cast %152 : vector<1x64x64xbf16> to vector<64x64xbf16>
      %cst_107 = arith.constant dense<0.000000e+00> : vector<256x64xf32>
      %154 = tpu.matmul %147, %153, %cst_107 {dimension_numbers = #tpu.dot_dimension_numbers<[1], [0], [0], [1], [0, 0, 1, 1], [], []>} : vector<256x64xbf16>, vector<64x64xbf16>, vector<256x64xf32> -> vector<256x64xf32>
      %155 = arith.addf %143, %154 : vector<256x64xf32>
      %156 = vector.extract_strided_slice %145 {offsets = [1, 0, 0], sizes = [16, 16, 64], strides = [1, 1, 1]} : vector<18x16x64xbf16> to vector<16x16x64xbf16>
      %157 = vector.shape_cast %156 : vector<16x16x64xbf16> to vector<256x64xbf16>
      %c9_i32_108 = arith.constant 9 : i32
      %158 = arith.muli %78, %c9_i32_108 : i32
      %c3_i32_109 = arith.constant 3 : i32
      %159 = arith.addi %158, %c3_i32_109 : i32
      %c2_i32_110 = arith.constant 2 : i32
      %160 = arith.addi %159, %c2_i32_110 : i32
      %161 = arith.index_cast %160 : i32 to index
      %c0_111 = arith.constant 0 : index
      %c0_112 = arith.constant 0 : index
      %162 = vector.load %arg2[%161, %c0_111, %c0_112] : memref<153x64x64xbf16, #tpu.memory_space<vmem>>, vector<1x64x64xbf16>
      %163 = vector.shape_cast %162 : vector<1x64x64xbf16> to vector<64x64xbf16>
      %cst_113 = arith.constant dense<0.000000e+00> : vector<256x64xf32>
      %164 = tpu.matmul %157, %163, %cst_113 {dimension_numbers = #tpu.dot_dimension_numbers<[1], [0], [0], [1], [0, 0, 1, 1], [], []>} : vector<256x64xbf16>, vector<64x64xbf16>, vector<256x64xf32> -> vector<256x64xf32>
      %165 = arith.addf %155, %164 : vector<256x64xf32>
      %166 = vector.extract_strided_slice %145 {offsets = [2, 0, 0], sizes = [16, 16, 64], strides = [1, 1, 1]} : vector<18x16x64xbf16> to vector<16x16x64xbf16>
      %167 = vector.shape_cast %166 : vector<16x16x64xbf16> to vector<256x64xbf16>
      %c9_i32_114 = arith.constant 9 : i32
      %168 = arith.muli %78, %c9_i32_114 : i32
      %c6_i32_115 = arith.constant 6 : i32
      %169 = arith.addi %168, %c6_i32_115 : i32
      %c2_i32_116 = arith.constant 2 : i32
      %170 = arith.addi %169, %c2_i32_116 : i32
      %171 = arith.index_cast %170 : i32 to index
      %c0_117 = arith.constant 0 : index
      %c0_118 = arith.constant 0 : index
      %172 = vector.load %arg2[%171, %c0_117, %c0_118] : memref<153x64x64xbf16, #tpu.memory_space<vmem>>, vector<1x64x64xbf16>
      %173 = vector.shape_cast %172 : vector<1x64x64xbf16> to vector<64x64xbf16>
      %cst_119 = arith.constant dense<0.000000e+00> : vector<256x64xf32>
      %174 = tpu.matmul %167, %173, %cst_119 {dimension_numbers = #tpu.dot_dimension_numbers<[1], [0], [0], [1], [0, 0, 1, 1], [], []>} : vector<256x64xbf16>, vector<64x64xbf16>, vector<256x64xf32> -> vector<256x64xf32>
      %175 = arith.addf %165, %174 : vector<256x64xf32>
      %176 = arith.index_cast %78 : i32 to index
      %c0_120 = arith.constant 0 : index
      %c0_121 = arith.constant 0 : index
      %177 = vector.load %arg3[%176, %c0_120, %c0_121] : memref<17x1x64xf32, #tpu.memory_space<vmem>>, vector<1x1x64xf32>
      %178 = vector.shape_cast %177 : vector<1x1x64xf32> to vector<1x64xf32>
      %179 = vector.broadcast %178 : vector<1x64xf32> to vector<256x64xf32>
      %180 = arith.addf %175, %179 : vector<256x64xf32>
      %cst_122 = arith.constant 0.000000e+00 : f32
      %181 = vector.broadcast %cst_122 : f32 to vector<256x64xf32>
      %182 = arith.maximumf %180, %181 : vector<256x64xf32>
      %183 = vector.shape_cast %182 : vector<256x64xf32> to vector<16x16x64xf32>
      %184 = arith.truncf %183 : vector<16x16x64xf32> to vector<16x16x64xbf16>
      %c1_123 = arith.constant 1 : index
      %c1_124 = arith.constant 1 : index
      %c1_125 = arith.constant 1 : index
      %c0_126 = arith.constant 0 : index
      %185 = vector.load %arg5[%c1_123, %c1_124, %c1_125, %c0_126] : memref<2x18x18x64xbf16, #tpu.memory_space<vmem>>, vector<1x16x16x64xbf16>
      %186 = vector.shape_cast %185 : vector<1x16x16x64xbf16> to vector<16x16x64xbf16>
      %187 = vector.shape_cast %184 : vector<16x16x64xbf16> to vector<1x16x16x64xbf16>
      tpu.vector_store %arg5[%c1_123, %c1_124, %c1_125, %c0_126], %187 {strides = array<i32>} : memref<2x18x18x64xbf16, #tpu.memory_space<vmem>>, vector<1x16x16x64xbf16>,
      %c2_i32_127 = arith.constant 2 : i32
      %188 = arith.muli %c2_i32_127, %arg6 : i32
      %c1_i32_128 = arith.constant 1 : i32
      %189 = arith.addi %188, %c1_i32_128 : i32
      %cst_129 = arith.constant 0.000000e+00 : f32
      %190 = vector.broadcast %cst_129 : f32 to vector<256x64xf32>
      %c1_130 = arith.constant 1 : index
      %c0_131 = arith.constant 0 : index
      %c0_132 = arith.constant 0 : index
      %c0_133 = arith.constant 0 : index
      %191 = vector.load %arg5[%c1_130, %c0_131, %c0_132, %c0_133] : memref<2x18x18x64xbf16, #tpu.memory_space<vmem>>, vector<1x18x16x64xbf16>
      %192 = vector.shape_cast %191 : vector<1x18x16x64xbf16> to vector<18x16x64xbf16>
      %193 = vector.extract_strided_slice %192 {offsets = [0, 0, 0], sizes = [16, 16, 64], strides = [1, 1, 1]} : vector<18x16x64xbf16> to vector<16x16x64xbf16>
      %194 = vector.shape_cast %193 : vector<16x16x64xbf16> to vector<256x64xbf16>
      %c9_i32_134 = arith.constant 9 : i32
      %195 = arith.muli %189, %c9_i32_134 : i32
      %c0_i32_135 = arith.constant 0 : i32
      %196 = arith.addi %195, %c0_i32_135 : i32
      %c0_i32_136 = arith.constant 0 : i32
      %197 = arith.addi %196, %c0_i32_136 : i32
      %198 = arith.index_cast %197 : i32 to index
      %c0_137 = arith.constant 0 : index
      %c0_138 = arith.constant 0 : index
      %199 = vector.load %arg2[%198, %c0_137, %c0_138] : memref<153x64x64xbf16, #tpu.memory_space<vmem>>, vector<1x64x64xbf16>
      %200 = vector.shape_cast %199 : vector<1x64x64xbf16> to vector<64x64xbf16>
      %cst_139 = arith.constant dense<0.000000e+00> : vector<256x64xf32>
      %201 = tpu.matmul %194, %200, %cst_139 {dimension_numbers = #tpu.dot_dimension_numbers<[1], [0], [0], [1], [0, 0, 1, 1], [], []>} : vector<256x64xbf16>, vector<64x64xbf16>, vector<256x64xf32> -> vector<256x64xf32>
      %202 = arith.addf %190, %201 : vector<256x64xf32>
      %203 = vector.extract_strided_slice %192 {offsets = [1, 0, 0], sizes = [16, 16, 64], strides = [1, 1, 1]} : vector<18x16x64xbf16> to vector<16x16x64xbf16>
      %204 = vector.shape_cast %203 : vector<16x16x64xbf16> to vector<256x64xbf16>
      %c9_i32_140 = arith.constant 9 : i32
      %205 = arith.muli %189, %c9_i32_140 : i32
      %c3_i32_141 = arith.constant 3 : i32
      %206 = arith.addi %205, %c3_i32_141 : i32
      %c0_i32_142 = arith.constant 0 : i32
      %207 = arith.addi %206, %c0_i32_142 : i32
      %208 = arith.index_cast %207 : i32 to index
      %c0_143 = arith.constant 0 : index
      %c0_144 = arith.constant 0 : index
      %209 = vector.load %arg2[%208, %c0_143, %c0_144] : memref<153x64x64xbf16, #tpu.memory_space<vmem>>, vector<1x64x64xbf16>
      %210 = vector.shape_cast %209 : vector<1x64x64xbf16> to vector<64x64xbf16>
      %cst_145 = arith.constant dense<0.000000e+00> : vector<256x64xf32>
      %211 = tpu.matmul %204, %210, %cst_145 {dimension_numbers = #tpu.dot_dimension_numbers<[1], [0], [0], [1], [0, 0, 1, 1], [], []>} : vector<256x64xbf16>, vector<64x64xbf16>, vector<256x64xf32> -> vector<256x64xf32>
      %212 = arith.addf %202, %211 : vector<256x64xf32>
      %213 = vector.extract_strided_slice %192 {offsets = [2, 0, 0], sizes = [16, 16, 64], strides = [1, 1, 1]} : vector<18x16x64xbf16> to vector<16x16x64xbf16>
      %214 = vector.shape_cast %213 : vector<16x16x64xbf16> to vector<256x64xbf16>
      %c9_i32_146 = arith.constant 9 : i32
      %215 = arith.muli %189, %c9_i32_146 : i32
      %c6_i32_147 = arith.constant 6 : i32
      %216 = arith.addi %215, %c6_i32_147 : i32
      %c0_i32_148 = arith.constant 0 : i32
      %217 = arith.addi %216, %c0_i32_148 : i32
      %218 = arith.index_cast %217 : i32 to index
      %c0_149 = arith.constant 0 : index
      %c0_150 = arith.constant 0 : index
      %219 = vector.load %arg2[%218, %c0_149, %c0_150] : memref<153x64x64xbf16, #tpu.memory_space<vmem>>, vector<1x64x64xbf16>
      %220 = vector.shape_cast %219 : vector<1x64x64xbf16> to vector<64x64xbf16>
      %cst_151 = arith.constant dense<0.000000e+00> : vector<256x64xf32>
      %221 = tpu.matmul %214, %220, %cst_151 {dimension_numbers = #tpu.dot_dimension_numbers<[1], [0], [0], [1], [0, 0, 1, 1], [], []>} : vector<256x64xbf16>, vector<64x64xbf16>, vector<256x64xf32> -> vector<256x64xf32>
      %222 = arith.addf %212, %221 : vector<256x64xf32>
      %c1_152 = arith.constant 1 : index
      %c0_153 = arith.constant 0 : index
      %c1_154 = arith.constant 1 : index
      %c0_155 = arith.constant 0 : index
      %223 = vector.load %arg5[%c1_152, %c0_153, %c1_154, %c0_155] : memref<2x18x18x64xbf16, #tpu.memory_space<vmem>>, vector<1x18x16x64xbf16>
      %224 = vector.shape_cast %223 : vector<1x18x16x64xbf16> to vector<18x16x64xbf16>
      %225 = vector.extract_strided_slice %224 {offsets = [0, 0, 0], sizes = [16, 16, 64], strides = [1, 1, 1]} : vector<18x16x64xbf16> to vector<16x16x64xbf16>
      %226 = vector.shape_cast %225 : vector<16x16x64xbf16> to vector<256x64xbf16>
      %c9_i32_156 = arith.constant 9 : i32
      %227 = arith.muli %189, %c9_i32_156 : i32
      %c0_i32_157 = arith.constant 0 : i32
      %228 = arith.addi %227, %c0_i32_157 : i32
      %c1_i32_158 = arith.constant 1 : i32
      %229 = arith.addi %228, %c1_i32_158 : i32
      %230 = arith.index_cast %229 : i32 to index
      %c0_159 = arith.constant 0 : index
      %c0_160 = arith.constant 0 : index
      %231 = vector.load %arg2[%230, %c0_159, %c0_160] : memref<153x64x64xbf16, #tpu.memory_space<vmem>>, vector<1x64x64xbf16>
      %232 = vector.shape_cast %231 : vector<1x64x64xbf16> to vector<64x64xbf16>
      %cst_161 = arith.constant dense<0.000000e+00> : vector<256x64xf32>
      %233 = tpu.matmul %226, %232, %cst_161 {dimension_numbers = #tpu.dot_dimension_numbers<[1], [0], [0], [1], [0, 0, 1, 1], [], []>} : vector<256x64xbf16>, vector<64x64xbf16>, vector<256x64xf32> -> vector<256x64xf32>
      %234 = arith.addf %222, %233 : vector<256x64xf32>
      %235 = vector.extract_strided_slice %224 {offsets = [1, 0, 0], sizes = [16, 16, 64], strides = [1, 1, 1]} : vector<18x16x64xbf16> to vector<16x16x64xbf16>
      %236 = vector.shape_cast %235 : vector<16x16x64xbf16> to vector<256x64xbf16>
      %c9_i32_162 = arith.constant 9 : i32
      %237 = arith.muli %189, %c9_i32_162 : i32
      %c3_i32_163 = arith.constant 3 : i32
      %238 = arith.addi %237, %c3_i32_163 : i32
      %c1_i32_164 = arith.constant 1 : i32
      %239 = arith.addi %238, %c1_i32_164 : i32
      %240 = arith.index_cast %239 : i32 to index
      %c0_165 = arith.constant 0 : index
      %c0_166 = arith.constant 0 : index
      %241 = vector.load %arg2[%240, %c0_165, %c0_166] : memref<153x64x64xbf16, #tpu.memory_space<vmem>>, vector<1x64x64xbf16>
      %242 = vector.shape_cast %241 : vector<1x64x64xbf16> to vector<64x64xbf16>
      %cst_167 = arith.constant dense<0.000000e+00> : vector<256x64xf32>
      %243 = tpu.matmul %236, %242, %cst_167 {dimension_numbers = #tpu.dot_dimension_numbers<[1], [0], [0], [1], [0, 0, 1, 1], [], []>} : vector<256x64xbf16>, vector<64x64xbf16>, vector<256x64xf32> -> vector<256x64xf32>
      %244 = arith.addf %234, %243 : vector<256x64xf32>
      %245 = vector.extract_strided_slice %224 {offsets = [2, 0, 0], sizes = [16, 16, 64], strides = [1, 1, 1]} : vector<18x16x64xbf16> to vector<16x16x64xbf16>
      %246 = vector.shape_cast %245 : vector<16x16x64xbf16> to vector<256x64xbf16>
      %c9_i32_168 = arith.constant 9 : i32
      %247 = arith.muli %189, %c9_i32_168 : i32
      %c6_i32_169 = arith.constant 6 : i32
      %248 = arith.addi %247, %c6_i32_169 : i32
      %c1_i32_170 = arith.constant 1 : i32
      %249 = arith.addi %248, %c1_i32_170 : i32
      %250 = arith.index_cast %249 : i32 to index
      %c0_171 = arith.constant 0 : index
      %c0_172 = arith.constant 0 : index
      %251 = vector.load %arg2[%250, %c0_171, %c0_172] : memref<153x64x64xbf16, #tpu.memory_space<vmem>>, vector<1x64x64xbf16>
      %252 = vector.shape_cast %251 : vector<1x64x64xbf16> to vector<64x64xbf16>
      %cst_173 = arith.constant dense<0.000000e+00> : vector<256x64xf32>
      %253 = tpu.matmul %246, %252, %cst_173 {dimension_numbers = #tpu.dot_dimension_numbers<[1], [0], [0], [1], [0, 0, 1, 1], [], []>} : vector<256x64xbf16>, vector<64x64xbf16>, vector<256x64xf32> -> vector<256x64xf32>
      %254 = arith.addf %244, %253 : vector<256x64xf32>
      %c1_174 = arith.constant 1 : index
      %c0_175 = arith.constant 0 : index
      %c2_176 = arith.constant 2 : index
      %c0_177 = arith.constant 0 : index
      %255 = vector.load %arg5[%c1_174, %c0_175, %c2_176, %c0_177] : memref<2x18x18x64xbf16, #tpu.memory_space<vmem>>, vector<1x18x16x64xbf16>
      %256 = vector.shape_cast %255 : vector<1x18x16x64xbf16> to vector<18x16x64xbf16>
      %257 = vector.extract_strided_slice %256 {offsets = [0, 0, 0], sizes = [16, 16, 64], strides = [1, 1, 1]} : vector<18x16x64xbf16> to vector<16x16x64xbf16>
      %258 = vector.shape_cast %257 : vector<16x16x64xbf16> to vector<256x64xbf16>
      %c9_i32_178 = arith.constant 9 : i32
      %259 = arith.muli %189, %c9_i32_178 : i32
      %c0_i32_179 = arith.constant 0 : i32
      %260 = arith.addi %259, %c0_i32_179 : i32
      %c2_i32_180 = arith.constant 2 : i32
      %261 = arith.addi %260, %c2_i32_180 : i32
      %262 = arith.index_cast %261 : i32 to index
      %c0_181 = arith.constant 0 : index
      %c0_182 = arith.constant 0 : index
      %263 = vector.load %arg2[%262, %c0_181, %c0_182] : memref<153x64x64xbf16, #tpu.memory_space<vmem>>, vector<1x64x64xbf16>
      %264 = vector.shape_cast %263 : vector<1x64x64xbf16> to vector<64x64xbf16>
      %cst_183 = arith.constant dense<0.000000e+00> : vector<256x64xf32>
      %265 = tpu.matmul %258, %264, %cst_183 {dimension_numbers = #tpu.dot_dimension_numbers<[1], [0], [0], [1], [0, 0, 1, 1], [], []>} : vector<256x64xbf16>, vector<64x64xbf16>, vector<256x64xf32> -> vector<256x64xf32>
      %266 = arith.addf %254, %265 : vector<256x64xf32>
      %267 = vector.extract_strided_slice %256 {offsets = [1, 0, 0], sizes = [16, 16, 64], strides = [1, 1, 1]} : vector<18x16x64xbf16> to vector<16x16x64xbf16>
      %268 = vector.shape_cast %267 : vector<16x16x64xbf16> to vector<256x64xbf16>
      %c9_i32_184 = arith.constant 9 : i32
      %269 = arith.muli %189, %c9_i32_184 : i32
      %c3_i32_185 = arith.constant 3 : i32
      %270 = arith.addi %269, %c3_i32_185 : i32
      %c2_i32_186 = arith.constant 2 : i32
      %271 = arith.addi %270, %c2_i32_186 : i32
      %272 = arith.index_cast %271 : i32 to index
      %c0_187 = arith.constant 0 : index
      %c0_188 = arith.constant 0 : index
      %273 = vector.load %arg2[%272, %c0_187, %c0_188] : memref<153x64x64xbf16, #tpu.memory_space<vmem>>, vector<1x64x64xbf16>
      %274 = vector.shape_cast %273 : vector<1x64x64xbf16> to vector<64x64xbf16>
      %cst_189 = arith.constant dense<0.000000e+00> : vector<256x64xf32>
      %275 = tpu.matmul %268, %274, %cst_189 {dimension_numbers = #tpu.dot_dimension_numbers<[1], [0], [0], [1], [0, 0, 1, 1], [], []>} : vector<256x64xbf16>, vector<64x64xbf16>, vector<256x64xf32> -> vector<256x64xf32>
      %276 = arith.addf %266, %275 : vector<256x64xf32>
      %277 = vector.extract_strided_slice %256 {offsets = [2, 0, 0], sizes = [16, 16, 64], strides = [1, 1, 1]} : vector<18x16x64xbf16> to vector<16x16x64xbf16>
      %278 = vector.shape_cast %277 : vector<16x16x64xbf16> to vector<256x64xbf16>
      %c9_i32_190 = arith.constant 9 : i32
      %279 = arith.muli %189, %c9_i32_190 : i32
      %c6_i32_191 = arith.constant 6 : i32
      %280 = arith.addi %279, %c6_i32_191 : i32
      %c2_i32_192 = arith.constant 2 : i32
      %281 = arith.addi %280, %c2_i32_192 : i32
      %282 = arith.index_cast %281 : i32 to index
      %c0_193 = arith.constant 0 : index
      %c0_194 = arith.constant 0 : index
      %283 = vector.load %arg2[%282, %c0_193, %c0_194] : memref<153x64x64xbf16, #tpu.memory_space<vmem>>, vector<1x64x64xbf16>
      %284 = vector.shape_cast %283 : vector<1x64x64xbf16> to vector<64x64xbf16>
      %cst_195 = arith.constant dense<0.000000e+00> : vector<256x64xf32>
      %285 = tpu.matmul %278, %284, %cst_195 {dimension_numbers = #tpu.dot_dimension_numbers<[1], [0], [0], [1], [0, 0, 1, 1], [], []>} : vector<256x64xbf16>, vector<64x64xbf16>, vector<256x64xf32> -> vector<256x64xf32>
      %286 = arith.addf %276, %285 : vector<256x64xf32>
      %287 = arith.index_cast %189 : i32 to index
      %c0_196 = arith.constant 0 : index
      %c0_197 = arith.constant 0 : index
      %288 = vector.load %arg3[%287, %c0_196, %c0_197] : memref<17x1x64xf32, #tpu.memory_space<vmem>>, vector<1x1x64xf32>
      %289 = vector.shape_cast %288 : vector<1x1x64xf32> to vector<1x64xf32>
      %290 = vector.broadcast %289 : vector<1x64xf32> to vector<256x64xf32>
      %291 = arith.addf %286, %290 : vector<256x64xf32>
      %cst_198 = arith.constant 0.000000e+00 : f32
      %292 = vector.broadcast %cst_198 : f32 to vector<256x64xf32>
      %293 = arith.maximumf %291, %292 : vector<256x64xf32>
      %294 = vector.shape_cast %293 : vector<256x64xf32> to vector<16x16x64xf32>
      %295 = arith.truncf %294 : vector<16x16x64xf32> to vector<16x16x64xbf16>
      %c0_199 = arith.constant 0 : index
      %c1_200 = arith.constant 1 : index
      %c1_201 = arith.constant 1 : index
      %c0_202 = arith.constant 0 : index
      %296 = vector.load %arg5[%c0_199, %c1_200, %c1_201, %c0_202] : memref<2x18x18x64xbf16, #tpu.memory_space<vmem>>, vector<1x16x16x64xbf16>
      %297 = vector.shape_cast %296 : vector<1x16x16x64xbf16> to vector<16x16x64xbf16>
      %298 = vector.shape_cast %295 : vector<16x16x64xbf16> to vector<1x16x16x64xbf16>
      tpu.vector_store %arg5[%c0_199, %c1_200, %c1_201, %c0_202], %298 {strides = array<i32>} : memref<2x18x18x64xbf16, #tpu.memory_space<vmem>>, vector<1x16x16x64xbf16>,
    }
    %c8_i32_10 = arith.constant 8 : i32
    %cst_11 = arith.constant 0.000000e+00 : f32
    %9 = vector.broadcast %cst_11 : f32 to vector<256x64xf32>
    %c0_12 = arith.constant 0 : index
    %c0_13 = arith.constant 0 : index
    %c0_14 = arith.constant 0 : index
    %c0_15 = arith.constant 0 : index
    %10 = vector.load %arg5[%c0_12, %c0_13, %c0_14, %c0_15] : memref<2x18x18x64xbf16, #tpu.memory_space<vmem>>, vector<1x18x16x64xbf16>
    %11 = vector.shape_cast %10 : vector<1x18x16x64xbf16> to vector<18x16x64xbf16>
    %12 = vector.extract_strided_slice %11 {offsets = [0, 0, 0], sizes = [16, 16, 64], strides = [1, 1, 1]} : vector<18x16x64xbf16> to vector<16x16x64xbf16>
    %13 = vector.shape_cast %12 : vector<16x16x64xbf16> to vector<256x64xbf16>
    %c144 = arith.constant 144 : index
    %c0_16 = arith.constant 0 : index
    %c0_17 = arith.constant 0 : index
    %14 = vector.load %arg2[%c144, %c0_16, %c0_17] : memref<153x64x64xbf16, #tpu.memory_space<vmem>>, vector<1x64x64xbf16>
    %15 = vector.shape_cast %14 : vector<1x64x64xbf16> to vector<64x64xbf16>
    %cst_18 = arith.constant dense<0.000000e+00> : vector<256x64xf32>
    %16 = tpu.matmul %13, %15, %cst_18 {dimension_numbers = #tpu.dot_dimension_numbers<[1], [0], [0], [1], [0, 0, 1, 1], [], []>} : vector<256x64xbf16>, vector<64x64xbf16>, vector<256x64xf32> -> vector<256x64xf32>
    %17 = arith.addf %9, %16 : vector<256x64xf32>
    %18 = vector.extract_strided_slice %11 {offsets = [1, 0, 0], sizes = [16, 16, 64], strides = [1, 1, 1]} : vector<18x16x64xbf16> to vector<16x16x64xbf16>
    %19 = vector.shape_cast %18 : vector<16x16x64xbf16> to vector<256x64xbf16>
    %c147 = arith.constant 147 : index
    %c0_19 = arith.constant 0 : index
    %c0_20 = arith.constant 0 : index
    %20 = vector.load %arg2[%c147, %c0_19, %c0_20] : memref<153x64x64xbf16, #tpu.memory_space<vmem>>, vector<1x64x64xbf16>
    %21 = vector.shape_cast %20 : vector<1x64x64xbf16> to vector<64x64xbf16>
    %cst_21 = arith.constant dense<0.000000e+00> : vector<256x64xf32>
    %22 = tpu.matmul %19, %21, %cst_21 {dimension_numbers = #tpu.dot_dimension_numbers<[1], [0], [0], [1], [0, 0, 1, 1], [], []>} : vector<256x64xbf16>, vector<64x64xbf16>, vector<256x64xf32> -> vector<256x64xf32>
    %23 = arith.addf %17, %22 : vector<256x64xf32>
    %24 = vector.extract_strided_slice %11 {offsets = [2, 0, 0], sizes = [16, 16, 64], strides = [1, 1, 1]} : vector<18x16x64xbf16> to vector<16x16x64xbf16>
    %25 = vector.shape_cast %24 : vector<16x16x64xbf16> to vector<256x64xbf16>
    %c150 = arith.constant 150 : index
    %c0_22 = arith.constant 0 : index
    %c0_23 = arith.constant 0 : index
    %26 = vector.load %arg2[%c150, %c0_22, %c0_23] : memref<153x64x64xbf16, #tpu.memory_space<vmem>>, vector<1x64x64xbf16>
    %27 = vector.shape_cast %26 : vector<1x64x64xbf16> to vector<64x64xbf16>
    %cst_24 = arith.constant dense<0.000000e+00> : vector<256x64xf32>
    %28 = tpu.matmul %25, %27, %cst_24 {dimension_numbers = #tpu.dot_dimension_numbers<[1], [0], [0], [1], [0, 0, 1, 1], [], []>} : vector<256x64xbf16>, vector<64x64xbf16>, vector<256x64xf32> -> vector<256x64xf32>
    %29 = arith.addf %23, %28 : vector<256x64xf32>
    %c0_25 = arith.constant 0 : index
    %c0_26 = arith.constant 0 : index
    %c1_27 = arith.constant 1 : index
    %c0_28 = arith.constant 0 : index
    %30 = vector.load %arg5[%c0_25, %c0_26, %c1_27, %c0_28] : memref<2x18x18x64xbf16, #tpu.memory_space<vmem>>, vector<1x18x16x64xbf16>
    %31 = vector.shape_cast %30 : vector<1x18x16x64xbf16> to vector<18x16x64xbf16>
    %32 = vector.extract_strided_slice %31 {offsets = [0, 0, 0], sizes = [16, 16, 64], strides = [1, 1, 1]} : vector<18x16x64xbf16> to vector<16x16x64xbf16>
    %33 = vector.shape_cast %32 : vector<16x16x64xbf16> to vector<256x64xbf16>
    %c145 = arith.constant 145 : index
    %c0_29 = arith.constant 0 : index
    %c0_30 = arith.constant 0 : index
    %34 = vector.load %arg2[%c145, %c0_29, %c0_30] : memref<153x64x64xbf16, #tpu.memory_space<vmem>>, vector<1x64x64xbf16>
    %35 = vector.shape_cast %34 : vector<1x64x64xbf16> to vector<64x64xbf16>
    %cst_31 = arith.constant dense<0.000000e+00> : vector<256x64xf32>
    %36 = tpu.matmul %33, %35, %cst_31 {dimension_numbers = #tpu.dot_dimension_numbers<[1], [0], [0], [1], [0, 0, 1, 1], [], []>} : vector<256x64xbf16>, vector<64x64xbf16>, vector<256x64xf32> -> vector<256x64xf32>
    %37 = arith.addf %29, %36 : vector<256x64xf32>
    %38 = vector.extract_strided_slice %31 {offsets = [1, 0, 0], sizes = [16, 16, 64], strides = [1, 1, 1]} : vector<18x16x64xbf16> to vector<16x16x64xbf16>
    %39 = vector.shape_cast %38 : vector<16x16x64xbf16> to vector<256x64xbf16>
    %c148 = arith.constant 148 : index
    %c0_32 = arith.constant 0 : index
    %c0_33 = arith.constant 0 : index
    %40 = vector.load %arg2[%c148, %c0_32, %c0_33] : memref<153x64x64xbf16, #tpu.memory_space<vmem>>, vector<1x64x64xbf16>
    %41 = vector.shape_cast %40 : vector<1x64x64xbf16> to vector<64x64xbf16>
    %cst_34 = arith.constant dense<0.000000e+00> : vector<256x64xf32>
    %42 = tpu.matmul %39, %41, %cst_34 {dimension_numbers = #tpu.dot_dimension_numbers<[1], [0], [0], [1], [0, 0, 1, 1], [], []>} : vector<256x64xbf16>, vector<64x64xbf16>, vector<256x64xf32> -> vector<256x64xf32>
    %43 = arith.addf %37, %42 : vector<256x64xf32>
    %44 = vector.extract_strided_slice %31 {offsets = [2, 0, 0], sizes = [16, 16, 64], strides = [1, 1, 1]} : vector<18x16x64xbf16> to vector<16x16x64xbf16>
    %45 = vector.shape_cast %44 : vector<16x16x64xbf16> to vector<256x64xbf16>
    %c151 = arith.constant 151 : index
    %c0_35 = arith.constant 0 : index
    %c0_36 = arith.constant 0 : index
    %46 = vector.load %arg2[%c151, %c0_35, %c0_36] : memref<153x64x64xbf16, #tpu.memory_space<vmem>>, vector<1x64x64xbf16>
    %47 = vector.shape_cast %46 : vector<1x64x64xbf16> to vector<64x64xbf16>
    %cst_37 = arith.constant dense<0.000000e+00> : vector<256x64xf32>
    %48 = tpu.matmul %45, %47, %cst_37 {dimension_numbers = #tpu.dot_dimension_numbers<[1], [0], [0], [1], [0, 0, 1, 1], [], []>} : vector<256x64xbf16>, vector<64x64xbf16>, vector<256x64xf32> -> vector<256x64xf32>
    %49 = arith.addf %43, %48 : vector<256x64xf32>
    %c0_38 = arith.constant 0 : index
    %c0_39 = arith.constant 0 : index
    %c2 = arith.constant 2 : index
    %c0_40 = arith.constant 0 : index
    %50 = vector.load %arg5[%c0_38, %c0_39, %c2, %c0_40] : memref<2x18x18x64xbf16, #tpu.memory_space<vmem>>, vector<1x18x16x64xbf16>
    %51 = vector.shape_cast %50 : vector<1x18x16x64xbf16> to vector<18x16x64xbf16>
    %52 = vector.extract_strided_slice %51 {offsets = [0, 0, 0], sizes = [16, 16, 64], strides = [1, 1, 1]} : vector<18x16x64xbf16> to vector<16x16x64xbf16>
    %53 = vector.shape_cast %52 : vector<16x16x64xbf16> to vector<256x64xbf16>
    %c146 = arith.constant 146 : index
    %c0_41 = arith.constant 0 : index
    %c0_42 = arith.constant 0 : index
    %54 = vector.load %arg2[%c146, %c0_41, %c0_42] : memref<153x64x64xbf16, #tpu.memory_space<vmem>>, vector<1x64x64xbf16>
    %55 = vector.shape_cast %54 : vector<1x64x64xbf16> to vector<64x64xbf16>
    %cst_43 = arith.constant dense<0.000000e+00> : vector<256x64xf32>
    %56 = tpu.matmul %53, %55, %cst_43 {dimension_numbers = #tpu.dot_dimension_numbers<[1], [0], [0], [1], [0, 0, 1, 1], [], []>} : vector<256x64xbf16>, vector<64x64xbf16>, vector<256x64xf32> -> vector<256x64xf32>
    %57 = arith.addf %49, %56 : vector<256x64xf32>
    %58 = vector.extract_strided_slice %51 {offsets = [1, 0, 0], sizes = [16, 16, 64], strides = [1, 1, 1]} : vector<18x16x64xbf16> to vector<16x16x64xbf16>
    %59 = vector.shape_cast %58 : vector<16x16x64xbf16> to vector<256x64xbf16>
    %c149 = arith.constant 149 : index
    %c0_44 = arith.constant 0 : index
    %c0_45 = arith.constant 0 : index
    %60 = vector.load %arg2[%c149, %c0_44, %c0_45] : memref<153x64x64xbf16, #tpu.memory_space<vmem>>, vector<1x64x64xbf16>
    %61 = vector.shape_cast %60 : vector<1x64x64xbf16> to vector<64x64xbf16>
    %cst_46 = arith.constant dense<0.000000e+00> : vector<256x64xf32>
    %62 = tpu.matmul %59, %61, %cst_46 {dimension_numbers = #tpu.dot_dimension_numbers<[1], [0], [0], [1], [0, 0, 1, 1], [], []>} : vector<256x64xbf16>, vector<64x64xbf16>, vector<256x64xf32> -> vector<256x64xf32>
    %63 = arith.addf %57, %62 : vector<256x64xf32>
    %64 = vector.extract_strided_slice %51 {offsets = [2, 0, 0], sizes = [16, 16, 64], strides = [1, 1, 1]} : vector<18x16x64xbf16> to vector<16x16x64xbf16>
    %65 = vector.shape_cast %64 : vector<16x16x64xbf16> to vector<256x64xbf16>
    %c152 = arith.constant 152 : index
    %c0_47 = arith.constant 0 : index
    %c0_48 = arith.constant 0 : index
    %66 = vector.load %arg2[%c152, %c0_47, %c0_48] : memref<153x64x64xbf16, #tpu.memory_space<vmem>>, vector<1x64x64xbf16>
    %67 = vector.shape_cast %66 : vector<1x64x64xbf16> to vector<64x64xbf16>
    %cst_49 = arith.constant dense<0.000000e+00> : vector<256x64xf32>
    %68 = tpu.matmul %65, %67, %cst_49 {dimension_numbers = #tpu.dot_dimension_numbers<[1], [0], [0], [1], [0, 0, 1, 1], [], []>} : vector<256x64xbf16>, vector<64x64xbf16>, vector<256x64xf32> -> vector<256x64xf32>
    %69 = arith.addf %63, %68 : vector<256x64xf32>
    %c16 = arith.constant 16 : index
    %c0_50 = arith.constant 0 : index
    %c0_51 = arith.constant 0 : index
    %70 = vector.load %arg3[%c16, %c0_50, %c0_51] : memref<17x1x64xf32, #tpu.memory_space<vmem>>, vector<1x1x64xf32>
    %71 = vector.shape_cast %70 : vector<1x1x64xf32> to vector<1x64xf32>
    %72 = vector.broadcast %71 : vector<1x64xf32> to vector<256x64xf32>
    %73 = arith.addf %69, %72 : vector<256x64xf32>
    %74 = vector.shape_cast %73 : vector<256x64xf32> to vector<16x16x64xf32>
    %c0_52 = arith.constant 0 : index
    %c0_53 = arith.constant 0 : index
    %c0_54 = arith.constant 0 : index
    %c0_55 = arith.constant 0 : index
    %75 = vector.load %arg4[%c0_52, %c0_53, %c0_54, %c0_55] : memref<1x16x16x64xf32, #tpu.memory_space<vmem>>, vector<1x16x16x64xf32>
    %76 = vector.shape_cast %75 : vector<1x16x16x64xf32> to vector<16x16x64xf32>
    %77 = vector.shape_cast %74 : vector<16x16x64xf32> to vector<1x16x16x64xf32>
    tpu.vector_store %arg4[%c0_52, %c0_53, %c0_54, %c0_55], %77 {strides = array<i32>} : memref<1x16x16x64xf32, #tpu.memory_space<vmem>>, vector<1x16x16x64xf32>,
    return
  }
  func.func @transform_0(%arg0: i32) -> (i32, i32, i32, i32) {
    %c0_i32 = arith.constant 0 : i32
    %c0_i32_0 = arith.constant 0 : i32
    %c0_i32_1 = arith.constant 0 : i32
    %c0_i32_2 = arith.constant 0 : i32
    return %arg0, %c0_i32, %c0_i32_0, %c0_i32_1 : i32, i32, i32, i32
  }
  func.func @transform_1(%arg0: i32) -> (i32, i32, i32) {
    %c0_i32 = arith.constant 0 : i32
    %c0_i32_0 = arith.constant 0 : i32
    %c0_i32_1 = arith.constant 0 : i32
    %c0_i32_2 = arith.constant 0 : i32
    return %c0_i32, %c0_i32_0, %c0_i32_1 : i32, i32, i32
  }
  func.func @transform_2(%arg0: i32) -> (i32, i32, i32) {
    %c0_i32 = arith.constant 0 : i32
    %c0_i32_0 = arith.constant 0 : i32
    %c0_i32_1 = arith.constant 0 : i32
    %c0_i32_2 = arith.constant 0 : i32
    return %c0_i32, %c0_i32_0, %c0_i32_1 : i32, i32, i32
  }
  func.func @transform_3(%arg0: i32) -> (i32, i32, i32, i32) {
    %c0_i32 = arith.constant 0 : i32
    %c0_i32_0 = arith.constant 0 : i32
    %c0_i32_1 = arith.constant 0 : i32
    %c0_i32_2 = arith.constant 0 : i32
    return %arg0, %c0_i32, %c0_i32_0, %c0_i32_1 : i32, i32, i32, i32
  }
}

</mosaic_0001>

<bundles_post_ra>
// kernel: _lambda_.1
= control target key start
LH: loop header
LB: loop body
LE: loop exit
PB: predicated region body
PF: predicated region fallthrough
CT: control target
= control target key end

     0   :  { %8 = vsyncpa [#allocation4], 0  ;;  %s18681_s0 = inlined_call_operand.vmem [shape: f32[2,16,16,64], index: 0, kind: input, shape index: {}]   ;;  %s18682_s1 = inlined_call_operand.hbm [shape: bf16[153,64,64], index: 1, kind: input, shape index: {}]   ;;  %s18683_s2 = inlined_call_operand.hbm [shape: f32[17,1,64], index: 2, kind: input, shape index: {}]   ;;  %s18684_s3 = inlined_call_operand.vmem [shape: f32[2,16,16,64], index: 3, kind: output, shape index: {}]  }
   0x1   :  { %9 = vsyncpa [#allocation6], 0  ;;  %s15416_s12 = smov 0  }
   0x2 LB: > { %s15389_s13 = smov [#allocation3]   ;;  %s15422_s15 = sadd.s32 4294967295, %s15383_s12   ;;  %s15383_s12 = sphi %s15416_s12, %s15_s12  }
   0x3   : > { %s126_s14 = sshll.u32 %s15389_s13, 4  ;;  %p11548_p0 = scmp.ge.s32.totalorder %s15383_s12, 1  ;;  %s127_s14 = int_to_ptr.vmem [resolvable:$true] %s126_s14 }
   0x4   : > { %p114_p1 = scmp.lt.s32.totalorder %s15383_s12, 3  ;;  %p18685_p3 = scmp.eq.s32.totalorder %s15422_s15, 0 }
   0x5   : > { %s15390_s17 = smov [#allocation5]   ;;  %s15309_s22 = scalar_lea.hbm %s18682_s1, 78336 }
   0x6   : > { %p15426_p2 = pnand %p11548_p0, %p114_p1  ;;  %s139_s18 = sshll.u32 %s15390_s17, 4  ;;  %s15439_s18 = int_to_ptr.vmem [resolvable:$true] %s139_s18 }
   0x7   : > { %p15310_p6 = scmp.ne.s32.totalorder %s18682_s1, %s15309_s22  ;;  %p15316_p10 = scmp.lt.u32.totalorder %s15309_s22, %s18682_s1 }
   0x8   : > { %s18761_s16 = scalar_select %p15426_p2, 1, 0 }
   0x9   : > { %p15094_p4 = pneg %p15426_p2 }
   0xb   : > { %p15435_p5 = pnand %p18685_p3, %p15094_p4 }
   0xd   : > { %p15311_p7 = pneg %p15435_p5 }
   0xf   : > { %p15312_p8 = pnand %p15311_p7, %p15310_p6 }
  0x11   : > { %p15313_p9 = pneg %p15312_p8 }
  0x13   : > { %p15318_p11 = pnand %p15316_p10, %p15313_p9 }
  0x15   : > { %15321 = shalt.err (!%p15318_p11)
}
  0x16   : > { %s15322_s27 = scalar_lea.vmem %s127_s14, 78336  ;;  %p15330_p1 = scmp.lt.s32.totalorder %s127_s14, %s127_s14 }
  0x17   : > { %p15323_p12 = scmp.ne.s32.totalorder %s127_s14, %s15322_s27  ;;  %p15331_p4 = scmp.lt.s32.totalorder %s15322_s27, %s15322_s27 }
  0x19   : > { %p15325_p13 = pnand %p15323_p12, %p15311_p7  ;;  %p15332_p3 = por %p15331_p4, %p15330_p1 }
  0x1b   : > { %p15326_p0 = pneg %p15325_p13 }
  0x1d   : > { %p15333_p2 = pnand %p15332_p3, %p15326_p0 }
  0x1f   : > { %15336 = shalt.err (!%p15333_p2)
}
  0x20   : > { %s15391_s28 = smov 64   ;;  %s15392_s29 = smov 4  }
  0x21   : > { %15097 = dma.hbm_to_vmem [thread:$0]  (!%p15435_p5), %s18682_s1, 78336, %s127_s14, [#allocation4], %s15391_s28, %s15391_s28, %s15392_s29  }
  0x22   : > { %s15337_s7 = scalar_lea.hbm %s18683_s2, 272 }
  0x23   : > { %p15338_p6 = scmp.ne.s32.totalorder %s18683_s2, %s15337_s7  ;;  %p15344_p8 = scmp.lt.u32.totalorder %s15337_s7, %s18683_s2 }
  0x25   : > { %p15340_p2 = pnand %p15338_p6, %p15311_p7 }
  0x27   : > { %p15341_p3 = pneg %p15340_p2 }
  0x29   : > { %p15346_p9 = pnand %p15344_p8, %p15341_p3 }
  0x2b   : > { %15349 = shalt.err (!%p15346_p9)
}
  0x2c   : > { %s15350_s13 = scalar_lea.vmem %s15439_s18, 272  ;;  %s15357_s14 = scalar_lea.vmem %s15439_s18, 288 }
  0x2d   : > { %p15351_p10 = scmp.ne.s32.totalorder %s15439_s18, %s15350_s13  ;;  %p15358_p13 = scmp.lt.s32.totalorder %s15439_s18, %s15439_s18 }
  0x2e   : > { %p15359_p0 = scmp.lt.s32.totalorder %s15357_s14, %s15350_s13 }
  0x2f   : > { %p15353_p11 = pnand %p15351_p10, %p15311_p7 }
  0x30   : > { %p15360_p1 = por %p15359_p0, %p15358_p13 }
  0x31   : > { %p15354_p12 = pneg %p15353_p11 }
  0x33   : > { %p15361_p4 = pnand %p15360_p1, %p15354_p12 }
  0x35   : > { %15364 = shalt.err (!%p15361_p4)
}
  0x36   : > { %s15393_s17 = smov 16   ;;  %s15394_s20 = smov 1  }
  0x37   : > { %15100 = dma.hbm_to_vmem [thread:$0]  (!%p15435_p5), %s18683_s2, 272, %s15439_s18, [#allocation6], %s15393_s17, %s15393_s17, %s15394_s20  }
  0x38   : > { %p18763_p6 = scmp.ne.s32.totalorder %s18761_s16, 0 }
  0x3a   : > { %163 = sbr.rel (%p18763_p6) target bundleno = 2285 (0x8ed), region = 32 }
  0x41   : > { %p18764_p7 = scmp.eq.s32.totalorder %s15422_s15, 0 }
  0x43   : > { %15374 = dma.done.wait (%p18764_p7), [#allocation4], 78336   ;;  %p18765_p2 = pmov %p18764_p7 }
  0x45   : > { %15376 = vsyncadd (%p18765_p2), [#allocation4], 4294888960  ;;  %p18766_p3 = pmov %p18765_p2 }
  0x46   : > { %p18767_p8 = pmov %p18765_p2 }
  0x47   : > { %15378 = dma.done.wait (%p18766_p3), [#allocation6], 272  }
  0x48   : > { %15380 = vsyncadd (%p18767_p8), [#allocation6], 4294967024  ;;  %vm202_vm0 = vcmask 519168   ;;  %vm205_vm1 = vcmask 516096   ;;  %p191_p9 = scmp.lt.s32.totalorder %s15422_s15, 1  ;;  %v15395_v0 = vmov 0  }
  0x49   : > { %207 = vst.msk [vmem:[#allocation2 + $0xc] sm:$0xf] %vm202_vm0, %v15395_v0  ;;  %203 = vst.msk [vmem:[#allocation2] sm:$0xf] %vm202_vm0, %v15395_v0  ;;  %vm765_vm2 = vsmask.f32 7938 }
  0x4a   : > { %204 = vst.msk [vmem:[#allocation2 + $0x4] sm:$0xf] %vm202_vm0, %v15395_v0  ;;  %208 = vst.msk [vmem:[#allocation2 + $0x10] sm:$0xf] %vm202_vm0, %v15395_v0  ;;  %s18905_s15 = smov (!%p191_p9, %s15422_s15), 1  ;;  %v18768_v13 = vmov 0 }
  0x4b   : > { %210 = vst.msk [vmem:[#allocation2 + $0x18] sm:$0xf] %vm202_vm0, %v15395_v0  ;;  %211 = vst.msk [vmem:[#allocation2 + $0x1c] sm:$0xf] %vm202_vm0, %v15395_v0  ;;  %s12591_s16 = sshll.u32 %s18905_s15, 8  ;;  %v18771_v22 = vmov 0 }
  0x4c   : > { %213 = vst.msk [vmem:[#allocation2 + $0x24] sm:$0xf] %vm202_vm0, %v15395_v0  ;;  %214 = vst.msk [vmem:[#allocation2 + $0x28] sm:$0xf] %vm202_vm0, %v15395_v0  ;;  %s15722_s23 = scalar_lea.vmem %s18681_s0, %s12591_s16  ;;  %s15727_s26 = scalar_lea.vmem %s18684_s3, %s12591_s16  ;;  %vm440_vm3 = vsmask.f32 256 }
  0x4d   : > { %216 = vst.msk [vmem:[#allocation2 + $0x30] sm:$0xf] %vm202_vm0, %v15395_v0  ;;  %217 = vst.msk [vmem:[#allocation2 + $0x34] sm:$0xf] %vm202_vm0, %v15395_v0  ;;  %v312_v1 = vld [vmem:[%s15722_s23] sm:$0xff]  ;;  %v313_v2 = vld [vmem:[%s15722_s23 + $0x8] sm:$0xff] }
  0x4e   : > { %219 = vst.msk [vmem:[#allocation2 + $0x3c] sm:$0xf] %vm202_vm0, %v15395_v0  ;;  %220 = vst.msk [vmem:[#allocation2 + $0x40] sm:$0xf] %vm202_vm0, %v15395_v0  ;;  %v314_v3 = vld [vmem:[%s15722_s23 + $0x10] sm:$0xff]  ;;  %v12593_v4 = vpack.c.bf16 %v312_v1, %v312_v1  ;;  %v12594_v5 = vpack.c.bf16 %v313_v2, %v313_v2  ;;  %v315_v7 = vld [vmem:[%s15722_s23 + $0x18] sm:$0xff] }
  0x4f   : > { %222 = vst.msk [vmem:[#allocation2 + $0x48] sm:$0xf] %vm202_vm0, %v15395_v0  ;;  %223 = vst.msk [vmem:[#allocation2 + $0x4c] sm:$0xf] %vm202_vm0, %v15395_v0  ;;  %v12595_v6 = vpack.c.bf16 %v314_v3, %v314_v3  ;;  %vm441_vm4 = vsmask.f32 4368  ;;  %v12596_v16 = vpack.c.bf16 %v315_v7, %v315_v7 }
  0x50   : > { %225 = vst.msk [vmem:[#allocation2 + $0x54] sm:$0xf] %vm202_vm0, %v15395_v0  ;;  %226 = vst.msk [vmem:[#allocation2 + $0x58] sm:$0xf] %vm202_vm0, %v15395_v0  ;;  %v316_v8 = vld [vmem:[%s15722_s23 + $0x20] sm:$0xff]  ;;  %v444_v9 = vshrl.u32 %v12593_v4, 16 }
  0x51   : > { %228 = vst.msk [vmem:[#allocation2 + $0x60] sm:$0xf] %vm202_vm0, %v15395_v0  ;;  %229 = vst.msk [vmem:[#allocation2 + $0x64] sm:$0xf] %vm202_vm0, %v15395_v0  ;;  %v447_v10 = vshll.u32 %v12593_v4, 16  ;;  %v452_v11 = vshrl.u32 %v12594_v5, 16  ;;  %v12597_v17 = vpack.c.bf16 %v316_v8, %v316_v8 }
  0x52   : > { %231 = vst.msk [vmem:[#allocation2 + $0x6c] sm:$0xf] %vm202_vm0, %v15395_v0  ;;  %232 = vst.msk [vmem:[#allocation2 + $0x70] sm:$0xf] %vm202_vm0, %v15395_v0  ;;  %v455_v12 = vshll.u32 %v12594_v5, 16  ;;  %v461_v14 = vshrl.u32 %v12595_v6, 16 }
  0x53   : > { %234 = vst.msk [vmem:[#allocation2 + $0x78] sm:$0xf] %vm202_vm0, %v15395_v0  ;;  %235 = vst.msk [vmem:[#allocation2 + $0x7c] sm:$0xf] %vm202_vm0, %v15395_v0  ;;  %v464_v15 = vshll.u32 %v12595_v6, 16  ;;  %v317_v18 = vld [vmem:[%s15722_s23 + $0x28] sm:$0xff] }
  0x54   : > { %237 = vst.msk [vmem:[#allocation2 + $0x84] sm:$0xf] %vm202_vm0, %v15395_v0  ;;  %238 = vst.msk [vmem:[#allocation2 + $0x88] sm:$0xf] %vm202_vm0, %v15395_v0  ;;  %v318_v19 = vld [vmem:[%s15722_s23 + $0x30] sm:$0xff]  ;;  %v446_v20 = vrot.slane %v444_v9, 7  ;;  %v12598_v24 = vpack.c.bf16 %v317_v18, %v317_v18 }
  0x55   : > { %240 = vst.msk [vmem:[#allocation2 + $0x90] sm:$0xf] %vm202_vm0, %v15395_v0  ;;  %241 = vst.msk [vmem:[#allocation2 + $0x94] sm:$0xf] %vm202_vm0, %v15395_v0  ;;  %v767_v21 = vld [vmem:[#allocation2 + $0xc] sm:$0xf]  ;;  %v12599_v25 = vpack.c.bf16 %v318_v19, %v318_v19 }
  0x56   : > { %243 = vst.msk [vmem:[#allocation2 + $0x9c] sm:$0xf] %vm202_vm0, %v15395_v0  ;;  %244 = vst.msk [vmem:[#allocation2 + $0xa0] sm:$0xf] %vm202_vm0, %v15395_v0  ;;  %v454_v23 = vrot.slane %v452_v11, 7  ;;  %v18774_v26 = vmov 0  ;;  %v449_v32 = vor.u32 %v447_v10, %v446_v20 }
  0x57   : > { %246 = vst.msk [vmem:[#allocation2 + $0xa8] sm:$0xf] %vm202_vm0, %v15395_v0  ;;  %247 = vst.msk [vmem:[#allocation2 + $0xac] sm:$0xf] %vm202_vm0, %v15395_v0  ;;  %v463_v28 = vrot.slane %v461_v14, 7  ;;  %v469_v29 = vshrl.u32 %v12596_v16, 16 }
  0x58   : > { %249 = vst.msk [vmem:[#allocation2 + $0xb4] sm:$0xf] %vm202_vm0, %v15395_v0  ;;  %250 = vst.msk [vmem:[#allocation2 + $0xb8] sm:$0xf] %vm202_vm0, %v15395_v0  ;;  %v472_v30 = vshll.u32 %v12596_v16, 16  ;;  %v478_v31 = vshrl.u32 %v12597_v17, 16  ;;  %v457_v34 = vor.u32 %v455_v12, %v454_v23 }
  0x59   : > { %252 = vst.msk [vmem:[#allocation2 + $0xc0] sm:$0xf] %vm202_vm0, %v15395_v0  ;;  %253 = vst.msk [vmem:[#allocation2 + $0xc4] sm:$0xf] %vm202_vm0, %v15395_v0  ;;  %v450_v33 = vrot.slane %v446_v20, 4  ;;  %v459_v35 = vrot.slane %v454_v23, 4  ;;  %v466_v37 = vor.u32 %v464_v15, %v463_v28 }
  0x5a   : > { %255 = vst.msk [vmem:[#allocation2 + $0xcc] sm:$0xf] %vm202_vm0, %v15395_v0  ;;  %256 = vst.msk [vmem:[#allocation2 + $0xd0] sm:$0xf] %vm202_vm0, %v15395_v0  ;;  %v776_v36 = vld [vmem:[#allocation2 + $0x18] sm:$0xf] }
  0x5b   : > { %258 = vst.msk [vmem:[#allocation2 + $0xd8] sm:$0xf] %vm202_vm0, %v15395_v0  ;;  %259 = vst.msk [vmem:[#allocation2 + $0xdc] sm:$0xf] %vm202_vm0, %v15395_v0  ;;  %v467_v38 = vrot.slane %v463_v28, 4  ;;  %v471_v39 = vrot.slane %v469_v29, 7 }
  0x5c   : > { %261 = vst.msk [vmem:[#allocation2 + $0xe4] sm:$0xf] %vm202_vm0, %v15395_v0  ;;  %262 = vst.msk [vmem:[#allocation2 + $0xe8] sm:$0xf] %vm202_vm0, %v15395_v0  ;;  %v480_v40 = vrot.slane %v478_v31, 7  ;;  %v481_v45 = vshll.u32 %v12597_v17, 16 }
  0x5d   : > { %264 = vst.msk [vmem:[#allocation2 + $0xf0] sm:$0xf] %vm202_vm0, %v15395_v0  ;;  %265 = vst.msk [vmem:[#allocation2 + $0xf4] sm:$0xf] %vm202_vm0, %v15395_v0  ;;  %v319_v46 = vld [vmem:[%s15722_s23 + $0x38] sm:$0xff]  ;;  %v474_v48 = vor.u32 %v472_v30, %v471_v39  ;;  %v476_v49 = vrot.slane %v471_v39, 4 }
  0x5e   : > { %267 = vst.msk [vmem:[#allocation2 + $0xfc] sm:$0xf] %vm202_vm0, %v15395_v0  ;;  %268 = vst.msk [vmem:[#allocation2 + $0x100] sm:$0xf] %vm202_vm0, %v15395_v0  ;;  %v783_v50 = vld [vmem:[#allocation2 + $0x24] sm:$0xf]  ;;  %v483_v53 = vor.u32 %v481_v45, %v480_v40  ;;  %v12600_v62 = vpack.c.bf16 %v319_v46, %v319_v46 }
  0x5f   : > { %270 = vst.msk [vmem:[#allocation2 + $0x108] sm:$0xf] %vm202_vm0, %v15395_v0  ;;  %271 = vst.msk [vmem:[#allocation2 + $0x10c] sm:$0xf] %vm202_vm0, %v15395_v0  ;;  %v484_v51 = vrot.slane %v480_v40, 4  ;;  %v320_v52 = vld [vmem:[%s15722_s23 + $0x40] sm:$0xff] }
  0x60   : > { %273 = vst.msk [vmem:[#allocation2 + $0x114] sm:$0xf] %vm202_vm0, %v15395_v0  ;;  %274 = vst.msk [vmem:[#allocation2 + $0x118] sm:$0xf] %vm202_vm0, %v15395_v0  ;;  %v486_v54 = vshrl.u32 %v12598_v24, 16  ;;  %v489_v55 = vshll.u32 %v12598_v24, 16  ;;  %v12601_v2 = vpack.c.bf16 %v320_v52, %v320_v52 }
  0x61   : > { %276 = vst.msk [vmem:[#allocation2 + $0x120] sm:$0xf] %vm202_vm0, %v15395_v0  ;;  %277 = vst.msk [vmem:[#allocation2 + $0x124] sm:$0xf] %vm202_vm0, %v15395_v0  ;;  %v495_v56 = vshrl.u32 %v12599_v25, 16  ;;  %v321_v57 = vld [vmem:[%s15722_s23 + $0x48] sm:$0xff] }
  0x62   : > { %279 = vst.msk [vmem:[#allocation2 + $0x12c] sm:$0xf] %vm202_vm0, %v15395_v0  ;;  %280 = vst.msk [vmem:[#allocation2 + $0x130] sm:$0xf] %vm202_vm0, %v15395_v0  ;;  %v322_v58 = vld [vmem:[%s15722_s23 + $0x50] sm:$0xff]  ;;  %v498_v61 = vshll.u32 %v12599_v25, 16  ;;  %v12602_v7 = vpack.c.bf16 %v321_v57, %v321_v57 }
  0x63   : > { %282 = vst.msk [vmem:[#allocation2 + $0x138] sm:$0xf] %vm202_vm0, %v15395_v0  ;;  %283 = vst.msk [vmem:[#allocation2 + $0x13c] sm:$0xf] %vm202_vm0, %v15395_v0  ;;  %v497_v1 = vrot.slane %v495_v56, 7  ;;  %v503_v5 = vshrl.u32 %v12600_v62, 16  ;;  %v12603_v8 = vpack.c.bf16 %v322_v58, %v322_v58 }
  0x64   : > { %285 = vst.msk [vmem:[#allocation2 + $0x144] sm:$0xf] %vm202_vm0, %v15395_v0  ;;  %286 = vst.msk [vmem:[#allocation2 + $0x148] sm:$0xf] %vm202_vm0, %v15395_v0  ;;  %v790_v4 = vld [vmem:[#allocation2 + $0x30] sm:$0xf] }
  0x65   : > { %288 = vst.msk [vmem:[#allocation2 + $0x150] sm:$0xf] %vm202_vm0, %v15395_v0  ;;  %289 = vst.msk [vmem:[#allocation2 + $0x154] sm:$0xf] %vm202_vm0, %v15395_v0  ;;  %v506_v6 = vshll.u32 %v12600_v62, 16  ;;  %v500_v11 = vor.u32 %v498_v61, %v497_v1  ;;  %v501_v12 = vrot.slane %v497_v1, 4 }
  0x66   : > { %291 = vst.msk [vmem:[#allocation2 + $0x15c] sm:$0xf] %vm202_vm0, %v15395_v0  ;;  %292 = vst.msk [vmem:[#allocation2 + $0x160] sm:$0xf] %vm202_vm0, %v15395_v0  ;;  %v505_v14 = vrot.slane %v503_v5, 7  ;;  %v512_v15 = vshrl.u32 %v12601_v2, 16 }
  0x67   : > { %294 = vst.msk [vmem:[#allocation2 + $0x168] sm:$0xf] %vm202_vm0, %v15395_v0  ;;  %295 = vst.msk [vmem:[#allocation2 + $0x16c] sm:$0xf] %vm202_vm0, %v15395_v0  ;;  %v515_v16 = vshll.u32 %v12601_v2, 16  ;;  %v520_v17 = vshrl.u32 %v12602_v7, 16 }
  0x68   : > { %297 = vst.msk [vmem:[#allocation2 + $0x174] sm:$0xf] %vm202_vm0, %v15395_v0  ;;  %298 = vst.msk [vmem:[#allocation2 + $0x178] sm:$0xf] %vm202_vm0, %v15395_v0  ;;  %v323_v18 = vld [vmem:[%s15722_s23 + $0x58] sm:$0xff]  ;;  %v324_v19 = vld [vmem:[%s15722_s23 + $0x60] sm:$0xff] }
  0x69   : > { %300 = vst.msk [vmem:[#allocation2 + $0x180] sm:$0xf] %vm202_vm0, %v15395_v0  ;;  %301 = vst.msk [vmem:[#allocation2 + $0x184] sm:$0xf] %vm202_vm0, %v15395_v0  ;;  %v523_v25 = vshll.u32 %v12602_v7, 16  ;;  %v510_v28 = vrot.slane %v505_v14, 4 }
  0x6a   : > { %303 = vst.msk [vmem:[#allocation2 + $0x18c] sm:$0xf] %vm202_vm0, %v15395_v0  ;;  %304 = vst.msk [vmem:[#allocation2 + $0x190] sm:$0xf] %vm202_vm0, %v15395_v0  ;;  %v514_v29 = vrot.slane %v512_v15, 7  ;;  %v522_v30 = vrot.slane %v520_v17, 7 }
  0x6b   : > { %306 = vst.msk [vmem:[#allocation2 + $0x198] sm:$0xf] %vm202_vm0, %v15395_v0  ;;  %307 = vst.msk [vmem:[#allocation2 + $0x19c] sm:$0xf] %vm202_vm0, %v15395_v0  ;;  %v797_v31 = vld [vmem:[#allocation2 + $0x3c] sm:$0xf] }
  0x6c   : > { %309 = vst.msk [vmem:[#allocation2 + $0x1a4] sm:$0xf] %vm202_vm0, %v15395_v0  ;;  %310 = vst.msk [vmem:[#allocation2 + $0x1a8] sm:$0xf] %vm202_vm0, %v15395_v0  ;;  %v518_v39 = vrot.slane %v514_v29, 4  ;;  %v325_v46 = vld [vmem:[%s15722_s23 + $0x68] sm:$0xff] }
  0x6d   : > { %209 = vst.msk [vmem:[#allocation2 + $0x14] sm:$0x1] %vm205_vm1, %v15395_v0  ;;  %206 = vst.msk [vmem:[#allocation2 + $0x8] sm:$0x1] %vm205_vm1, %v15395_v0  ;;  %v327_v52 = vld [vmem:[%s15722_s23 + $0x78] sm:$0xff]  ;;  %v12606_v61 = vpack.c.bf16 %v325_v46, %v325_v46  ;;  %v332_v46 = vld [vmem:[%s15722_s23 + $0xa0] sm:$0xff] }
  0x6e   : > { %212 = vst.msk [vmem:[#allocation2 + $0x20] sm:$0x1] %vm205_vm1, %v15395_v0  ;;  %215 = vst.msk [vmem:[#allocation2 + $0x2c] sm:$0x1] %vm205_vm1, %v15395_v0  ;;  %v811_v1 = vld [vmem:[#allocation2 + $0x54] sm:$0xf]  ;;  %v12608_v2 = vpack.c.bf16 %v327_v52, %v327_v52 }
  0x6f   : > { %218 = vst.msk [vmem:[#allocation2 + $0x38] sm:$0x1] %vm205_vm1, %v15395_v0  ;;  %221 = vst.msk [vmem:[#allocation2 + $0x44] sm:$0x1] %vm205_vm1, %v15395_v0  ;;  %s15890_s15 = smov 0  }
  0x70   : > { %224 = vst.msk [vmem:[#allocation2 + $0x50] sm:$0x1] %vm205_vm1, %v15395_v0  ;;  %227 = vst.msk [vmem:[#allocation2 + $0x5c] sm:$0x1] %vm205_vm1, %v15395_v0 }
  0x71   : > { %230 = vst.msk [vmem:[#allocation2 + $0x68] sm:$0x1] %vm205_vm1, %v15395_v0  ;;  %233 = vst.msk [vmem:[#allocation2 + $0x74] sm:$0x1] %vm205_vm1, %v15395_v0 }
  0x72   : > { %236 = vst.msk [vmem:[#allocation2 + $0x80] sm:$0x1] %vm205_vm1, %v15395_v0  ;;  %239 = vst.msk [vmem:[#allocation2 + $0x8c] sm:$0x1] %vm205_vm1, %v15395_v0 }
  0x73   : > { %242 = vst.msk [vmem:[#allocation2 + $0x98] sm:$0x1] %vm205_vm1, %v15395_v0  ;;  %245 = vst.msk [vmem:[#allocation2 + $0xa4] sm:$0x1] %vm205_vm1, %v15395_v0 }
  0x74   : > { %248 = vst.msk [vmem:[#allocation2 + $0xb0] sm:$0x1] %vm205_vm1, %v15395_v0  ;;  %251 = vst.msk [vmem:[#allocation2 + $0xbc] sm:$0x1] %vm205_vm1, %v15395_v0  ;;  %v773_v27 = vld [vmem:[#allocation2 + $0x14] sm:$0x1] }
  0x75   : > { %254 = vst.msk [vmem:[#allocation2 + $0xc8] sm:$0x1] %vm205_vm1, %v15395_v0  ;;  %257 = vst.msk [vmem:[#allocation2 + $0xd4] sm:$0x1] %vm205_vm1, %v15395_v0  ;;  %v780_v44 = vld [vmem:[#allocation2 + $0x20] sm:$0x1] }
  0x76   : > { %260 = vst.msk [vmem:[#allocation2 + $0xe0] sm:$0x1] %vm205_vm1, %v15395_v0  ;;  %263 = vst.msk [vmem:[#allocation2 + $0xec] sm:$0x1] %vm205_vm1, %v15395_v0  ;;  %v787_v3 = vld [vmem:[#allocation2 + $0x2c] sm:$0x1] }
  0x77   : > { %266 = vst.msk [vmem:[#allocation2 + $0xf8] sm:$0x1] %vm205_vm1, %v15395_v0  ;;  %269 = vst.msk [vmem:[#allocation2 + $0x104] sm:$0x1] %vm205_vm1, %v15395_v0  ;;  %v794_v24 = vld [vmem:[#allocation2 + $0x38] sm:$0x1] }
  0x78   : > { %272 = vst.msk [vmem:[#allocation2 + $0x110] sm:$0x1] %vm205_vm1, %v15395_v0  ;;  %275 = vst.msk [vmem:[#allocation2 + $0x11c] sm:$0x1] %vm205_vm1, %v15395_v0  ;;  %v801_v40 = vld [vmem:[#allocation2 + $0x44] sm:$0x1] }
  0x79   : > { %278 = vst.msk [vmem:[#allocation2 + $0x128] sm:$0x1] %vm205_vm1, %v15395_v0  ;;  %281 = vst.msk [vmem:[#allocation2 + $0x134] sm:$0x1] %vm205_vm1, %v15395_v0  ;;  %v815_v17 = vld [vmem:[#allocation2 + $0x5c] sm:$0x1] }
  0x7a   : > { %284 = vst.msk [vmem:[#allocation2 + $0x140] sm:$0x1] %vm205_vm1, %v15395_v0  ;;  %287 = vst.msk [vmem:[#allocation2 + $0x14c] sm:$0x1] %vm205_vm1, %v15395_v0  ;;  %v829_v52 = vld [vmem:[#allocation2 + $0x74] sm:$0x1] }
  0x7b   : > { %290 = vst.msk [vmem:[#allocation2 + $0x158] sm:$0x1] %vm205_vm1, %v15395_v0  ;;  %293 = vst.msk [vmem:[#allocation2 + $0x164] sm:$0x1] %vm205_vm1, %v15395_v0 }
  0x7c   : > { %296 = vst.msk [vmem:[#allocation2 + $0x170] sm:$0x1] %vm205_vm1, %v15395_v0  ;;  %299 = vst.msk [vmem:[#allocation2 + $0x17c] sm:$0x1] %vm205_vm1, %v15395_v0 }
  0x7d   : > { %302 = vst.msk [vmem:[#allocation2 + $0x188] sm:$0x1] %vm205_vm1, %v15395_v0  ;;  %305 = vst.msk [vmem:[#allocation2 + $0x194] sm:$0x1] %vm205_vm1, %v15395_v0 }
  0x7e   : > { %308 = vst.msk [vmem:[#allocation2 + $0x1a0] sm:$0x1] %vm205_vm1, %v15395_v0  ;;  %311 = vst.msk [vmem:[#allocation2 + $0x1ac] sm:$0x1] %vm205_vm1, %v15395_v0  ;;  %v488_v0 = vrot.slane %v486_v54, 7  ;;  %v329_v54 = vld [vmem:[%s15722_s23 + $0x88] sm:$0xff] }
  0x7f   : > { %vm15735_vm5 = vmand %vm202_vm0, %vm765_vm2 }
  0x80   : > { %v18769_v13 = vsel %vm15735_vm5, 4294967295, %v18768_v13  ;;  %vm15743_vm6 = vmor %vm440_vm3, %vm441_vm4  ;;  %v768_v41 = vsel %vm15735_vm5, %v449_v32, %v767_v21  ;;  %v777_v47 = vsel %vm15735_vm5, %v466_v37, %v776_v36  ;;  %v784_v63 = vsel %vm15735_vm5, %v483_v53, %v783_v50  ;;  %v328_v53 = vld [vmem:[%s15722_s23 + $0x80] sm:$0xff] }
  0x81   : > { %18770 = vst [vmem:[#allocation9_spill] sm:$0xff] %v18769_v13  ;;  %v18772_v22 = vsel %vm15743_vm6, 4294967295, %v18771_v22  ;;  %vm15749_vm7 = vmand %vm205_vm1, %vm440_vm3  ;;  %v458_v42 = vsel %vm15743_vm6, %v450_v33, %v457_v34  ;;  %v475_v59 = vsel %vm15743_vm6, %v467_v38, %v474_v48  ;;  %v491_v9 = vor.u32 %v489_v55, %v488_v0 }
  0x82   : > { %18773 = vst [vmem:[#allocation10_spill] sm:$0xff] %v18772_v22  ;;  %v18775_v26 = vsel %vm15749_vm7, 4294967295, %v18774_v26  ;;  %v774_v43 = vsel %vm15749_vm7, %v459_v35, %v773_v27  ;;  %769 = vst [vmem:[#allocation2 + $0xc] sm:$0xf] %v768_v41  ;;  %v781_v60 = vsel %vm15749_vm7, %v476_v49, %v780_v44  ;;  %v493_v10 = vrot.slane %v488_v0, 4 }
  0x83   : > { %18776 = vst [vmem:[#allocation11_spill] sm:$0xff] %v18775_v26  ;;  %770 = vst.msk [vmem:[#allocation2 + $0x10] sm:$0xf] %vm202_vm0, %v458_v42  ;;  %v492_v20 = vsel %vm15743_vm6, %v484_v51, %v491_v9  ;;  %v791_v23 = vsel %vm15735_vm5, %v500_v11, %v790_v4  ;;  %v508_v27 = vor.u32 %v506_v6, %v505_v14  ;;  %v529_v32 = vshrl.u32 %v12603_v8, 16  ;;  %v804_v41 = vld [vmem:[#allocation2 + $0x48] sm:$0xf] }
  0x84   : > { %775 = vst [vmem:[#allocation2 + $0x14] sm:$0x1] %v774_v43  ;;  %778 = vst [vmem:[#allocation2 + $0x18] sm:$0xf] %v777_v47  ;;  %v788_v21 = vsel %vm15749_vm7, %v493_v10, %v787_v3  ;;  %v532_v33 = vshll.u32 %v12603_v8, 16  ;;  %v12604_v34 = vpack.c.bf16 %v323_v18, %v323_v18  ;;  %v12605_v35 = vpack.c.bf16 %v324_v19, %v324_v19  ;;  %v326_v47 = vld [vmem:[%s15722_s23 + $0x70] sm:$0xff] }
  0x85   : > { %779 = vst.msk [vmem:[#allocation2 + $0x1c] sm:$0xf] %vm202_vm0, %v475_v59  ;;  %782 = vst [vmem:[#allocation2 + $0x20] sm:$0x1] %v781_v60  ;;  %v509_v36 = vsel %vm15743_vm6, %v501_v12, %v508_v27  ;;  %v795_v37 = vsel %vm15749_vm7, %v510_v28, %v794_v24  ;;  %v517_v38 = vor.u32 %v515_v16, %v514_v29  ;;  %v527_v43 = vrot.slane %v522_v30, 4 }
  0x86   : > { %785 = vst [vmem:[#allocation2 + $0x24] sm:$0xf] %v784_v63  ;;  %786 = vst.msk [vmem:[#allocation2 + $0x28] sm:$0xf] %vm202_vm0, %v492_v20  ;;  %v525_v42 = vor.u32 %v523_v25, %v522_v30  ;;  %v531_v44 = vrot.slane %v529_v32, 7  ;;  %v537_v45 = vshrl.u32 %v12604_v34, 16  ;;  %v12607_v62 = vpack.c.bf16 %v326_v47, %v326_v47 }
  0x87   : > { %789 = vst [vmem:[#allocation2 + $0x2c] sm:$0x1] %v788_v21  ;;  %792 = vst [vmem:[#allocation2 + $0x30] sm:$0xf] %v791_v23  ;;  %v798_v48 = vsel %vm15735_vm5, %v517_v38, %v797_v31  ;;  %v540_v49 = vshll.u32 %v12604_v34, 16  ;;  %v546_v50 = vshrl.u32 %v12605_v35, 16  ;;  %v802_v56 = vsel %vm15749_vm7, %v527_v43, %v801_v40 }
  0x88   : > { %793 = vst.msk [vmem:[#allocation2 + $0x34] sm:$0xf] %vm202_vm0, %v509_v36  ;;  %796 = vst [vmem:[#allocation2 + $0x38] sm:$0x1] %v795_v37  ;;  %v549_v51 = vshll.u32 %v12605_v35, 16  ;;  %v526_v55 = vsel %vm15743_vm6, %v518_v39, %v525_v42  ;;  %v534_v57 = vor.u32 %v532_v33, %v531_v44  ;;  %v535_v58 = vrot.slane %v531_v44, 4 }
  0x89   : > { %799 = vst [vmem:[#allocation2 + $0x3c] sm:$0xf] %v798_v48  ;;  %800 = vst.msk [vmem:[#allocation2 + $0x40] sm:$0xf] %vm202_vm0, %v526_v55  ;;  %v539_v59 = vrot.slane %v537_v45, 7  ;;  %v548_v60 = vrot.slane %v546_v50, 7  ;;  %v12609_v3 = vpack.c.bf16 %v328_v53, %v328_v53  ;;  %v12610_v4 = vpack.c.bf16 %v329_v54, %v329_v54 }
  0x8a   : > { %803 = vst [vmem:[#allocation2 + $0x44] sm:$0x1] %v802_v56  ;;  %v805_v63 = vsel %vm15735_vm5, %v534_v57, %v804_v41  ;;  %v808_v0 = vld [vmem:[#allocation2 + $0x50] sm:$0x1]  ;;  %v554_v9 = vshrl.u32 %v12606_v61, 16  ;;  %v557_v10 = vshll.u32 %v12606_v61, 16 }
  0x8b   : > { %806 = vst [vmem:[#allocation2 + $0x48] sm:$0xf] %v805_v63  ;;  %v542_v5 = vor.u32 %v540_v49, %v539_v59  ;;  %v544_v6 = vrot.slane %v539_v59, 4  ;;  %v551_v7 = vor.u32 %v549_v51, %v548_v60  ;;  %v552_v8 = vrot.slane %v548_v60, 4  ;;  %v818_v21 = vld [vmem:[#allocation2 + $0x60] sm:$0xf] }
  0x8c   : > { %v563_v11 = vshrl.u32 %v12607_v62, 16  ;;  %v566_v12 = vshll.u32 %v12607_v62, 16  ;;  %v571_v18 = vshrl.u32 %v12608_v2, 16  ;;  %v556_v19 = vrot.slane %v554_v9, 7  ;;  %v330_v30 = vld [vmem:[%s15722_s23 + $0x90] sm:$0xff]  ;;  %v331_v45 = vld [vmem:[%s15722_s23 + $0x98] sm:$0xff] }
  0x8d   : > { %v543_v14 = vsel %vm15743_vm6, %v535_v58, %v542_v5  ;;  %v809_v15 = vsel %vm15749_vm7, %v544_v6, %v808_v0  ;;  %v812_v16 = vsel %vm15735_vm5, %v551_v7, %v811_v1  ;;  %v574_v23 = vshll.u32 %v12608_v2, 16  ;;  %v822_v35 = vld [vmem:[#allocation2 + $0x68] sm:$0x1]  ;;  %v825_v39 = vld [vmem:[#allocation2 + $0x6c] sm:$0xf]  ;;  %v334_v53 = vld [vmem:[%s15722_s23 + $0xb0] sm:$0xff] }
  0x8e   : > { %807 = vst.msk [vmem:[#allocation2 + $0x4c] sm:$0xf] %vm202_vm0, %v543_v14  ;;  %810 = vst [vmem:[#allocation2 + $0x50] sm:$0x1] %v809_v15  ;;  %v565_v20 = vrot.slane %v563_v11, 7  ;;  %v580_v24 = vshrl.u32 %v12609_v3, 16  ;;  %v559_v31 = vor.u32 %v557_v10, %v556_v19  ;;  %v12611_v44 = vpack.c.bf16 %v330_v30, %v330_v30 }
  0x8f   : > { %813 = vst [vmem:[#allocation2 + $0x54] sm:$0xf] %v812_v16  ;;  %v573_v25 = vrot.slane %v571_v18, 7  ;;  %v583_v27 = vshll.u32 %v12609_v3, 16  ;;  %v588_v28 = vshrl.u32 %v12610_v4, 16  ;;  %v591_v29 = vshll.u32 %v12610_v4, 16 }
  0x90   : > { %v561_v32 = vrot.slane %v556_v19, 4  ;;  %v568_v33 = vor.u32 %v566_v12, %v565_v20  ;;  %v569_v34 = vrot.slane %v565_v20, 4  ;;  %v582_v38 = vrot.slane %v580_v24, 7  ;;  %v333_v47 = vld [vmem:[%s15722_s23 + $0xa8] sm:$0xff]  ;;  %v832_v1 = vld [vmem:[#allocation2 + $0x78] sm:$0xf] }
  0x91   : > { %v576_v36 = vor.u32 %v574_v23, %v573_v25  ;;  %v578_v37 = vrot.slane %v573_v25, 4  ;;  %v590_v40 = vrot.slane %v588_v28, 7  ;;  %v560_v41 = vsel %vm15743_vm6, %v552_v8, %v559_v31  ;;  %v335_v7 = vld [vmem:[%s15722_s23 + $0xb8] sm:$0xff]  ;;  %v336_v8 = vld [vmem:[%s15722_s23 + $0xc0] sm:$0xff]  ;;  %v843_v30 = vld [vmem:[#allocation2 + $0x8c] sm:$0x1] }
  0x92   : > { %v816_v42 = vsel %vm15749_vm7, %v561_v32, %v815_v17  ;;  %v819_v43 = vsel %vm15735_vm5, %v568_v33, %v818_v21  ;;  %814 = vst.msk [vmem:[#allocation2 + $0x58] sm:$0xf] %vm202_vm0, %v560_v41  ;;  %v585_v50 = vor.u32 %v583_v27, %v582_v38  ;;  %v586_v51 = vrot.slane %v582_v38, 4  ;;  %v836_v19 = vld [vmem:[#allocation2 + $0x80] sm:$0x1]  ;;  %v338_v41 = vld [vmem:[%s15722_s23 + $0xd0] sm:$0xff] }
  0x93   : > { %817 = vst [vmem:[#allocation2 + $0x5c] sm:$0x1] %v816_v42  ;;  %820 = vst [vmem:[#allocation2 + $0x60] sm:$0xf] %v819_v43  ;;  %v577_v48 = vsel %vm15743_vm6, %v569_v34, %v576_v36  ;;  %v823_v49 = vsel %vm15749_vm7, %v578_v37, %v822_v35  ;;  %v593_v54 = vor.u32 %v591_v29, %v590_v40  ;;  %v595_v55 = vrot.slane %v590_v40, 4  ;;  %v337_v36 = vld [vmem:[%s15722_s23 + $0xc8] sm:$0xff] }
  0x94   : > { %821 = vst.msk [vmem:[#allocation2 + $0x64] sm:$0xf] %vm202_vm0, %v577_v48  ;;  %824 = vst [vmem:[#allocation2 + $0x68] sm:$0x1] %v823_v49  ;;  %v597_v56 = vshrl.u32 %v12611_v44, 16  ;;  %v600_v57 = vshll.u32 %v12611_v44, 16  ;;  %v826_v58 = vsel %vm15735_vm5, %v585_v50, %v825_v39  ;;  %v12612_v59 = vpack.c.bf16 %v331_v45, %v331_v45 }
  0x95   : > { %v12613_v60 = vpack.c.bf16 %v332_v46, %v332_v46  ;;  %v12614_v61 = vpack.c.bf16 %v333_v47, %v333_v47  ;;  %827 = vst [vmem:[#allocation2 + $0x6c] sm:$0xf] %v826_v58  ;;  %v594_v62 = vsel %vm15743_vm6, %v586_v51, %v593_v54  ;;  %v830_v63 = vsel %vm15749_vm7, %v595_v55, %v829_v52  ;;  %v839_v20 = vld [vmem:[#allocation2 + $0x84] sm:$0xf]  ;;  %v846_v34 = vld [vmem:[#allocation2 + $0x90] sm:$0xf] }
  0x96   : > { %v599_v0 = vrot.slane %v597_v56, 7  ;;  %v12615_v2 = vpack.c.bf16 %v334_v53, %v334_v53  ;;  %828 = vst.msk [vmem:[#allocation2 + $0x70] sm:$0xf] %vm202_vm0, %v594_v62  ;;  %831 = vst [vmem:[#allocation2 + $0x74] sm:$0x1] %v830_v63  ;;  %v605_v3 = vshrl.u32 %v12612_v59, 16  ;;  %v12616_v23 = vpack.c.bf16 %v335_v7, %v335_v7 }
  0x97   : > { %v608_v4 = vshll.u32 %v12612_v59, 16  ;;  %v614_v5 = vshrl.u32 %v12613_v60, 16  ;;  %v617_v6 = vshll.u32 %v12613_v60, 16  ;;  %v622_v11 = vshrl.u32 %v12614_v61, 16  ;;  %v339_v42 = vld [vmem:[%s15722_s23 + $0xd8] sm:$0xff]  ;;  %v340_v43 = vld [vmem:[%s15722_s23 + $0xe0] sm:$0xff] }
  0x98   : > { %v602_v9 = vor.u32 %v600_v57, %v599_v0  ;;  %v603_v10 = vrot.slane %v599_v0, 4  ;;  %v625_v12 = vshll.u32 %v12614_v61, 16  ;;  %v607_v14 = vrot.slane %v605_v3, 7  ;;  %v850_v53 = vld [vmem:[#allocation2 + $0x98] sm:$0x1] }
  0x99   : > { %v616_v15 = vrot.slane %v614_v5, 7  ;;  %v631_v16 = vshrl.u32 %v12615_v2, 16  ;;  %v634_v17 = vshll.u32 %v12615_v2, 16  ;;  %v624_v21 = vrot.slane %v622_v11, 7  ;;  %v853_v60 = vld [vmem:[#allocation2 + $0x9c] sm:$0xf] }
  0x9a   : > { %v833_v18 = vsel %vm15735_vm5, %v602_v9, %v832_v1  ;;  %v12617_v24 = vpack.c.bf16 %v336_v8, %v336_v8  ;;  %v610_v25 = vor.u32 %v608_v4, %v607_v14  ;;  %v612_v27 = vrot.slane %v607_v14, 4  ;;  %v341_v2 = vld [vmem:[%s15722_s23 + $0xe8] sm:$0xff] }
  0x9b   : > { %834 = vst [vmem:[#allocation2 + $0x78] sm:$0xf] %v833_v18  ;;  %v619_v28 = vor.u32 %v617_v6, %v616_v15  ;;  %v620_v29 = vrot.slane %v616_v15, 4  ;;  %v627_v31 = vor.u32 %v625_v12, %v624_v21  ;;  %v629_v32 = vrot.slane %v624_v21, 4  ;;  %v857_v12 = vld [vmem:[#allocation2 + $0xa4] sm:$0x1] }
  0x9c   : > { %v633_v33 = vrot.slane %v631_v16, 7  ;;  %v639_v35 = vshrl.u32 %v12616_v23, 16  ;;  %v611_v37 = vsel %vm15743_vm6, %v603_v10, %v610_v25  ;;  %v837_v38 = vsel %vm15749_vm7, %v612_v27, %v836_v19  ;;  %v860_v14 = vld [vmem:[#allocation2 + $0xa8] sm:$0xf] }
  0x9d   : > { %v840_v39 = vsel %vm15735_vm5, %v619_v28, %v839_v20  ;;  %v642_v40 = vshll.u32 %v12616_v23, 16  ;;  %835 = vst.msk [vmem:[#allocation2 + $0x7c] sm:$0xf] %vm202_vm0, %v611_v37  ;;  %838 = vst [vmem:[#allocation2 + $0x80] sm:$0x1] %v837_v38  ;;  %v628_v44 = vsel %vm15743_vm6, %v620_v29, %v627_v31  ;;  %v844_v45 = vsel %vm15749_vm7, %v629_v32, %v843_v30  ;;  %v342_v29 = vld [vmem:[%s15722_s23 + $0xf0] sm:$0xff] }
  0x9e   : > { %841 = vst [vmem:[#allocation2 + $0x84] sm:$0xf] %v840_v39  ;;  %v636_v46 = vor.u32 %v634_v17, %v633_v33  ;;  %v637_v47 = vrot.slane %v633_v33, 4  ;;  %842 = vst.msk [vmem:[#allocation2 + $0x88] sm:$0xf] %vm202_vm0, %v628_v44  ;;  %v641_v48 = vrot.slane %v639_v35, 7  ;;  %v12618_v51 = vpack.c.bf16 %v337_v36, %v337_v36 }
  0x9f   : > { %845 = vst [vmem:[#allocation2 + $0x8c] sm:$0x1] %v844_v45  ;;  %v648_v49 = vshrl.u32 %v12617_v24, 16  ;;  %v651_v50 = vshll.u32 %v12617_v24, 16  ;;  %v12619_v54 = vpack.c.bf16 %v338_v41, %v338_v41  ;;  %v12620_v55 = vpack.c.bf16 %v339_v42, %v339_v42  ;;  %v864_v23 = vld [vmem:[#allocation2 + $0xb0] sm:$0x1] }
  0xa0   : > { %v847_v52 = vsel %vm15735_vm5, %v636_v46, %v846_v34  ;;  %v12621_v56 = vpack.c.bf16 %v340_v43, %v340_v43  ;;  %v644_v57 = vor.u32 %v642_v40, %v641_v48  ;;  %v646_v58 = vrot.slane %v641_v48, 4  ;;  %v343_v30 = vld [vmem:[%s15722_s23 + $0xf8] sm:$0xff]  ;;  %v867_v34 = vld [vmem:[#allocation2 + $0xb4] sm:$0xf] }
  0xa1   : > { %848 = vst [vmem:[#allocation2 + $0x90] sm:$0xf] %v847_v52  ;;  %v650_v59 = vrot.slane %v648_v49, 7  ;;  %v656_v61 = vshrl.u32 %v12618_v51, 16  ;;  %v659_v62 = vshll.u32 %v12618_v51, 16  ;;  %v665_v63 = vshrl.u32 %v12619_v54, 16 }
  0xa2   : > { %v668_v0 = vshll.u32 %v12619_v54, 16  ;;  %v673_v1 = vshrl.u32 %v12620_v55, 16  ;;  %v645_v3 = vsel %vm15743_vm6, %v637_v47, %v644_v57  ;;  %v851_v4 = vsel %vm15749_vm7, %v646_v58, %v850_v53  ;;  %v871_v44 = vld [vmem:[#allocation2 + $0xbc] sm:$0x1]  ;;  %v874_v54 = vld [vmem:[#allocation2 + $0xc0] sm:$0xf] }
  0xa3   : > { %v653_v5 = vor.u32 %v651_v50, %v650_v59  ;;  %v654_v6 = vrot.slane %v650_v59, 4  ;;  %849 = vst.msk [vmem:[#allocation2 + $0x94] sm:$0xf] %vm202_vm0, %v645_v3  ;;  %852 = vst [vmem:[#allocation2 + $0x98] sm:$0x1] %v851_v4  ;;  %v658_v7 = vrot.slane %v656_v61, 7  ;;  %v12622_v17 = vpack.c.bf16 %v341_v2, %v341_v2 }
  0xa4   : > { %v667_v8 = vrot.slane %v665_v63, 7  ;;  %v675_v9 = vrot.slane %v673_v1, 7  ;;  %v676_v10 = vshll.u32 %v12620_v55, 16  ;;  %v682_v15 = vshrl.u32 %v12621_v56, 16  ;;  %v878_v58 = vld [vmem:[#allocation2 + $0xc8] sm:$0x1] }
  0xa5   : > { %v854_v11 = vsel %vm15735_vm5, %v653_v5, %v853_v60  ;;  %v685_v16 = vshll.u32 %v12621_v56, 16  ;;  %v661_v18 = vor.u32 %v659_v62, %v658_v7  ;;  %v663_v19 = vrot.slane %v658_v7, 4 }
  0xa6   : > { %855 = vst [vmem:[#allocation2 + $0x9c] sm:$0xf] %v854_v11  ;;  %v670_v20 = vor.u32 %v668_v0, %v667_v8  ;;  %v671_v21 = vrot.slane %v667_v8, 4  ;;  %v678_v24 = vor.u32 %v676_v10, %v675_v9  ;;  %v680_v25 = vrot.slane %v675_v9, 4 }
  0xa7   : > { %v684_v27 = vrot.slane %v682_v15, 7  ;;  %v690_v28 = vshrl.u32 %v12622_v17, 16  ;;  %v662_v31 = vsel %vm15743_vm6, %v654_v6, %v661_v18  ;;  %v858_v32 = vsel %vm15749_vm7, %v663_v19, %v857_v12 }
  0xa8   : > { %v861_v33 = vsel %vm15735_vm5, %v670_v20, %v860_v14  ;;  %v693_v35 = vshll.u32 %v12622_v17, 16  ;;  %856 = vst.msk [vmem:[#allocation2 + $0xa0] sm:$0xf] %vm202_vm0, %v662_v31  ;;  %859 = vst [vmem:[#allocation2 + $0xa4] sm:$0x1] %v858_v32  ;;  %v679_v36 = vsel %vm15743_vm6, %v671_v21, %v678_v24  ;;  %v865_v37 = vsel %vm15749_vm7, %v680_v25, %v864_v23 }
  0xa9   : > { %862 = vst [vmem:[#allocation2 + $0xa8] sm:$0xf] %v861_v33  ;;  %v687_v38 = vor.u32 %v685_v16, %v684_v27  ;;  %863 = vst.msk [vmem:[#allocation2 + $0xac] sm:$0xf] %vm202_vm0, %v679_v36  ;;  %v688_v39 = vrot.slane %v684_v27, 4  ;;  %v692_v40 = vrot.slane %v690_v28, 7  ;;  %v12623_v41 = vpack.c.bf16 %v342_v29, %v342_v29 }
  0xaa   : > { %866 = vst [vmem:[#allocation2 + $0xb0] sm:$0x1] %v865_v37  ;;  %v12624_v42 = vpack.c.bf16 %v343_v30, %v343_v30 }
  0xab   : > { %v868_v43 = vsel %vm15735_vm5, %v687_v38, %v867_v34  ;;  %v695_v45 = vor.u32 %v693_v35, %v692_v40  ;;  %v697_v46 = vrot.slane %v692_v40, 4  ;;  %v699_v47 = vshrl.u32 %v12623_v41, 16 }
  0xac   : > { %869 = vst [vmem:[#allocation2 + $0xb4] sm:$0xf] %v868_v43  ;;  %v702_v48 = vshll.u32 %v12623_v41, 16  ;;  %v707_v49 = vshrl.u32 %v12624_v42, 16  ;;  %v710_v50 = vshll.u32 %v12624_v42, 16 }
  0xad   : > { %v696_v51 = vsel %vm15743_vm6, %v688_v39, %v695_v45  ;;  %v872_v52 = vsel %vm15749_vm7, %v697_v46, %v871_v44  ;;  %v701_v53 = vrot.slane %v699_v47, 7 }
  0xae   : > { %870 = vst.msk [vmem:[#allocation2 + $0xb8] sm:$0xf] %vm202_vm0, %v696_v51  ;;  %873 = vst [vmem:[#allocation2 + $0xbc] sm:$0x1] %v872_v52  ;;  %v709_v55 = vrot.slane %v707_v49, 7 }
  0xaf   : > { %v704_v56 = vor.u32 %v702_v48, %v701_v53  ;;  %v705_v57 = vrot.slane %v701_v53, 4 }
  0xb0   : > { %v712_v59 = vor.u32 %v710_v50, %v709_v55  ;;  %v714_v60 = vrot.slane %v709_v55, 4 }
  0xb1   : > { %v875_v61 = vsel %vm15735_vm5, %v704_v56, %v874_v54 }
  0xb2   : > { %876 = vst [vmem:[#allocation2 + $0xc0] sm:$0xf] %v875_v61  ;;  %v713_v62 = vsel %vm15743_vm6, %v705_v57, %v712_v59  ;;  %v879_v63 = vsel %vm15749_vm7, %v714_v60, %v878_v58 }
  0xb3   : > { %877 = vst.msk [vmem:[#allocation2 + $0xc4] sm:$0xf] %vm202_vm0, %v713_v62  ;;  %880 = vst [vmem:[#allocation2 + $0xc8] sm:$0x1] %v879_v63 }
  0xb4 LB: >> { %v15895_v0 = vld [vmem:[#allocation2 + $0xc] sm:$0xff]   ;;  %vm1052_vm8 = vcmask 523264   ;;  %s12625_s27 = smul.u32 576, %s15387_s15  ;;  %v15907_v6 = vld [vmem:[#allocation2 + $0x18] sm:$0xff]   ;;  %v15909_v7 = vld [vmem:[#allocation2 + $0x24] sm:$0xff]   ;;  %vm3042_vm12 = vcmask 1042432   ;;  %s15387_s15 = sphi %s15890_s15, %s886_s15  }
  0xb5   : >> { %13238 = vmatprep.mubr.msk.bf16.mxu0 %vm1052_vm8, %v15895_v0  ;;  %v15917_v10 = vld [vmem:[#allocation2 + $0x30] sm:$0xff]   ;;  %v15919_v11 = vld [vmem:[#allocation2 + $0x3c] sm:$0xff]   ;;  %v15927_v15 = vld [vmem:[#allocation2 + $0x48] sm:$0xff]   ;;  %vm1746_vm9 = vsmask.f32 3328  ;;  %vm3043_vm13 = vcmask 1046532  }
  0xb6   : >> { %s15900_s28 = scalar_lea.vmem [#allocation3], %s12625_s27  ;;  %v15929_v16 = vld [vmem:[#allocation2 + $0x54] sm:$0xff]   ;;  %v15935_v17 = vld [vmem:[#allocation2 + $0x60] sm:$0xff]   ;;  %v15937_v18 = vld [vmem:[#allocation2 + $0x6c] sm:$0xff]   ;;  %vm1747_vm10 = vsmask.f32 7440 }
  0xb7   : >> { %v15128_v1 = vld [vmem:[%s15900_s28 + $0x60] sm:$0xff]   ;;  %v15129_v2 = vld [vmem:[%s15900_s28 + $0x68] sm:$0xff]   ;;  %v15130_v3 = vld [vmem:[%s15900_s28 + $0x70] sm:$0xff]   ;;  %s11591_s29 = sshll.u32 %s15387_s15, 1  ;;  %s886_s15 = sadd.s32 1, %s15387_s15  }
  0xb8   : >> { %13230 = vmatprep.subr.bf16.mxu0 %v15128_v1  ;;  %v15131_v4 = vld [vmem:[%s15900_s28 + $0x78] sm:$0xff]   ;;  %v15134_v5 = vld [vmem:[%s15900_s28] sm:$0xff]   ;;  %v15139_v8 = vld [vmem:[%s15900_s28 + $0x8] sm:$0xff]   ;;  %s16715_s30 = scalar_lea.vmem [#allocation5], %s11591_s29  ;;  %p883_p5 = scmp.ge.s32.totalorder %s886_s15, 8  }
  0xb9   : >> { %13231 = vmatpush3.bf16.msra.mxu0 %v15128_v1  ;;  %v15144_v9 = vld [vmem:[%s15900_s28 + $0x10] sm:$0xff]   ;;  %v15149_v12 = vld [vmem:[%s15900_s28 + $0x18] sm:$0xff]   ;;  %v15153_v14 = vld [vmem:[%s15900_s28 + $0xc0] sm:$0xff]  }
  0xba   : >> { %13232 = vmatprep.subr.bf16.mxu0 %v15129_v2  ;;  %v15943_v19 = vld [vmem:[#allocation2 + $0x78] sm:$0xff]   ;;  %v15945_v20 = vld [vmem:[#allocation2 + $0x84] sm:$0xff]   ;;  %v15951_v21 = vld [vmem:[#allocation2 + $0x90] sm:$0xff]  }
  0xbb   : >> { %v15953_v23 = vld [vmem:[#allocation2 + $0x9c] sm:$0xff]   ;;  %v15959_v24 = vld [vmem:[#allocation2 + $0xa8] sm:$0xff]   ;;  %v15961_v25 = vld [vmem:[#allocation2 + $0xb4] sm:$0xff]  }
  0xbc   : >> { %v15967_v27 = vld [vmem:[#allocation2 + $0xc0] sm:$0xff]   ;;  %v15154_v29 = vld [vmem:[%s15900_s28 + $0xc8] sm:$0xff]   ;;  %v15155_v30 = vld [vmem:[%s15900_s28 + $0xd0] sm:$0xff]  }
  0xbd   : >> { %13233 = vmatpush3.bf16.msra.mxu0 %v15129_v2  ;;  %v15152_v28 = vld [vmem:[#allocation2] sm:$0xff]   ;;  %v15156_v31 = vld [vmem:[%s15900_s28 + $0xd8] sm:$0xff]   ;;  %v15158_v33 = vld [vmem:[%s15900_s28 + $0x28] sm:$0xff]  }
  0xbe   : >> { %13234 = vmatprep.subr.bf16.mxu0 %v15130_v3  ;;  %v15157_v32 = vld [vmem:[%s15900_s28 + $0x20] sm:$0xff]   ;;  %v15159_v34 = vld [vmem:[%s15900_s28 + $0x30] sm:$0xff]   ;;  %v15160_v35 = vld [vmem:[%s15900_s28 + $0x38] sm:$0xff]  }
  0xbf   : >> { %v16020_v36 = vld [vmem:[%s15900_s28 + $0x80] sm:$0xff]   ;;  %v1695_v39 = vld [vmem:[#allocation2 + $0xc] sm:$0xf]  ;;  %v16041_v50 = vld [vmem:[#allocation2 + $0x10] sm:$0xf] }
  0xc0   : >> { %v1692_v37 = vld [vmem:[#allocation2] sm:$0xf]  ;;  %v16031_v38 = vld [vmem:[#allocation2 + $0x4] sm:$0xf]  ;;  %v1774_v44 = vshrl.u32 %v1695_v39, 16  ;;  %v1777_v45 = vshll.u32 %v1695_v39, 16  ;;  %vm16064_vm11 = vmor %vm1746_vm9, %vm1747_vm10 }
  0xc1   : >> { %13235 = vmatpush3.bf16.msra.mxu0 %v15130_v3  ;;  %v1750_v40 = vshrl.u32 %v1692_v37, 16  ;;  %v1753_v41 = vshll.u32 %v1692_v37, 16  ;;  %v1759_v42 = vshll.u32 %v16031_v38, 16  ;;  %v1763_v43 = vshrl.u32 %v16031_v38, 16  ;;  %v16043_v51 = vld [vmem:[#allocation2 + $0x8] sm:$0x1]  ;;  %vm16469_vm14 = vmor %vm3042_vm12, %vm3043_vm13 }
  0xc2   : >> { %13236 = vmatprep.subr.bf16.mxu0 %v15131_v4  ;;  %v1776_v52 = vrot.slane %v1774_v44, 4  ;;  %v1779_v53 = vrot.slane %v1777_v45, 5  ;;  %v1698_v54 = vld [vmem:[#allocation2 + $0x18] sm:$0xf]  ;;  %v16045_v55 = vld [vmem:[#allocation2 + $0x1c] sm:$0xf] }
  0xc3   : >> { %v1752_v46 = vrot.slane %v1750_v40, 4  ;;  %v1755_v47 = vrot.slane %v1753_v41, 5  ;;  %v16039_v48 = vrot.slane %v1759_v42, 5  ;;  %v1765_v49 = vrot.slane %v1763_v43, 4  ;;  %v16051_v61 = vld [vmem:[#allocation2 + $0x14] sm:$0x1] }
  0xc4   : >> { %v1783_v56 = vshll.u32 %v16041_v50, 16  ;;  %v1787_v57 = vshrl.u32 %v16041_v50, 16  ;;  %v1769_v60 = vshll.u32 %v16043_v51, 16  ;;  %v1780_v62 = vor.u32 %v1779_v53, %v1776_v52  ;;  %v1707_v37 = vld [vmem:[#allocation2 + $0x3c] sm:$0xf] }
  0xc5   : >> { %13237 = vmatpush3.bf16.msra.mxu0 %v15131_v4  ;;  %v1756_v58 = vor.u32 %v1755_v47, %v1752_v46  ;;  %v1766_v59 = vor.u32 %v1765_v49, %v16039_v48  ;;  %v1798_v63 = vshrl.u32 %v1698_v54, 16  ;;  %v1807_v1 = vshll.u32 %v16045_v55, 16  ;;  %v16096_v47 = vld [vmem:[#allocation2 + $0x40] sm:$0xf] }
  0xc6   : >> { %13270 = vmatprep.subr.bf16.mxu0 %v15134_v5  ;;  %v1811_v2 = vshrl.u32 %v16045_v55, 16  ;;  %v16057_v3 = vrot.slane %v1783_v56, 5  ;;  %v1789_v4 = vrot.slane %v1787_v57, 4  ;;  %v16104_v57 = vld [vmem:[#allocation2 + $0x38] sm:$0x1] }
  0xc8   : >> { %13239 = vmatmul.mubr.msk.bf16.vlgmr.msra.gmra.mrb[0].mxu0 %vm1052_vm8, %v15907_v6 }
  0xc9   : >> { %13271 = vmatpush3.bf16.msra.mxu0 %v15134_v5  ;;  %13242 = vmatprep.mubr.msk.bf16.mxu0 %vm1052_vm8, %v15909_v7  ;;  %v1701_v5 = vld [vmem:[#allocation2 + $0x24] sm:$0xf] }
  0xca   : >> { %13272 = vmatprep.subr.bf16.mxu0 %v15139_v8 }
  0xcd   : >> { %13273 = vmatpush3.bf16.msra.mxu0 %v15139_v8  ;;  %v1767_v8 = vrot.slane %v1766_v59, 4 }
  0xce   : >> { %13274 = vmatprep.subr.bf16.mxu0 %v15144_v9 }
  0xd0   : >> { %13243 = vmatmul.mubr.msk.bf16.gmra.mrb[4].mxu0 %vm1052_vm8, %v15917_v10 }
  0xd1   : >> { %13246 = vmatprep.mubr.msk.bf16.mxu0 %vm1052_vm8, %v15919_v11  ;;  %13275 = vmatpush3.bf16.msra.mxu0 %v15144_v9  ;;  %v1771_v9 = vrot.slane %v1769_v60, 5  ;;  %v1873_v60 = vshll.u32 %v1707_v37, 16 }
  0xd2   : >> { %13276 = vmatprep.subr.bf16.mxu0 %v15149_v12 }
  0xd3   : >> { %v1772_v39 = vsel %vm16064_vm11, %v1767_v8, %v1771_v9  ;;  %v15161_v8 = vld [vmem:[#allocation2 + $0xcc] sm:$0xff]  }
  0xd5   : >> { %13277 = vmatpush3.bf16.msra.mxu0 %v15149_v12 }
  0xd6   : >> { %13310 = vmatprep.subr.bf16.mxu0 %v15153_v14 }
  0xd8   : >> { %13247 = vmatmul.mubr.msk.bf16.gmra.mrb[8].mxu0 %vm1052_vm8, %v15927_v15 }
  0xd9   : >> { %13250 = vmatprep.mubr.msk.bf16.mxu0 %vm1052_vm8, %v15929_v16 }
  0xe0   : >> { %13251 = vmatmul.mubr.msk.bf16.gmra.mrb[12].mxu0 %vm1052_vm8, %v15935_v17 }
  0xe1   : >> { %13254 = vmatprep.mubr.msk.bf16.mxu0 %vm1052_vm8, %v15937_v18 }
  0xe8   : >> { %13255 = vmatmul.mubr.msk.bf16.gmra.mrb[16].mxu0 %vm1052_vm8, %v15943_v19 }
  0xe9   : >> { %13258 = vmatprep.mubr.msk.bf16.mxu0 %vm1052_vm8, %v15945_v20 }
  0xf0   : >> { %13259 = vmatmul.mubr.msk.bf16.gmra.mrb[20].mxu0 %vm1052_vm8, %v15951_v21 }
  0xf1   : >> { %13262 = vmatprep.mubr.msk.bf16.mxu0 %vm1052_vm8, %v15953_v23 }
  0xf8   : >> { %13263 = vmatmul.mubr.msk.bf16.gmra.mrb[24].mxu0 %vm1052_vm8, %v15959_v24 }
  0xf9   : >> { %13266 = vmatprep.mubr.msk.bf16.mxu0 %vm1052_vm8, %v15961_v25 }
 0x100   : >> { %13267 = vmatmul.mubr.msk.bf16.gmra.mrb[28].mxu0 %vm1052_vm8, %v15967_v27 }
 0x101   : >> { %13278 = vmatprep.mubr.msk.bf16.mxu0 %vm1052_vm8, %v15152_v28  ;;  %v1790_v28 = vor.u32 %v1789_v4, %v16057_v3 }
 0x103   : >> { %v1791_v56 = vrot.slane %v1790_v28, 4 }
 0x108   : >> { %13279 = vmatmul.mubr.msk.bf16.vlgmr.msra.gmra.mrb[0].mxu0 %vm1052_vm8, %v15895_v0  ;;  %v1801_v0 = vshll.u32 %v1698_v54, 16  ;;  %v1870_v54 = vshrl.u32 %v1707_v37, 16 }
 0x109   : >> { %13311 = vmatpush3.bf16.msra.mxu0 %v15153_v14  ;;  %13282 = vmatprep.mubr.msk.bf16.mxu0 %vm1052_vm8, %v15907_v6  ;;  %v16068_v14 = vrot.slane %v1780_v62, 4 }
 0x10a   : >> { %13312 = vmatprep.subr.bf16.mxu0 %v15154_v29 }
 0x10b   : >> { %v1786_v40 = vsel %vm16064_vm11, %v16068_v14, %v16057_v3  ;;  %v1716_v14 = vld [vmem:[#allocation2 + $0x60] sm:$0xf] }
 0x10d   : >> { %13313 = vmatpush3.bf16.msra.mxu0 %v15154_v29 }
 0x10e   : >> { %13314 = vmatprep.subr.bf16.mxu0 %v15155_v30 }
 0x110   : >> { %13283 = vmatmul.mubr.msk.bf16.gmra.mrb[4].mxu0 %vm1052_vm8, %v15909_v7 }
 0x111   : >> { %13286 = vmatprep.mubr.msk.bf16.mxu0 %vm1052_vm8, %v15917_v10  ;;  %13315 = vmatpush3.bf16.msra.mxu0 %v15155_v30 }
 0x112   : >> { %13316 = vmatprep.subr.bf16.mxu0 %v15156_v31 }
 0x115   : >> { %13317 = vmatpush3.bf16.msra.mxu0 %v15156_v31 }
 0x116   : >> { %13350 = vmatprep.subr.bf16.mxu0 %v15157_v32 }
 0x118   : >> { %13287 = vmatmul.mubr.msk.bf16.gmra.mrb[8].mxu0 %vm1052_vm8, %v15919_v11 }
 0x119   : >> { %13290 = vmatprep.mubr.msk.bf16.mxu0 %vm1052_vm8, %v15927_v15 }
 0x120   : >> { %13291 = vmatmul.mubr.msk.bf16.gmra.mrb[12].mxu0 %vm1052_vm8, %v15929_v16 }
 0x121   : >> { %13294 = vmatprep.mubr.msk.bf16.mxu0 %vm1052_vm8, %v15935_v17 }
 0x128   : >> { %13295 = vmatmul.mubr.msk.bf16.gmra.mrb[16].mxu0 %vm1052_vm8, %v15937_v18 }
 0x129   : >> { %13298 = vmatprep.mubr.msk.bf16.mxu0 %vm1052_vm8, %v15943_v19 }
 0x130   : >> { %13299 = vmatmul.mubr.msk.bf16.gmra.mrb[20].mxu0 %vm1052_vm8, %v15945_v20 }
 0x131   : >> { %13302 = vmatprep.mubr.msk.bf16.mxu0 %vm1052_vm8, %v15951_v21 }
 0x138   : >> { %13303 = vmatmul.mubr.msk.bf16.gmra.mrb[24].mxu0 %vm1052_vm8, %v15953_v23 }
 0x139   : >> { %13306 = vmatprep.mubr.msk.bf16.mxu0 %vm1052_vm8, %v15959_v24 }
 0x140   : >> { %13307 = vmatmul.mubr.msk.bf16.gmra.mrb[28].mxu0 %vm1052_vm8, %v15961_v25 }
 0x141   : >> { %13318 = vmatprep.mubr.msk.bf16.mxu0 %vm1052_vm8, %v15907_v6  ;;  %v16059_v6 = vld [vmem:[#allocation2 + $0x28] sm:$0xf] }
 0x142   : >> { %v1835_v29 = vshrl.u32 %v16059_v6, 16 }
 0x144   : >> { %v1837_v49 = vrot.slane %v1835_v29, 4 }
 0x148   : >> { %13319 = vmatmul.mubr.msk.bf16.vlgmr.msra.gmra.mrb[0].mxu0 %vm1052_vm8, %v15909_v7  ;;  %v1757_v7 = vrot.slane %v1756_v58, 4 }
 0x149   : >> { %13351 = vmatpush3.bf16.msra.mxu0 %v15157_v32  ;;  %13322 = vmatprep.mubr.msk.bf16.mxu0 %vm1052_vm8, %v15917_v10  ;;  %v1793_v10 = vshll.u32 %v16051_v61, 16 }
 0x14a   : >> { %13352 = vmatprep.subr.bf16.mxu0 %v15158_v33  ;;  %v1762_v32 = vsel %vm16064_vm11, %v1757_v7, %v16039_v48  ;;  %v16100_v48 = vld [vmem:[#allocation2 + $0x2c] sm:$0x1] }
 0x14b   : >> { %v11699_v62 = vcombine.low %v1762_v32, %v1772_v39  ;;  %v1841_v7 = vshll.u32 %v16100_v48, 16 }
 0x14d   : >> { %13353 = vmatpush3.bf16.msra.mxu0 %v15158_v33  ;;  %v16082_v33 = vrot.slane %v1793_v10, 5  ;;  %v16130_v37 = vrot.slane %v1841_v7, 5 }
 0x14e   : >> { %13354 = vmatprep.subr.bf16.mxu0 %v15159_v34 }
 0x14f   : >> { %v1796_v32 = vsel %vm16064_vm11, %v1791_v56, %v16082_v33  ;;  %v16144_v56 = vld [vmem:[#allocation2 + $0x50] sm:$0x1] }
 0x150   : >> { %13323 = vmatmul.mubr.msk.bf16.gmra.mrb[4].mxu0 %vm1052_vm8, %v15919_v11  ;;  %v1704_v11 = vld [vmem:[#allocation2 + $0x30] sm:$0xf] }
 0x151   : >> { %13326 = vmatprep.mubr.msk.bf16.mxu0 %vm1052_vm8, %v15927_v15  ;;  %13355 = vmatpush3.bf16.msra.mxu0 %v15159_v34  ;;  %v1800_v15 = vrot.slane %v1798_v63, 4  ;;  %v1846_v30 = vshrl.u32 %v1704_v11, 16  ;;  %v1849_v31 = vshll.u32 %v1704_v11, 16  ;;  %v1865_v11 = vshll.u32 %v16104_v57, 16 }
 0x152   : >> { %13356 = vmatprep.subr.bf16.mxu0 %v15160_v35 }
 0x153   : >> { %v1848_v52 = vrot.slane %v1846_v30, 4  ;;  %v1851_v53 = vrot.slane %v1849_v31, 5 }
 0x155   : >> { %13357 = vmatpush3.bf16.msra.mxu0 %v15160_v35  ;;  %v1852_v10 = vor.u32 %v1851_v53, %v1848_v52  ;;  %v16141_v52 = vld [vmem:[#allocation2 + $0x58] sm:$0xf] }
 0x156   : >> { %13390 = vmatprep.subr.bf16.mxu0 %v16020_v36  ;;  %v1931_v3 = vshrl.u32 %v16141_v52, 16 }
 0x158   : >> { %13327 = vmatmul.mubr.msk.bf16.gmra.mrb[8].mxu0 %vm1052_vm8, %v15929_v16  ;;  %v1803_v16 = vrot.slane %v1801_v0, 5  ;;  %v1883_v0 = vshrl.u32 %v16096_v47, 16 }
 0x159   : >> { %13330 = vmatprep.mubr.msk.bf16.mxu0 %vm1052_vm8, %v15935_v17  ;;  %v16070_v17 = vrot.slane %v1807_v1, 5  ;;  %v1710_v1 = vld [vmem:[#allocation2 + $0x48] sm:$0xf] }
 0x15a   : >> { %v1804_v41 = vor.u32 %v1803_v16, %v1800_v15  ;;  %v1872_v15 = vrot.slane %v1870_v54, 4  ;;  %v1885_v29 = vrot.slane %v1883_v0, 4 }
 0x15c   : >> { %v1805_v63 = vrot.slane %v1804_v41, 4 }
 0x160   : >> { %13331 = vmatmul.mubr.msk.bf16.gmra.mrb[12].mxu0 %vm1052_vm8, %v15937_v18  ;;  %v16072_v18 = vld [vmem:[#allocation2 + $0x34] sm:$0xf] }
 0x161   : >> { %13334 = vmatprep.mubr.msk.bf16.mxu0 %vm1052_vm8, %v15943_v19  ;;  %v16074_v19 = vld [vmem:[#allocation2 + $0x20] sm:$0x1]  ;;  %v1855_v34 = vshll.u32 %v16072_v18, 16  ;;  %v1859_v35 = vshrl.u32 %v16072_v18, 16 }
 0x162   : >> { %v1817_v42 = vshll.u32 %v16074_v19, 16 }
 0x163   : >> { %v16106_v58 = vrot.slane %v1855_v34, 5  ;;  %v1861_v59 = vrot.slane %v1859_v35, 4  ;;  %v1810_v34 = vsel %vm16064_vm11, %v1805_v63, %v16070_v17 }
 0x164   : >> { %v1819_v4 = vrot.slane %v1817_v42, 5  ;;  %v16137_v42 = vrot.slane %v1852_v10, 4 }
 0x165   : >> { %v1862_v16 = vor.u32 %v1861_v59, %v16106_v58 }
 0x167   : >> { %v1863_v53 = vrot.slane %v1862_v16, 4 }
 0x168   : >> { %13335 = vmatmul.mubr.msk.bf16.gmra.mrb[16].mxu0 %vm1052_vm8, %v15945_v20  ;;  %v1813_v20 = vrot.slane %v1811_v2, 4 }
 0x169   : >> { %13338 = vmatprep.mubr.msk.bf16.mxu0 %vm1052_vm8, %v15951_v21  ;;  %v1822_v21 = vshrl.u32 %v1701_v5, 16 }
 0x16a   : >> { %v1814_v43 = vor.u32 %v1813_v20, %v16070_v17  ;;  %v1875_v20 = vrot.slane %v1873_v60, 5 }
 0x16b   : >> { %v1824_v44 = vrot.slane %v1822_v21, 4  ;;  %v1894_v21 = vshrl.u32 %v1710_v1, 16 }
 0x16c   : >> { %v1815_v2 = vrot.slane %v1814_v43, 4  ;;  %v1867_v43 = vrot.slane %v1865_v11, 5  ;;  %v1876_v33 = vor.u32 %v1875_v20, %v1872_v15  ;;  %v15163_v15 = vld [vmem:[%s15900_s28 + $0x88] sm:$0xff]   ;;  %v16184_v20 = vld [vmem:[#allocation2 + $0x5c] sm:$0x1] }
 0x16e   : >> { %v1820_v39 = vsel %vm16064_vm11, %v1815_v2, %v1819_v4  ;;  %v1927_v4 = vshll.u32 %v16141_v52, 16  ;;  %v1868_v10 = vsel %vm16064_vm11, %v1863_v53, %v1867_v43 }
 0x16f   : >> { %v16155_v63 = vcombine.low %v1810_v34, %v1820_v39 }
 0x170   : >> { %13339 = vmatmul.mubr.msk.bf16.gmra.mrb[20].mxu0 %vm1052_vm8, %v15953_v23  ;;  %v1825_v23 = vshll.u32 %v1701_v5, 16 }
 0x171   : >> { %13342 = vmatprep.mubr.msk.bf16.mxu0 %vm1052_vm8, %v15959_v24  ;;  %v1831_v24 = vshll.u32 %v16059_v6, 16 }
 0x172   : >> { %v1827_v45 = vrot.slane %v1825_v23, 5  ;;  %v1897_v23 = vshll.u32 %v1710_v1, 16 }
 0x173   : >> { %v16094_v46 = vrot.slane %v1831_v24, 5  ;;  %v16116_v24 = vld [vmem:[#allocation2 + $0x44] sm:$0x1] }
 0x174   : >> { %v1828_v5 = vor.u32 %v1827_v45, %v1824_v44  ;;  %v1713_v44 = vld [vmem:[#allocation2 + $0x54] sm:$0xf]  ;;  %v1889_v17 = vshll.u32 %v16116_v24, 16  ;;  %v1896_v45 = vrot.slane %v1894_v21, 4  ;;  %v1719_v21 = vld [vmem:[#allocation2 + $0x6c] sm:$0xf] }
 0x175   : >> { %v1838_v9 = vor.u32 %v1837_v49, %v16094_v46  ;;  %v1899_v49 = vrot.slane %v1897_v23, 5  ;;  %v1921_v0 = vshll.u32 %v1713_v44, 16  ;;  %v1942_v23 = vshrl.u32 %v1716_v14, 16 }
 0x176   : >> { %v16128_v35 = vrot.slane %v1828_v5, 4  ;;  %v16169_v5 = vrot.slane %v1876_v33, 4  ;;  %v16171_v7 = vrot.slane %v1889_v17, 5  ;;  %v1966_v43 = vshrl.u32 %v1719_v21, 16 }
 0x177   : >> { %v16135_v41 = vrot.slane %v1838_v9, 4  ;;  %v1913_v9 = vshll.u32 %v16144_v56, 16  ;;  %v1923_v34 = vrot.slane %v1921_v0, 5  ;;  %v1969_v33 = vshll.u32 %v1719_v21, 16 }
 0x178   : >> { %13343 = vmatmul.mubr.msk.bf16.gmra.mrb[24].mxu0 %vm1052_vm8, %v15961_v25  ;;  %v1879_v25 = vshll.u32 %v16096_v47, 16  ;;  %v1834_v1 = vsel %vm16064_vm11, %v16128_v35, %v16094_v46  ;;  %v1858_v46 = vsel %vm16064_vm11, %v16137_v42, %v16106_v58  ;;  %v16192_v35 = vrot.slane %v1927_v4, 5 }
 0x179   : >> { %13346 = vmatprep.mubr.msk.bf16.mxu0 %vm1052_vm8, %v15967_v27  ;;  %v16111_v27 = vld [vmem:[#allocation2 + $0x4c] sm:$0xf]  ;;  %v1844_v2 = vsel %vm16064_vm11, %v16135_v41, %v16130_v37  ;;  %v1933_v37 = vrot.slane %v1931_v3, 4  ;;  %v1915_v41 = vrot.slane %v1913_v9, 5  ;;  %v1937_v42 = vshll.u32 %v16184_v20, 16 }
 0x17a   : >> { %v16118_v28 = vrot.slane %v1879_v25, 5  ;;  %v1903_v30 = vshll.u32 %v16111_v27, 16  ;;  %v1907_v31 = vshrl.u32 %v16111_v27, 16  ;;  %v1918_v25 = vshrl.u32 %v1713_v44, 16 }
 0x17b   : >> { %v1944_v53 = vrot.slane %v1942_v23, 4  ;;  %v16205_v0 = vcombine.low %v1858_v46, %v1868_v10  ;;  %v1934_v3 = vor.u32 %v1933_v37, %v16192_v35  ;;  %v1722_v46 = vld [vmem:[#allocation2 + $0x78] sm:$0xf] }
 0x17c   : >> { %v1886_v54 = vor.u32 %v1885_v29, %v16118_v28  ;;  %v16146_v59 = vrot.slane %v1903_v30, 5  ;;  %v1909_v60 = vrot.slane %v1907_v31, 4  ;;  %v1945_v29 = vshll.u32 %v1716_v14, 16  ;;  %v16208_v14 = vld [vmem:[#allocation2 + $0x68] sm:$0x1] }
 0x17d   : >> { %v1920_v58 = vrot.slane %v1918_v25, 4  ;;  %v16203_v25 = vcombine.low %v1834_v1, %v1844_v2  ;;  %v16218_v1 = vrot.slane %v1937_v42, 5  ;;  %v1968_v2 = vrot.slane %v1966_v43, 4 }
 0x17e   : >> { %v16180_v11 = vrot.slane %v1886_v54, 4  ;;  %v1910_v16 = vor.u32 %v1909_v60, %v16146_v59  ;;  %v1947_v54 = vrot.slane %v1945_v29, 5  ;;  %v1961_v29 = vshll.u32 %v16208_v14, 16 }
 0x17f   : >> { %v1924_v4 = vor.u32 %v1923_v34, %v1920_v58  ;;  %v1990_v58 = vshrl.u32 %v1722_v46, 16  ;;  %v1993_v34 = vshll.u32 %v1722_v46, 16  ;;  %v1728_v46 = vld [vmem:[#allocation2 + $0x90] sm:$0xf] }
 0x180   : >> { %13347 = vmatmul.mubr.msk.bf16.gmra.mrb[28].mxu0 %vm1052_vm8, %v15161_v8  ;;  %v1900_v8 = vor.u32 %v1899_v49, %v1896_v45  ;;  %v1911_v44 = vrot.slane %v1910_v16, 4  ;;  %v15164_v49 = vld [vmem:[%s15900_s28 + $0x90] sm:$0xff]   ;;  %v1892_v9 = vsel %vm16064_vm11, %v16180_v11, %v16171_v7  ;;  %v1971_v16 = vrot.slane %v1969_v33, 5  ;;  %v1725_v33 = vld [vmem:[#allocation2 + $0x84] sm:$0xf] }
 0x181   : >> { %13358 = vmatprep.mubr.msk.bf16.mxu0 %vm1052_vm8, %v11699_v62  ;;  %v16153_v62 = vcombine.low %v1786_v40, %v1796_v32  ;;  %v16167_v40 = vld [vmem:[#allocation2 + $0x64] sm:$0xf]  ;;  %v16188_v32 = vld [vmem:[#allocation2 + $0x70] sm:$0xf]  ;;  %v1948_v11 = vor.u32 %v1947_v54, %v1944_v53 }
 0x182   : >> { %v1951_v30 = vshll.u32 %v16167_v40, 16  ;;  %v1955_v31 = vshrl.u32 %v16167_v40, 16  ;;  %18779 = vst [vmem:[#allocation12_spill] sm:$0xff] %v16188_v32  ;;  %v1901_v39 = vrot.slane %v1900_v8, 4  ;;  %v1975_v17 = vshll.u32 %v16188_v32, 16 }
 0x183   : >> { %v1979_v45 = vshrl.u32 %v16188_v32, 16  ;;  %v1882_v8 = vsel %vm16064_vm11, %v16169_v5, %v16118_v28  ;;  %v16225_v28 = vld [vmem:[#allocation2 + $0x7c] sm:$0xf]  ;;  %v1916_v7 = vsel %vm16064_vm11, %v1911_v44, %v1915_v41  ;;  %v1972_v42 = vor.u32 %v1971_v16, %v1968_v2  ;;  %v16257_v2 = vld [vmem:[#allocation2 + $0x88] sm:$0xf] }
 0x184   : >> { %v16201_v60 = vrot.slane %v1951_v30, 5  ;;  %v1906_v10 = vsel %vm16064_vm11, %v1901_v39, %v16146_v59  ;;  %v16223_v21 = vrot.slane %v1975_v17, 5  ;;  %18780 = vst [vmem:[#allocation13_spill] sm:$0xff] %v16225_v28  ;;  %v15165_v5 = vld [vmem:[%s15900_s28 + $0x98] sm:$0xff]   ;;  %v16232_v30 = vld [vmem:[#allocation2 + $0x74] sm:$0x1]  ;;  %v16240_v41 = vcombine.low %v1882_v8, %v1892_v9 }
 0x185   : >> { %v1981_v23 = vrot.slane %v1979_v45, 4  ;;  %18781 = vst [vmem:[#allocation14_spill] sm:$0xff] %v16232_v30  ;;  %v1925_v59 = vrot.slane %v1924_v4, 4  ;;  %v1999_v37 = vshll.u32 %v16225_v28, 16  ;;  %v2003_v39 = vshrl.u32 %v16225_v28, 16  ;;  %v16245_v17 = vld [vmem:[%s15900_s28 + $0xe0] sm:$0xff]  }
 0x186   : >> { %v1985_v44 = vshll.u32 %v16232_v30, 16  ;;  %v16247_v45 = vcombine.low %v1906_v10, %v1916_v7  ;;  %v1949_v53 = vrot.slane %v1948_v11, 4  ;;  %v1992_v8 = vrot.slane %v1990_v58, 4  ;;  %18783 = vst [vmem:[#allocation16_spill] sm:$0xff] %v16257_v2  ;;  %v16261_v11 = vld [vmem:[#allocation2 + $0x94] sm:$0xf] }
 0x187   : >> { %v1982_v43 = vor.u32 %v1981_v23, %v16223_v21  ;;  %v1930_v4 = vsel %vm16064_vm11, %v1925_v59, %v16192_v35  ;;  %v1995_v9 = vrot.slane %v1993_v34, 5  ;;  %v16259_v10 = vrot.slane %v1999_v37, 5  ;;  %18784 = vst [vmem:[#allocation17_spill] sm:$0xff] %v16261_v11  ;;  %v16323_v32 = vld [vmem:[#allocation2 + $0xb8] sm:$0xf] }
 0x188   : >> { %13359 = vmatmul.mubr.msk.bf16.vlgmr.msra.gmra.mrb[0].mxu0 %vm1052_vm8, %v16153_v62  ;;  %v2005_v16 = vrot.slane %v2003_v39, 4  ;;  %v2014_v23 = vshrl.u32 %v1725_v33, 16  ;;  %v2017_v7 = vshll.u32 %v1725_v33, 16  ;;  %v1987_v35 = vrot.slane %v1985_v44, 5 }
 0x189   : >> { %13391 = vmatpush3.bf16.msra.mxu0 %v16020_v36  ;;  %13362 = vmatprep.mubr.msk.bf16.mxu0 %vm1052_vm8, %v16155_v63  ;;  %v1957_v36 = vrot.slane %v1955_v31, 4  ;;  %v1935_v31 = vrot.slane %v1934_v3, 4  ;;  %v2038_v58 = vshrl.u32 %v1728_v46, 16  ;;  %v2041_v34 = vshll.u32 %v1728_v46, 16 }
 0x18a   : >> { %13392 = vmatprep.subr.bf16.mxu0 %v15163_v15  ;;  %v2047_v39 = vshll.u32 %v16261_v11, 16  ;;  %v2006_v44 = vor.u32 %v2005_v16, %v16259_v10  ;;  %v2016_v33 = vrot.slane %v2014_v23, 4  ;;  %v2019_v46 = vrot.slane %v2017_v7, 5  ;;  %v16292_v16 = vld [vmem:[#allocation2 + $0x98] sm:$0x1] }
 0x18b   : >> { %v1940_v3 = vsel %vm16064_vm11, %v1935_v31, %v16218_v1  ;;  %v2023_v1 = vshll.u32 %v16257_v2, 16  ;;  %v2027_v31 = vshrl.u32 %v16257_v2, 16  ;;  %v2040_v13 = vrot.slane %v2038_v58, 4  ;;  %18786 = vst [vmem:[#allocation19_spill] sm:$0xff] %v16292_v16  ;;  %v1731_v7 = vld [vmem:[#allocation2 + $0x9c] sm:$0xf] }
 0x18c   : >> { %v16294_v23 = vrot.slane %v2047_v39, 5  ;;  %v2057_v58 = vshll.u32 %v16292_v16, 16 }
 0x18d   : >> { %13393 = vmatpush3.bf16.msra.mxu0 %v15163_v15  ;;  %v1958_v15 = vor.u32 %v1957_v36, %v16201_v60  ;;  %v16249_v36 = vld [vmem:[#allocation2 + $0x80] sm:$0x1]  ;;  %v2029_v22 = vrot.slane %v2027_v31, 4 }
 0x18e   : >> { %13394 = vmatprep.subr.bf16.mxu0 %v15164_v49  ;;  %18782 = vst [vmem:[#allocation15_spill] sm:$0xff] %v16249_v36  ;;  %v2009_v59 = vshll.u32 %v16249_v36, 16  ;;  %v2059_v16 = vrot.slane %v2057_v58, 5  ;;  %v16319_v36 = vld [vmem:[#allocation2 + $0xa4] sm:$0x1] }
 0x18f   : >> { %v1959_v54 = vrot.slane %v1958_v15, 4  ;;  %v1973_v15 = vrot.slane %v1972_v42, 4  ;;  %v2051_v42 = vshrl.u32 %v16261_v11, 16  ;;  %v2043_v11 = vrot.slane %v2041_v34, 5  ;;  %18789 = vst [vmem:[#allocation22_spill] sm:$0xff] %v16319_v36 }
 0x190   : >> { %13363 = vmatmul.mubr.msk.bf16.gmra.mrb[4].mxu0 %vm1052_vm8, %v16203_v25  ;;  %v2062_v34 = vshrl.u32 %v1731_v7, 16  ;;  %v2081_v58 = vshll.u32 %v16319_v36, 16 }
 0x191   : >> { %13366 = vmatprep.mubr.msk.bf16.mxu0 %vm1052_vm8, %v16205_v0  ;;  %13395 = vmatpush3.bf16.msra.mxu0 %v15164_v49  ;;  %v1963_v49 = vrot.slane %v1961_v29, 5  ;;  %v1983_v29 = vrot.slane %v1982_v43, 4  ;;  %v1996_v43 = vor.u32 %v1995_v9, %v1992_v8  ;;  %v1978_v26 = vsel %vm16064_vm11, %v1973_v15, %v16223_v21 }
 0x192   : >> { %13396 = vmatprep.subr.bf16.mxu0 %v15165_v5  ;;  %v16288_v8 = vcombine.low %v1930_v4, %v1940_v3  ;;  %v2053_v21 = vrot.slane %v2051_v42, 4  ;;  %v2044_v3 = vor.u32 %v2043_v11, %v2040_v13  ;;  %v2065_v42 = vshll.u32 %v1731_v7, 16 }
 0x193   : >> { %v1964_v37 = vsel %vm16064_vm11, %v1959_v54, %v1963_v49  ;;  %v16284_v54 = vld [vmem:[#allocation2 + $0x8c] sm:$0x1]  ;;  %v16286_v49 = vrot.slane %v2023_v1, 5  ;;  %v1997_v15 = vrot.slane %v1996_v43, 4  ;;  %v16297_v1 = vld [vmem:[#allocation2 + $0xa0] sm:$0xf] }
 0x194   : >> { %18785 = vst [vmem:[#allocation18_spill] sm:$0xff] %v16284_v54  ;;  %18787 = vst [vmem:[#allocation20_spill] sm:$0xff] %v16297_v1  ;;  %v2054_v39 = vor.u32 %v2053_v21, %v16294_v23  ;;  %v2071_v43 = vshll.u32 %v16297_v1, 16  ;;  %v2067_v30 = vrot.slane %v2065_v42, 5 }
 0x195   : >> { %13397 = vmatpush3.bf16.msra.mxu0 %v15165_v5  ;;  %v1954_v5 = vsel %vm16064_vm11, %v1949_v53, %v16201_v60  ;;  %v1988_v60 = vsel %vm16064_vm11, %v1983_v29, %v1987_v35  ;;  %v2011_v53 = vrot.slane %v2009_v59, 5  ;;  %v2007_v29 = vrot.slane %v2006_v44, 4 }
 0x196   : >> { %13430 = vmatprep.subr.bf16.mxu0 %v16245_v17  ;;  %v16290_v9 = vcombine.low %v1954_v5, %v1964_v37  ;;  %v2020_v35 = vor.u32 %v2019_v46, %v2016_v33  ;;  %v2033_v59 = vshll.u32 %v16284_v54, 16  ;;  %v16299_v31 = vcombine.low %v1978_v26, %v1988_v60  ;;  %v1734_v5 = vld [vmem:[#allocation2 + $0xa8] sm:$0xf]  ;;  %v16303_v37 = vld [vmem:[#allocation2 + $0xac] sm:$0xf] }
 0x197   : >> { %v2030_v4 = vor.u32 %v2029_v22, %v16286_v49  ;;  %18788 = vst [vmem:[#allocation21_spill] sm:$0xff] %v16303_v37  ;;  %v2075_v26 = vshrl.u32 %v16297_v1, 16  ;;  %v2002_v13 = vsel %vm16064_vm11, %v1997_v15, %v16259_v10  ;;  %v2012_v22 = vsel %vm16064_vm11, %v2007_v29, %v2011_v53  ;;  %v1737_v53 = vld [vmem:[#allocation2 + $0xb4] sm:$0xf] }
 0x198   : >> { %13367 = vmatmul.mubr.msk.bf16.gmra.mrb[8].mxu0 %vm1052_vm8, %v16240_v41  ;;  %v2021_v11 = vrot.slane %v2020_v35, 4  ;;  %v2035_v44 = vrot.slane %v2033_v59, 5  ;;  %v2086_v33 = vshrl.u32 %v1734_v5, 16  ;;  %v2089_v46 = vshll.u32 %v1734_v5, 16 }
 0x199   : >> { %13370 = vmatprep.mubr.msk.bf16.mxu0 %vm1052_vm8, %v16247_v45  ;;  %v2095_v60 = vshll.u32 %v16303_v37, 16  ;;  %v2099_v21 = vshrl.u32 %v16303_v37, 16  ;;  %v2031_v7 = vrot.slane %v2030_v4, 4  ;;  %v2045_v1 = vrot.slane %v2044_v3, 4  ;;  %v16349_v37 = vld [vmem:[#allocation2 + $0xbc] sm:$0x1] }
 0x19a   : >> { %v2064_v54 = vrot.slane %v2062_v34, 4  ;;  %v2055_v2 = vrot.slane %v2054_v39, 4  ;;  %v2073_v10 = vrot.slane %v2071_v43, 5  ;;  %v2077_v15 = vrot.slane %v2075_v26, 4  ;;  %v16331_v34 = vld [vmem:[#allocation2 + $0xb0] sm:$0x1] }
 0x19b   : >> { %v16321_v28 = vcombine.low %v2002_v13, %v2012_v22  ;;  %v2088_v29 = vrot.slane %v2086_v33, 4  ;;  %v2091_v35 = vrot.slane %v2089_v46, 5  ;;  %v2097_v59 = vrot.slane %v2095_v60, 5 }
 0x19c   : >> { %v2101_v5 = vrot.slane %v2099_v21, 4  ;;  %v2026_v4 = vsel %vm16064_vm11, %v2021_v11, %v16286_v49  ;;  %v2036_v3 = vsel %vm16064_vm11, %v2031_v7, %v2035_v44  ;;  %v2050_v39 = vsel %vm16064_vm11, %v2045_v1, %v16294_v23 }
 0x19d   : >> { %v2060_v42 = vsel %vm16064_vm11, %v2055_v2, %v2059_v16  ;;  %v2068_v43 = vor.u32 %v2067_v30, %v2064_v54  ;;  %v2078_v26 = vor.u32 %v2077_v15, %v2073_v10  ;;  %v2110_v49 = vshrl.u32 %v1737_v53, 16 }
 0x19e   : >> { %v2113_v13 = vshll.u32 %v1737_v53, 16  ;;  %v2119_v22 = vshll.u32 %v16323_v32, 16  ;;  %v2123_v11 = vshrl.u32 %v16323_v32, 16  ;;  %v2092_v44 = vor.u32 %v2091_v35, %v2088_v29 }
 0x19f   : >> { %v2102_v33 = vor.u32 %v2101_v5, %v2097_v59  ;;  %v2105_v46 = vshll.u32 %v16331_v34, 16  ;;  %v16345_v60 = vcombine.low %v2026_v4, %v2036_v3  ;;  %v16347_v23 = vcombine.low %v2050_v39, %v2060_v42 }
 0x1a0   : >> { %13371 = vmatmul.mubr.msk.bf16.gmra.mrb[12].mxu0 %vm1052_vm8, %v16288_v8  ;;  %v2069_v2 = vrot.slane %v2068_v43, 4  ;;  %v2079_v30 = vrot.slane %v2078_v26, 4  ;;  %v2083_v54 = vrot.slane %v2081_v58, 5  ;;  %v2112_v16 = vrot.slane %v2110_v49, 4 }
 0x1a1   : >> { %13374 = vmatprep.mubr.msk.bf16.mxu0 %vm1052_vm8, %v16290_v9  ;;  %v2115_v1 = vrot.slane %v2113_v13, 5  ;;  %v2121_v21 = vrot.slane %v2119_v22, 5  ;;  %v2125_v7 = vrot.slane %v2123_v11, 4  ;;  %v2093_v15 = vrot.slane %v2092_v44, 4  ;;  %v15167_v22 = vld [vmem:[%s15900_s28 + $0xe8] sm:$0xff]   ;;  %v15168_v11 = vld [vmem:[%s15900_s28 + $0xf0] sm:$0xff]  }
 0x1a2   : >> { %v2103_v53 = vrot.slane %v2102_v33, 4  ;;  %v2107_v36 = vrot.slane %v2105_v46, 5  ;;  %v2074_v29 = vsel %vm16064_vm11, %v2069_v2, %v2073_v10  ;;  %v2084_v35 = vsel %vm16064_vm11, %v2079_v30, %v2083_v54  ;;  %v15169_v44 = vld [vmem:[%s15900_s28 + $0xf8] sm:$0xff]   ;;  %v16403_v33 = vld [vmem:[#allocation2 + $0xc4] sm:$0xf] }
 0x1a3   : >> { %v2116_v5 = vor.u32 %v2115_v1, %v2112_v16  ;;  %v2126_v4 = vor.u32 %v2125_v7, %v2121_v21  ;;  %v2129_v3 = vshll.u32 %v16349_v37, 16  ;;  %v2098_v58 = vsel %vm16064_vm11, %v2093_v15, %v2097_v59  ;;  %v16411_v15 = vld [vmem:[#allocation2 + $0xc8] sm:$0x1] }
 0x1a4   : >> { %v2108_v39 = vsel %vm16064_vm11, %v2103_v53, %v2107_v36  ;;  %v16364_v42 = vcombine.low %v2074_v29, %v2084_v35  ;;  %v2468_v30 = vshll.u32 %v16403_v33, 16  ;;  %v2472_v54 = vshrl.u32 %v16403_v33, 16 }
 0x1a5   : >> { %v16366_v10 = vcombine.low %v2098_v58, %v2108_v39  ;;  %v2117_v43 = vrot.slane %v2116_v5, 4  ;;  %v2127_v26 = vrot.slane %v2126_v4, 4  ;;  %v2131_v49 = vrot.slane %v2129_v3, 5 }
 0x1a6   : >> { %v2474_v7 = vrot.slane %v2472_v54, 4  ;;  %v2478_v35 = vshll.u32 %v16411_v15, 16 }
 0x1a7   : >> { %v2122_v59 = vsel %vm16064_vm11, %v2117_v43, %v2121_v21  ;;  %v2132_v36 = vsel %vm16064_vm11, %v2127_v26, %v2131_v49  ;;  %v2470_v21 = vrot.slane %v2468_v30, 5  ;;  %v15171_v26 = vld [vmem:[%s15900_s28 + $0x48] sm:$0xff]   ;;  %v15172_v49 = vld [vmem:[%s15900_s28 + $0x50] sm:$0xff]  }
 0x1a8   : >> { %13375 = vmatmul.mubr.msk.bf16.gmra.mrb[16].mxu0 %vm1052_vm8, %v16299_v31  ;;  %v16376_v13 = vcombine.low %v2122_v59, %v2132_v36  ;;  %v2480_v3 = vrot.slane %v2478_v35, 5  ;;  %v15173_v59 = vld [vmem:[%s15900_s28 + $0x58] sm:$0xff]  }
 0x1a9   : >> { %13378 = vmatprep.mubr.msk.bf16.mxu0 %vm1052_vm8, %v16321_v28  ;;  %v2475_v29 = vor.u32 %v2474_v7, %v2470_v21 }
 0x1ab   : >> { %v2476_v4 = vrot.slane %v2475_v29, 4  ;;  %v3061_v29 = vrot.slane %v16045_v55, 5 }
 0x1ad   : >> { %v2481_v39 = vsel %vm16064_vm11, %v2476_v4, %v2480_v3 }
 0x1b0   : >> { %13379 = vmatmul.mubr.msk.bf16.gmra.mrb[20].mxu0 %vm1052_vm8, %v16345_v60 }
 0x1b1   : >> { %13382 = vmatprep.mubr.msk.bf16.mxu0 %vm1052_vm8, %v16347_v23 }
 0x1b8   : >> { %13383 = vmatmul.mubr.msk.bf16.gmra.mrb[24].mxu0 %vm1052_vm8, %v16364_v42 }
 0x1b9   : >> { %13386 = vmatprep.mubr.msk.bf16.mxu0 %vm1052_vm8, %v16366_v10 }
 0x1c0   : >> { %13387 = vmatmul.mubr.msk.bf16.gmra.mrb[28].mxu0 %vm1052_vm8, %v16376_v13 }
 0x1c1   : >> { %13398 = vmatprep.mubr.msk.bf16.mxu0 %vm1052_vm8, %v16153_v62  ;;  %v15170_v62 = vld [vmem:[%s15900_s28 + $0x40] sm:$0xff]  }
 0x1c8   : >> { %13399 = vmatmul.mubr.msk.bf16.vlgmr.msra.gmra.mrb[0].mxu0 %vm1052_vm8, %v16155_v63 }
 0x1c9   : >> { %13431 = vmatpush3.bf16.msra.mxu0 %v16245_v17  ;;  %13402 = vmatprep.mubr.msk.bf16.mxu0 %vm1052_vm8, %v16203_v25  ;;  %v1740_v17 = vld [vmem:[#allocation2 + $0xc0] sm:$0xf] }
 0x1ca   : >> { %13432 = vmatprep.subr.bf16.mxu0 %v15167_v22  ;;  %v2459_v46 = vshrl.u32 %v1740_v17, 16  ;;  %v2462_v2 = vshll.u32 %v1740_v17, 16  ;;  %v2976_v17 = vld [vmem:[#allocation2] sm:$0xe] }
 0x1cb   : >> { %v11795_v54 = vrot.slane %v2976_v17, 9  ;;  %v15176_v17 = vld [vmem:[%s15900_s28 + $0xb0] sm:$0xff]  }
 0x1cc   : >> { %v2461_v16 = vrot.slane %v2459_v46, 4  ;;  %v2464_v1 = vrot.slane %v2462_v2, 5 }
 0x1cd   : >> { %13433 = vmatpush3.bf16.msra.mxu0 %v15167_v22 }
 0x1ce   : >> { %13434 = vmatprep.subr.bf16.mxu0 %v15168_v11  ;;  %v2465_v53 = vor.u32 %v2464_v1, %v2461_v16  ;;  %v3050_v1 = vrot.slane %v16043_v51, 5 }
 0x1d0   : >> { %13403 = vmatmul.mubr.msk.bf16.gmra.mrb[4].mxu0 %vm1052_vm8, %v16205_v0  ;;  %v2466_v5 = vrot.slane %v2465_v53, 4  ;;  %v2977_v53 = vld [vmem:[#allocation2 + $0xc] sm:$0xe] }
 0x1d1   : >> { %13406 = vmatprep.mubr.msk.bf16.mxu0 %vm1052_vm8, %v16240_v41  ;;  %13435 = vmatpush3.bf16.msra.mxu0 %v15168_v11  ;;  %v11796_v4 = vrot.slane %v2977_v53, 9  ;;  %v2983_v53 = vld [vmem:[#allocation2 + $0x54] sm:$0xe] }
 0x1d2   : >> { %13436 = vmatprep.subr.bf16.mxu0 %v15169_v44  ;;  %v2471_v58 = vsel %vm16064_vm11, %v2466_v5, %v2470_v21  ;;  %v3054_v21 = vrot.slane %v16041_v50, 5  ;;  %v3064_v50 = vrot.slane %v16074_v19, 5  ;;  %v2979_v19 = vld [vmem:[#allocation2 + $0x24] sm:$0xe] }
 0x1d3   : >> { %v11744_v43 = vcombine.low %v2471_v58, %v2481_v39  ;;  %v3057_v58 = vrot.slane %v16051_v61, 5 }
 0x1d4   : >> { %v3056_v3 = vrot.slane %v3054_v21, 4 }
 0x1d5   : >> { %13437 = vmatpush3.bf16.msra.mxu0 %v15169_v44 }
 0x1d6   : >> { %13470 = vmatprep.subr.bf16.mxu0 %v15170_v62  ;;  %v3058_v55 = vsel %vm16469_vm14, %v3056_v3, %v3057_v58  ;;  %v11802_v3 = vrot.slane %v2983_v53, 9  ;;  %v3099_v58 = vrot.slane %v16184_v20, 5  ;;  %v18793_v20 = vld [vmem:[#allocation12_spill] sm:$0xff] }
 0x1d8   : >> { %13407 = vmatmul.mubr.msk.bf16.gmra.mrb[8].mxu0 %vm1052_vm8, %v16247_v45 }
 0x1d9   : >> { %13410 = vmatprep.mubr.msk.bf16.mxu0 %vm1052_vm8, %v16288_v8 }
 0x1e0   : >> { %13411 = vmatmul.mubr.msk.bf16.gmra.mrb[12].mxu0 %vm1052_vm8, %v16290_v9 }
 0x1e1   : >> { %13414 = vmatprep.mubr.msk.bf16.mxu0 %vm1052_vm8, %v16299_v31 }
 0x1e8   : >> { %13415 = vmatmul.mubr.msk.bf16.gmra.mrb[16].mxu0 %vm1052_vm8, %v16321_v28 }
 0x1e9   : >> { %13418 = vmatprep.mubr.msk.bf16.mxu0 %vm1052_vm8, %v16345_v60 }
 0x1f0   : >> { %13419 = vmatmul.mubr.msk.bf16.gmra.mrb[20].mxu0 %vm1052_vm8, %v16347_v23 }
 0x1f1   : >> { %13422 = vmatprep.mubr.msk.bf16.mxu0 %vm1052_vm8, %v16364_v42 }
 0x1f8   : >> { %13423 = vmatmul.mubr.msk.bf16.gmra.mrb[24].mxu0 %vm1052_vm8, %v16366_v10 }
 0x1f9   : >> { %13426 = vmatprep.mubr.msk.bf16.mxu0 %vm1052_vm8, %v16376_v13 }
 0x200   : >> { %13427 = vmatmul.mubr.msk.bf16.gmra.mrb[28].mxu0 %vm1052_vm8, %v11744_v43 }
 0x201   : >> { %13438 = vmatprep.mubr.msk.bf16.mxu0 %vm1052_vm8, %v16155_v63  ;;  %v16441_v63 = vld [vmem:[%s15900_s28 + $0xa0] sm:$0xff]  }
 0x208   : >> { %13439 = vmatmul.mubr.msk.bf16.vlgmr.msra.gmra.mrb[0].mxu0 %vm1052_vm8, %v16203_v25  ;;  %v1743_v25 = vld [vmem:[#allocation2 + $0xcc] sm:$0xf] }
 0x209   : >> { %13471 = vmatpush3.bf16.msra.mxu0 %v15170_v62  ;;  %13442 = vmatprep.mubr.msk.bf16.mxu0 %vm1052_vm8, %v16205_v0  ;;  %v16452_v0 = vld [vmem:[#allocation2 + $0xd0] sm:$0xf]  ;;  %v3047_v62 = vrot.slane %v16031_v38, 5 }
 0x20a   : >> { %13472 = vmatprep.subr.bf16.mxu0 %v15171_v26 }
 0x20b   : >> { %v3049_v16 = vrot.slane %v3047_v62, 4  ;;  %v3048_v51 = vsel %vm16469_vm14, %v11795_v54, %v3047_v62  ;;  %v2981_v62 = vld [vmem:[#allocation2 + $0x3c] sm:$0xe] }
 0x20c   : >> { %v11800_v54 = vrot.slane %v2981_v62, 9 }
 0x20d   : >> { %13473 = vmatpush3.bf16.msra.mxu0 %v15171_v26  ;;  %v3051_v7 = vsel %vm16469_vm14, %v3049_v16, %v3050_v1  ;;  %v3055_v26 = vsel %vm16469_vm14, %v11796_v4, %v3054_v21  ;;  %v15177_v21 = vld [vmem:[%s15900_s28 + $0xb8] sm:$0xff]  }
 0x20e   : >> { %13474 = vmatprep.subr.bf16.mxu0 %v15172_v49  ;;  %v11820_v5 = vcombine.low %v3048_v51, %v3051_v7  ;;  %v3096_v51 = vrot.slane %v16141_v52, 5 }
 0x210   : >> { %13443 = vmatmul.mubr.msk.bf16.gmra.mrb[4].mxu0 %vm1052_vm8, %v16240_v41  ;;  %v2718_v41 = vshrl.u32 %v1743_v25, 16  ;;  %v3098_v52 = vrot.slane %v3096_v51, 4 }
 0x211   : >> { %13446 = vmatprep.mubr.msk.bf16.mxu0 %vm1052_vm8, %v16247_v45  ;;  %13475 = vmatpush3.bf16.msra.mxu0 %v15172_v49  ;;  %v2721_v45 = vshll.u32 %v1743_v25, 16  ;;  %v3068_v49 = vrot.slane %v16059_v6, 5  ;;  %v3075_v25 = vrot.slane %v16072_v18, 5 }
 0x212   : >> { %13476 = vmatprep.subr.bf16.mxu0 %v15173_v59  ;;  %v2720_v36 = vrot.slane %v2718_v41, 4  ;;  %v2980_v41 = vld [vmem:[#allocation2 + $0x30] sm:$0xe] }
 0x213   : >> { %v11799_v6 = vrot.slane %v2980_v41, 9 }
 0x215   : >> { %13477 = vmatpush3.bf16.msra.mxu0 %v15173_v59 }
 0x216   : >> { %13510 = vmatprep.subr.bf16.mxu0 %v16441_v63 }
 0x218   : >> { %13447 = vmatmul.mubr.msk.bf16.gmra.mrb[8].mxu0 %vm1052_vm8, %v16288_v8  ;;  %v2727_v8 = vshll.u32 %v16452_v0, 16 }
 0x219   : >> { %13450 = vmatprep.mubr.msk.bf16.mxu0 %vm1052_vm8, %v16290_v9  ;;  %v2731_v9 = vshrl.u32 %v16452_v0, 16 }
 0x21a   : >> { %v2729_v22 = vrot.slane %v2727_v8, 5 }
 0x21b   : >> { %v2733_v11 = vrot.slane %v2731_v9, 4  ;;  %v11798_v9 = vrot.slane %v2979_v19, 9 }
 0x21d   : >> { %v3069_v18 = vsel %vm16469_vm14, %v11798_v9, %v3068_v49 }
 0x220   : >> { %13451 = vmatmul.mubr.msk.bf16.gmra.mrb[12].mxu0 %vm1052_vm8, %v16299_v31  ;;  %v2723_v31 = vrot.slane %v2721_v45, 5  ;;  %v16500_v45 = vcombine.low %v3055_v26, %v3058_v55  ;;  %v3100_v26 = vsel %vm16469_vm14, %v3098_v52, %v3099_v58  ;;  %v3110_v55 = vrot.slane %v18793_v20, 5 }
 0x221   : >> { %13454 = vmatprep.mubr.msk.bf16.mxu0 %vm1052_vm8, %v16321_v28  ;;  %v16460_v28 = vld [vmem:[#allocation2 + $0xd4] sm:$0x1] }
 0x222   : >> { %v2737_v44 = vshll.u32 %v16460_v28, 16 }
 0x224   : >> { %v2739_v30 = vrot.slane %v2737_v44, 5 }
 0x228   : >> { %13455 = vmatmul.mubr.msk.bf16.gmra.mrb[16].mxu0 %vm1052_vm8, %v16345_v60  ;;  %v2724_v60 = vor.u32 %v2723_v31, %v2720_v36  ;;  %v3070_v36 = vrot.slane %v3068_v49, 4  ;;  %v3071_v31 = vrot.slane %v16100_v48, 5 }
 0x229   : >> { %13458 = vmatprep.mubr.msk.bf16.mxu0 %vm1052_vm8, %v16347_v23  ;;  %v2734_v23 = vor.u32 %v2733_v11, %v2729_v22  ;;  %v3078_v11 = vrot.slane %v16104_v57, 5  ;;  %v3076_v57 = vsel %vm16469_vm14, %v11799_v6, %v3075_v25  ;;  %v18795_v6 = vld [vmem:[#allocation14_spill] sm:$0xff] }
 0x22a   : >> { %v2725_v46 = vrot.slane %v2724_v60, 4  ;;  %v15175_v60 = vld [vmem:[%s15900_s28 + $0xa8] sm:$0xff]   ;;  %v3072_v48 = vsel %vm16469_vm14, %v3070_v36, %v3071_v31  ;;  %v3112_v31 = vrot.slane %v3110_v55, 4 }
 0x22b   : >> { %v2735_v2 = vrot.slane %v2734_v23, 4  ;;  %v3082_v23 = vrot.slane %v16096_v47, 5  ;;  %v3085_v47 = vrot.slane %v16116_v24, 5 }
 0x22c   : >> { %v2730_v38 = vsel %vm16064_vm11, %v2725_v46, %v2729_v22  ;;  %v3077_v22 = vrot.slane %v3075_v25, 4  ;;  %v2982_v46 = vld [vmem:[#allocation2 + $0x48] sm:$0xe]  ;;  %v2986_v25 = vld [vmem:[#allocation2 + $0x78] sm:$0xe] }
 0x22d   : >> { %v3084_v16 = vrot.slane %v3082_v23, 4  ;;  %v11801_v1 = vrot.slane %v2982_v46, 9  ;;  %v2987_v46 = vld [vmem:[#allocation2 + $0x84] sm:$0xe] }
 0x22e   : >> { %v3079_v44 = vsel %vm16469_vm14, %v3077_v22, %v3078_v11  ;;  %v3113_v22 = vrot.slane %v18795_v6, 5  ;;  %v11805_v11 = vrot.slane %v2986_v25, 9 }
 0x22f   : >> { %v3086_v24 = vsel %vm16469_vm14, %v3084_v16, %v3085_v47  ;;  %v2988_v47 = vld [vmem:[#allocation2 + $0x90] sm:$0xe] }
 0x230   : >> { %13459 = vmatmul.mubr.msk.bf16.gmra.mrb[20].mxu0 %vm1052_vm8, %v16364_v42  ;;  %v18790_v42 = vmov 0 }
 0x231   : >> { %13462 = vmatprep.mubr.msk.bf16.mxu0 %vm1052_vm8, %v16366_v10  ;;  %v18791_v42 = vsel %vm16469_vm14, 4294967295, %v18790_v42  ;;  %v2740_v10 = vsel %vm16064_vm11, %v2735_v2, %v2739_v30  ;;  %v16523_v2 = vcombine.low %v3069_v18, %v3072_v48  ;;  %v16525_v30 = vcombine.low %v3076_v57, %v3079_v44  ;;  %v18796_v18 = vld [vmem:[#allocation15_spill] sm:$0xff]  ;;  %v18797_v44 = vld [vmem:[#allocation16_spill] sm:$0xff] }
 0x232   : >> { %18792 = vst [vmem:[#allocation23_spill] sm:$0xff] %v18791_v42  ;;  %v11774_v35 = vcombine.low %v2730_v38, %v2740_v10  ;;  %v3092_v10 = vrot.slane %v16144_v56, 5  ;;  %v3120_v48 = vrot.slane %v18796_v18, 5  ;;  %v3114_v57 = vsel %vm16469_vm14, %v3112_v31, %v3113_v22 }
 0x233   : >> { %v3124_v62 = vrot.slane %v18797_v44, 5  ;;  %v3152_v22 = vrot.slane %v16323_v32, 5  ;;  %v3155_v44 = vrot.slane %v16349_v37, 5  ;;  %v15180_v37 = vld [vmem:[%s15900_s28 + $0x110] sm:$0xff]  }
 0x238   : >> { %13463 = vmatmul.mubr.msk.bf16.gmra.mrb[24].mxu0 %vm1052_vm8, %v16376_v13  ;;  %v2978_v13 = vld [vmem:[#allocation2 + $0x18] sm:$0xe] }
 0x239   : >> { %13466 = vmatprep.mubr.msk.bf16.mxu0 %vm1052_vm8, %v11744_v43  ;;  %v11797_v39 = vrot.slane %v2978_v13, 9  ;;  %v3063_v43 = vrot.slane %v3061_v29, 4  ;;  %v16545_v13 = vld [vmem:[%s15900_s28 + $0x100] sm:$0xff]  }
 0x23b   : >> { %v3062_v61 = vsel %vm16469_vm14, %v11797_v39, %v3061_v29  ;;  %v3065_v59 = vsel %vm16469_vm14, %v3063_v43, %v3064_v50  ;;  %v3103_v29 = vrot.slane %v16167_v40, 5  ;;  %v3106_v50 = vrot.slane %v16208_v14, 5 }
 0x23c   : >> { %v16502_v8 = vcombine.low %v3062_v61, %v3065_v59  ;;  %v3097_v40 = vsel %vm16469_vm14, %v11802_v3, %v3096_v51  ;;  %v2985_v61 = vld [vmem:[#allocation2 + $0x6c] sm:$0xe]  ;;  %v18794_v59 = vld [vmem:[#allocation13_spill] sm:$0xff]  ;;  %v11807_v51 = vrot.slane %v2988_v47, 9  ;;  %v3490_v47 = vrot.slane %v16411_v15, 5 }
 0x23d   : >> { %v3105_v43 = vrot.slane %v3103_v29, 4  ;;  %v3117_v19 = vrot.slane %v18794_v59, 5  ;;  %v16568_v41 = vcombine.low %v3097_v40, %v3100_v26  ;;  %v11804_v36 = vrot.slane %v2985_v61, 9  ;;  %v18801_v3 = vld [vmem:[#allocation20_spill] sm:$0xff]  ;;  %v18803_v61 = vld [vmem:[#allocation22_spill] sm:$0xff] }
 0x23e   : >> { %v3138_v52 = vrot.slane %v18801_v3, 5  ;;  %v2990_v26 = vld [vmem:[#allocation2 + $0xa8] sm:$0xe]  ;;  %v3141_v59 = vrot.slane %v18803_v61, 5  ;;  %v2993_v15 = vld [vmem:[#allocation2 + $0xcc] sm:$0xe] }
 0x23f   : >> { %v3107_v14 = vsel %vm16469_vm14, %v3105_v43, %v3106_v50  ;;  %v2989_v43 = vld [vmem:[#allocation2 + $0x9c] sm:$0xe]  ;;  %v18802_v50 = vld [vmem:[#allocation21_spill] sm:$0xff] }
 0x240   : >> { %13467 = vmatmul.mubr.msk.bf16.gmra.mrb[28].mxu0 %vm1052_vm8, %v11774_v35  ;;  %v2984_v35 = vld [vmem:[#allocation2 + $0x60] sm:$0xe]  ;;  %v3145_v40 = vrot.slane %v18802_v50, 5 }
 0x241   : >> { %13478 = vmatprep.mubr.msk.bf16.mxu0 %vm1052_vm8, %v11820_v5  ;;  %v11803_v39 = vrot.slane %v2984_v35, 9 }
 0x242   : >> { %v3147_v25 = vrot.slane %v3145_v40, 4 }
 0x243   : >> { %v3104_v49 = vsel %vm16469_vm14, %v11803_v39, %v3103_v29 }
 0x244   : >> { %v16570_v9 = vcombine.low %v3104_v49, %v3107_v14  ;;  %v11808_v49 = vrot.slane %v2989_v43, 9  ;;  %v3140_v14 = vrot.slane %v3138_v52, 4 }
 0x246   : >> { %v3139_v31 = vsel %vm16469_vm14, %v11808_v49, %v3138_v52  ;;  %v3142_v6 = vsel %vm16469_vm14, %v3140_v14, %v3141_v59 }
 0x247   : >> { %v11833_v18 = vcombine.low %v3139_v31, %v3142_v6 }
 0x248   : >> { %13479 = vmatmul.mubr.msk.bf16.vlgmr.msra.gmra.mrb[0].mxu0 %vm1052_vm8, %v16500_v45 }
 0x249   : >> { %13511 = vmatpush3.bf16.msra.mxu0 %v16441_v63  ;;  %13482 = vmatprep.mubr.msk.bf16.mxu0 %vm1052_vm8, %v16502_v8  ;;  %v3089_v63 = vrot.slane %v16111_v27, 5  ;;  %v3083_v27 = vsel %vm16469_vm14, %v11800_v54, %v3082_v23  ;;  %v3111_v23 = vsel %vm16469_vm14, %v11804_v36, %v3110_v55  ;;  %v18798_v54 = vld [vmem:[#allocation17_spill] sm:$0xff]  ;;  %v3148_v36 = vrot.slane %v16331_v34, 5 }
 0x24a   : >> { %13512 = vmatprep.subr.bf16.mxu0 %v15175_v60  ;;  %v16547_v5 = vcombine.low %v3083_v27, %v3086_v24  ;;  %v3131_v16 = vrot.slane %v18798_v54, 5  ;;  %v18799_v27 = vld [vmem:[#allocation18_spill] sm:$0xff] }
 0x24b   : >> { %v3091_v38 = vrot.slane %v3089_v63, 4  ;;  %v3090_v56 = vsel %vm16469_vm14, %v11801_v1, %v3089_v63  ;;  %v3118_v63 = vsel %vm16469_vm14, %v11805_v11, %v3117_v19  ;;  %v16588_v1 = vcombine.low %v3111_v23, %v3114_v57 }
 0x24c   : >> { %v3127_v24 = vrot.slane %v18799_v27, 5  ;;  %v3132_v58 = vsel %vm16469_vm14, %v11807_v51, %v3131_v16  ;;  %v3149_v34 = vsel %vm16469_vm14, %v3147_v25, %v3148_v36  ;;  %v3154_v57 = vrot.slane %v3152_v22, 4 }
 0x24d   : >> { %13513 = vmatpush3.bf16.msra.mxu0 %v15175_v60  ;;  %v3093_v7 = vsel %vm16469_vm14, %v3091_v38, %v3092_v10  ;;  %v3119_v60 = vrot.slane %v3117_v19, 4  ;;  %v11806_v10 = vrot.slane %v2987_v46, 9  ;;  %v11809_v19 = vrot.slane %v2990_v26, 9  ;;  %v15181_v46 = vld [vmem:[%s15900_s28 + $0x118] sm:$0xff]  }
 0x24e   : >> { %13514 = vmatprep.subr.bf16.mxu0 %v15176_v17  ;;  %v16549_v4 = vcombine.low %v3090_v56, %v3093_v7  ;;  %v3133_v56 = vrot.slane %v3131_v16, 4  ;;  %v18800_v7 = vld [vmem:[#allocation19_spill] sm:$0xff] }
 0x24f   : >> { %v3134_v53 = vrot.slane %v18800_v7, 5  ;;  %v3125_v29 = vsel %vm16469_vm14, %v11806_v10, %v3124_v62  ;;  %v3146_v11 = vsel %vm16469_vm14, %v11809_v19, %v3145_v40 }
 0x250   : >> { %13483 = vmatmul.mubr.msk.bf16.gmra.mrb[4].mxu0 %vm1052_vm8, %v16523_v2 }
 0x251   : >> { %13486 = vmatprep.mubr.msk.bf16.mxu0 %vm1052_vm8, %v16525_v30  ;;  %13515 = vmatpush3.bf16.msra.mxu0 %v15176_v17  ;;  %v3121_v17 = vsel %vm16469_vm14, %v3119_v60, %v3120_v48  ;;  %v3135_v39 = vsel %vm16469_vm14, %v3133_v56, %v3134_v53  ;;  %v2991_v60 = vld [vmem:[#allocation2 + $0xb4] sm:$0xe]  ;;  %v11834_v48 = vcombine.low %v3146_v11, %v3149_v34  ;;  %v4468_v11 = vld [vmem:[#allocation2 + $0xf0] sm:$0xf] }
 0x252   : >> { %13516 = vmatprep.subr.bf16.mxu0 %v15177_v21  ;;  %v16590_v38 = vcombine.low %v3118_v63, %v3121_v17  ;;  %v16610_v55 = vcombine.low %v3132_v58, %v3135_v39  ;;  %v11810_v23 = vrot.slane %v2991_v60, 9  ;;  %v15179_v17 = vld [vmem:[%s15900_s28 + $0x108] sm:$0xff]  }
 0x254   : >> { %v3153_v32 = vsel %vm16469_vm14, %v11810_v23, %v3152_v22 }
 0x255   : >> { %13517 = vmatpush3.bf16.msra.mxu0 %v15177_v21  ;;  %v3126_v21 = vrot.slane %v3124_v62, 4  ;;  %v3156_v62 = vsel %vm16469_vm14, %v3154_v57, %v3155_v44 }
 0x256   : >> { %13550 = vmatprep.subr.bf16.mxu0 %v16545_v13  ;;  %v11835_v63 = vcombine.low %v3153_v32, %v3156_v62  ;;  %v4461_v32 = vld [vmem:[#allocation2 + $0xe4] sm:$0xf] }
 0x257   : >> { %v3128_v35 = vsel %vm16469_vm14, %v3126_v21, %v3127_v24  ;;  %v16718_v24 = vld [vmem:[%s16715_s30] ss:$0 sm:$0xff] }
 0x258   : >> { %13487 = vmatmul.mubr.msk.bf16.gmra.mrb[8].mxu0 %vm1052_vm8, %v16547_v5  ;;  %v16608_v20 = vcombine.low %v3125_v29, %v3128_v35 }
 0x259   : >> { %13490 = vmatprep.mubr.msk.bf16.mxu0 %vm1052_vm8, %v16549_v4 }
 0x260   : >> { %13491 = vmatmul.mubr.msk.bf16.gmra.mrb[12].mxu0 %vm1052_vm8, %v16568_v41 }
 0x261   : >> { %13494 = vmatprep.mubr.msk.bf16.mxu0 %vm1052_vm8, %v16570_v9 }
 0x268   : >> { %13495 = vmatmul.mubr.msk.bf16.gmra.mrb[16].mxu0 %vm1052_vm8, %v16588_v1 }
 0x269   : >> { %13498 = vmatprep.mubr.msk.bf16.mxu0 %vm1052_vm8, %v16590_v38 }
 0x270   : >> { %13499 = vmatmul.mubr.msk.bf16.gmra.mrb[20].mxu0 %vm1052_vm8, %v16608_v20 }
 0x271   : >> { %13502 = vmatprep.mubr.msk.bf16.mxu0 %vm1052_vm8, %v16610_v55 }
 0x278   : >> { %13503 = vmatmul.mubr.msk.bf16.gmra.mrb[24].mxu0 %vm1052_vm8, %v11833_v18 }
 0x279   : >> { %13506 = vmatprep.mubr.msk.bf16.mxu0 %vm1052_vm8, %v11834_v48 }
 0x280   : >> { %13507 = vmatmul.mubr.msk.bf16.gmra.mrb[28].mxu0 %vm1052_vm8, %v11835_v63 }
 0x281   : >> { %13518 = vmatprep.mubr.msk.bf16.mxu0 %vm1052_vm8, %v16500_v45  ;;  %v3487_v45 = vrot.slane %v16403_v33, 5  ;;  %v3732_v33 = vrot.slane %v16452_v0, 5  ;;  %v15182_v0 = vld [vmem:[%s15900_s28 + $0x180] sm:$0xff]  }
 0x282   : >> { %13590 = vmatprep.subr.bf16.mxu1 %v15182_v0 }
 0x283   : >> { %v3489_v16 = vrot.slane %v3487_v45, 4  ;;  %13591 = vmatpush3.bf16.msra.mxu1 %v15182_v0 }
 0x285   : >> { %v3491_v21 = vsel %vm16469_vm14, %v3489_v16, %v3490_v47 }
 0x288   : >> { %13519 = vmatmul.mubr.msk.bf16.vlgmr.msra.gmra.mrb[0].mxu0 %vm1052_vm8, %v16502_v8 }
 0x289   : >> { %13551 = vmatpush3.bf16.msra.mxu0 %v16545_v13  ;;  %13522 = vmatprep.mubr.msk.bf16.mxu0 %vm1052_vm8, %v16523_v2  ;;  %v2992_v13 = vld [vmem:[#allocation2 + $0xc0] sm:$0xe] }
 0x28a   : >> { %13552 = vmatprep.subr.bf16.mxu0 %v15179_v17  ;;  %v11856_v54 = vrot.slane %v2992_v13, 9 }
 0x28c   : >> { %v3488_v10 = vsel %vm16469_vm14, %v11856_v54, %v3487_v45  ;;  %v4472_v45 = vld [vmem:[#allocation2 + $0xf8] sm:$0x1] }
 0x28d   : >> { %13553 = vmatpush3.bf16.msra.mxu0 %v15179_v17  ;;  %v11866_v27 = vcombine.low %v3488_v10, %v3491_v21 }
 0x28e   : >> { %13554 = vmatprep.subr.bf16.mxu0 %v15180_v37 }
 0x290   : >> { %13523 = vmatmul.mubr.msk.bf16.gmra.mrb[4].mxu0 %vm1052_vm8, %v16525_v30 }
 0x291   : >> { %13526 = vmatprep.mubr.msk.bf16.mxu0 %vm1052_vm8, %v16547_v5  ;;  %13555 = vmatpush3.bf16.msra.mxu0 %v15180_v37 }
 0x292   : >> { %13556 = vmatprep.subr.bf16.mxu0 %v15181_v46 }
 0x295   : >> { %13557 = vmatpush3.bf16.msra.mxu0 %v15181_v46 }
 0x298   : >> { %13527 = vmatmul.mubr.msk.bf16.gmra.mrb[8].mxu0 %vm1052_vm8, %v16549_v4 }
 0x299   : >> { %13530 = vmatprep.mubr.msk.bf16.mxu0 %vm1052_vm8, %v16568_v41 }
 0x2a0   : >> { %13531 = vmatmul.mubr.msk.bf16.gmra.mrb[12].mxu0 %vm1052_vm8, %v16570_v9 }
 0x2a1   : >> { %13534 = vmatprep.mubr.msk.bf16.mxu0 %vm1052_vm8, %v16588_v1 }
 0x2a8   : >> { %13535 = vmatmul.mubr.msk.bf16.gmra.mrb[16].mxu0 %vm1052_vm8, %v16590_v38 }
 0x2a9   : >> { %13538 = vmatprep.mubr.msk.bf16.mxu0 %vm1052_vm8, %v16608_v20 }
 0x2b0   : >> { %13539 = vmatmul.mubr.msk.bf16.gmra.mrb[20].mxu0 %vm1052_vm8, %v16610_v55 }
 0x2b1   : >> { %13542 = vmatprep.mubr.msk.bf16.mxu0 %vm1052_vm8, %v11833_v18 }
 0x2b8   : >> { %13543 = vmatmul.mubr.msk.bf16.gmra.mrb[24].mxu0 %vm1052_vm8, %v11834_v48 }
 0x2b9   : >> { %13546 = vmatprep.mubr.msk.bf16.mxu0 %vm1052_vm8, %v11835_v63 }
 0x2c0   : >> { %13547 = vmatmul.mubr.msk.bf16.gmra.mrb[28].mxu0 %vm1052_vm8, %v11866_v27 }
 0x2c1   : >> { %13558 = vmatprep.mubr.msk.bf16.mxu0 %vm1052_vm8, %v16502_v8  ;;  %v11887_v8 = vrot.slane %v2993_v15, 9 }
 0x2c8   : >> { %13559 = vmatmul.mubr.msk.bf16.vlgmr.msra.gmra.mrb[0].mxu0 %vm1052_vm8, %v16523_v2  ;;  %v3734_v2 = vrot.slane %v3732_v33, 4 }
 0x2c9   : >> { %13562 = vmatprep.mubr.msk.bf16.mxu0 %vm1052_vm8, %v16525_v30  ;;  %v3735_v30 = vrot.slane %v16460_v28, 5  ;;  %v15183_v28 = vld [vmem:[%s15900_s28 + $0x188] sm:$0xff]  }
 0x2ca   : >> { %13592 = vmatprep.subr.bf16.mxu1 %v15183_v28 }
 0x2cb   : >> { %13593 = vmatpush3.bf16.msra.mxu1 %v15183_v28 }
 0x2d0   : >> { %13563 = vmatmul.mubr.msk.bf16.gmra.mrb[4].mxu0 %vm1052_vm8, %v16547_v5  ;;  %v3733_v5 = vsel %vm16469_vm14, %v11887_v8, %v3732_v33 }
 0x2d1   : >> { %13566 = vmatprep.mubr.msk.bf16.mxu0 %vm1052_vm8, %v16549_v4  ;;  %v3736_v4 = vsel %vm16469_vm14, %v3734_v2, %v3735_v30 }
 0x2d8   : >> { %13567 = vmatmul.mubr.msk.bf16.gmra.mrb[8].mxu0 %vm1052_vm8, %v16568_v41  ;;  %v11897_v41 = vcombine.low %v3733_v5, %v3736_v4 }
 0x2d9   : >> { %13570 = vmatprep.mubr.msk.bf16.mxu0 %vm1052_vm8, %v16570_v9  ;;  %v15184_v9 = vld [vmem:[%s15900_s28 + $0x190] sm:$0xff]  }
 0x2da   : >> { %13594 = vmatprep.subr.bf16.mxu1 %v15184_v9 }
 0x2db   : >> { %13595 = vmatpush3.bf16.msra.mxu1 %v15184_v9 }
 0x2e0   : >> { %13571 = vmatmul.mubr.msk.bf16.gmra.mrb[12].mxu0 %vm1052_vm8, %v16588_v1  ;;  %v15185_v1 = vld [vmem:[%s15900_s28 + $0x198] sm:$0xff]  }
 0x2e1   : >> { %13574 = vmatprep.mubr.msk.bf16.mxu0 %vm1052_vm8, %v16590_v38  ;;  %13596 = vmatprep.subr.bf16.mxu1 %v15185_v1  ;;  %v16711_v38 = vld [vmem:[%s15900_s28 + $0x120] sm:$0xff]  }
 0x2e2   : >> { %13597 = vmatpush3.bf16.msra.mxu1 %v15185_v1 }
 0x2e3   : >> { %13630 = vmatprep.subr.bf16.mxu1 %v16711_v38 }
 0x2e8   : >> { %13575 = vmatmul.mubr.msk.bf16.gmra.mrb[16].mxu0 %vm1052_vm8, %v16608_v20 }
 0x2e9   : >> { %13578 = vmatprep.mubr.msk.bf16.mxu0 %vm1052_vm8, %v16610_v55 }
 0x2f0   : >> { %13579 = vmatmul.mubr.msk.bf16.gmra.mrb[20].mxu0 %vm1052_vm8, %v11833_v18 }
 0x2f1   : >> { %13582 = vmatprep.mubr.msk.bf16.mxu0 %vm1052_vm8, %v11834_v48 }
 0x2f8   : >> { %13583 = vmatmul.mubr.msk.bf16.gmra.mrb[24].mxu0 %vm1052_vm8, %v11835_v63 }
 0x2f9   : >> { %13586 = vmatprep.mubr.msk.bf16.mxu0 %vm1052_vm8, %v11866_v27  ;;  %v4465_v27 = vld [vmem:[#allocation2 + $0xec] sm:$0x1] }
 0x300   : >> { %13587 = vmatmul.mubr.msk.bf16.gmra.mrb[28].mxu0 %vm1052_vm8, %v11897_v41 }
 0x39b   : >> { %v13560_v51 = vpop.f32.mrb[0].mxu0 }
 0x39c   : >> { %v3982_v56 = vadd.f32 %v13560_v51, %v16718_v24  ;;  %v3813_v7 = vpop.f32.mrb[1].mxu0 }
 0x39d   : >> { %v3980_v53 = vadd.f32 %v16718_v24, %v3813_v7  ;;  %v13561_v29 = vpop.f32.mrb[2].mxu0 }
 0x39e   : >> { %v4014_v35 = vmax.f32 %v3982_v56, 0.0  ;;  %v3983_v3 = vadd.f32 %v13561_v29, %v16718_v24  ;;  %v3816_v52 = vpop.f32.mrb[3].mxu0 }
 0x39f   : >> { %v4012_v58 = vmax.f32 %v3980_v53, 0.0  ;;  %v3981_v39 = vadd.f32 %v16718_v24, %v3816_v52 }
 0x3a0   : >> { %v12628_v43 = vpack.c.bf16 %v4014_v35, %v4014_v35  ;;  %v4015_v50 = vmax.f32 %v3983_v3, 0.0 }
 0x3a1   : >> { %v12626_v40 = vpack.c.bf16 %v4012_v58, %v4012_v58  ;;  %v4013_v26 = vmax.f32 %v3981_v39, 0.0  ;;  %v4482_v58 = vld [vmem:[#allocation2 + $0x108] sm:$0xf] }
 0x3a2   : >> { %v4158_v20 = vshrl.u32 %v12628_v43, 16  ;;  %v12629_v55 = vpack.c.bf16 %v4015_v50, %v4015_v50  ;;  %v4161_v49 = vshll.u32 %v12628_v43, 16 }
 0x3a3   : >> { %v4141_v14 = vshrl.u32 %v12626_v40, 16  ;;  %v4144_v61 = vshll.u32 %v12626_v40, 16  ;;  %v12627_v59 = vpack.c.bf16 %v4013_v26, %v4013_v26  ;;  %v13564_v19 = vpop.f32.mrb[4].mxu0 }
 0x3a4   : >> { %v4160_v25 = vrot.slane %v4158_v20, 7  ;;  %v4166_v36 = vshrl.u32 %v12629_v55, 16  ;;  %v4169_v31 = vshll.u32 %v12629_v55, 16  ;;  %v3986_v6 = vadd.f32 %v13564_v19, %v16718_v24  ;;  %v3829_v22 = vpop.f32.mrb[5].mxu0  ;;  %v4475_v55 = vld [vmem:[#allocation2 + $0xfc] sm:$0xf] }
 0x3a5   : >> { %v4143_v34 = vrot.slane %v4141_v14, 7  ;;  %v4149_v60 = vshrl.u32 %v12627_v59, 16  ;;  %v4152_v18 = vshll.u32 %v12627_v59, 16  ;;  %v3984_v48 = vadd.f32 %v16718_v24, %v3829_v22  ;;  %v13565_v23 = vpop.f32.mrb[6].mxu0 }
 0x3a6   : >> { %v4163_v57 = vor.u32 %v4161_v49, %v4160_v25  ;;  %v4164_v44 = vrot.slane %v4160_v25, 4  ;;  %v4168_v62 = vrot.slane %v4166_v36, 7  ;;  %v4018_v63 = vmax.f32 %v3986_v6, 0.0  ;;  %v3832_v17 = vpop.f32.mrb[7].mxu0 }
 0x3a7   : >> { %v4146_v37 = vor.u32 %v4144_v61, %v4143_v34  ;;  %v4147_v46 = vrot.slane %v4143_v34, 4  ;;  %v4151_v13 = vrot.slane %v4149_v60, 7  ;;  %v4016_v54 = vmax.f32 %v3984_v48, 0.0 }
 0x3a8   : >> { %v4469_v47 = vsel %vm15735_vm5, %v4163_v57, %v4468_v11  ;;  %v4171_v10 = vor.u32 %v4169_v31, %v4168_v62  ;;  %v4173_v21 = vrot.slane %v4168_v62, 4  ;;  %v12632_v33 = vpack.c.bf16 %v4018_v63, %v4018_v63  ;;  %v15193_v62 = vld [vmem:[%s15900_s28 + $0x128] sm:$0xff]   ;;  %v4486_v63 = vld [vmem:[#allocation2 + $0x110] sm:$0x1] }
 0x3a9   : >> { %4470 = vst [vmem:[#allocation2 + $0xf0] sm:$0xf] %v4469_v47  ;;  %v4462_v15 = vsel %vm15735_vm5, %v4146_v37, %v4461_v32  ;;  %v4154_v8 = vor.u32 %v4152_v18, %v4151_v13  ;;  %v4156_v2 = vrot.slane %v4151_v13, 4  ;;  %v12630_v30 = vpack.c.bf16 %v4016_v54, %v4016_v54 }
 0x3aa   : >> { %4463 = vst [vmem:[#allocation2 + $0xe4] sm:$0xf] %v4462_v15  ;;  %v4172_v4 = vsel %vm15743_vm6, %v4164_v44, %v4171_v10  ;;  %v4473_v0 = vsel %vm15749_vm7, %v4173_v21, %v4472_v45  ;;  %v4192_v28 = vshrl.u32 %v12632_v33, 16  ;;  %v4195_v51 = vshll.u32 %v12632_v33, 16 }
 0x3ab   : >> { %4471 = vst.msk [vmem:[#allocation2 + $0xf4] sm:$0xf] %vm202_vm0, %v4172_v4  ;;  %4474 = vst [vmem:[#allocation2 + $0xf8] sm:$0x1] %v4473_v0  ;;  %v4155_v9 = vsel %vm15743_vm6, %v4147_v46, %v4154_v8  ;;  %v4466_v1 = vsel %vm15749_vm7, %v4156_v2, %v4465_v27  ;;  %v4175_v56 = vshrl.u32 %v12630_v30, 16  ;;  %v13568_v7 = vpop.f32.mrb[8].mxu0  ;;  %v3987_v29 = vadd.f32 %v13565_v23, %v16718_v24 }
 0x3ac   : >> { %4464 = vst.msk [vmem:[#allocation2 + $0xe8] sm:$0xf] %vm202_vm0, %v4155_v9  ;;  %4467 = vst [vmem:[#allocation2 + $0xec] sm:$0x1] %v4466_v1  ;;  %v16740_v53 = vrot.slane %v4192_v28, 7  ;;  %v3985_v35 = vadd.f32 %v16718_v24, %v3832_v17  ;;  %v3990_v3 = vadd.f32 %v13568_v7, %v16718_v24  ;;  %v3845_v52 = vpop.f32.mrb[9].mxu0 }
 0x3ad   : >> { %v16745_v39 = vrot.slane %v4175_v56, 7  ;;  %v4178_v43 = vshll.u32 %v12630_v30, 16  ;;  %v3988_v50 = vadd.f32 %v16718_v24, %v3845_v52  ;;  %v13569_v40 = vpop.f32.mrb[10].mxu0  ;;  %v4019_v49 = vmax.f32 %v3987_v29, 0.0  ;;  %v4479_v17 = vld [vmem:[#allocation2 + $0x104] sm:$0x1] }
 0x3ae   : >> { %v4197_v26 = vor.u32 %v4195_v51, %v16740_v53  ;;  %v4198_v20 = vrot.slane %v16740_v53, 4  ;;  %v4017_v14 = vmax.f32 %v3985_v35, 0.0  ;;  %v3848_v61 = vpop.f32.mrb[11].mxu0  ;;  %v4022_v25 = vmax.f32 %v3990_v3, 0.0  ;;  %v4496_v27 = vld [vmem:[#allocation2 + $0x120] sm:$0xf] }
 0x3af   : >> { %v4180_v59 = vor.u32 %v4178_v43, %v16745_v39  ;;  %v4181_v19 = vrot.slane %v16745_v39, 4  ;;  %v4020_v36 = vmax.f32 %v3988_v50, 0.0  ;;  %v12633_v6 = vpack.c.bf16 %v4019_v49, %v4019_v49  ;;  %v4489_v53 = vld [vmem:[#allocation2 + $0x114] sm:$0xf] }
 0x3b0   : >> { %v4483_v31 = vsel %vm15735_vm5, %v4197_v26, %v4482_v58  ;;  %v12631_v22 = vpack.c.bf16 %v4017_v14, %v4017_v14  ;;  %v3991_v11 = vadd.f32 %v13569_v40, %v16718_v24  ;;  %v12636_v60 = vpack.c.bf16 %v4022_v25, %v4022_v25  ;;  %v15198_v26 = vld [vmem:[%s15900_s28 + $0x130] sm:$0xff]  }
 0x3b1   : >> { %4484 = vst [vmem:[#allocation2 + $0x108] sm:$0xf] %v4483_v31  ;;  %v4476_v34 = vsel %vm15735_vm5, %v4180_v59, %v4475_v55  ;;  %v12634_v18 = vpack.c.bf16 %v4020_v36, %v4020_v36  ;;  %v3989_v48 = vadd.f32 %v16718_v24, %v3848_v61  ;;  %v4200_v23 = vshrl.u32 %v12633_v6, 16 }
 0x3b2   : >> { %4477 = vst [vmem:[#allocation2 + $0xfc] sm:$0xf] %v4476_v34  ;;  %v4203_v57 = vshll.u32 %v12633_v6, 16  ;;  %v4183_v44 = vshrl.u32 %v12631_v22, 16  ;;  %v4186_v32 = vshll.u32 %v12631_v22, 16  ;;  %v4226_v37 = vshrl.u32 %v12636_v60, 16 }
 0x3b3   : >> { %v4229_v46 = vshll.u32 %v12636_v60, 16  ;;  %v4209_v45 = vshrl.u32 %v12634_v18, 16  ;;  %v4212_v13 = vshll.u32 %v12634_v18, 16  ;;  %v13572_v54 = vpop.f32.mrb[12].mxu0  ;;  %v16759_v47 = vld [vmem:[#allocation2 + $0xe4] sm:$0xff]   ;;  %v4202_v10 = vrot.slane %v4200_v23, 7 }
 0x3b4   : >> { %v4185_v21 = vrot.slane %v4183_v44, 7  ;;  %v4023_v33 = vmax.f32 %v3991_v11, 0.0  ;;  %v4021_v15 = vmax.f32 %v3989_v48, 0.0  ;;  %v3861_v8 = vpop.f32.mrb[13].mxu0  ;;  %v16761_v2 = vld [vmem:[#allocation2 + $0xf0] sm:$0xff]   ;;  %v16763_v30 = vrot.slane %v4226_v37, 7  ;;  %13598 = vmatprep.mubr.msk.bf16.mxu1 %vm1052_vm8, %v16759_v47 }
 0x3b5   : >> { %v16765_v4 = vrot.slane %v4209_v45, 7  ;;  %v3994_v0 = vadd.f32 %v13572_v54, %v16718_v24  ;;  %v3992_v28 = vadd.f32 %v16718_v24, %v3861_v8  ;;  %v13573_v9 = vpop.f32.mrb[14].mxu0  ;;  %v4205_v1 = vor.u32 %v4203_v57, %v4202_v10  ;;  %13599 = vmatmul.mubr.msk.bf16.vlgmr.msra.gmra.mrb[0].mxu1 %vm1052_vm8, %v16761_v2  ;;  %v4500_v11 = vld [vmem:[#allocation2 + $0x128] sm:$0x1]  ;;  %v15203_v57 = vld [vmem:[%s15900_s28 + $0x138] sm:$0xff]  }
 0x3b6   : >> { %v4207_v51 = vrot.slane %v4202_v10, 4  ;;  %v4188_v56 = vor.u32 %v4186_v32, %v4185_v21  ;;  %v4190_v7 = vrot.slane %v4185_v21, 4  ;;  %v3864_v29 = vpop.f32.mrb[15].mxu0  ;;  %v4231_v35 = vor.u32 %v4229_v46, %v16763_v30  ;;  %13631 = vmatpush3.bf16.msra.mxu1 %v16711_v38  ;;  %v4510_v8 = vld [vmem:[#allocation2 + $0x138] sm:$0xf] }
 0x3b7   : >> { %v4232_v3 = vrot.slane %v16763_v30, 4  ;;  %v4214_v52 = vor.u32 %v4212_v13, %v16765_v4  ;;  %v4215_v58 = vrot.slane %v16765_v4, 4  ;;  %v4206_v39 = vsel %vm15743_vm6, %v4198_v20, %v4205_v1  ;;  %13632 = vmatprep.subr.bf16.mxu1 %v15193_v62 }
 0x3b8   : >> { %v4487_v43 = vsel %vm15749_vm7, %v4207_v51, %v4486_v63  ;;  %v4189_v50 = vsel %vm15743_vm6, %v4181_v19, %v4188_v56  ;;  %v4480_v40 = vsel %vm15749_vm7, %v4190_v7, %v4479_v17  ;;  %4485 = vst.msk [vmem:[#allocation2 + $0x10c] sm:$0xf] %vm202_vm0, %v4206_v39  ;;  %v4497_v38 = vsel %vm15735_vm5, %v4231_v35, %v4496_v27  ;;  %v4493_v63 = vld [vmem:[#allocation2 + $0x11c] sm:$0x1] }
 0x3b9   : >> { %4488 = vst [vmem:[#allocation2 + $0x110] sm:$0x1] %v4487_v43  ;;  %4478 = vst.msk [vmem:[#allocation2 + $0x100] sm:$0xf] %vm202_vm0, %v4189_v50  ;;  %v4490_v20 = vsel %vm15735_vm5, %v4214_v52, %v4489_v53  ;;  %v12637_v55 = vpack.c.bf16 %v4023_v33, %v4023_v33  ;;  %v12635_v49 = vpack.c.bf16 %v4021_v15, %v4021_v15  ;;  %v4026_v14 = vmax.f32 %v3994_v0, 0.0 }
 0x3ba   : >> { %4481 = vst [vmem:[#allocation2 + $0x104] sm:$0x1] %v4480_v40  ;;  %4498 = vst [vmem:[#allocation2 + $0x120] sm:$0xf] %v4497_v38  ;;  %v4024_v61 = vmax.f32 %v3992_v28, 0.0  ;;  %v3995_v59 = vadd.f32 %v13573_v9, %v16718_v24  ;;  %v3993_v19 = vadd.f32 %v16718_v24, %v3864_v29  ;;  %13633 = vmatpush3.bf16.msra.mxu1 %v15193_v62  ;;  %v16799_v28 = vld [vmem:[%s15900_s28 + $0x1e0] sm:$0xff]  }
 0x3bb   : >> { %4491 = vst [vmem:[#allocation2 + $0x114] sm:$0xf] %v4490_v20  ;;  %v4234_v25 = vshrl.u32 %v12637_v55, 16  ;;  %v4237_v36 = vshll.u32 %v12637_v55, 16  ;;  %v4217_v31 = vshrl.u32 %v12635_v49, 16  ;;  %v4220_v6 = vshll.u32 %v12635_v49, 16  ;;  %13634 = vmatprep.subr.bf16.mxu1 %v15198_v26 }
 0x3bc   : >> { %v13576_v22 = vpop.f32.mrb[16].mxu0  ;;  %v12640_v34 = vpack.c.bf16 %v4026_v14, %v4026_v14  ;;  %v12638_v60 = vpack.c.bf16 %v4024_v61, %v4024_v61  ;;  %v4027_v18 = vmax.f32 %v3995_v59, 0.0  ;;  %v4025_v48 = vmax.f32 %v3993_v19, 0.0  ;;  %v4503_v0 = vld [vmem:[#allocation2 + $0x12c] sm:$0xf] }
 0x3bd   : >> { %v3877_v23 = vpop.f32.mrb[17].mxu0  ;;  %v4236_v44 = vrot.slane %v4234_v25, 7  ;;  %v4219_v32 = vrot.slane %v4217_v31, 7  ;;  %v3998_v17 = vadd.f32 %v13576_v22, %v16718_v24  ;;  %v4507_v22 = vld [vmem:[#allocation2 + $0x134] sm:$0x1] }
 0x3be   : >> { %v3996_v37 = vadd.f32 %v16718_v24, %v3877_v23  ;;  %v13577_v46 = vpop.f32.mrb[18].mxu0  ;;  %v4260_v45 = vshrl.u32 %v12640_v34, 16  ;;  %v4263_v13 = vshll.u32 %v12640_v34, 16  ;;  %v4243_v62 = vshrl.u32 %v12638_v60, 16  ;;  %13635 = vmatpush3.bf16.msra.mxu1 %v15198_v26 }
 0x3bf   : >> { %v4246_v54 = vshll.u32 %v12638_v60, 16  ;;  %v3880_v10 = vpop.f32.mrb[19].mxu0  ;;  %v4239_v21 = vor.u32 %v4237_v36, %v4236_v44  ;;  %v4241_v27 = vrot.slane %v4236_v44, 4  ;;  %v4222_v33 = vor.u32 %v4220_v6, %v4219_v32  ;;  %v16803_v53 = vld [vmem:[#allocation2 + $0x108] sm:$0xff]   ;;  %13636 = vmatprep.subr.bf16.mxu1 %v15203_v57  ;;  %v4514_v6 = vld [vmem:[#allocation2 + $0x140] sm:$0x1] }
 0x3c0   : >> { %v4224_v15 = vrot.slane %v4219_v32, 4  ;;  %v4262_v9 = vrot.slane %v4260_v45, 7  ;;  %v4245_v1 = vrot.slane %v4243_v62, 7  ;;  %v12641_v51 = vpack.c.bf16 %v4027_v18, %v4027_v18  ;;  %v16801_v7 = vld [vmem:[#allocation2 + $0xfc] sm:$0xff]  }
 0x3c1   : >> { %v12639_v56 = vpack.c.bf16 %v4025_v48, %v4025_v48  ;;  %v4240_v29 = vsel %vm15743_vm6, %v4232_v3, %v4239_v21  ;;  %v4501_v35 = vsel %vm15749_vm7, %v4241_v27, %v4500_v11  ;;  %v4223_v52 = vsel %vm15743_vm6, %v4215_v58, %v4222_v33  ;;  %13602 = vmatprep.mubr.msk.bf16.mxu1 %vm1052_vm8, %v16801_v7 }
 0x3c2   : >> { %v4494_v39 = vsel %vm15749_vm7, %v4224_v15, %v4493_v63  ;;  %4499 = vst.msk [vmem:[#allocation2 + $0x124] sm:$0xf] %vm202_vm0, %v4240_v29  ;;  %4502 = vst [vmem:[#allocation2 + $0x128] sm:$0x1] %v4501_v35  ;;  %v4265_v30 = vor.u32 %v4263_v13, %v4262_v9  ;;  %v4266_v43 = vrot.slane %v4262_v9, 4  ;;  %v4248_v3 = vor.u32 %v4246_v54, %v4245_v1 }
 0x3c3   : >> { %4492 = vst.msk [vmem:[#allocation2 + $0x118] sm:$0xf] %vm202_vm0, %v4223_v52  ;;  %4495 = vst [vmem:[#allocation2 + $0x11c] sm:$0x1] %v4494_v39  ;;  %v4249_v50 = vrot.slane %v4245_v1, 4  ;;  %v4268_v4 = vshrl.u32 %v12641_v51, 16  ;;  %13603 = vmatmul.mubr.msk.bf16.gmra.mrb[4].mxu1 %vm1052_vm8, %v16803_v53  ;;  %v3999_v25 = vadd.f32 %v13577_v46, %v16718_v24  ;;  %v3997_v36 = vadd.f32 %v16718_v24, %v3880_v10 }
 0x3c4   : >> { %v4271_v40 = vshll.u32 %v12641_v51, 16  ;;  %v4251_v26 = vshrl.u32 %v12639_v56, 16  ;;  %v4254_v58 = vshll.u32 %v12639_v56, 16  ;;  %v13580_v38 = vpop.f32.mrb[20].mxu0  ;;  %v4511_v20 = vsel %vm15735_vm5, %v4265_v30, %v4510_v8  ;;  %13637 = vmatpush3.bf16.msra.mxu1 %v15203_v57  ;;  %v4524_v10 = vld [vmem:[#allocation2 + $0x150] sm:$0xf] }
 0x3c5   : >> { %v4504_v55 = vsel %vm15735_vm5, %v4248_v3, %v4503_v0  ;;  %v4030_v49 = vmax.f32 %v3998_v17, 0.0  ;;  %v4028_v14 = vmax.f32 %v3996_v37, 0.0  ;;  %v3893_v61 = vpop.f32.mrb[21].mxu0  ;;  %4512 = vst [vmem:[#allocation2 + $0x138] sm:$0xf] %v4511_v20  ;;  %v4270_v59 = vrot.slane %v4268_v4, 7  ;;  %13670 = vmatprep.subr.bf16.mxu1 %v16799_v28 }
 0x3c6   : >> { %4505 = vst [vmem:[#allocation2 + $0x12c] sm:$0xf] %v4504_v55  ;;  %v4253_v19 = vrot.slane %v4251_v26, 7  ;;  %v13581_v31 = vpop.f32.mrb[22].mxu0  ;;  %v4002_v60 = vadd.f32 %v13580_v38, %v16718_v24  ;;  %v4000_v18 = vadd.f32 %v16718_v24, %v3893_v61  ;;  %v4031_v15 = vmax.f32 %v3999_v25, 0.0 }
 0x3c7   : >> { %v12644_v11 = vpack.c.bf16 %v4030_v49, %v4030_v49  ;;  %v12642_v34 = vpack.c.bf16 %v4028_v14, %v4028_v14  ;;  %v3896_v48 = vpop.f32.mrb[23].mxu0  ;;  %v4273_v23 = vor.u32 %v4271_v40, %v4270_v59  ;;  %v4275_v57 = vrot.slane %v4270_v59, 4  ;;  %v4517_v9 = vld [vmem:[#allocation2 + $0x144] sm:$0xf] }
 0x3c8   : >> { %v4256_v44 = vor.u32 %v4254_v58, %v4253_v19  ;;  %v4258_v32 = vrot.slane %v4253_v19, 4  ;;  %v4029_v8 = vmax.f32 %v3997_v36, 0.0  ;;  %v4034_v1 = vmax.f32 %v4002_v60, 0.0  ;;  %v4528_v36 = vld [vmem:[#allocation2 + $0x158] sm:$0x1] }
 0x3c9   : >> { %v4294_v63 = vshrl.u32 %v12644_v11, 16  ;;  %v4297_v17 = vshll.u32 %v12644_v11, 16  ;;  %v4277_v37 = vshrl.u32 %v12642_v34, 16  ;;  %v4280_v46 = vshll.u32 %v12642_v34, 16  ;;  %v16848_v0 = vld [vmem:[#allocation2 + $0x120] sm:$0xff]  }
 0x3ca   : >> { %v4274_v45 = vsel %vm15743_vm6, %v4266_v43, %v4273_v23  ;;  %v4515_v13 = vsel %vm15749_vm7, %v4275_v57, %v4514_v6  ;;  %v4257_v62 = vsel %vm15743_vm6, %v4249_v50, %v4256_v44  ;;  %v4508_v54 = vsel %vm15749_vm7, %v4258_v32, %v4507_v22  ;;  %v16840_v21 = vld [vmem:[#allocation2 + $0x114] sm:$0xff]  }
 0x3cb   : >> { %4513 = vst.msk [vmem:[#allocation2 + $0x13c] sm:$0xf] %vm202_vm0, %v4274_v45  ;;  %4516 = vst [vmem:[#allocation2 + $0x140] sm:$0x1] %v4515_v13  ;;  %v16844_v27 = vrot.slane %v4294_v63, 7  ;;  %v16846_v33 = vrot.slane %v4277_v37, 7  ;;  %v4003_v56 = vadd.f32 %v13581_v31, %v16718_v24  ;;  %v4001_v29 = vadd.f32 %v16718_v24, %v3896_v48  ;;  %13606 = vmatprep.mubr.msk.bf16.mxu1 %vm1052_vm8, %v16840_v21 }
 0x3cc   : >> { %4506 = vst.msk [vmem:[#allocation2 + $0x130] sm:$0xf] %vm202_vm0, %v4257_v62  ;;  %4509 = vst [vmem:[#allocation2 + $0x134] sm:$0x1] %v4508_v54  ;;  %v4032_v51 = vmax.f32 %v4000_v18, 0.0  ;;  %v13584_v35 = vpop.f32.mrb[24].mxu0  ;;  %13607 = vmatmul.mubr.msk.bf16.gmra.mrb[8].mxu1 %vm1052_vm8, %v16848_v0  ;;  %v12645_v50 = vpack.c.bf16 %v4031_v15, %v4031_v15  ;;  %v12643_v4 = vpack.c.bf16 %v4029_v8, %v4029_v8 }
 0x3cd   : >> { %v4299_v52 = vor.u32 %v4297_v17, %v16844_v27  ;;  %v4300_v39 = vrot.slane %v16844_v27, 4  ;;  %v4282_v30 = vor.u32 %v4280_v46, %v16846_v33  ;;  %v4283_v43 = vrot.slane %v16846_v33, 4  ;;  %v3909_v3 = vpop.f32.mrb[25].mxu0  ;;  %v4521_v31 = vld [vmem:[#allocation2 + $0x14c] sm:$0x1] }
 0x3ce   : >> { %v12648_v40 = vpack.c.bf16 %v4034_v1, %v4034_v1  ;;  %v12646_v26 = vpack.c.bf16 %v4032_v51, %v4032_v51  ;;  %v16860_v58 = vpop.f32.mrb[26].mxu0  ;;  %v4035_v55 = vmax.f32 %v4003_v56, 0.0  ;;  %v4033_v49 = vmax.f32 %v4001_v29, 0.0  ;;  %v4538_v48 = vld [vmem:[#allocation2 + $0x168] sm:$0xf] }
 0x3cf   : >> { %v4525_v38 = vsel %vm15735_vm5, %v4299_v52, %v4524_v10  ;;  %v4518_v20 = vsel %vm15735_vm5, %v4282_v30, %v4517_v9  ;;  %v3912_v14 = vpop.f32.mrb[27].mxu0  ;;  %v4302_v61 = vshrl.u32 %v12645_v50, 16  ;;  %v4305_v59 = vshll.u32 %v12645_v50, 16  ;;  %v4531_v10 = vld [vmem:[#allocation2 + $0x15c] sm:$0xf] }
 0x3d0   : >> { %4526 = vst [vmem:[#allocation2 + $0x150] sm:$0xf] %v4525_v38  ;;  %4519 = vst [vmem:[#allocation2 + $0x144] sm:$0xf] %v4518_v20  ;;  %v4285_v19 = vshrl.u32 %v12643_v4, 16  ;;  %v4288_v25 = vshll.u32 %v12643_v4, 16  ;;  %v12649_v23 = vpack.c.bf16 %v4035_v55, %v4035_v55  ;;  %v12647_v57 = vpack.c.bf16 %v4033_v49, %v4033_v49 }
 0x3d1   : >> { %v4328_v6 = vshrl.u32 %v12648_v40, 16  ;;  %v4331_v22 = vshll.u32 %v12648_v40, 16  ;;  %v4311_v11 = vshrl.u32 %v12646_v26, 16  ;;  %v4314_v34 = vshll.u32 %v12646_v26, 16 }
 0x3d2   : >> { %v4304_v60 = vrot.slane %v4302_v61, 7  ;;  %v4287_v18 = vrot.slane %v4285_v19, 7  ;;  %v4006_v17 = vadd.f32 %v13584_v35, %v16718_v24  ;;  %v4004_v37 = vadd.f32 %v16718_v24, %v3909_v3  ;;  %v16872_v46 = vld [vmem:[#allocation2 + $0x138] sm:$0xff]  }
 0x3d3   : >> { %v16866_v44 = vld [vmem:[#allocation2 + $0x12c] sm:$0xff]   ;;  %v4330_v32 = vrot.slane %v4328_v6, 7  ;;  %v16868_v63 = vrot.slane %v4311_v11, 7  ;;  %v13588_v27 = vpop.f32.mrb[28].mxu0  ;;  %v4336_v3 = vshrl.u32 %v12649_v23, 16  ;;  %v4339_v50 = vshll.u32 %v12649_v23, 16 }
 0x3d4   : >> { %v4307_v45 = vor.u32 %v4305_v59, %v4304_v60  ;;  %v4309_v13 = vrot.slane %v4304_v60, 4  ;;  %v4290_v62 = vor.u32 %v4288_v25, %v4287_v18  ;;  %v4292_v54 = vrot.slane %v4287_v18, 4  ;;  %13610 = vmatprep.mubr.msk.bf16.mxu1 %vm1052_vm8, %v16866_v44  ;;  %v3925_v1 = vpop.f32.mrb[29].mxu0  ;;  %v4542_v59 = vld [vmem:[#allocation2 + $0x170] sm:$0x1] }
 0x3d5   : >> { %v4333_v33 = vor.u32 %v4331_v22, %v4330_v32  ;;  %v4334_v15 = vrot.slane %v4330_v32, 4  ;;  %v4316_v8 = vor.u32 %v4314_v34, %v16868_v63  ;;  %v4317_v9 = vrot.slane %v16868_v63, 4  ;;  %13611 = vmatmul.mubr.msk.bf16.gmra.mrb[12].mxu1 %vm1052_vm8, %v16872_v46  ;;  %v16888_v52 = vpop.f32.mrb[30].mxu0  ;;  %v4535_v11 = vld [vmem:[#allocation2 + $0x164] sm:$0x1] }
 0x3d6   : >> { %v4308_v51 = vsel %vm15743_vm6, %v4300_v39, %v4307_v45  ;;  %v4529_v56 = vsel %vm15749_vm7, %v4309_v13, %v4528_v36  ;;  %v4291_v29 = vsel %vm15743_vm6, %v4283_v43, %v4290_v62  ;;  %v4522_v35 = vsel %vm15749_vm7, %v4292_v54, %v4521_v31  ;;  %v16896_v43 = vpop.f32.mrb[31].mxu0  ;;  %v4552_v32 = vld [vmem:[#allocation2 + $0x180] sm:$0xf]  ;;  %v4545_v62 = vld [vmem:[#allocation2 + $0x174] sm:$0xf] }
 0x3d7   : >> { %4527 = vst.msk [vmem:[#allocation2 + $0x154] sm:$0xf] %vm202_vm0, %v4308_v51  ;;  %4530 = vst [vmem:[#allocation2 + $0x158] sm:$0x1] %v4529_v56  ;;  %v4539_v39 = vsel %vm15735_vm5, %v4333_v33, %v4538_v48  ;;  %v4532_v30 = vsel %vm15735_vm5, %v4316_v8, %v4531_v10  ;;  %v4319_v4 = vshrl.u32 %v12647_v57, 16  ;;  %v4322_v40 = vshll.u32 %v12647_v57, 16 }
 0x3d8   : >> { %4520 = vst.msk [vmem:[#allocation2 + $0x148] sm:$0xf] %vm202_vm0, %v4291_v29  ;;  %4523 = vst [vmem:[#allocation2 + $0x14c] sm:$0x1] %v4522_v35  ;;  %v4038_v26 = vmax.f32 %v4006_v17, 0.0  ;;  %v4036_v38 = vmax.f32 %v4004_v37, 0.0  ;;  %v4007_v55 = vadd.f32 %v16860_v58, %v16718_v24  ;;  %v4005_v49 = vadd.f32 %v16718_v24, %v3912_v14 }
 0x3d9   : >> { %4540 = vst [vmem:[#allocation2 + $0x168] sm:$0xf] %v4539_v39  ;;  %4533 = vst [vmem:[#allocation2 + $0x15c] sm:$0xf] %v4532_v30  ;;  %v4338_v20 = vrot.slane %v4336_v3, 7  ;;  %v4010_v61 = vadd.f32 %v13588_v27, %v16718_v24  ;;  %v4321_v19 = vrot.slane %v4319_v4, 7  ;;  %v4008_v31 = vadd.f32 %v16718_v24, %v3925_v1 }
 0x3da   : >> { %v12652_v25 = vpack.c.bf16 %v4038_v26, %v4038_v26  ;;  %v12650_v36 = vpack.c.bf16 %v4036_v38, %v4036_v38  ;;  %v4039_v34 = vmax.f32 %v4007_v55, 0.0  ;;  %v4037_v60 = vmax.f32 %v4005_v49, 0.0 }
 0x3db   : >> { %v4341_v6 = vor.u32 %v4339_v50, %v4338_v20  ;;  %v4343_v22 = vrot.slane %v4338_v20, 4  ;;  %v4324_v18 = vor.u32 %v4322_v40, %v4321_v19  ;;  %v4326_v48 = vrot.slane %v4321_v19, 4  ;;  %v4556_v20 = vld [vmem:[#allocation2 + $0x188] sm:$0x1] }
 0x3dc   : >> { %v4362_v23 = vshrl.u32 %v12652_v25, 16  ;;  %v4365_v57 = vshll.u32 %v12652_v25, 16  ;;  %v4345_v63 = vshrl.u32 %v12650_v36, 16  ;;  %v4348_v17 = vshll.u32 %v12650_v36, 16  ;;  %v4549_v25 = vld [vmem:[#allocation2 + $0x17c] sm:$0x1] }
 0x3dd   : >> { %v4342_v58 = vsel %vm15743_vm6, %v4334_v15, %v4341_v6  ;;  %v4543_v14 = vsel %vm15749_vm7, %v4343_v22, %v4542_v59  ;;  %v4325_v37 = vsel %vm15743_vm6, %v4317_v9, %v4324_v18  ;;  %v4536_v45 = vsel %vm15749_vm7, %v4326_v48, %v4535_v11 }
 0x3de   : >> { %4541 = vst.msk [vmem:[#allocation2 + $0x16c] sm:$0xf] %vm202_vm0, %v4342_v58  ;;  %4544 = vst [vmem:[#allocation2 + $0x170] sm:$0x1] %v4543_v14  ;;  %v4364_v13 = vrot.slane %v4362_v23, 7  ;;  %v12653_v54 = vpack.c.bf16 %v4039_v34, %v4039_v34  ;;  %v4347_v27 = vrot.slane %v4345_v63, 7  ;;  %v12651_v33 = vpack.c.bf16 %v4037_v60, %v4037_v60 }
 0x3df   : >> { %v16912_v10 = vld [vmem:[#allocation2 + $0x144] sm:$0xff]   ;;  %4534 = vst.msk [vmem:[#allocation2 + $0x160] sm:$0xf] %vm202_vm0, %v4325_v37  ;;  %4537 = vst [vmem:[#allocation2 + $0x164] sm:$0x1] %v4536_v45  ;;  %v4042_v15 = vmax.f32 %v4010_v61, 0.0  ;;  %v4011_v49 = vadd.f32 %v16888_v52, %v16718_v24  ;;  %v4009_v61 = vadd.f32 %v16718_v24, %v16896_v43 }
 0x3e0   : >> { %v4040_v8 = vmax.f32 %v4008_v31, 0.0  ;;  %v16915_v1 = vld [vmem:[#allocation2 + $0x150] sm:$0xff]   ;;  %v4367_v51 = vor.u32 %v4365_v57, %v4364_v13  ;;  %v4368_v56 = vrot.slane %v4364_v13, 4  ;;  %v4370_v9 = vshrl.u32 %v12653_v54, 16  ;;  %13614 = vmatprep.mubr.msk.bf16.mxu1 %vm1052_vm8, %v16912_v10  ;;  %v4566_v57 = vld [vmem:[#allocation2 + $0x198] sm:$0xf] }
 0x3e1   : >> { %v4373_v29 = vshll.u32 %v12653_v54, 16  ;;  %v4350_v35 = vor.u32 %v4348_v17, %v4347_v27  ;;  %v4351_v39 = vrot.slane %v4347_v27, 4  ;;  %v4353_v30 = vshrl.u32 %v12651_v33, 16  ;;  %13615 = vmatmul.mubr.msk.bf16.gmra.mrb[16].mxu1 %vm1052_vm8, %v16915_v1  ;;  %v4559_v17 = vld [vmem:[#allocation2 + $0x18c] sm:$0xf] }
 0x3e2   : >> { %v4356_v3 = vshll.u32 %v12651_v33, 16  ;;  %v4553_v50 = vsel %vm15735_vm5, %v4367_v51, %v4552_v32  ;;  %v4372_v4 = vrot.slane %v4370_v9, 7  ;;  %v12656_v40 = vpack.c.bf16 %v4042_v15, %v4042_v15  ;;  %v4570_v51 = vld [vmem:[#allocation2 + $0x1a0] sm:$0x1] }
 0x3e3   : >> { %v12654_v26 = vpack.c.bf16 %v4040_v8, %v4040_v8  ;;  %4554 = vst [vmem:[#allocation2 + $0x180] sm:$0xf] %v4553_v50  ;;  %v4546_v38 = vsel %vm15735_vm5, %v4350_v35, %v4545_v62  ;;  %v4355_v55 = vrot.slane %v4353_v30, 7  ;;  %v4043_v48 = vmax.f32 %v4011_v49, 0.0  ;;  %v4563_v30 = vld [vmem:[#allocation2 + $0x194] sm:$0x1] }
 0x3e4   : >> { %4547 = vst [vmem:[#allocation2 + $0x174] sm:$0xf] %v4546_v38  ;;  %v4375_v59 = vor.u32 %v4373_v29, %v4372_v4  ;;  %v4377_v19 = vrot.slane %v4372_v4, 4  ;;  %v4396_v36 = vshrl.u32 %v12656_v40, 16  ;;  %v4399_v31 = vshll.u32 %v12656_v40, 16 }
 0x3e5   : >> { %v4358_v6 = vor.u32 %v4356_v3, %v4355_v55  ;;  %v4360_v22 = vrot.slane %v4355_v55, 4  ;;  %v4379_v11 = vshrl.u32 %v12654_v26, 16  ;;  %v4382_v34 = vshll.u32 %v12654_v26, 16  ;;  %v16940_v32 = vld [vmem:[#allocation2 + $0x168] sm:$0xff]  }
 0x3e6   : >> { %v4376_v60 = vsel %vm15743_vm6, %v4368_v56, %v4375_v59  ;;  %v4557_v18 = vsel %vm15749_vm7, %v4377_v19, %v4556_v20  ;;  %v4398_v52 = vrot.slane %v4396_v36, 7  ;;  %v16933_v23 = vld [vmem:[#allocation2 + $0x15c] sm:$0xff]   ;;  %v4041_v14 = vmax.f32 %v4009_v61, 0.0  ;;  %v15209_v36 = vld [vmem:[%s15900_s28 + $0x1f0] sm:$0xff]  }
 0x3e7   : >> { %4555 = vst.msk [vmem:[#allocation2 + $0x184] sm:$0xf] %vm202_vm0, %v4376_v60  ;;  %4558 = vst [vmem:[#allocation2 + $0x188] sm:$0x1] %v4557_v18  ;;  %v4359_v24 = vsel %vm15743_vm6, %v4351_v39, %v4358_v6  ;;  %v4550_v43 = vsel %vm15749_vm7, %v4360_v22, %v4549_v25  ;;  %v4381_v58 = vrot.slane %v4379_v11, 7  ;;  %v12657_v37 = vpack.c.bf16 %v4043_v48, %v4043_v48  ;;  %v15206_v59 = vld [vmem:[#allocation2 + $0xd8] sm:$0xff]  }
 0x3e8   : >> { %4548 = vst.msk [vmem:[#allocation2 + $0x178] sm:$0xf] %vm202_vm0, %v4359_v24  ;;  %4551 = vst [vmem:[#allocation2 + $0x17c] sm:$0x1] %v4550_v43  ;;  %v4401_v63 = vor.u32 %v4399_v31, %v4398_v52  ;;  %13618 = vmatprep.mubr.msk.bf16.mxu1 %vm1052_vm8, %v16933_v23  ;;  %v12655_v13 = vpack.c.bf16 %v4041_v14, %v4041_v14  ;;  %v4402_v29 = vrot.slane %v4398_v52, 4  ;;  %v15208_v25 = vld [vmem:[%s15900_s28 + $0x1e8] sm:$0xff]  }
 0x3e9   : >> { %v4384_v45 = vor.u32 %v4382_v34, %v4381_v58  ;;  %13619 = vmatmul.mubr.msk.bf16.gmra.mrb[20].mxu1 %vm1052_vm8, %v16940_v32  ;;  %v4404_v54 = vshrl.u32 %v12657_v37, 16  ;;  %v4407_v8 = vshll.u32 %v12657_v37, 16  ;;  %v4385_v3 = vrot.slane %v4381_v58, 4  ;;  %v15210_v31 = vld [vmem:[%s15900_s28 + $0x1f8] sm:$0xff]   ;;  %v16991_v6 = vld [vmem:[%s15900_s28 + $0x140] sm:$0xff]  }
 0x3ea   : >> { %v4567_v62 = vsel %vm15735_vm5, %v4401_v63, %v4566_v57  ;;  %v4387_v33 = vshrl.u32 %v12655_v13, 16  ;;  %v4390_v9 = vshll.u32 %v12655_v13, 16  ;;  %v17016_v22 = vld [vmem:[#allocation2 + $0x110] sm:$0x1]  ;;  %v17018_v11 = vld [vmem:[#allocation2 + $0x118] sm:$0xf] }
 0x3eb   : >> { %4568 = vst [vmem:[#allocation2 + $0x198] sm:$0xf] %v4567_v62  ;;  %v4560_v27 = vsel %vm15735_vm5, %v4384_v45, %v4559_v17  ;;  %v4406_v15 = vrot.slane %v4404_v54, 7  ;;  %v17021_v60 = vld [vmem:[#allocation2 + $0x124] sm:$0xf]  ;;  %v6758_v14 = vrot.slane %v17016_v22, 5 }
 0x3ec   : >> { %4561 = vst [vmem:[#allocation2 + $0x18c] sm:$0xf] %v4560_v27  ;;  %v4389_v56 = vrot.slane %v4387_v33, 7  ;;  %v6664_v18 = vld [vmem:[#allocation2 + $0x114] sm:$0xe]  ;;  %v6762_v63 = vrot.slane %v17018_v11, 5 }
 0x3ed   : >> { %v4409_v35 = vor.u32 %v4407_v8, %v4406_v15  ;;  %v4411_v39 = vrot.slane %v4406_v15, 4  ;;  %v6665_v52 = vld [vmem:[#allocation2 + $0x120] sm:$0xe]  ;;  %v17023_v48 = vld [vmem:[#allocation2 + $0x11c] sm:$0x1]  ;;  %v12177_v45 = vrot.slane %v6664_v18, 9 }
 0x3ee   : >> { %v4392_v50 = vor.u32 %v4390_v9, %v4389_v56  ;;  %v4394_v4 = vrot.slane %v4389_v56, 4  ;;  %v16957_v20 = vld [vmem:[#allocation2 + $0x180] sm:$0xff]   ;;  %v17025_v24 = vld [vmem:[#allocation2 + $0x128] sm:$0x1]  ;;  %v17029_v57 = vld [vmem:[#allocation2 + $0x130] sm:$0xf] }
 0x3ef   : >> { %v16951_v40 = vld [vmem:[#allocation2 + $0x174] sm:$0xff]   ;;  %v4410_v26 = vsel %vm15743_vm6, %v4402_v29, %v4409_v35  ;;  %v4571_v38 = vsel %vm15749_vm7, %v4411_v39, %v4570_v51  ;;  %v6769_v13 = vrot.slane %v17021_v60, 5  ;;  %v6666_v62 = vld [vmem:[#allocation2 + $0x12c] sm:$0xe]  ;;  %v17040_v54 = vld [vmem:[#allocation2 + $0x13c] sm:$0xf]  ;;  %v6763_v56 = vsel %vm16469_vm14, %v12177_v45, %v6762_v63 }
 0x3f0   : >> { %4569 = vst.msk [vmem:[#allocation2 + $0x19c] sm:$0xf] %vm202_vm0, %v4410_v26  ;;  %4572 = vst [vmem:[#allocation2 + $0x1a0] sm:$0x1] %v4571_v38  ;;  %v4393_v55 = vsel %vm15743_vm6, %v4385_v3, %v4392_v50  ;;  %v4564_v49 = vsel %vm15749_vm7, %v4394_v4, %v4563_v30  ;;  %13622 = vmatprep.mubr.msk.bf16.mxu1 %vm1052_vm8, %v16951_v40  ;;  %v17035_v17 = vld [vmem:[#allocation2 + $0x134] sm:$0x1] }
 0x3f1   : >> { %4562 = vst.msk [vmem:[#allocation2 + $0x190] sm:$0xf] %vm202_vm0, %v4393_v55  ;;  %4565 = vst [vmem:[#allocation2 + $0x194] sm:$0x1] %v4564_v49  ;;  %13623 = vmatmul.mubr.msk.bf16.gmra.mrb[24].mxu1 %vm1052_vm8, %v16957_v20  ;;  %v6764_v33 = vrot.slane %v6762_v63, 4  ;;  %v6765_v15 = vrot.slane %v17023_v48, 5 }
 0x3f2   : >> { %v12178_v8 = vrot.slane %v6665_v52, 9  ;;  %v17045_v51 = vld [vmem:[#allocation2 + $0x140] sm:$0x1]  ;;  %v6771_v9 = vrot.slane %v6769_v13, 4  ;;  %v6772_v29 = vrot.slane %v17025_v24, 5  ;;  %v12179_v50 = vrot.slane %v6666_v62, 9 }
 0x3f3   : >> { %v6667_v35 = vld [vmem:[#allocation2 + $0x138] sm:$0xe]  ;;  %v17052_v39 = vld [vmem:[#allocation2 + $0x148] sm:$0xf]  ;;  %v6766_v30 = vsel %vm16469_vm14, %v6764_v33, %v6765_v15  ;;  %v6776_v4 = vrot.slane %v17029_v57, 5  ;;  %v6786_v52 = vrot.slane %v17045_v51, 5 }
 0x3f4   : >> { %v6770_v3 = vsel %vm16469_vm14, %v12178_v8, %v6769_v13  ;;  %v6668_v26 = vld [vmem:[#allocation2 + $0x144] sm:$0xe]  ;;  %v17059_v38 = vld [vmem:[#allocation2 + $0x14c] sm:$0x1]  ;;  %v17061_v55 = vld [vmem:[#allocation2 + $0x154] sm:$0xf]  ;;  %v17063_v49 = vcombine.low %v6763_v56, %v6766_v30 }
 0x3f5   : >> { %v12180_v18 = vrot.slane %v6667_v35, 9  ;;  %v6790_v45 = vrot.slane %v17052_v39, 5  ;;  %v15213_v13 = vld [vmem:[%s15900_s28 + $0x150] sm:$0xff]   ;;  %v17081_v62 = vld [vmem:[#allocation2 + $0x160] sm:$0xf]  ;;  %v6793_v8 = vrot.slane %v17059_v38, 5 }
 0x3f6   : >> { %18808 = vst [vmem:[#allocation13_spill] sm:$0xff] %v17063_v49  ;;  %v6797_v56 = vrot.slane %v17061_v55, 5 }
 0x3f7   : >> { %v16971_v19 = vld [vmem:[#allocation2 + $0x198] sm:$0xff]   ;;  %v6792_v35 = vrot.slane %v6790_v45, 4 }
 0x3f8   : >> { %v16969_v61 = vld [vmem:[#allocation2 + $0x18c] sm:$0xff]  }
 0x3f9   : >> { %13626 = vmatprep.mubr.msk.bf16.mxu1 %vm1052_vm8, %v16969_v61 }
 0x3fa   : >> { %13627 = vmatmul.mubr.msk.bf16.gmra.mrb[28].mxu1 %vm1052_vm8, %v16971_v19 }
 0x3fb   : >> { %13638 = vmatprep.mubr.msk.bf16.mxu1 %vm1052_vm8, %v15206_v59  ;;  %v6773_v59 = vsel %vm16469_vm14, %v6771_v9, %v6772_v29 }
 0x402   : >> { %13639 = vmatmul.mubr.msk.bf16.vlgmr.msra.gmra.mrb[0].mxu1 %vm1052_vm8, %v16759_v47  ;;  %v17014_v47 = vld [vmem:[#allocation2 + $0x10c] sm:$0xf] }
 0x403   : >> { %13642 = vmatprep.mubr.msk.bf16.mxu1 %vm1052_vm8, %v16761_v2  ;;  %13671 = vmatpush3.bf16.msra.mxu1 %v16799_v28  ;;  %v6663_v28 = vld [vmem:[#allocation2 + $0x108] sm:$0xe]  ;;  %v6755_v34 = vrot.slane %v17014_v47, 5 }
 0x404   : >> { %13672 = vmatprep.subr.bf16.mxu1 %v15208_v25  ;;  %v12176_v43 = vrot.slane %v6663_v28, 9  ;;  %v17070_v28 = vcombine.low %v6770_v3, %v6773_v59  ;;  %v6670_v3 = vld [vmem:[#allocation2 + $0x15c] sm:$0xe]  ;;  %v6671_v59 = vld [vmem:[#allocation2 + $0x168] sm:$0xe] }
 0x405   : >> { %v6757_v58 = vrot.slane %v6755_v34, 4 }
 0x406   : >> { %v6756_v37 = vsel %vm16469_vm14, %v12176_v43, %v6755_v34  ;;  %18809 = vst [vmem:[#allocation14_spill] sm:$0xff] %v17070_v28  ;;  %v6778_v34 = vrot.slane %v6776_v4, 4  ;;  %v6669_v43 = vld [vmem:[#allocation2 + $0x150] sm:$0xe] }
 0x407   : >> { %13673 = vmatpush3.bf16.msra.mxu1 %v15208_v25  ;;  %v6759_v27 = vsel %vm16469_vm14, %v6757_v58, %v6758_v14  ;;  %v6779_v25 = vrot.slane %v17035_v17, 5  ;;  %v17073_v58 = vld [vmem:[#allocation2 + $0x158] sm:$0x1]  ;;  %v6777_v14 = vsel %vm16469_vm14, %v12179_v50, %v6776_v4  ;;  %v12182_v30 = vrot.slane %v6669_v43, 9  ;;  %v17100_v50 = vld [vmem:[#allocation2 + $0x170] sm:$0x1] }
 0x408   : >> { %13674 = vmatprep.subr.bf16.mxu1 %v15209_v36  ;;  %v17116_v43 = vld [vmem:[#allocation2 + $0x184] sm:$0xf] }
 0x409   : >> { %v6780_v33 = vsel %vm16469_vm14, %v6778_v34, %v6779_v25  ;;  %v17107_v25 = vld [vmem:[#allocation2 + $0x17c] sm:$0x1]  ;;  %v6794_v34 = vsel %vm16469_vm14, %v6792_v35, %v6793_v8  ;;  %v12184_v35 = vrot.slane %v6671_v59, 9  ;;  %v6825_v41 = vrot.slane %v17116_v43, 5 }
 0x40a   : >> { %13643 = vmatmul.mubr.msk.bf16.gmra.mrb[4].mxu1 %vm1052_vm8, %v16801_v7  ;;  %v17096_v9 = vcombine.low %v6777_v14, %v6780_v33  ;;  %v12183_v33 = vrot.slane %v6670_v3, 9  ;;  %v6814_v3 = vrot.slane %v17100_v50, 5 }
 0x40b   : >> { %13646 = vmatprep.mubr.msk.bf16.mxu1 %vm1052_vm8, %v16803_v53  ;;  %13675 = vmatpush3.bf16.msra.mxu1 %v15209_v36  ;;  %v6783_v36 = vrot.slane %v17040_v54, 5 }
 0x40c   : >> { %13676 = vmatprep.subr.bf16.mxu1 %v15210_v31  ;;  %18810 = vst [vmem:[#allocation15_spill] sm:$0xff] %v17096_v9 }
 0x40d   : >> { %v6785_v63 = vrot.slane %v6783_v36, 4  ;;  %v6784_v15 = vsel %vm16469_vm14, %v12180_v18, %v6783_v36  ;;  %v6798_v18 = vsel %vm16469_vm14, %v12182_v30, %v6797_v56  ;;  %v15214_v30 = vld [vmem:[%s15900_s28 + $0x158] sm:$0xff]  }
 0x40f   : >> { %13677 = vmatpush3.bf16.msra.mxu1 %v15210_v31  ;;  %v15212_v31 = vld [vmem:[%s15900_s28 + $0x148] sm:$0xff]   ;;  %v6787_v29 = vsel %vm16469_vm14, %v6785_v63, %v6786_v52  ;;  %v6804_v52 = vrot.slane %v17081_v62, 5 }
 0x410   : >> { %13710 = vmatprep.subr.bf16.mxu1 %v16991_v6  ;;  %v17102_v4 = vcombine.low %v6784_v15, %v6787_v29 }
 0x411   : >> { %v6806_v29 = vrot.slane %v6804_v52, 4 }
 0x412   : >> { %13647 = vmatmul.mubr.msk.bf16.gmra.mrb[8].mxu1 %vm1052_vm8, %v16840_v21  ;;  %18811 = vst [vmem:[#allocation16_spill] sm:$0xff] %v17102_v4 }
 0x413   : >> { %13650 = vmatprep.mubr.msk.bf16.mxu1 %vm1052_vm8, %v16848_v0 }
 0x41a   : >> { %13651 = vmatmul.mubr.msk.bf16.gmra.mrb[12].mxu1 %vm1052_vm8, %v16866_v44 }
 0x41b   : >> { %13654 = vmatprep.mubr.msk.bf16.mxu1 %vm1052_vm8, %v16872_v46 }
 0x422   : >> { %13655 = vmatmul.mubr.msk.bf16.gmra.mrb[16].mxu1 %vm1052_vm8, %v16912_v10 }
 0x423   : >> { %13658 = vmatprep.mubr.msk.bf16.mxu1 %vm1052_vm8, %v16915_v1 }
 0x42a   : >> { %13659 = vmatmul.mubr.msk.bf16.gmra.mrb[20].mxu1 %vm1052_vm8, %v16933_v23 }
 0x42b   : >> { %13662 = vmatprep.mubr.msk.bf16.mxu1 %vm1052_vm8, %v16940_v32 }
 0x432   : >> { %13663 = vmatmul.mubr.msk.bf16.gmra.mrb[24].mxu1 %vm1052_vm8, %v16951_v40 }
 0x433   : >> { %13666 = vmatprep.mubr.msk.bf16.mxu1 %vm1052_vm8, %v16957_v20 }
 0x43a   : >> { %13667 = vmatmul.mubr.msk.bf16.gmra.mrb[28].mxu1 %vm1052_vm8, %v16969_v61 }
 0x43b   : >> { %13678 = vmatprep.mubr.msk.bf16.mxu1 %vm1052_vm8, %v16761_v2  ;;  %v17047_v2 = vcombine.low %v6756_v37, %v6759_v27  ;;  %v12181_v37 = vrot.slane %v6668_v26, 9  ;;  %v17083_v27 = vld [vmem:[#allocation2 + $0x164] sm:$0x1]  ;;  %v6799_v26 = vrot.slane %v6797_v56, 4 }
 0x43c   : >> { %v6807_v56 = vrot.slane %v17083_v27, 5 }
 0x43d   : >> { %18807 = vst [vmem:[#allocation12_spill] sm:$0xff] %v17047_v2  ;;  %v6791_v36 = vsel %vm16469_vm14, %v12181_v37, %v6790_v45  ;;  %v6672_v37 = vld [vmem:[#allocation2 + $0x174] sm:$0xe]  ;;  %v17123_v45 = vld [vmem:[#allocation2 + $0x188] sm:$0x1] }
 0x43e   : >> { %v17118_v14 = vcombine.low %v6791_v36, %v6794_v34  ;;  %v6805_v36 = vsel %vm16469_vm14, %v12183_v33, %v6804_v52  ;;  %v12185_v59 = vrot.slane %v6672_v37, 9  ;;  %v17142_v52 = vld [vmem:[#allocation2 + $0x194] sm:$0x1]  ;;  %v17144_v33 = vld [vmem:[#allocation2 + $0x19c] sm:$0xf] }
 0x440   : >> { %18812 = vst [vmem:[#allocation17_spill] sm:$0xff] %v17118_v14 }
 0x442   : >> { %13679 = vmatmul.mubr.msk.bf16.vlgmr.msra.gmra.mrb[0].mxu1 %vm1052_vm8, %v16801_v7  ;;  %v17094_v7 = vld [vmem:[#allocation2 + $0x16c] sm:$0xf] }
 0x443   : >> { %13682 = vmatprep.mubr.msk.bf16.mxu1 %vm1052_vm8, %v16803_v53  ;;  %13711 = vmatpush3.bf16.msra.mxu1 %v16991_v6  ;;  %v6800_v53 = vrot.slane %v17073_v58, 5  ;;  %v17105_v6 = vld [vmem:[#allocation2 + $0x178] sm:$0xf]  ;;  %v6811_v15 = vrot.slane %v17094_v7, 5 }
 0x444   : >> { %13712 = vmatprep.subr.bf16.mxu1 %v15212_v31 }
 0x445   : >> { %v6801_v63 = vsel %vm16469_vm14, %v6799_v26, %v6800_v53  ;;  %v6813_v34 = vrot.slane %v6811_v15, 4  ;;  %v6818_v26 = vrot.slane %v17105_v6, 5  ;;  %v6673_v53 = vld [vmem:[#allocation2 + $0x180] sm:$0xe] }
 0x446   : >> { %v17125_v8 = vcombine.low %v6798_v18, %v6801_v63  ;;  %v6808_v18 = vsel %vm16469_vm14, %v6806_v29, %v6807_v56  ;;  %v6812_v63 = vsel %vm16469_vm14, %v12184_v35, %v6811_v15  ;;  %v6821_v56 = vrot.slane %v17107_v25, 5 }
 0x447   : >> { %13713 = vmatpush3.bf16.msra.mxu1 %v15212_v31  ;;  %v17133_v31 = vld [vmem:[#allocation2 + $0x190] sm:$0xf]  ;;  %v17146_v5 = vcombine.low %v6805_v36, %v6808_v18  ;;  %v6815_v16 = vsel %vm16469_vm14, %v6813_v34, %v6814_v3  ;;  %v6820_v29 = vrot.slane %v6818_v26, 4  ;;  %v12186_v37 = vrot.slane %v6673_v53, 9  ;;  %v17157_v36 = vld [vmem:[%s15900_s28 + $0x1a0] sm:$0xff]  }
 0x448   : >> { %18813 = vst [vmem:[#allocation18_spill] sm:$0xff] %v17125_v8  ;;  %13714 = vmatprep.subr.bf16.mxu1 %v15213_v13  ;;  %v17153_v15 = vcombine.low %v6812_v63, %v6815_v16  ;;  %v6828_v35 = vrot.slane %v17123_v45, 5  ;;  %v6674_v8 = vld [vmem:[#allocation2 + $0x18c] sm:$0xe]  ;;  %v17159_v18 = vld [vmem:[#allocation2 + $0x1a0] sm:$0x1]  ;;  %v6819_v34 = vsel %vm16469_vm14, %v12185_v59, %v6818_v26 }
 0x449   : >> { %18814 = vst [vmem:[#allocation19_spill] sm:$0xff] %v17146_v5  ;;  %v6822_v3 = vsel %vm16469_vm14, %v6820_v29, %v6821_v56  ;;  %v6675_v16 = vld [vmem:[#allocation2 + $0x198] sm:$0xe]  ;;  %v6826_v53 = vsel %vm16469_vm14, %v12186_v37, %v6825_v41  ;;  %v12187_v14 = vrot.slane %v6674_v8, 9  ;;  %v6835_v59 = vrot.slane %v17142_v52, 5 }
 0x44a   : >> { %13683 = vmatmul.mubr.msk.bf16.gmra.mrb[4].mxu1 %vm1052_vm8, %v16840_v21  ;;  %18815 = vst [vmem:[#allocation20_spill] sm:$0xff] %v17153_v15  ;;  %v6827_v21 = vrot.slane %v6825_v41, 4  ;;  %v7167_v15 = vrot.slane %v17144_v33, 5  ;;  %v12235_v29 = vrot.slane %v6675_v16, 9  ;;  %v5381_v16 = vld [vmem:[#allocation2 + $0xe4] sm:$0xf] }
 0x44b   : >> { %13686 = vmatprep.mubr.msk.bf16.mxu1 %vm1052_vm8, %v16848_v0  ;;  %13715 = vmatpush3.bf16.msra.mxu1 %v15213_v13  ;;  %v6832_v0 = vrot.slane %v17133_v31, 5  ;;  %v17166_v13 = vcombine.low %v6819_v34, %v6822_v3  ;;  %v7170_v34 = vrot.slane %v17159_v18, 5  ;;  %v17198_v3 = vld [vmem:[#allocation2 + $0xdc] sm:$0xf] }
 0x44c   : >> { %13716 = vmatprep.subr.bf16.mxu1 %v15214_v30  ;;  %v6829_v63 = vsel %vm16469_vm14, %v6827_v21, %v6828_v35  ;;  %v7169_v56 = vrot.slane %v7167_v15, 4  ;;  %v7168_v8 = vsel %vm16469_vm14, %v12235_v29, %v7167_v15 }
 0x44d   : >> { %18816 = vst [vmem:[#allocation21_spill] sm:$0xff] %v17166_v13  ;;  %v17173_v5 = vcombine.low %v6826_v53, %v6829_v63  ;;  %v6834_v26 = vrot.slane %v6832_v0, 4  ;;  %v6833_v41 = vsel %vm16469_vm14, %v12187_v14, %v6832_v0  ;;  %v5378_v14 = vld [vmem:[#allocation2 + $0xd8] sm:$0xf]  ;;  %v5442_v0 = vshll.u32 %v17198_v3, 16 }
 0x44e   : >> { %v5436_v15 = vshll.u32 %v5378_v14, 16  ;;  %v5384_v53 = vld [vmem:[#allocation2 + $0xf0] sm:$0xf]  ;;  %v5460_v63 = vshll.u32 %v5381_v16, 16 }
 0x44f   : >> { %18817 = vst [vmem:[#allocation22_spill] sm:$0xff] %v17173_v5  ;;  %13717 = vmatpush3.bf16.msra.mxu1 %v15214_v30  ;;  %v6836_v37 = vsel %vm16469_vm14, %v6834_v26, %v6835_v59  ;;  %v7171_v30 = vsel %vm16469_vm14, %v7169_v56, %v7170_v34  ;;  %v17208_v26 = vld [vmem:[#allocation2 + $0xf4] sm:$0xf]  ;;  %v17214_v34 = vld [vmem:[#allocation2 + $0xe0] sm:$0x1] }
 0x450   : >> { %13750 = vmatprep.subr.bf16.mxu1 %v17157_v36  ;;  %v17182_v21 = vcombine.low %v6833_v41, %v6836_v37  ;;  %v17190_v35 = vcombine.low %v7168_v8, %v7171_v30  ;;  %18821 = vst [vmem:[#allocation27_spill] sm:$0xff] %v17208_v26  ;;  %v5438_v29 = vrot.slane %v5436_v15, 5  ;;  %18823 = vst [vmem:[#allocation29_spill] sm:$0xff] %v17214_v34  ;;  %v5481_v8 = vshrl.u32 %v5384_v53, 16 }
 0x451   : >> { %v5484_v30 = vshll.u32 %v5384_v53, 16  ;;  %v5452_v53 = vshll.u32 %v17214_v34, 16  ;;  %v5462_v5 = vrot.slane %v5460_v63, 5 }
 0x452   : >> { %18818 = vst [vmem:[#allocation24_spill] sm:$0xff] %v17182_v21  ;;  %13687 = vmatmul.mubr.msk.bf16.gmra.mrb[8].mxu1 %vm1052_vm8, %v16866_v44  ;;  %18819 = vst [vmem:[#allocation25_spill] sm:$0xff] %v17190_v35  ;;  %v5433_v44 = vshrl.u32 %v5378_v14, 16  ;;  %v5490_v14 = vshll.u32 %v17208_v26, 16  ;;  %v5483_v4 = vrot.slane %v5481_v8, 4 }
 0x453   : >> { %13690 = vmatprep.mubr.msk.bf16.mxu1 %vm1052_vm8, %v16872_v46  ;;  %v5446_v46 = vshrl.u32 %v17198_v3, 16  ;;  %v5486_v9 = vrot.slane %v5484_v30, 5 }
 0x454   : >> { %v5435_v59 = vrot.slane %v5433_v44, 4  ;;  %v5494_v44 = vshrl.u32 %v17208_v26, 16  ;;  %v17230_v28 = vrot.slane %v5490_v14, 5 }
 0x455   : >> { %v5448_v56 = vrot.slane %v5446_v46, 4  ;;  %v5487_v8 = vor.u32 %v5486_v9, %v5483_v4  ;;  %v5538_v4 = vshll.u32 %v17014_v47, 16 }
 0x456   : >> { %v5439_v35 = vor.u32 %v5438_v29, %v5435_v59  ;;  %v5454_v29 = vrot.slane %v5452_v53, 5 }
 0x457   : >> { %v5488_v53 = vrot.slane %v5487_v8, 4  ;;  %v17257_v42 = vrot.slane %v5538_v4, 5 }
 0x45a   : >> { %13691 = vmatmul.mubr.msk.bf16.gmra.mrb[12].mxu1 %vm1052_vm8, %v16912_v10  ;;  %v17206_v10 = vld [vmem:[#allocation2 + $0xe8] sm:$0xf] }
 0x45b   : >> { %13694 = vmatprep.mubr.msk.bf16.mxu1 %vm1052_vm8, %v16915_v1  ;;  %18820 = vst [vmem:[#allocation26_spill] sm:$0xff] %v17206_v10  ;;  %v5457_v1 = vshrl.u32 %v5381_v16, 16  ;;  %v5466_v41 = vshll.u32 %v17206_v10, 16  ;;  %v5470_v37 = vshrl.u32 %v17206_v10, 16 }
 0x45d   : >> { %v5459_v15 = vrot.slane %v5457_v1, 4  ;;  %v5472_v13 = vrot.slane %v5470_v37, 4  ;;  %v17239_v37 = vld [vmem:[#allocation2 + $0xf8] sm:$0x1] }
 0x45e   : >> { %18825 = vst [vmem:[#allocation31_spill] sm:$0xff] %v17239_v37 }
 0x45f   : >> { %v5463_v10 = vor.u32 %v5462_v5, %v5459_v15 }
 0x461   : >> { %v5464_v15 = vrot.slane %v5463_v10, 4 }
 0x462   : >> { %13695 = vmatmul.mubr.msk.bf16.gmra.mrb[16].mxu1 %vm1052_vm8, %v16933_v23  ;;  %v17210_v23 = vrot.slane %v5442_v0, 5  ;;  %v5387_v0 = vld [vmem:[#allocation2 + $0xfc] sm:$0xf] }
 0x463   : >> { %13698 = vmatprep.mubr.msk.bf16.mxu1 %vm1052_vm8, %v16940_v32  ;;  %v17212_v32 = vld [vmem:[#allocation2 + $0x100] sm:$0xf]  ;;  %v5505_v1 = vshrl.u32 %v5387_v0, 16  ;;  %v5508_v49 = vshll.u32 %v5387_v0, 16 }
 0x464   : >> { %18822 = vst [vmem:[#allocation28_spill] sm:$0xff] %v17212_v32  ;;  %v5514_v46 = vshll.u32 %v17212_v32, 16  ;;  %v5518_v16 = vshrl.u32 %v17212_v32, 16  ;;  %v5449_v21 = vor.u32 %v5448_v56, %v17210_v23  ;;  %v5440_v32 = vrot.slane %v5439_v35, 4  ;;  %v5390_v56 = vld [vmem:[#allocation2 + $0x108] sm:$0xf] }
 0x465   : >> { %v5507_v14 = vrot.slane %v5505_v1, 4  ;;  %v5532_v35 = vshll.u32 %v5390_v56, 16 }
 0x466   : >> { %v17232_v2 = vrot.slane %v5514_v46, 5  ;;  %v5520_v26 = vrot.slane %v5518_v16, 4  ;;  %v5450_v59 = vrot.slane %v5449_v21, 4  ;;  %v17244_v21 = vld [vmem:[#allocation2 + $0x104] sm:$0x1]  ;;  %v5500_v46 = vshll.u32 %v17239_v37, 16 }
 0x467   : >> { %v15215_v16 = vld [vmem:[#allocation2 + $0x1a4] sm:$0xff]  }
 0x468   : >> { %v5521_v5 = vor.u32 %v5520_v26, %v17232_v2  ;;  %v5455_v9 = vsel %vm16064_vm11, %v5450_v59, %v5454_v29  ;;  %v5393_v26 = vld [vmem:[#allocation2 + $0x114] sm:$0xf]  ;;  %v5534_v29 = vrot.slane %v5532_v35, 5  ;;  %v5502_v34 = vrot.slane %v5500_v46, 5 }
 0x469   : >> { %v5553_v10 = vshrl.u32 %v5393_v26, 16 }
 0x46a   : >> { %13699 = vmatmul.mubr.msk.bf16.gmra.mrb[20].mxu1 %vm1052_vm8, %v16951_v40  ;;  %v17228_v40 = vrot.slane %v5466_v41, 5  ;;  %v17237_v41 = vld [vmem:[#allocation2 + $0xec] sm:$0x1] }
 0x46b   : >> { %13702 = vmatprep.mubr.msk.bf16.mxu1 %vm1052_vm8, %v16957_v20  ;;  %v5496_v20 = vrot.slane %v5494_v44, 4  ;;  %18824 = vst [vmem:[#allocation30_spill] sm:$0xff] %v17237_v41  ;;  %v5510_v44 = vrot.slane %v5508_v49, 5  ;;  %v5542_v49 = vshrl.u32 %v17014_v47, 16 }
 0x46c   : >> { %v5473_v63 = vor.u32 %v5472_v13, %v17228_v40  ;;  %v5529_v13 = vshrl.u32 %v5390_v56, 16  ;;  %v5522_v56 = vrot.slane %v5521_v5, 4  ;;  %v5469_v37 = vsel %vm16064_vm11, %v5464_v15, %v17228_v40  ;;  %v5396_v5 = vld [vmem:[#allocation2 + $0x120] sm:$0xf] }
 0x46d   : >> { %v5497_v30 = vor.u32 %v5496_v20, %v17230_v28  ;;  %v5511_v1 = vor.u32 %v5510_v44, %v5507_v14  ;;  %v5544_v47 = vrot.slane %v5542_v49, 4  ;;  %v5562_v14 = vshll.u32 %v17018_v11, 16 }
 0x46e   : >> { %v5474_v0 = vrot.slane %v5473_v63, 4  ;;  %v5531_v59 = vrot.slane %v5529_v13, 4  ;;  %v5556_v63 = vshll.u32 %v5393_v26, 16  ;;  %v5566_v44 = vshrl.u32 %v17018_v11, 16 }
 0x46f   : >> { %v5498_v20 = vrot.slane %v5497_v30, 4  ;;  %v5512_v8 = vrot.slane %v5511_v1, 4  ;;  %v5493_v40 = vsel %vm16064_vm11, %v5488_v53, %v17230_v28  ;;  %v5545_v4 = vor.u32 %v5544_v47, %v17257_v42  ;;  %v5399_v1 = vld [vmem:[#allocation2 + $0x12c] sm:$0xf] }
 0x470   : >> { %v5555_v11 = vrot.slane %v5553_v10, 4  ;;  %v5558_v49 = vrot.slane %v5556_v63, 5  ;;  %v5577_v15 = vshrl.u32 %v5396_v5, 16  ;;  %v17282_v46 = vrot.slane %v5562_v14, 5 }
 0x471   : >> { %v5503_v35 = vsel %vm16064_vm11, %v5498_v20, %v5502_v34  ;;  %v5517_v28 = vsel %vm16064_vm11, %v5512_v8, %v17232_v2  ;;  %v5548_v34 = vshll.u32 %v17016_v22, 16  ;;  %v5568_v26 = vrot.slane %v5566_v44, 4 }
 0x472   : >> { %13703 = vmatmul.mubr.msk.bf16.gmra.mrb[24].mxu1 %vm1052_vm8, %v16969_v61  ;;  %v5445_v61 = vsel %vm16064_vm11, %v5440_v32, %v17210_v23  ;;  %v5524_v23 = vshll.u32 %v17244_v21, 16  ;;  %v17286_v53 = vcombine.low %v5493_v40, %v5503_v35  ;;  %v5579_v2 = vrot.slane %v5577_v15, 4 }
 0x473   : >> { %13706 = vmatprep.mubr.msk.bf16.mxu1 %vm1052_vm8, %v16971_v19  ;;  %v5476_v19 = vshll.u32 %v17237_v41, 16  ;;  %v12072_v32 = vcombine.low %v5445_v61, %v5455_v9  ;;  %v5535_v61 = vor.u32 %v5534_v29, %v5531_v59  ;;  %v15217_v59 = vld [vmem:[%s15900_s28 + $0x1a8] sm:$0xff]   ;;  %v5402_v29 = vld [vmem:[#allocation2 + $0x138] sm:$0xf]  ;;  %v5569_v63 = vor.u32 %v5568_v26, %v17282_v46 }
 0x474   : >> { %v5526_v30 = vrot.slane %v5524_v23, 5  ;;  %v5601_v8 = vshrl.u32 %v5399_v1, 16  ;;  %v5614_v14 = vshrl.u32 %v17029_v57, 16  ;;  %v5625_v44 = vshrl.u32 %v5402_v29, 16 }
 0x475   : >> { %v5478_v41 = vrot.slane %v5476_v19, 5  ;;  %v5580_v19 = vshll.u32 %v5396_v5, 16  ;;  %v5536_v23 = vrot.slane %v5535_v61, 4  ;;  %v5628_v5 = vshll.u32 %v5402_v29, 16 }
 0x476   : >> { %v5527_v9 = vsel %vm16064_vm11, %v5522_v56, %v5526_v30  ;;  %v5559_v56 = vor.u32 %v5558_v49, %v5555_v11  ;;  %v5604_v30 = vshll.u32 %v5399_v1, 16  ;;  %v5634_v35 = vshll.u32 %v17040_v54, 16 }
 0x477   : >> { %v5479_v13 = vsel %vm16064_vm11, %v5474_v0, %v5478_v41  ;;  %v5586_v41 = vshll.u32 %v17021_v60, 16  ;;  %v5590_v0 = vshrl.u32 %v17021_v60, 16  ;;  %v17288_v20 = vcombine.low %v5517_v28, %v5527_v9  ;;  %v15218_v9 = vld [vmem:[%s15900_s28 + $0x1b0] sm:$0xff]  }
 0x478   : >> { %v5572_v60 = vshll.u32 %v17023_v48, 16  ;;  %v5582_v47 = vrot.slane %v5580_v19, 5  ;;  %v5610_v48 = vshll.u32 %v17029_v57, 16  ;;  %v5638_v61 = vshrl.u32 %v17040_v54, 16 }
 0x479   : >> { %v17292_v22 = vrot.slane %v5586_v41, 5  ;;  %v5592_v10 = vrot.slane %v5590_v0, 4  ;;  %v5570_v49 = vrot.slane %v5569_v63, 4  ;;  %v5596_v15 = vshll.u32 %v17025_v24, 16 }
 0x47a   : >> { %13707 = vmatmul.mubr.msk.bf16.gmra.mrb[28].mxu1 %vm1052_vm8, %v15215_v16  ;;  %v17284_v16 = vcombine.low %v5469_v37, %v5479_v13  ;;  %v5550_v37 = vrot.slane %v5548_v34, 5  ;;  %v5541_v13 = vsel %vm16064_vm11, %v5536_v23, %v17257_v42  ;;  %v5574_v40 = vrot.slane %v5572_v60, 5  ;;  %v5405_v34 = vld [vmem:[#allocation2 + $0x144] sm:$0xf] }
 0x47b   : >> { %13718 = vmatprep.mubr.msk.bf16.mxu1 %vm1052_vm8, %v12072_v32  ;;  %v5546_v32 = vrot.slane %v5545_v4, 4  ;;  %v5560_v4 = vrot.slane %v5559_v56, 4  ;;  %v5583_v11 = vor.u32 %v5582_v47, %v5579_v2  ;;  %v5593_v57 = vor.u32 %v5592_v10, %v17292_v22  ;;  %v15219_v56 = vld [vmem:[%s15900_s28 + $0x1b8] sm:$0xff]  }
 0x47c   : >> { %v5603_v19 = vrot.slane %v5601_v8, 4  ;;  %v5606_v42 = vrot.slane %v5604_v30, 5  ;;  %v17312_v41 = vrot.slane %v5610_v48, 5  ;;  %v5616_v0 = vrot.slane %v5614_v14, 4 }
 0x47d   : >> { %v5627_v28 = vrot.slane %v5625_v44, 4  ;;  %v5630_v54 = vrot.slane %v5628_v5, 5  ;;  %v17314_v26 = vrot.slane %v5634_v35, 5  ;;  %v5640_v1 = vrot.slane %v5638_v61, 4  ;;  %v17335_v44 = vld [vmem:[%s15900_s28 + $0x200] sm:$0xff]  }
 0x47e   : >> { %v5658_v23 = vshll.u32 %v17052_v39, 16  ;;  %v5584_v24 = vrot.slane %v5583_v11, 4  ;;  %v5594_v29 = vrot.slane %v5593_v57, 4  ;;  %v5575_v2 = vsel %vm16064_vm11, %v5570_v49, %v5574_v40 }
 0x47f   : >> { %v5607_v47 = vor.u32 %v5606_v42, %v5603_v19  ;;  %v5617_v10 = vor.u32 %v5616_v0, %v17312_v41  ;;  %v5652_v63 = vshll.u32 %v5405_v34, 16  ;;  %v5631_v8 = vor.u32 %v5630_v54, %v5627_v28 }
 0x480   : >> { %v5641_v30 = vor.u32 %v5640_v1, %v17314_v26  ;;  %v17332_v48 = vrot.slane %v5658_v23, 5  ;;  %v5620_v35 = vshll.u32 %v17035_v17, 16  ;;  %v5411_v1 = vld [vmem:[#allocation2 + $0x15c] sm:$0xf] }
 0x481   : >> { %v5608_v61 = vrot.slane %v5607_v47, 4  ;;  %v5654_v57 = vrot.slane %v5652_v63, 5  ;;  %v5618_v19 = vrot.slane %v5617_v10, 4  ;;  %v5632_v42 = vrot.slane %v5631_v8, 4 }
 0x482   : >> { %13719 = vmatmul.mubr.msk.bf16.vlgmr.msra.gmra.mrb[0].mxu1 %vm1052_vm8, %v17284_v16  ;;  %v5622_v28 = vrot.slane %v5620_v35, 5  ;;  %v5697_v47 = vshrl.u32 %v5411_v1, 16  ;;  %v5706_v10 = vshll.u32 %v17081_v62, 16 }
 0x483   : >> { %13722 = vmatprep.mubr.msk.bf16.mxu1 %vm1052_vm8, %v17286_v53  ;;  %13751 = vmatpush3.bf16.msra.mxu1 %v17157_v36  ;;  %v5551_v36 = vsel %vm16064_vm11, %v5546_v32, %v5550_v37  ;;  %v5662_v32 = vshrl.u32 %v17052_v39, 16  ;;  %v5598_v39 = vrot.slane %v5596_v15, 5  ;;  %v5649_v37 = vshrl.u32 %v5405_v34, 16 }
 0x484   : >> { %13752 = vmatprep.subr.bf16.mxu1 %v15217_v59  ;;  %v17319_v60 = vcombine.low %v5541_v13, %v5551_v36  ;;  %v5589_v13 = vsel %vm16064_vm11, %v5584_v24, %v17292_v22  ;;  %v5682_v36 = vshll.u32 %v17061_v55, 16  ;;  %v5642_v22 = vrot.slane %v5641_v30, 4 }
 0x485   : >> { %v5664_v14 = vrot.slane %v5662_v32, 4  ;;  %v5599_v40 = vsel %vm16064_vm11, %v5594_v29, %v5598_v39  ;;  %v5651_v11 = vrot.slane %v5649_v37, 4  ;;  %v5613_v23 = vsel %vm16064_vm11, %v5608_v61, %v17312_v41  ;;  %v5414_v37 = vld [vmem:[#allocation2 + $0x168] sm:$0xf] }
 0x486   : >> { %v17350_v17 = vcombine.low %v5589_v13, %v5599_v40  ;;  %v17355_v54 = vrot.slane %v5682_v36, 5  ;;  %v5623_v29 = vsel %vm16064_vm11, %v5618_v19, %v5622_v28  ;;  %v5700_v39 = vshll.u32 %v5411_v1, 16 }
 0x487   : >> { %13753 = vmatpush3.bf16.msra.mxu1 %v15217_v59  ;;  %v5565_v59 = vsel %vm16064_vm11, %v5560_v4, %v17282_v46  ;;  %v5408_v46 = vld [vmem:[#allocation2 + $0x150] sm:$0xf]  ;;  %v5686_v4 = vshrl.u32 %v17061_v55, 16  ;;  %v5665_v0 = vor.u32 %v5664_v14, %v17332_v48  ;;  %v5668_v55 = vshll.u32 %v17059_v38, 16 }
 0x488   : >> { %13754 = vmatprep.subr.bf16.mxu1 %v15218_v9  ;;  %v17337_v5 = vcombine.low %v5565_v59, %v5575_v2  ;;  %v5673_v49 = vshrl.u32 %v5408_v46, 16  ;;  %v5676_v15 = vshll.u32 %v5408_v46, 16  ;;  %v5655_v32 = vor.u32 %v5654_v57, %v5651_v11 }
 0x489   : >> { %v5688_v34 = vrot.slane %v5686_v4, 4  ;;  %v5637_v38 = vsel %vm16064_vm11, %v5632_v42, %v17314_v26  ;;  %v5666_v2 = vrot.slane %v5665_v0, 4  ;;  %v5710_v41 = vshrl.u32 %v17081_v62, 16 }
 0x48a   : >> { %13723 = vmatmul.mubr.msk.bf16.gmra.mrb[4].mxu1 %vm1052_vm8, %v17288_v20  ;;  %v5678_v24 = vrot.slane %v5676_v15, 5  ;;  %v5670_v63 = vrot.slane %v5668_v55, 5  ;;  %v5730_v30 = vshll.u32 %v17094_v7, 16  ;;  %v5734_v14 = vshrl.u32 %v17094_v7, 16 }
 0x48b   : >> { %13726 = vmatprep.mubr.msk.bf16.mxu1 %vm1052_vm8, %v17319_v60  ;;  %13755 = vmatpush3.bf16.msra.mxu1 %v15218_v9  ;;  %v5644_v9 = vshll.u32 %v17045_v51, 16  ;;  %v5689_v8 = vor.u32 %v5688_v34, %v17355_v54  ;;  %v17374_v46 = vcombine.low %v5613_v23, %v5623_v29  ;;  %v5656_v13 = vrot.slane %v5655_v32, 4  ;;  %v5420_v32 = vld [vmem:[#allocation2 + $0x180] sm:$0xf] }
 0x48c   : >> { %13756 = vmatprep.subr.bf16.mxu1 %v15219_v56  ;;  %v5671_v35 = vsel %vm16064_vm11, %v5666_v2, %v5670_v63  ;;  %v5692_v61 = vshll.u32 %v17073_v58, 16  ;;  %v5721_v62 = vshrl.u32 %v5414_v37, 16  ;;  %v5699_v36 = vrot.slane %v5697_v47, 4 }
 0x48d   : >> { %v5646_v51 = vrot.slane %v5644_v9, 5  ;;  %v5724_v9 = vshll.u32 %v5414_v37, 16  ;;  %v5702_v4 = vrot.slane %v5700_v39, 5  ;;  %v5708_v11 = vrot.slane %v5706_v10, 5 }
 0x48e   : >> { %v5712_v57 = vrot.slane %v5710_v41, 4  ;;  %v5690_v7 = vrot.slane %v5689_v8, 4  ;;  %v5736_v15 = vrot.slane %v5734_v14, 4  ;;  %v5661_v19 = vsel %vm16064_vm11, %v5656_v13, %v17332_v48 }
 0x48f   : >> { %13757 = vmatpush3.bf16.msra.mxu1 %v15219_v56  ;;  %v5675_v56 = vrot.slane %v5673_v49, 4  ;;  %v5647_v59 = vsel %vm16064_vm11, %v5642_v22, %v5646_v51  ;;  %v5732_v49 = vrot.slane %v5730_v30, 5  ;;  %v17388_v42 = vcombine.low %v5661_v19, %v5671_v35  ;;  %v5417_v51 = vld [vmem:[#allocation2 + $0x174] sm:$0xf] }
 0x490   : >> { %13790 = vmatprep.subr.bf16.mxu1 %v17335_v44  ;;  %v17376_v26 = vcombine.low %v5637_v38, %v5647_v59  ;;  %v5694_v22 = vrot.slane %v5692_v61, 5  ;;  %v5723_v0 = vrot.slane %v5721_v62, 4  ;;  %v5726_v28 = vrot.slane %v5724_v9, 5 }
 0x491   : >> { %v5679_v40 = vor.u32 %v5678_v24, %v5675_v56  ;;  %v5703_v55 = vor.u32 %v5702_v4, %v5699_v36  ;;  %v5713_v34 = vor.u32 %v5712_v57, %v5708_v11  ;;  %v5754_v1 = vshll.u32 %v17105_v6, 16  ;;  %v5423_v36 = vld [vmem:[#allocation2 + $0x18c] sm:$0xf] }
 0x492   : >> { %13727 = vmatmul.mubr.msk.bf16.gmra.mrb[8].mxu1 %vm1052_vm8, %v17337_v5  ;;  %v5758_v23 = vshrl.u32 %v17105_v6, 16  ;;  %v5695_v56 = vsel %vm16064_vm11, %v5690_v7, %v5694_v22  ;;  %v5737_v24 = vor.u32 %v5736_v15, %v5732_v49  ;;  %v5778_v48 = vshll.u32 %v17116_v43, 16 }
 0x493   : >> { %13730 = vmatprep.mubr.msk.bf16.mxu1 %vm1052_vm8, %v17350_v17  ;;  %v5680_v58 = vrot.slane %v5679_v40, 4  ;;  %v5782_v29 = vshrl.u32 %v17116_v43, 16  ;;  %v5716_v59 = vshll.u32 %v17083_v27, 16  ;;  %v5745_v2 = vshrl.u32 %v5417_v51, 16 }
 0x494   : >> { %v5748_v47 = vshll.u32 %v5417_v51, 16  ;;  %v5727_v39 = vor.u32 %v5726_v28, %v5723_v0  ;;  %v5740_v6 = vshll.u32 %v17100_v50, 16  ;;  %v5769_v10 = vshrl.u32 %v5420_v32, 16 }
 0x495   : >> { %v5685_v38 = vsel %vm16064_vm11, %v5680_v58, %v17355_v54  ;;  %v5772_v41 = vshll.u32 %v5420_v32, 16  ;;  %v5714_v63 = vrot.slane %v5713_v34, 4  ;;  %v5756_v8 = vrot.slane %v5754_v1, 5 }
 0x496   : >> { %v17401_v37 = vcombine.low %v5685_v38, %v5695_v56  ;;  %v5760_v30 = vrot.slane %v5758_v23, 4  ;;  %v5704_v43 = vrot.slane %v5703_v55, 4  ;;  %v5738_v14 = vrot.slane %v5737_v24, 4 }
 0x497   : >> { %v5780_v54 = vrot.slane %v5778_v48, 5  ;;  %v5784_v13 = vrot.slane %v5782_v29, 4  ;;  %v5718_v27 = vrot.slane %v5716_v59, 5  ;;  %v5747_v40 = vrot.slane %v5745_v2, 4 }
 0x498   : >> { %v5750_v50 = vrot.slane %v5748_v47, 5  ;;  %v5728_v35 = vrot.slane %v5727_v39, 4  ;;  %v5742_v61 = vrot.slane %v5740_v6, 5  ;;  %v5771_v62 = vrot.slane %v5769_v10, 4 }
 0x499   : >> { %v5774_v9 = vrot.slane %v5772_v41, 5  ;;  %v5719_v4 = vsel %vm16064_vm11, %v5714_v63, %v5718_v27  ;;  %v5761_v57 = vor.u32 %v5760_v30, %v5756_v8  ;;  %v5802_v7 = vshll.u32 %v17133_v31, 16 }
 0x49a   : >> { %13731 = vmatmul.mubr.msk.bf16.gmra.mrb[12].mxu1 %vm1052_vm8, %v17374_v46  ;;  %v5806_v15 = vshrl.u32 %v17133_v31, 16  ;;  %v5709_v19 = vsel %vm16064_vm11, %v5704_v43, %v5708_v11  ;;  %v5743_v58 = vsel %vm16064_vm11, %v5738_v14, %v5742_v61  ;;  %v5785_v22 = vor.u32 %v5784_v13, %v5780_v54 }
 0x49b   : >> { %13734 = vmatprep.mubr.msk.bf16.mxu1 %vm1052_vm8, %v17376_v26  ;;  %v5751_v0 = vor.u32 %v5750_v50, %v5747_v40  ;;  %v5764_v28 = vshll.u32 %v17107_v25, 16  ;;  %v5793_v51 = vshrl.u32 %v5423_v36, 16  ;;  %v5796_v55 = vshll.u32 %v5423_v36, 16  ;;  %v15221_v40 = vld [vmem:[%s15900_s28 + $0x208] sm:$0xff]   ;;  %v15222_v50 = vld [vmem:[%s15900_s28 + $0x210] sm:$0xff]  }
 0x49c   : >> { %v17416_v34 = vcombine.low %v5709_v19, %v5719_v4  ;;  %v5733_v1 = vsel %vm16064_vm11, %v5728_v35, %v5732_v49  ;;  %v5775_v23 = vor.u32 %v5774_v9, %v5771_v62  ;;  %v5788_v31 = vshll.u32 %v17123_v45, 16  ;;  %v15223_v35 = vld [vmem:[%s15900_s28 + $0x218] sm:$0xff]  }
 0x49d   : >> { %v17421_v32 = vcombine.low %v5733_v1, %v5743_v58  ;;  %v5762_v11 = vrot.slane %v5761_v57, 4  ;;  %v5804_v56 = vrot.slane %v5802_v7, 5  ;;  %v5808_v24 = vrot.slane %v5806_v15, 4 }
 0x49e   : >> { %v5786_v48 = vrot.slane %v5785_v22, 4  ;;  %v5752_v25 = vrot.slane %v5751_v0, 4  ;;  %v5766_v29 = vrot.slane %v5764_v28, 5  ;;  %v5795_v38 = vrot.slane %v5793_v51, 4 }
 0x49f   : >> { %v5798_v59 = vrot.slane %v5796_v55, 5  ;;  %v5776_v49 = vrot.slane %v5775_v23, 4  ;;  %v5790_v2 = vrot.slane %v5788_v31, 5  ;;  %v5809_v47 = vor.u32 %v5808_v24, %v5804_v56  ;;  %v15226_v23 = vld [vmem:[%s15900_s28 + $0x170] sm:$0xff]   ;;  %v15227_v31 = vld [vmem:[%s15900_s28 + $0x178] sm:$0xff]  }
 0x4a0   : >> { %v5767_v45 = vsel %vm16064_vm11, %v5762_v11, %v5766_v29  ;;  %v5757_v6 = vsel %vm16064_vm11, %v5752_v25, %v5756_v8  ;;  %v5812_v41 = vshll.u32 %v17142_v52, 16  ;;  %v6151_v61 = vshll.u32 %v17144_v33, 16  ;;  %v6659_v29 = vld [vmem:[#allocation2 + $0xd8] sm:$0xe] }
 0x4a1   : >> { %v5791_v39 = vsel %vm16064_vm11, %v5786_v48, %v5790_v2  ;;  %v5799_v10 = vor.u32 %v5798_v59, %v5795_v38  ;;  %v17434_v63 = vcombine.low %v5757_v6, %v5767_v45  ;;  %v5781_v30 = vsel %vm16064_vm11, %v5776_v49, %v5780_v54 }
 0x4a2   : >> { %13735 = vmatmul.mubr.msk.bf16.gmra.mrb[16].mxu1 %vm1052_vm8, %v17388_v42  ;;  %v17438_v43 = vcombine.low %v5781_v30, %v5791_v39  ;;  %v5810_v14 = vrot.slane %v5809_v47, 4  ;;  %v5814_v13 = vrot.slane %v5812_v41, 5  ;;  %v6155_v62 = vshrl.u32 %v17144_v33, 16  ;;  %v18826_v47 = vld [vmem:[#allocation29_spill] sm:$0xff]  ;;  %v18828_v30 = vld [vmem:[#allocation26_spill] sm:$0xff] }
 0x4a3   : >> { %13738 = vmatprep.mubr.msk.bf16.mxu1 %vm1052_vm8, %v17401_v37  ;;  %v5800_v8 = vrot.slane %v5799_v10, 4  ;;  %v6153_v4 = vrot.slane %v6151_v61, 5  ;;  %v6161_v22 = vshll.u32 %v17159_v18, 16  ;;  %v15225_v18 = vld [vmem:[%s15900_s28 + $0x168] sm:$0xff]   ;;  %v6727_v25 = vrot.slane %v17198_v3, 5 }
 0x4a4   : >> { %v5815_v52 = vsel %vm16064_vm11, %v5810_v14, %v5814_v13  ;;  %v6157_v57 = vrot.slane %v6155_v62, 4  ;;  %v12172_v2 = vrot.slane %v6659_v29, 9  ;;  %v6730_v39 = vrot.slane %v18826_v47, 5  ;;  %v15234_v29 = vld [vmem:[%s15900_s28 + $0x230] sm:$0xff]  }
 0x4a5   : >> { %v5805_v27 = vsel %vm16064_vm11, %v5800_v8, %v5804_v56  ;;  %v6163_v28 = vrot.slane %v6161_v22, 5  ;;  %v6729_v45 = vrot.slane %v6727_v25, 4  ;;  %v18829_v8 = vld [vmem:[#allocation27_spill] sm:$0xff]  ;;  %v15229_v22 = vld [vmem:[%s15900_s28 + $0x1c8] sm:$0xff]  }
 0x4a6   : >> { %v17448_v54 = vcombine.low %v5805_v27, %v5815_v52  ;;  %v6158_v19 = vor.u32 %v6157_v57, %v6153_v4  ;;  %v6728_v41 = vsel %vm16469_vm14, %v12172_v2, %v6727_v25  ;;  %v6741_v13 = vrot.slane %v18829_v8, 5  ;;  %v15233_v25 = vld [vmem:[%s15900_s28 + $0x228] sm:$0xff]   ;;  %v6676_v2 = vld [vmem:[#allocation2 + $0x1a4] sm:$0xe] }
 0x4a8   : >> { %v6159_v0 = vrot.slane %v6158_v19, 4 }
 0x4aa   : >> { %13739 = vmatmul.mubr.msk.bf16.gmra.mrb[20].mxu1 %vm1052_vm8, %v17416_v34  ;;  %v6164_v51 = vsel %vm16064_vm11, %v6159_v0, %v6163_v28  ;;  %v6662_v28 = vld [vmem:[#allocation2 + $0xfc] sm:$0xe] }
 0x4ab   : >> { %13742 = vmatprep.mubr.msk.bf16.mxu1 %vm1052_vm8, %v17421_v32 }
 0x4b2   : >> { %13743 = vmatmul.mubr.msk.bf16.gmra.mrb[24].mxu1 %vm1052_vm8, %v17434_v63 }
 0x4b3   : >> { %13746 = vmatprep.mubr.msk.bf16.mxu1 %vm1052_vm8, %v17438_v43 }
 0x4ba   : >> { %13747 = vmatmul.mubr.msk.bf16.gmra.mrb[28].mxu1 %vm1052_vm8, %v17448_v54 }
 0x4bb   : >> { %13758 = vmatprep.mubr.msk.bf16.mxu1 %vm1052_vm8, %v17284_v16  ;;  %v15224_v16 = vld [vmem:[%s15900_s28 + $0x160] sm:$0xff]  }
 0x4c2   : >> { %13759 = vmatmul.mubr.msk.bf16.vlgmr.msra.gmra.mrb[0].mxu1 %vm1052_vm8, %v17286_v53 }
 0x4c3   : >> { %13762 = vmatprep.mubr.msk.bf16.mxu1 %vm1052_vm8, %v17288_v20  ;;  %13791 = vmatpush3.bf16.msra.mxu1 %v17335_v44  ;;  %v5426_v44 = vld [vmem:[#allocation2 + $0x198] sm:$0xf] }
 0x4c4   : >> { %13792 = vmatprep.subr.bf16.mxu1 %v15221_v40  ;;  %v6142_v9 = vshrl.u32 %v5426_v44, 16  ;;  %v6145_v36 = vshll.u32 %v5426_v44, 16  ;;  %v18831_v44 = vld [vmem:[#allocation31_spill] sm:$0xff] }
 0x4c5   : >> { %v6744_v61 = vrot.slane %v18831_v44, 5 }
 0x4c6   : >> { %v6144_v7 = vrot.slane %v6142_v9, 4  ;;  %v6147_v15 = vrot.slane %v6145_v36, 5  ;;  %v18832_v36 = vld [vmem:[#allocation28_spill] sm:$0xff] }
 0x4c7   : >> { %13793 = vmatpush3.bf16.msra.mxu1 %v15221_v40  ;;  %v6743_v40 = vrot.slane %v6741_v13, 4 }
 0x4c8   : >> { %13794 = vmatprep.subr.bf16.mxu1 %v15222_v50  ;;  %v6148_v58 = vor.u32 %v6147_v15, %v6144_v7 }
 0x4c9   : >> { %v6745_v7 = vsel %vm16469_vm14, %v6743_v40, %v6744_v61 }
 0x4ca   : >> { %13763 = vmatmul.mubr.msk.bf16.gmra.mrb[4].mxu1 %vm1052_vm8, %v17319_v60  ;;  %v6149_v33 = vrot.slane %v6148_v58, 4 }
 0x4cb   : >> { %13766 = vmatprep.mubr.msk.bf16.mxu1 %vm1052_vm8, %v17337_v5  ;;  %13795 = vmatpush3.bf16.msra.mxu1 %v15222_v50  ;;  %v18830_v50 = vld [vmem:[#allocation30_spill] sm:$0xff] }
 0x4cc   : >> { %13796 = vmatprep.subr.bf16.mxu1 %v15223_v35  ;;  %v6154_v55 = vsel %vm16064_vm11, %v6149_v33, %v6153_v4  ;;  %v6748_v4 = vrot.slane %v18832_v36, 5 }
 0x4cd   : >> { %v12119_v1 = vcombine.low %v6154_v55, %v6164_v51  ;;  %v6751_v51 = vrot.slane %v17244_v21, 5  ;;  %v15230_v55 = vld [vmem:[%s15900_s28 + $0x1d0] sm:$0xff]   ;;  %v15232_v21 = vld [vmem:[%s15900_s28 + $0x220] sm:$0xff]  }
 0x4ce   : >> { %v6750_v33 = vrot.slane %v6748_v4, 4 }
 0x4cf   : >> { %13797 = vmatpush3.bf16.msra.mxu1 %v15223_v35  ;;  %v6737_v35 = vrot.slane %v18830_v50, 5 }
 0x4d0   : >> { %13830 = vmatprep.subr.bf16.mxu1 %v15224_v16 }
 0x4d2   : >> { %13767 = vmatmul.mubr.msk.bf16.gmra.mrb[8].mxu1 %vm1052_vm8, %v17350_v17 }
 0x4d3   : >> { %13770 = vmatprep.mubr.msk.bf16.mxu1 %vm1052_vm8, %v17374_v46 }
 0x4da   : >> { %13771 = vmatmul.mubr.msk.bf16.gmra.mrb[12].mxu1 %vm1052_vm8, %v17376_v26 }
 0x4db   : >> { %13774 = vmatprep.mubr.msk.bf16.mxu1 %vm1052_vm8, %v17388_v42 }
 0x4e2   : >> { %13775 = vmatmul.mubr.msk.bf16.gmra.mrb[16].mxu1 %vm1052_vm8, %v17401_v37 }
 0x4e3   : >> { %13778 = vmatprep.mubr.msk.bf16.mxu1 %vm1052_vm8, %v17416_v34 }
 0x4ea   : >> { %13779 = vmatmul.mubr.msk.bf16.gmra.mrb[20].mxu1 %vm1052_vm8, %v17421_v32 }
 0x4eb   : >> { %13782 = vmatprep.mubr.msk.bf16.mxu1 %vm1052_vm8, %v17434_v63 }
 0x4f2   : >> { %13783 = vmatmul.mubr.msk.bf16.gmra.mrb[24].mxu1 %vm1052_vm8, %v17438_v43 }
 0x4f3   : >> { %13786 = vmatprep.mubr.msk.bf16.mxu1 %vm1052_vm8, %v17448_v54 }
 0x4fa   : >> { %13787 = vmatmul.mubr.msk.bf16.gmra.mrb[28].mxu1 %vm1052_vm8, %v12119_v1 }
 0x4fb   : >> { %13798 = vmatprep.mubr.msk.bf16.mxu1 %vm1052_vm8, %v17286_v53  ;;  %v17509_v53 = vld [vmem:[%s15900_s28 + $0x1c0] sm:$0xff]  }
 0x502   : >> { %13799 = vmatmul.mubr.msk.bf16.vlgmr.msra.gmra.mrb[0].mxu1 %vm1052_vm8, %v17288_v20  ;;  %v5429_v20 = vld [vmem:[#allocation2 + $0x1a4] sm:$0xf] }
 0x503   : >> { %13802 = vmatprep.mubr.msk.bf16.mxu1 %vm1052_vm8, %v17319_v60  ;;  %13831 = vmatpush3.bf16.msra.mxu1 %v15224_v16  ;;  %v17520_v60 = vld [vmem:[#allocation2 + $0x1a8] sm:$0xf]  ;;  %v6661_v16 = vld [vmem:[#allocation2 + $0xf0] sm:$0xe] }
 0x504   : >> { %13832 = vmatprep.subr.bf16.mxu1 %v15225_v18  ;;  %v12174_v57 = vrot.slane %v6661_v16, 9 }
 0x506   : >> { %v6742_v58 = vsel %vm16469_vm14, %v12174_v57, %v6741_v13 }
 0x507   : >> { %13833 = vmatpush3.bf16.msra.mxu1 %v15225_v18  ;;  %v12201_v0 = vcombine.low %v6742_v58, %v6745_v7  ;;  %v6752_v18 = vsel %vm16469_vm14, %v6750_v33, %v6751_v51 }
 0x508   : >> { %13834 = vmatprep.subr.bf16.mxu1 %v15226_v23 }
 0x50a   : >> { %13803 = vmatmul.mubr.msk.bf16.gmra.mrb[4].mxu1 %vm1052_vm8, %v17337_v5  ;;  %v6401_v5 = vshrl.u32 %v5429_v20, 16 }
 0x50b   : >> { %13806 = vmatprep.mubr.msk.bf16.mxu1 %vm1052_vm8, %v17350_v17  ;;  %13835 = vmatpush3.bf16.msra.mxu1 %v15226_v23  ;;  %v6404_v17 = vshll.u32 %v5429_v20, 16  ;;  %v15231_v20 = vld [vmem:[%s15900_s28 + $0x1d8] sm:$0xff]  }
 0x50c   : >> { %13836 = vmatprep.subr.bf16.mxu1 %v15227_v31  ;;  %v6403_v11 = vrot.slane %v6401_v5, 4  ;;  %v18833_v5 = vld [vmem:[#allocation12_spill] sm:$0xff] }
 0x50f   : >> { %13837 = vmatpush3.bf16.msra.mxu1 %v15227_v31 }
 0x510   : >> { %13870 = vmatprep.subr.bf16.mxu1 %v17509_v53 }
 0x512   : >> { %13807 = vmatmul.mubr.msk.bf16.gmra.mrb[8].mxu1 %vm1052_vm8, %v17374_v46  ;;  %v6410_v46 = vshll.u32 %v17520_v60, 16 }
 0x513   : >> { %13810 = vmatprep.mubr.msk.bf16.mxu1 %vm1052_vm8, %v17376_v26  ;;  %v6414_v26 = vshrl.u32 %v17520_v60, 16 }
 0x514   : >> { %v6412_v56 = vrot.slane %v6410_v46, 5  ;;  %v18836_v46 = vld [vmem:[#allocation15_spill] sm:$0xff] }
 0x515   : >> { %v6416_v24 = vrot.slane %v6414_v26, 4  ;;  %v18837_v26 = vld [vmem:[#allocation16_spill] sm:$0xff] }
 0x51a   : >> { %13811 = vmatmul.mubr.msk.bf16.gmra.mrb[12].mxu1 %vm1052_vm8, %v17388_v42  ;;  %v6406_v42 = vrot.slane %v6404_v17, 5  ;;  %v18835_v17 = vld [vmem:[#allocation14_spill] sm:$0xff] }
 0x51b   : >> { %13814 = vmatprep.mubr.msk.bf16.mxu1 %vm1052_vm8, %v17401_v37  ;;  %v17528_v37 = vld [vmem:[#allocation2 + $0x1ac] sm:$0x1] }
 0x51c   : >> { %v6420_v48 = vshll.u32 %v17528_v37, 16 }
 0x51e   : >> { %v6422_v49 = vrot.slane %v6420_v48, 5  ;;  %v18844_v48 = vld [vmem:[#allocation24_spill] sm:$0xff] }
 0x522   : >> { %13815 = vmatmul.mubr.msk.bf16.gmra.mrb[16].mxu1 %vm1052_vm8, %v17416_v34  ;;  %v6407_v34 = vor.u32 %v6406_v42, %v6403_v11  ;;  %v18838_v11 = vld [vmem:[#allocation17_spill] sm:$0xff]  ;;  %v18839_v42 = vld [vmem:[#allocation18_spill] sm:$0xff] }
 0x523   : >> { %13818 = vmatprep.mubr.msk.bf16.mxu1 %vm1052_vm8, %v17421_v32  ;;  %v6417_v32 = vor.u32 %v6416_v24, %v6412_v56  ;;  %v18841_v24 = vld [vmem:[#allocation20_spill] sm:$0xff] }
 0x524   : >> { %v6408_v38 = vrot.slane %v6407_v34, 4  ;;  %v18842_v34 = vld [vmem:[#allocation21_spill] sm:$0xff] }
 0x525   : >> { %v6418_v59 = vrot.slane %v6417_v32, 4  ;;  %v18843_v32 = vld [vmem:[#allocation22_spill] sm:$0xff] }
 0x526   : >> { %v6413_v6 = vsel %vm16064_vm11, %v6408_v38, %v6412_v56  ;;  %v18840_v56 = vld [vmem:[#allocation19_spill] sm:$0xff]  ;;  %v15235_v38 = vld [vmem:[%s15900_s28 + $0x238] sm:$0xff]  }
 0x527   : >> { %v6423_v10 = vsel %vm16064_vm11, %v6418_v59, %v6422_v49  ;;  %v18845_v59 = vld [vmem:[#allocation25_spill] sm:$0xff]  ;;  %v7412_v49 = vrot.slane %v17520_v60, 5  ;;  %v17668_v60 = vld [vmem:[%s16715_s30 + $0x1] ss:$0 sm:$0xff] }
 0x528   : >> { %v12151_v14 = vcombine.low %v6413_v6, %v6423_v10 }
 0x529   : >> { %v7414_v47 = vrot.slane %v7412_v49, 4 }
 0x52a   : >> { %13819 = vmatmul.mubr.msk.bf16.gmra.mrb[20].mxu1 %vm1052_vm8, %v17434_v63  ;;  %v6731_v63 = vsel %vm16469_vm14, %v6729_v45, %v6730_v39  ;;  %v12268_v45 = vrot.slane %v6676_v2, 9  ;;  %v7415_v39 = vrot.slane %v17528_v37, 5 }
 0x52b   : >> { %13822 = vmatprep.mubr.msk.bf16.mxu1 %vm1052_vm8, %v17438_v43  ;;  %v6734_v43 = vrot.slane %v18828_v30, 5  ;;  %v12199_v52 = vcombine.low %v6728_v41, %v6731_v63 }
 0x52c   : >> { %v7413_v6 = vsel %vm16469_vm14, %v12268_v45, %v7412_v49  ;;  %v7416_v10 = vsel %vm16469_vm14, %v7414_v47, %v7415_v39 }
 0x52d   : >> { %v6736_v27 = vrot.slane %v6734_v43, 4  ;;  %v12280_v41 = vcombine.low %v7413_v6, %v7416_v10 }
 0x52f   : >> { %v6738_v9 = vsel %vm16469_vm14, %v6736_v27, %v6737_v35 }
 0x532   : >> { %13823 = vmatmul.mubr.msk.bf16.gmra.mrb[24].mxu1 %vm1052_vm8, %v17448_v54  ;;  %v6660_v54 = vld [vmem:[#allocation2 + $0xe4] sm:$0xe] }
 0x533   : >> { %13826 = vmatprep.mubr.msk.bf16.mxu1 %vm1052_vm8, %v12119_v1  ;;  %v12173_v62 = vrot.slane %v6660_v54, 9  ;;  %v12175_v1 = vrot.slane %v6662_v28, 9 }
 0x535   : >> { %v6735_v15 = vsel %vm16469_vm14, %v12173_v62, %v6734_v43  ;;  %v6749_v23 = vsel %vm16469_vm14, %v12175_v1, %v6748_v4 }
 0x536   : >> { %v12200_v19 = vcombine.low %v6735_v15, %v6738_v9  ;;  %v12202_v31 = vcombine.low %v6749_v23, %v6752_v18  ;;  %v8140_v23 = vld [vmem:[#allocation2 + $0xc] sm:$0xf] }
 0x53a   : >> { %13827 = vmatmul.mubr.msk.bf16.gmra.mrb[28].mxu1 %vm1052_vm8, %v12151_v14 }
 0x53b   : >> { %13838 = vmatprep.mubr.msk.bf16.mxu1 %vm1052_vm8, %v12199_v52 }
 0x542   : >> { %13839 = vmatmul.mubr.msk.bf16.vlgmr.msra.gmra.mrb[0].mxu1 %vm1052_vm8, %v12200_v19 }
 0x543   : >> { %13842 = vmatprep.mubr.msk.bf16.mxu1 %vm1052_vm8, %v12201_v0  ;;  %13871 = vmatpush3.bf16.msra.mxu1 %v17509_v53  ;;  %v18834_v53 = vld [vmem:[#allocation13_spill] sm:$0xff] }
 0x544   : >> { %13872 = vmatprep.subr.bf16.mxu1 %v15229_v22 }
 0x547   : >> { %13873 = vmatpush3.bf16.msra.mxu1 %v15229_v22  ;;  %v8147_v22 = vld [vmem:[#allocation2 + $0x18] sm:$0xf] }
 0x548   : >> { %13874 = vmatprep.subr.bf16.mxu1 %v15230_v55 }
 0x54a   : >> { %13843 = vmatmul.mubr.msk.bf16.gmra.mrb[4].mxu1 %vm1052_vm8, %v12202_v31 }
 0x54b   : >> { %13846 = vmatprep.mubr.msk.bf16.mxu1 %vm1052_vm8, %v18833_v5  ;;  %13875 = vmatpush3.bf16.msra.mxu1 %v15230_v55 }
 0x54c   : >> { %13876 = vmatprep.subr.bf16.mxu1 %v15231_v20 }
 0x54f   : >> { %13877 = vmatpush3.bf16.msra.mxu1 %v15231_v20 }
 0x550   : >> { %13910 = vmatprep.subr.bf16.mxu1 %v15232_v21 }
 0x552   : >> { %13847 = vmatmul.mubr.msk.bf16.gmra.mrb[8].mxu1 %vm1052_vm8, %v18834_v53 }
 0x553   : >> { %13850 = vmatprep.mubr.msk.bf16.mxu1 %vm1052_vm8, %v18835_v17 }
 0x55a   : >> { %13851 = vmatmul.mubr.msk.bf16.gmra.mrb[12].mxu1 %vm1052_vm8, %v18836_v46 }
 0x55b   : >> { %13854 = vmatprep.mubr.msk.bf16.mxu1 %vm1052_vm8, %v18837_v26 }
 0x562   : >> { %13855 = vmatmul.mubr.msk.bf16.gmra.mrb[16].mxu1 %vm1052_vm8, %v18838_v11 }
 0x563   : >> { %13858 = vmatprep.mubr.msk.bf16.mxu1 %vm1052_vm8, %v18839_v42 }
 0x56a   : >> { %13859 = vmatmul.mubr.msk.bf16.gmra.mrb[20].mxu1 %vm1052_vm8, %v18840_v56 }
 0x56b   : >> { %13862 = vmatprep.mubr.msk.bf16.mxu1 %vm1052_vm8, %v18841_v24 }
 0x572   : >> { %13863 = vmatmul.mubr.msk.bf16.gmra.mrb[24].mxu1 %vm1052_vm8, %v18842_v34 }
 0x573   : >> { %13866 = vmatprep.mubr.msk.bf16.mxu1 %vm1052_vm8, %v18843_v32 }
 0x57a   : >> { %13867 = vmatmul.mubr.msk.bf16.gmra.mrb[28].mxu1 %vm1052_vm8, %v18844_v48 }
 0x57b   : >> { %13878 = vmatprep.mubr.msk.bf16.mxu1 %vm1052_vm8, %v12200_v19 }
 0x582   : >> { %13879 = vmatmul.mubr.msk.bf16.vlgmr.msra.gmra.mrb[0].mxu1 %vm1052_vm8, %v12201_v0 }
 0x583   : >> { %13882 = vmatprep.mubr.msk.bf16.mxu1 %vm1052_vm8, %v12202_v31  ;;  %13911 = vmatpush3.bf16.msra.mxu1 %v15232_v21 }
 0x584   : >> { %13912 = vmatprep.subr.bf16.mxu1 %v15233_v25 }
 0x587   : >> { %13913 = vmatpush3.bf16.msra.mxu1 %v15233_v25 }
 0x588   : >> { %13914 = vmatprep.subr.bf16.mxu1 %v15234_v29 }
 0x58a   : >> { %13883 = vmatmul.mubr.msk.bf16.gmra.mrb[4].mxu1 %vm1052_vm8, %v18833_v5 }
 0x58b   : >> { %13886 = vmatprep.mubr.msk.bf16.mxu1 %vm1052_vm8, %v18834_v53  ;;  %13915 = vmatpush3.bf16.msra.mxu1 %v15234_v29 }
 0x58c   : >> { %13916 = vmatprep.subr.bf16.mxu1 %v15235_v38 }
 0x58f   : >> { %13917 = vmatpush3.bf16.msra.mxu1 %v15235_v38 }
 0x592   : >> { %13887 = vmatmul.mubr.msk.bf16.gmra.mrb[8].mxu1 %vm1052_vm8, %v18835_v17 }
 0x593   : >> { %13890 = vmatprep.mubr.msk.bf16.mxu1 %vm1052_vm8, %v18836_v46 }
 0x59a   : >> { %13891 = vmatmul.mubr.msk.bf16.gmra.mrb[12].mxu1 %vm1052_vm8, %v18837_v26 }
 0x59b   : >> { %13894 = vmatprep.mubr.msk.bf16.mxu1 %vm1052_vm8, %v18838_v11 }
 0x5a2   : >> { %13895 = vmatmul.mubr.msk.bf16.gmra.mrb[16].mxu1 %vm1052_vm8, %v18839_v42 }
 0x5a3   : >> { %13898 = vmatprep.mubr.msk.bf16.mxu1 %vm1052_vm8, %v18840_v56 }
 0x5aa   : >> { %13899 = vmatmul.mubr.msk.bf16.gmra.mrb[20].mxu1 %vm1052_vm8, %v18841_v24 }
 0x5ab   : >> { %13902 = vmatprep.mubr.msk.bf16.mxu1 %vm1052_vm8, %v18842_v34 }
 0x5b2   : >> { %13903 = vmatmul.mubr.msk.bf16.gmra.mrb[24].mxu1 %vm1052_vm8, %v18843_v32 }
 0x5b3   : >> { %13906 = vmatprep.mubr.msk.bf16.mxu1 %vm1052_vm8, %v18844_v48 }
 0x5ba   : >> { %13907 = vmatmul.mubr.msk.bf16.gmra.mrb[28].mxu1 %vm1052_vm8, %v18845_v59 }
 0x5bb   : >> { %13918 = vmatprep.mubr.msk.bf16.mxu1 %vm1052_vm8, %v12201_v0 }
 0x5c2   : >> { %13919 = vmatmul.mubr.msk.bf16.vlgmr.msra.gmra.mrb[0].mxu1 %vm1052_vm8, %v12202_v31 }
 0x5c3   : >> { %13922 = vmatprep.mubr.msk.bf16.mxu1 %vm1052_vm8, %v18833_v5 }
 0x5ca   : >> { %13923 = vmatmul.mubr.msk.bf16.gmra.mrb[4].mxu1 %vm1052_vm8, %v18834_v53 }
 0x5cb   : >> { %13926 = vmatprep.mubr.msk.bf16.mxu1 %vm1052_vm8, %v18835_v17  ;;  %v8151_v17 = vld [vmem:[#allocation2 + $0x20] sm:$0x1] }
 0x5d2   : >> { %13927 = vmatmul.mubr.msk.bf16.gmra.mrb[8].mxu1 %vm1052_vm8, %v18836_v46 }
 0x5d3   : >> { %13930 = vmatprep.mubr.msk.bf16.mxu1 %vm1052_vm8, %v18837_v26 }
 0x5da   : >> { %13931 = vmatmul.mubr.msk.bf16.gmra.mrb[12].mxu1 %vm1052_vm8, %v18838_v11 }
 0x5db   : >> { %13934 = vmatprep.mubr.msk.bf16.mxu1 %vm1052_vm8, %v18839_v42 }
 0x5e2   : >> { %13935 = vmatmul.mubr.msk.bf16.gmra.mrb[16].mxu1 %vm1052_vm8, %v18840_v56 }
 0x5e3   : >> { %13938 = vmatprep.mubr.msk.bf16.mxu1 %vm1052_vm8, %v18841_v24 }
 0x5ea   : >> { %13939 = vmatmul.mubr.msk.bf16.gmra.mrb[20].mxu1 %vm1052_vm8, %v18842_v34  ;;  %v8144_v34 = vld [vmem:[#allocation2 + $0x14] sm:$0x1] }
 0x5eb   : >> { %13942 = vmatprep.mubr.msk.bf16.mxu1 %vm1052_vm8, %v18843_v32 }
 0x5f2   : >> { %13943 = vmatmul.mubr.msk.bf16.gmra.mrb[24].mxu1 %vm1052_vm8, %v18844_v48 }
 0x5f3   : >> { %13946 = vmatprep.mubr.msk.bf16.mxu1 %vm1052_vm8, %v18845_v59 }
 0x5fa   : >> { %13947 = vmatmul.mubr.msk.bf16.gmra.mrb[28].mxu1 %vm1052_vm8, %v12280_v41 }
 0x695   : >> { %v13920_v63 = vpop.f32.mrb[0].mxu1 }
 0x696   : >> { %v7662_v37 = vadd.f32 %v13920_v63, %v17668_v60  ;;  %v7493_v30 = vpop.f32.mrb[1].mxu1 }
 0x697   : >> { %v7660_v43 = vadd.f32 %v17668_v60, %v7493_v30  ;;  %v13921_v14 = vpop.f32.mrb[2].mxu1 }
 0x698   : >> { %v7694_v8 = vmax.f32 %v7662_v37, 0.0  ;;  %v7663_v13 = vadd.f32 %v13921_v14, %v17668_v60  ;;  %v7496_v52 = vpop.f32.mrb[3].mxu1 }
 0x699   : >> { %v7692_v27 = vmax.f32 %v7660_v43, 0.0  ;;  %v7661_v3 = vadd.f32 %v17668_v60, %v7496_v52 }
 0x69a   : >> { %v12660_v54 = vpack.c.bf16 %v7694_v8, %v7694_v8  ;;  %v7695_v40 = vmax.f32 %v7663_v13, 0.0  ;;  %v8161_v13 = vld [vmem:[#allocation2 + $0x30] sm:$0xf] }
 0x69b   : >> { %v12658_v50 = vpack.c.bf16 %v7692_v27, %v7692_v27  ;;  %v7693_v35 = vmax.f32 %v7661_v3, 0.0 }
 0x69c   : >> { %v7838_v16 = vshrl.u32 %v12660_v54, 16  ;;  %v12661_v44 = vpack.c.bf16 %v7695_v40, %v7695_v40  ;;  %v7841_v61 = vshll.u32 %v12660_v54, 16 }
 0x69d   : >> { %v7821_v62 = vshrl.u32 %v12658_v50, 16  ;;  %v7824_v9 = vshll.u32 %v12658_v50, 16  ;;  %v12659_v36 = vpack.c.bf16 %v7693_v35, %v7693_v35  ;;  %v13924_v4 = vpop.f32.mrb[4].mxu1  ;;  %v8154_v35 = vld [vmem:[#allocation2 + $0x24] sm:$0xf] }
 0x69e   : >> { %v7840_v57 = vrot.slane %v7838_v16, 7  ;;  %v7846_v7 = vshrl.u32 %v12661_v44, 16  ;;  %v7849_v15 = vshll.u32 %v12661_v44, 16  ;;  %v7666_v19 = vadd.f32 %v13924_v4, %v17668_v60  ;;  %v7509_v58 = vpop.f32.mrb[5].mxu1 }
 0x69f   : >> { %v7823_v0 = vrot.slane %v7821_v62, 7  ;;  %v7829_v33 = vshrl.u32 %v12659_v36, 16  ;;  %v7832_v28 = vshll.u32 %v12659_v36, 16  ;;  %v7664_v51 = vadd.f32 %v17668_v60, %v7509_v58  ;;  %v13925_v55 = vpop.f32.mrb[6].mxu1 }
 0x6a0   : >> { %v7843_v1 = vor.u32 %v7841_v61, %v7840_v57  ;;  %v7844_v18 = vrot.slane %v7840_v57, 4  ;;  %v7848_v31 = vrot.slane %v7846_v7, 7  ;;  %v7698_v20 = vmax.f32 %v7666_v19, 0.0  ;;  %v7512_v5 = vpop.f32.mrb[7].mxu1 }
 0x6a1   : >> { %v7826_v21 = vor.u32 %v7824_v9, %v7823_v0  ;;  %v7827_v53 = vrot.slane %v7823_v0, 4  ;;  %v7831_v46 = vrot.slane %v7829_v33, 7  ;;  %v7696_v26 = vmax.f32 %v7664_v51, 0.0 }
 0x6a2   : >> { %v8148_v42 = vsel %vm15735_vm5, %v7843_v1, %v8147_v22  ;;  %v7851_v56 = vor.u32 %v7849_v15, %v7848_v31  ;;  %v7853_v24 = vrot.slane %v7848_v31, 4  ;;  %v12664_v32 = vpack.c.bf16 %v7698_v20, %v7698_v20 }
 0x6a3   : >> { %8149 = vst [vmem:[#allocation2 + $0x18] sm:$0xf] %v8148_v42  ;;  %v8141_v48 = vsel %vm15735_vm5, %v7826_v21, %v8140_v23  ;;  %v7834_v25 = vor.u32 %v7832_v28, %v7831_v46  ;;  %v7836_v29 = vrot.slane %v7831_v46, 4  ;;  %v12662_v38 = vpack.c.bf16 %v7696_v26, %v7696_v26  ;;  %v8158_v23 = vld [vmem:[#allocation2 + $0x2c] sm:$0x1] }
 0x6a4   : >> { %8142 = vst [vmem:[#allocation2 + $0xc] sm:$0xf] %v8141_v48  ;;  %v7852_v49 = vsel %vm15743_vm6, %v7844_v18, %v7851_v56  ;;  %v8152_v45 = vsel %vm15749_vm7, %v7853_v24, %v8151_v17  ;;  %v7872_v47 = vshrl.u32 %v12664_v32, 16  ;;  %v7875_v10 = vshll.u32 %v12664_v32, 16  ;;  %v8165_v18 = vld [vmem:[#allocation2 + $0x38] sm:$0x1] }
 0x6a5   : >> { %8150 = vst.msk [vmem:[#allocation2 + $0x1c] sm:$0xf] %vm202_vm0, %v7852_v49  ;;  %8153 = vst [vmem:[#allocation2 + $0x20] sm:$0x1] %v8152_v45  ;;  %v7835_v39 = vsel %vm15743_vm6, %v7827_v53, %v7834_v25  ;;  %v8145_v6 = vsel %vm15749_vm7, %v7836_v29, %v8144_v34  ;;  %v7855_v41 = vshrl.u32 %v12662_v38, 16  ;;  %v13928_v63 = vpop.f32.mrb[8].mxu1  ;;  %v7667_v30 = vadd.f32 %v13925_v55, %v17668_v60 }
 0x6a6   : >> { %8143 = vst.msk [vmem:[#allocation2 + $0x10] sm:$0xf] %vm202_vm0, %v7835_v39  ;;  %8146 = vst [vmem:[#allocation2 + $0x14] sm:$0x1] %v8145_v6  ;;  %v17690_v37 = vrot.slane %v7872_v47, 7  ;;  %v7665_v43 = vadd.f32 %v17668_v60, %v7512_v5  ;;  %v7670_v14 = vadd.f32 %v13928_v63, %v17668_v60  ;;  %v7525_v8 = vpop.f32.mrb[9].mxu1 }
 0x6a7   : >> { %v7857_v52 = vrot.slane %v7855_v41, 7  ;;  %v7858_v27 = vshll.u32 %v12662_v38, 16  ;;  %v7668_v3 = vadd.f32 %v17668_v60, %v7525_v8  ;;  %v13929_v54 = vpop.f32.mrb[10].mxu1  ;;  %v7699_v16 = vmax.f32 %v7667_v30, 0.0  ;;  %v8175_v34 = vld [vmem:[#allocation2 + $0x48] sm:$0xf] }
 0x6a8   : >> { %v7877_v40 = vor.u32 %v7875_v10, %v17690_v37  ;;  %v7878_v50 = vrot.slane %v17690_v37, 4  ;;  %v7697_v44 = vmax.f32 %v7665_v43, 0.0  ;;  %v7528_v61 = vpop.f32.mrb[11].mxu1  ;;  %v7702_v36 = vmax.f32 %v7670_v14, 0.0  ;;  %v8168_v39 = vld [vmem:[#allocation2 + $0x3c] sm:$0xf] }
 0x6a9   : >> { %v7860_v62 = vor.u32 %v7858_v27, %v7857_v52  ;;  %v7861_v9 = vrot.slane %v7857_v52, 4  ;;  %v7700_v4 = vmax.f32 %v7668_v3, 0.0  ;;  %v12665_v7 = vpack.c.bf16 %v7699_v16, %v7699_v16 }
 0x6aa   : >> { %v8162_v57 = vsel %vm15735_vm5, %v7877_v40, %v8161_v13  ;;  %v12663_v15 = vpack.c.bf16 %v7697_v44, %v7697_v44  ;;  %v7671_v19 = vadd.f32 %v13929_v54, %v17668_v60  ;;  %v12668_v22 = vpack.c.bf16 %v7702_v36, %v7702_v36  ;;  %v8179_v36 = vld [vmem:[#allocation2 + $0x50] sm:$0x1] }
 0x6ab   : >> { %8163 = vst [vmem:[#allocation2 + $0x30] sm:$0xf] %v8162_v57  ;;  %v8155_v58 = vsel %vm15735_vm5, %v7860_v62, %v8154_v35  ;;  %v12666_v0 = vpack.c.bf16 %v7700_v4, %v7700_v4  ;;  %v7669_v33 = vadd.f32 %v17668_v60, %v7528_v61  ;;  %v7880_v28 = vshrl.u32 %v12665_v7, 16  ;;  %v9050_v11 = vld [vmem:[#allocation2 + $0xc] sm:$0xf] (%p883_p5) }
 0x6ac   : >> { %8156 = vst [vmem:[#allocation2 + $0x24] sm:$0xf] %v8155_v58  ;;  %v7883_v51 = vshll.u32 %v12665_v7, 16  ;;  %v7863_v55 = vshrl.u32 %v12663_v15, 16  ;;  %v7866_v1 = vshll.u32 %v12663_v15, 16  ;;  %v7906_v31 = vshrl.u32 %v12668_v22, 16 }
 0x6ad   : >> { %v7909_v20 = vshll.u32 %v12668_v22, 16  ;;  %v7889_v5 = vshrl.u32 %v12666_v0, 16  ;;  %v7892_v21 = vshll.u32 %v12666_v0, 16  ;;  %v13932_v53 = vpop.f32.mrb[12].mxu1  ;;  %v7882_v17 = vrot.slane %v7880_v28, 7 }
 0x6ae   : >> { %v7865_v46 = vrot.slane %v7863_v55, 7  ;;  %v7703_v26 = vmax.f32 %v7671_v19, 0.0  ;;  %v7701_v42 = vmax.f32 %v7669_v33, 0.0  ;;  %v7541_v56 = vpop.f32.mrb[13].mxu1  ;;  %v17704_v24 = vrot.slane %v7906_v31, 7 }
 0x6af   : >> { %v17706_v32 = vrot.slane %v7889_v5, 7  ;;  %v7674_v48 = vadd.f32 %v13932_v53, %v17668_v60  ;;  %v7672_v25 = vadd.f32 %v17668_v60, %v7541_v56  ;;  %v13933_v29 = vpop.f32.mrb[14].mxu1  ;;  %v7885_v38 = vor.u32 %v7883_v51, %v7882_v17  ;;  %v8172_v0 = vld [vmem:[#allocation2 + $0x44] sm:$0x1]  ;;  %v9051_v59 = vld [vmem:[#allocation2 + $0x10] sm:$0xf] (%p883_p5) }
 0x6b0   : >> { %v7887_v49 = vrot.slane %v7882_v17, 4  ;;  %v7868_v45 = vor.u32 %v7866_v1, %v7865_v46  ;;  %v7870_v47 = vrot.slane %v7865_v46, 4  ;;  %v7544_v6 = vpop.f32.mrb[15].mxu1  ;;  %v7911_v10 = vor.u32 %v7909_v20, %v17704_v24  ;;  %v9052_v2 = vld [vmem:[#allocation2 + $0x14] sm:$0x1] (%p883_p5) }
 0x6b1   : >> { %v7912_v41 = vrot.slane %v17704_v24, 4  ;;  %v7894_v63 = vor.u32 %v7892_v21, %v17706_v32  ;;  %v7895_v37 = vrot.slane %v17706_v32, 4  ;;  %v7886_v30 = vsel %vm15743_vm6, %v7878_v50, %v7885_v38 }
 0x6b2   : >> { %v8166_v43 = vsel %vm15749_vm7, %v7887_v49, %v8165_v18  ;;  %v7869_v14 = vsel %vm15743_vm6, %v7861_v9, %v7868_v45  ;;  %v8159_v8 = vsel %vm15749_vm7, %v7870_v47, %v8158_v23  ;;  %8164 = vst.msk [vmem:[#allocation2 + $0x34] sm:$0xf] %vm202_vm0, %v7886_v30  ;;  %v8176_v13 = vsel %vm15735_vm5, %v7911_v10, %v8175_v34 }
 0x6b3   : >> { %8167 = vst [vmem:[#allocation2 + $0x38] sm:$0x1] %v8166_v43  ;;  %8157 = vst.msk [vmem:[#allocation2 + $0x28] sm:$0xf] %vm202_vm0, %v7869_v14  ;;  %v8169_v52 = vsel %vm15735_vm5, %v7894_v63, %v8168_v39  ;;  %v12669_v27 = vpack.c.bf16 %v7703_v26, %v7703_v26  ;;  %v12667_v3 = vpack.c.bf16 %v7701_v42, %v7701_v42  ;;  %v7706_v54 = vmax.f32 %v7674_v48, 0.0 }
 0x6b4   : >> { %8160 = vst [vmem:[#allocation2 + $0x2c] sm:$0x1] %v8159_v8  ;;  %8177 = vst [vmem:[#allocation2 + $0x48] sm:$0xf] %v8176_v13  ;;  %v7704_v40 = vmax.f32 %v7672_v25, 0.0  ;;  %v7675_v50 = vadd.f32 %v13933_v29, %v17668_v60  ;;  %v7673_v35 = vadd.f32 %v17668_v60, %v7544_v6 }
 0x6b5   : >> { %8170 = vst [vmem:[#allocation2 + $0x3c] sm:$0xf] %v8169_v52  ;;  %v7914_v16 = vshrl.u32 %v12669_v27, 16  ;;  %v7917_v44 = vshll.u32 %v12669_v27, 16  ;;  %v7897_v61 = vshrl.u32 %v12667_v3, 16  ;;  %v7900_v62 = vshll.u32 %v12667_v3, 16 }
 0x6b6   : >> { %v13936_v9 = vpop.f32.mrb[16].mxu1  ;;  %v12672_v4 = vpack.c.bf16 %v7706_v54, %v7706_v54  ;;  %v12670_v57 = vpack.c.bf16 %v7704_v40, %v7704_v40  ;;  %v7707_v7 = vmax.f32 %v7675_v50, 0.0  ;;  %v7705_v15 = vmax.f32 %v7673_v35, 0.0  ;;  %v8189_v48 = vld [vmem:[#allocation2 + $0x60] sm:$0xf] }
 0x6b7   : >> { %v7557_v19 = vpop.f32.mrb[17].mxu1  ;;  %v7916_v58 = vrot.slane %v7914_v16, 7  ;;  %v7899_v22 = vrot.slane %v7897_v61, 7  ;;  %v7678_v33 = vadd.f32 %v13936_v9, %v17668_v60  ;;  %v8182_v25 = vld [vmem:[#allocation2 + $0x54] sm:$0xf] }
 0x6b8   : >> { %v7676_v28 = vadd.f32 %v17668_v60, %v7557_v19  ;;  %v13937_v51 = vpop.f32.mrb[18].mxu1  ;;  %v7940_v55 = vshrl.u32 %v12672_v4, 16  ;;  %v7943_v1 = vshll.u32 %v12672_v4, 16  ;;  %v7923_v18 = vshrl.u32 %v12670_v57, 16  ;;  %v8193_v54 = vld [vmem:[#allocation2 + $0x68] sm:$0x1] }
 0x6b9   : >> { %v7926_v23 = vshll.u32 %v12670_v57, 16  ;;  %v7560_v31 = vpop.f32.mrb[19].mxu1  ;;  %v7919_v20 = vor.u32 %v7917_v44, %v7916_v58  ;;  %v7921_v5 = vrot.slane %v7916_v58, 4  ;;  %v7902_v21 = vor.u32 %v7900_v62, %v7899_v22  ;;  %v8186_v40 = vld [vmem:[#allocation2 + $0x5c] sm:$0x1] }
 0x6ba   : >> { %v7904_v53 = vrot.slane %v7899_v22, 4  ;;  %v7942_v17 = vrot.slane %v7940_v55, 7  ;;  %v7925_v46 = vrot.slane %v7923_v18, 7  ;;  %v12673_v26 = vpack.c.bf16 %v7707_v7, %v7707_v7 }
 0x6bb   : >> { %v12671_v42 = vpack.c.bf16 %v7705_v15, %v7705_v15  ;;  %v7920_v56 = vsel %vm15743_vm6, %v7912_v41, %v7919_v20  ;;  %v8180_v24 = vsel %vm15749_vm7, %v7921_v5, %v8179_v36  ;;  %v7903_v34 = vsel %vm15743_vm6, %v7895_v37, %v7902_v21 }
 0x6bc   : >> { %v8173_v32 = vsel %vm15749_vm7, %v7904_v53, %v8172_v0  ;;  %8178 = vst.msk [vmem:[#allocation2 + $0x4c] sm:$0xf] %vm202_vm0, %v7920_v56  ;;  %8181 = vst [vmem:[#allocation2 + $0x50] sm:$0x1] %v8180_v24  ;;  %v7945_v29 = vor.u32 %v7943_v1, %v7942_v17  ;;  %v7946_v38 = vrot.slane %v7942_v17, 4  ;;  %v7928_v49 = vor.u32 %v7926_v23, %v7925_v46 }
 0x6bd   : >> { %8171 = vst.msk [vmem:[#allocation2 + $0x40] sm:$0xf] %vm202_vm0, %v7903_v34  ;;  %8174 = vst [vmem:[#allocation2 + $0x44] sm:$0x1] %v8173_v32  ;;  %v7929_v45 = vrot.slane %v7925_v46, 4  ;;  %v7948_v47 = vshrl.u32 %v12673_v26, 16  ;;  %v7679_v52 = vadd.f32 %v13937_v51, %v17668_v60  ;;  %v7677_v27 = vadd.f32 %v17668_v60, %v7560_v31 }
 0x6be   : >> { %v7951_v39 = vshll.u32 %v12673_v26, 16  ;;  %v7931_v6 = vshrl.u32 %v12671_v42, 16  ;;  %v7934_v10 = vshll.u32 %v12671_v42, 16  ;;  %v13940_v41 = vpop.f32.mrb[20].mxu1  ;;  %v8190_v63 = vsel %vm15735_vm5, %v7945_v29, %v8189_v48  ;;  %v8203_v51 = vld [vmem:[#allocation2 + $0x78] sm:$0xf] }
 0x6bf   : >> { %v8183_v37 = vsel %vm15735_vm5, %v7928_v49, %v8182_v25  ;;  %v7710_v30 = vmax.f32 %v7678_v33, 0.0  ;;  %v7708_v43 = vmax.f32 %v7676_v28, 0.0  ;;  %v7573_v14 = vpop.f32.mrb[21].mxu1  ;;  %8191 = vst [vmem:[#allocation2 + $0x60] sm:$0xf] %v8190_v63  ;;  %v7950_v8 = vrot.slane %v7948_v47, 7 }
 0x6c0   : >> { %8184 = vst [vmem:[#allocation2 + $0x54] sm:$0xf] %v8183_v37  ;;  %v7933_v13 = vrot.slane %v7931_v6, 7  ;;  %v13941_v3 = vpop.f32.mrb[22].mxu1  ;;  %v7682_v16 = vadd.f32 %v13940_v41, %v17668_v60  ;;  %v7680_v44 = vadd.f32 %v17668_v60, %v7573_v14  ;;  %v7711_v1 = vmax.f32 %v7679_v52, 0.0 }
 0x6c1   : >> { %v12676_v50 = vpack.c.bf16 %v7710_v30, %v7710_v30  ;;  %v12674_v35 = vpack.c.bf16 %v7708_v43, %v7708_v43  ;;  %v7576_v61 = vpop.f32.mrb[23].mxu1  ;;  %v7953_v62 = vor.u32 %v7951_v39, %v7950_v8  ;;  %v7955_v9 = vrot.slane %v7950_v8, 4  ;;  %v8196_v23 = vld [vmem:[#allocation2 + $0x6c] sm:$0xf]  ;;  %v8207_v8 = vld [vmem:[#allocation2 + $0x80] sm:$0x1] }
 0x6c2   : >> { %v7936_v36 = vor.u32 %v7934_v10, %v7933_v13  ;;  %v7938_v4 = vrot.slane %v7933_v13, 4  ;;  %v7709_v18 = vmax.f32 %v7677_v27, 0.0  ;;  %v7714_v31 = vmax.f32 %v7682_v16, 0.0 }
 0x6c3   : >> { %v7974_v57 = vshrl.u32 %v12676_v50, 16  ;;  %v7977_v7 = vshll.u32 %v12676_v50, 16  ;;  %v7957_v15 = vshrl.u32 %v12674_v35, 16  ;;  %v7960_v19 = vshll.u32 %v12674_v35, 16  ;;  %v15294_v12 = vld [vmem:[#allocation2 + $0x50] sm:$0x1] (%p883_p5) }
 0x6c4   : >> { %v7954_v58 = vsel %vm15743_vm6, %v7946_v38, %v7953_v62  ;;  %v8194_v22 = vsel %vm15749_vm7, %v7955_v9, %v8193_v54  ;;  %v7937_v0 = vsel %vm15743_vm6, %v7929_v45, %v7936_v36  ;;  %v8187_v33 = vsel %vm15749_vm7, %v7938_v4, %v8186_v40  ;;  %v8217_v40 = vld [vmem:[#allocation2 + $0x90] sm:$0xf]  ;;  %v8210_v36 = vld [vmem:[#allocation2 + $0x84] sm:$0xf] }
 0x6c5   : >> { %8192 = vst.msk [vmem:[#allocation2 + $0x64] sm:$0xf] %vm202_vm0, %v7954_v58  ;;  %8195 = vst [vmem:[#allocation2 + $0x68] sm:$0x1] %v8194_v22  ;;  %v7976_v28 = vrot.slane %v7974_v57, 7  ;;  %v7959_v55 = vrot.slane %v7957_v15, 7  ;;  %v7683_v5 = vadd.f32 %v13941_v3, %v17668_v60  ;;  %v7681_v21 = vadd.f32 %v17668_v60, %v7576_v61 }
 0x6c6   : >> { %8185 = vst.msk [vmem:[#allocation2 + $0x58] sm:$0xf] %vm202_vm0, %v7937_v0  ;;  %8188 = vst [vmem:[#allocation2 + $0x5c] sm:$0x1] %v8187_v33  ;;  %v7712_v20 = vmax.f32 %v7680_v44, 0.0  ;;  %v13944_v53 = vpop.f32.mrb[24].mxu1  ;;  %v12677_v24 = vpack.c.bf16 %v7711_v1, %v7711_v1  ;;  %v12675_v34 = vpack.c.bf16 %v7709_v18, %v7709_v18  ;;  %v12680_v32 = vpack.c.bf16 %v7714_v31, %v7714_v31 }
 0x6c7   : >> { %v7979_v17 = vor.u32 %v7977_v7, %v7976_v28  ;;  %v7980_v46 = vrot.slane %v7976_v28, 4  ;;  %v7962_v26 = vor.u32 %v7960_v19, %v7959_v55  ;;  %v7963_v42 = vrot.slane %v7959_v55, 4  ;;  %v7589_v56 = vpop.f32.mrb[25].mxu1  ;;  %v8200_v3 = vld [vmem:[#allocation2 + $0x74] sm:$0x1] }
 0x6c8   : >> { %v12678_v48 = vpack.c.bf16 %v7712_v20, %v7712_v20  ;;  %v13945_v25 = vpop.f32.mrb[26].mxu1  ;;  %v7715_v49 = vmax.f32 %v7683_v5, 0.0  ;;  %v7713_v45 = vmax.f32 %v7681_v21, 0.0  ;;  %v7982_v39 = vshrl.u32 %v12677_v24, 16 }
 0x6c9   : >> { %v8204_v29 = vsel %vm15735_vm5, %v7979_v17, %v8203_v51  ;;  %v8197_v38 = vsel %vm15735_vm5, %v7962_v26, %v8196_v23  ;;  %v7592_v47 = vpop.f32.mrb[27].mxu1  ;;  %v7985_v6 = vshll.u32 %v12677_v24, 16  ;;  %v7965_v10 = vshrl.u32 %v12675_v34, 16 }
 0x6ca   : >> { %8205 = vst [vmem:[#allocation2 + $0x78] sm:$0xf] %v8204_v29  ;;  %8198 = vst [vmem:[#allocation2 + $0x6c] sm:$0xf] %v8197_v38  ;;  %v7968_v41 = vshll.u32 %v12675_v34, 16  ;;  %v8008_v63 = vshrl.u32 %v12680_v32, 16  ;;  %v12681_v52 = vpack.c.bf16 %v7715_v49, %v7715_v49  ;;  %v12679_v27 = vpack.c.bf16 %v7713_v45, %v7713_v45 }
 0x6cb   : >> { %v8011_v37 = vshll.u32 %v12680_v32, 16  ;;  %v7991_v30 = vshrl.u32 %v12678_v48, 16  ;;  %v7994_v43 = vshll.u32 %v12678_v48, 16  ;;  %v7984_v14 = vrot.slane %v7982_v39, 7  ;;  %v8214_v49 = vld [vmem:[#allocation2 + $0x8c] sm:$0x1] }
 0x6cc   : >> { %v7967_v13 = vrot.slane %v7965_v10, 7  ;;  %v8010_v54 = vrot.slane %v8008_v63, 7  ;;  %v7686_v35 = vadd.f32 %v13944_v53, %v17668_v60  ;;  %v7684_v16 = vadd.f32 %v17668_v60, %v7589_v56  ;;  %v8221_v56 = vld [vmem:[#allocation2 + $0x98] sm:$0x1] }
 0x6cd   : >> { %v7993_v50 = vrot.slane %v7991_v30, 7  ;;  %v7987_v44 = vor.u32 %v7985_v6, %v7984_v14  ;;  %v7989_v61 = vrot.slane %v7984_v14, 4  ;;  %v13948_v4 = vpop.f32.mrb[28].mxu1  ;;  %v8016_v18 = vshrl.u32 %v12681_v52, 16 }
 0x6ce   : >> { %v7970_v62 = vor.u32 %v7968_v41, %v7967_v13  ;;  %v7972_v9 = vrot.slane %v7967_v13, 4  ;;  %v8013_v57 = vor.u32 %v8011_v37, %v8010_v54  ;;  %v8014_v7 = vrot.slane %v8010_v54, 4  ;;  %v7605_v58 = vpop.f32.mrb[29].mxu1 }
 0x6cf   : >> { %v7996_v15 = vor.u32 %v7994_v43, %v7993_v50  ;;  %v7997_v19 = vrot.slane %v7993_v50, 4  ;;  %v7988_v22 = vsel %vm15743_vm6, %v7980_v46, %v7987_v44  ;;  %v8208_v0 = vsel %vm15749_vm7, %v7989_v61, %v8207_v8  ;;  %v17776_v51 = vpop.f32.mrb[30].mxu1 }
 0x6d0   : >> { %v7971_v33 = vsel %vm15743_vm6, %v7963_v42, %v7970_v62  ;;  %v8201_v28 = vsel %vm15749_vm7, %v7972_v9, %v8200_v3  ;;  %8206 = vst.msk [vmem:[#allocation2 + $0x7c] sm:$0xf] %vm202_vm0, %v7988_v22  ;;  %8209 = vst [vmem:[#allocation2 + $0x80] sm:$0x1] %v8208_v0  ;;  %v8218_v55 = vsel %vm15735_vm5, %v8013_v57, %v8217_v40  ;;  %v8019_v23 = vshll.u32 %v12681_v52, 16  ;;  %v7608_v31 = vpop.f32.mrb[31].mxu1 }
 0x6d1   : >> { %8199 = vst.msk [vmem:[#allocation2 + $0x70] sm:$0xf] %vm202_vm0, %v7971_v33  ;;  %8202 = vst [vmem:[#allocation2 + $0x74] sm:$0x1] %v8201_v28  ;;  %v8211_v1 = vsel %vm15735_vm5, %v7996_v15, %v8210_v36  ;;  %v7999_v20 = vshrl.u32 %v12679_v27, 16  ;;  %v8002_v5 = vshll.u32 %v12679_v27, 16  ;;  %v7687_v46 = vadd.f32 %v13945_v25, %v17668_v60 }
 0x6d2   : >> { %8219 = vst [vmem:[#allocation2 + $0x90] sm:$0xf] %v8218_v55  ;;  %8212 = vst [vmem:[#allocation2 + $0x84] sm:$0xf] %v8211_v1  ;;  %v7718_v21 = vmax.f32 %v7686_v35, 0.0  ;;  %v7716_v53 = vmax.f32 %v7684_v16, 0.0  ;;  %v7685_v26 = vadd.f32 %v17668_v60, %v7592_v47  ;;  %v7690_v42 = vadd.f32 %v13948_v4, %v17668_v60 }
 0x6d3   : >> { %v8018_v17 = vrot.slane %v8016_v18, 7  ;;  %v8001_v24 = vrot.slane %v7999_v20, 7  ;;  %v7688_v48 = vadd.f32 %v17668_v60, %v7605_v58  ;;  %v7719_v45 = vmax.f32 %v7687_v46, 0.0  ;;  %v8231_v52 = vld [vmem:[#allocation2 + $0xa8] sm:$0xf] }
 0x6d4   : >> { %v12684_v34 = vpack.c.bf16 %v7718_v21, %v7718_v21  ;;  %v12682_v32 = vpack.c.bf16 %v7716_v53, %v7716_v53  ;;  %v7717_v39 = vmax.f32 %v7685_v26, 0.0  ;;  %v7722_v54 = vmax.f32 %v7690_v42, 0.0  ;;  %v8224_v16 = vld [vmem:[#allocation2 + $0x9c] sm:$0xf]  ;;  %v8235_v22 = vld [vmem:[#allocation2 + $0xb0] sm:$0x1] }
 0x6d5   : >> { %v8021_v29 = vor.u32 %v8019_v23, %v8018_v17  ;;  %v8023_v38 = vrot.slane %v8018_v17, 4  ;;  %v8004_v6 = vor.u32 %v8002_v5, %v8001_v24  ;;  %v8006_v10 = vrot.slane %v8001_v24, 4  ;;  %v8228_v18 = vld [vmem:[#allocation2 + $0xa4] sm:$0x1] }
 0x6d6   : >> { %v8042_v41 = vshrl.u32 %v12684_v34, 16  ;;  %v8045_v63 = vshll.u32 %v12684_v34, 16  ;;  %v8025_v37 = vshrl.u32 %v12682_v32, 16  ;;  %v8028_v30 = vshll.u32 %v12682_v32, 16 }
 0x6d7   : >> { %v8022_v25 = vsel %vm15743_vm6, %v8014_v7, %v8021_v29  ;;  %v8222_v47 = vsel %vm15749_vm7, %v8023_v38, %v8221_v56  ;;  %v8005_v43 = vsel %vm15743_vm6, %v7997_v19, %v8004_v6  ;;  %v8215_v14 = vsel %vm15749_vm7, %v8006_v10, %v8214_v49  ;;  %v8245_v56 = vld [vmem:[#allocation2 + $0xc0] sm:$0xf] }
 0x6d8   : >> { %8220 = vst.msk [vmem:[#allocation2 + $0x94] sm:$0xf] %vm202_vm0, %v8022_v25  ;;  %8223 = vst [vmem:[#allocation2 + $0x98] sm:$0x1] %v8222_v47  ;;  %v8044_v8 = vrot.slane %v8042_v41, 7  ;;  %v12685_v13 = vpack.c.bf16 %v7719_v45, %v7719_v45  ;;  %v8027_v27 = vrot.slane %v8025_v37, 7  ;;  %v12683_v3 = vpack.c.bf16 %v7717_v39, %v7717_v39 }
 0x6d9   : >> { %8213 = vst.msk [vmem:[#allocation2 + $0x88] sm:$0xf] %vm202_vm0, %v8005_v43  ;;  %8216 = vst [vmem:[#allocation2 + $0x8c] sm:$0x1] %v8215_v14  ;;  %v7720_v40 = vmax.f32 %v7688_v48, 0.0  ;;  %v12688_v15 = vpack.c.bf16 %v7722_v54, %v7722_v54  ;;  %v7691_v33 = vadd.f32 %v17776_v51, %v17668_v60  ;;  %v7689_v28 = vadd.f32 %v17668_v60, %v7608_v31 }
 0x6da   : >> { %v8047_v50 = vor.u32 %v8045_v63, %v8044_v8  ;;  %v8048_v35 = vrot.slane %v8044_v8, 4  ;;  %v8050_v44 = vshrl.u32 %v12685_v13, 16  ;;  %v8053_v61 = vshll.u32 %v12685_v13, 16  ;;  %v8238_v48 = vld [vmem:[#allocation2 + $0xb4] sm:$0xf] }
 0x6db   : >> { %v8030_v62 = vor.u32 %v8028_v30, %v8027_v27  ;;  %v8031_v9 = vrot.slane %v8027_v27, 4  ;;  %v8033_v36 = vshrl.u32 %v12683_v3, 16  ;;  %v8036_v4 = vshll.u32 %v12683_v3, 16  ;;  %v8249_v25 = vld [vmem:[#allocation2 + $0xc8] sm:$0x1] }
 0x6dc   : >> { %v8232_v57 = vsel %vm15735_vm5, %v8047_v50, %v8231_v52  ;;  %v8052_v7 = vrot.slane %v8050_v44, 7  ;;  %v12686_v19 = vpack.c.bf16 %v7720_v40, %v7720_v40  ;;  %v8076_v23 = vshrl.u32 %v12688_v15, 16  ;;  %v8242_v8 = vld [vmem:[#allocation2 + $0xbc] sm:$0x1] }
 0x6dd   : >> { %8233 = vst [vmem:[#allocation2 + $0xa8] sm:$0xf] %v8232_v57  ;;  %v8225_v58 = vsel %vm15735_vm5, %v8030_v62, %v8224_v16  ;;  %v8035_v0 = vrot.slane %v8033_v36, 7  ;;  %v8079_v20 = vshll.u32 %v12688_v15, 16  ;;  %v7723_v51 = vmax.f32 %v7691_v33, 0.0  ;;  %v15237_v16 = vld [vmem:[#allocation3 + $0x1280] sm:$0xff] (%p883_p5)  }
 0x6de   : >> { %8226 = vst [vmem:[#allocation2 + $0x9c] sm:$0xf] %v8225_v58  ;;  %v8055_v55 = vor.u32 %v8053_v61, %v8052_v7  ;;  %v8057_v1 = vrot.slane %v8052_v7, 4  ;;  %v8059_v53 = vshrl.u32 %v12686_v19, 16  ;;  %v8062_v17 = vshll.u32 %v12686_v19, 16  ;;  %v15238_v44 = vld [vmem:[#allocation3 + $0x1268] sm:$0xff] (%p883_p5)   ;;  %14110 = vmatprep.subr.bf16.mxu0 (%p883_p5), %v15237_v16 }
 0x6df   : >> { %v8038_v5 = vor.u32 %v8036_v4, %v8035_v0  ;;  %v8040_v21 = vrot.slane %v8035_v0, 4  ;;  %v8078_v42 = vrot.slane %v8076_v23, 7  ;;  %v7721_v34 = vmax.f32 %v7689_v28, 0.0  ;;  %v15239_v61 = vld [vmem:[#allocation3 + $0x1288] sm:$0xff] (%p883_p5)   ;;  %14111 = vmatpush3.bf16.msra.mxu0 (%p883_p5), %v15237_v16  ;;  %v15240_v62 = vld [vmem:[#allocation3 + $0x1270] sm:$0xff] (%p883_p5)   ;;  %v15242_v36 = vld [vmem:[#allocation3 + $0x1278] sm:$0xff] (%p883_p5)  }
 0x6e0   : >> { %v8056_v46 = vsel %vm15743_vm6, %v8048_v35, %v8055_v55  ;;  %v8236_v26 = vsel %vm15749_vm7, %v8057_v1, %v8235_v22  ;;  %v8061_v24 = vrot.slane %v8059_v53, 7  ;;  %v12689_v29 = vpack.c.bf16 %v7723_v51, %v7723_v51  ;;  %v15236_v35 = vld [vmem:[#allocation3 + $0x1260] sm:$0xff] (%p883_p5)   ;;  %14112 = vmatprep.subr.bf16.mxu0 (%p883_p5), %v15239_v61  ;;  %v15243_v4 = vld [vmem:[#allocation3 + $0x1298] sm:$0xff] (%p883_p5)  }
 0x6e1   : >> { %8234 = vst.msk [vmem:[#allocation2 + $0xac] sm:$0xf] %vm202_vm0, %v8056_v46  ;;  %8237 = vst [vmem:[#allocation2 + $0xb0] sm:$0x1] %v8236_v26  ;;  %v8039_v60 = vsel %vm15743_vm6, %v8031_v9, %v8038_v5  ;;  %v8229_v31 = vsel %vm15749_vm7, %v8040_v21, %v8228_v18  ;;  %v8081_v32 = vor.u32 %v8079_v20, %v8078_v42  ;;  %v8082_v30 = vrot.slane %v8078_v42, 4  ;;  %v15241_v9 = vld [vmem:[#allocation3 + $0x1290] sm:$0xff] (%p883_p5)  }
 0x6e2   : >> { %8227 = vst.msk [vmem:[#allocation2 + $0xa0] sm:$0xf] %vm202_vm0, %v8039_v60  ;;  %8230 = vst [vmem:[#allocation2 + $0xa4] sm:$0x1] %v8229_v31  ;;  %v8064_v38 = vor.u32 %v8062_v17, %v8061_v24  ;;  %v12687_v49 = vpack.c.bf16 %v7721_v34, %v7721_v34  ;;  %v8084_v39 = vshrl.u32 %v12689_v29, 16  ;;  %v8087_v63 = vshll.u32 %v12689_v29, 16  ;;  %13950 = vmatprep.subr.bf16.mxu1 (%p883_p5), %v15236_v35 }
 0x6e3   : >> { %v8246_v45 = vsel %vm15735_vm5, %v8081_v32, %v8245_v56  ;;  %v8065_v13 = vrot.slane %v8061_v24, 4  ;;  %13951 = vmatpush3.bf16.msra.mxu1 (%p883_p5), %v15236_v35  ;;  %14113 = vmatpush3.bf16.msra.mxu0 (%p883_p5), %v15239_v61  ;;  %v17832_v57 = vld [vmem:[#allocation2 + $0xc] sm:$0xff] (%p883_p5)   ;;  %v9129_v7 = vshrl.u32 (%p883_p5), %v9050_v11, 16  ;;  %v9132_v15 = vshll.u32 (%p883_p5), %v9050_v11, 16  ;;  %v17838_v46 = vld [vmem:[#allocation2 + $0x18] sm:$0xff] (%p883_p5)  }
 0x6e4   : >> { %8247 = vst [vmem:[#allocation2 + $0xc0] sm:$0xf] %v8246_v45  ;;  %v8239_v6 = vsel %vm15735_vm5, %v8064_v38, %v8238_v48  ;;  %v8067_v10 = vshrl.u32 %v12687_v49, 16  ;;  %v8086_v41 = vrot.slane %v8084_v39, 7  ;;  %v8070_v37 = vshll.u32 %v12687_v49, 16  ;;  %13952 = vmatprep.subr.bf16.mxu1 (%p883_p5), %v15238_v44  ;;  %14114 = vmatprep.subr.bf16.mxu0 (%p883_p5), %v15241_v9  ;;  %v15246_v26 = vld [vmem:[#allocation3 + $0x1200] sm:$0xff] (%p883_p5)  }
 0x6e5   : >> { %8240 = vst [vmem:[#allocation2 + $0xb4] sm:$0xf] %v8239_v6  ;;  %885 = sbr.rel (!%p883_p5) target bundleno = 180 (0xb4), region = 111  ;;  %13958 = vmatprep.mubr.msk.bf16.mxu1 (%p883_p5), %vm1052_vm8, %v17832_v57  ;;  %v9138_v19 = vshll.u32 (%p883_p5), %v9051_v59, 16  ;;  %v9142_v58 = vshrl.u32 (%p883_p5), %v9051_v59, 16  ;;  %v9148_v0 = vshll.u32 (%p883_p5), %v9052_v2, 16 }
 0x6e6   : >> { %v8069_v47 = vrot.slane %v8067_v10, 7  ;;  %v8089_v43 = vor.u32 %v8087_v63, %v8086_v41  ;;  %v8091_v14 = vrot.slane %v8086_v41, 4  ;;  %v10323_v22 = vld [vmem:[#allocation2 + $0xc] sm:$0xe] (%p883_p5)  ;;  %v10400_v28 = vrot.slane (%p883_p5), %v9051_v59, 5  ;;  %v17847_v29 = vld [vmem:[#allocation3 + $0x12e0] sm:$0xff] (%p883_p5)  }
 0x6e7   : > { %13953 = vmatpush3.bf16.msra.mxu1 (%p883_p5), %v15238_v44  ;;  %v12493_v33 = vrot.slane (%p883_p5), %v10323_v22, 9  ;;  %v10403_v55 = vrot.slane (%p883_p5), %v9052_v2, 5  ;;  %14115 = vmatpush3.bf16.msra.mxu0 (%p883_p5), %v15241_v9  ;;  %v9131_v1 = vrot.slane (%p883_p5), %v9129_v7, 4  ;;  %v9134_v18 = vrot.slane (%p883_p5), %v9132_v15, 5  ;;  %v9053_v60 = vld [vmem:[#allocation2 + $0x18] sm:$0xf] (%p883_p5) }
 0x6e8   : >> { %v8072_v52 = vor.u32 %v8070_v37, %v8069_v47  ;;  %v8074_v27 = vrot.slane %v8069_v47, 4  ;;  %v8090_v3 = vsel %vm15743_vm6, %v8082_v30, %v8089_v43  ;;  %v8250_v54 = vsel %vm15749_vm7, %v8091_v14, %v8249_v25  ;;  %13954 = vmatprep.subr.bf16.mxu1 (%p883_p5), %v15240_v62  ;;  %14116 = vmatprep.subr.bf16.mxu0 (%p883_p5), %v15243_v4  ;;  %v17840_v31 = vld [vmem:[#allocation2 + $0x1c] sm:$0xf] (%p883_p5)  ;;  %v17844_v24 = vld [vmem:[#allocation2 + $0x20] sm:$0x1] (%p883_p5)  ;;  %v17852_v6 = vld [vmem:[#allocation2 + $0x24] sm:$0xff] (%p883_p5)  }
 0x6e9   : >> { %8248 = vst.msk [vmem:[#allocation2 + $0xc4] sm:$0xf] %vm202_vm0, %v8090_v3  ;;  %8251 = vst [vmem:[#allocation2 + $0xc8] sm:$0x1] %v8250_v54  ;;  %v9140_v23 = vrot.slane (%p883_p5), %v9138_v19, 5  ;;  %v9144_v20 = vrot.slane (%p883_p5), %v9142_v58, 4  ;;  %v10401_v53 = vsel (%p883_p5), %vm16469_vm14, %v12493_v33, %v10400_v28  ;;  %v9135_v42 = vor.u32 (%p883_p5), %v9134_v18, %v9131_v1 }
 0x6ea   : >> { %v8073_v40 = vsel %vm15743_vm6, %v8065_v13, %v8072_v52  ;;  %v8243_v50 = vsel %vm15749_vm7, %v8074_v27, %v8242_v8  ;;  %v9150_v5 = vrot.slane (%p883_p5), %v9148_v0, 5  ;;  %v10402_v17 = vrot.slane (%p883_p5), %v10400_v28, 4  ;;  %v9056_v13 = vld [vmem:[#allocation2 + $0x24] sm:$0xf] (%p883_p5)  ;;  %v17866_v52 = vld [vmem:[#allocation2 + $0x28] sm:$0xf] (%p883_p5) }
 0x6eb   : >> { %8241 = vst.msk [vmem:[#allocation2 + $0xb8] sm:$0xf] %vm202_vm0, %v8073_v40  ;;  %8244 = vst [vmem:[#allocation2 + $0xbc] sm:$0x1] %v8243_v50  ;;  %13955 = vmatpush3.bf16.msra.mxu1 (%p883_p5), %v15240_v62  ;;  %v9145_v51 = vor.u32 (%p883_p5), %v9144_v20, %v9140_v23  ;;  %v9153_v34 = vshrl.u32 (%p883_p5), %v9053_v60, 16  ;;  %v9156_v32 = vshll.u32 (%p883_p5), %v9053_v60, 16  ;;  %14117 = vmatpush3.bf16.msra.mxu0 (%p883_p5), %v15243_v4 }
 0x6ec   : > { %13956 = vmatprep.subr.bf16.mxu1 %v15242_v36  ;;  %v10404_v56 = vsel %vm16469_vm14, %v10402_v17, %v10403_v55  ;;  %v9162_v48 = vshll.u32 %v17840_v31, 16  ;;  %v9136_v38 = vrot.slane %v9135_v42, 4  ;;  %v9166_v39 = vshrl.u32 %v17840_v31, 16  ;;  %14150 = vmatprep.subr.bf16.mxu0 %v17847_v29  ;;  %v17868_v3 = vld [vmem:[#allocation2 + $0x2c] sm:$0x1]  ;;  %v17871_v35 = vld [vmem:[#allocation2 + $0x30] sm:$0xff]  }
 0x6ed   : > { %v9146_v49 = vrot.slane %v9145_v51, 4  ;;  %v17849_v45 = vcombine.low %v10401_v53, %v10404_v56  ;;  %v9155_v10 = vrot.slane %v9153_v34, 4  ;;  %v9158_v41 = vrot.slane %v9156_v32, 5  ;;  %v17877_v62 = vld [vmem:[#allocation2 + $0x3c] sm:$0xff]   ;;  %v9059_v15 = vld [vmem:[#allocation2 + $0x30] sm:$0xf] }
 0x6ee   : > { %v9164_v63 = vrot.slane %v9162_v48, 5  ;;  %v9172_v25 = vshll.u32 %v17844_v24, 16  ;;  %v9141_v47 = vsel %vm16064_vm11, %v9136_v38, %v9140_v23  ;;  %v9168_v30 = vrot.slane %v9166_v39, 4  ;;  %v17881_v19 = vld [vmem:[#allocation2 + $0x34] sm:$0xf]  ;;  %v15250_v58 = vld [vmem:[#allocation3 + $0x12e8] sm:$0xff]  }
 0x6ef   : > { %13957 = vmatpush3.bf16.msra.mxu1 %v15242_v36  ;;  %18850 = vst [vmem:[#allocation9_spill] sm:$0xff] %v17849_v45  ;;  %v9151_v37 = vsel %vm16064_vm11, %v9146_v49, %v9150_v5  ;;  %v9159_v14 = vor.u32 %v9158_v41, %v9155_v10  ;;  %v9177_v54 = vshrl.u32 %v9056_v13, 16  ;;  %v9180_v40 = vshll.u32 %v9056_v13, 16  ;;  %v9061_v33 = vld [vmem:[#allocation2 + $0x38] sm:$0x1]  ;;  %v17898_v41 = vld [vmem:[#allocation2 + $0x48] sm:$0xff]  }
 0x6f0   : > { %13990 = vmatprep.subr.bf16.mxu1 %v15246_v26  ;;  %v17862_v43 = vcombine.low %v9141_v47, %v9151_v37  ;;  %v9174_v8 = vrot.slane %v9172_v25, 5  ;;  %v9169_v27 = vor.u32 %v9168_v30, %v9164_v63  ;;  %v9186_v50 = vshll.u32 %v17866_v52, 16  ;;  %v9062_v56 = vld [vmem:[#allocation2 + $0x3c] sm:$0xf]  ;;  %v9063_v49 = vld [vmem:[#allocation2 + $0x40] sm:$0xf] }
 0x6f1   : > { %v9160_v16 = vrot.slane %v9159_v14, 4  ;;  %v9190_v44 = vshrl.u32 %v17866_v52, 16  ;;  %v9196_v61 = vshll.u32 %v17868_v3, 16  ;;  %v9179_v36 = vrot.slane %v9177_v54, 4  ;;  %v15253_v34 = vld [vmem:[#allocation3 + $0x1208] sm:$0xff]   ;;  %v15254_v13 = vld [vmem:[#allocation3 + $0x12f0] sm:$0xff]  }
 0x6f2   : > { %13959 = vmatmul.mubr.msk.bf16.vlgmr.msra.gmra.mrb[0].mxu1 %vm1052_vm8, %v17838_v46  ;;  %18851 = vst [vmem:[#allocation10_spill] sm:$0xff] %v17862_v43  ;;  %14118 = vmatprep.mubr.msk.bf16.mxu0 %vm1052_vm8, %v17862_v43  ;;  %v9170_v9 = vrot.slane %v9169_v27, 4  ;;  %v9182_v4 = vrot.slane %v9180_v40, 5  ;;  %v9188_v11 = vrot.slane %v9186_v50, 5  ;;  %v9201_v28 = vshrl.u32 %v9059_v15, 16 }
 0x6f3   : > { %13991 = vmatpush3.bf16.msra.mxu1 %v15246_v26  ;;  %13962 = vmatprep.mubr.msk.bf16.mxu1 %vm1052_vm8, %v17852_v6  ;;  %v9165_v59 = vsel %vm16064_vm11, %v9160_v16, %v9164_v63  ;;  %v9192_v2 = vrot.slane %v9190_v44, 4  ;;  %v9198_v7 = vrot.slane %v9196_v61, 5  ;;  %v9204_v55 = vshll.u32 %v9059_v15, 16  ;;  %v9064_v39 = vld [vmem:[#allocation2 + $0x44] sm:$0x1] }
 0x6f4   : > { %v9175_v22 = vsel %vm16064_vm11, %v9170_v9, %v9174_v8  ;;  %v9183_v0 = vor.u32 %v9182_v4, %v9179_v36  ;;  %v9210_v23 = vshll.u32 %v17881_v19, 16  ;;  %v9214_v20 = vshrl.u32 %v17881_v19, 16  ;;  %13992 = vmatprep.subr.bf16.mxu1 %v15253_v34  ;;  %v9065_v61 = vld [vmem:[#allocation2 + $0x48] sm:$0xf]  ;;  %v9066_v9 = vld [vmem:[#allocation2 + $0x4c] sm:$0xf] }
 0x6f5   : > { %v17885_v1 = vcombine.low %v9165_v59, %v9175_v22  ;;  %v9193_v18 = vor.u32 %v9192_v2, %v9188_v11  ;;  %v9203_v53 = vrot.slane %v9201_v28, 4  ;;  %v9206_v17 = vrot.slane %v9204_v55, 5  ;;  %v17908_v36 = vld [vmem:[#allocation2 + $0x54] sm:$0xff]   ;;  %v9067_v2 = vld [vmem:[#allocation2 + $0x50] sm:$0x1] }
 0x6f6   : > { %v9184_v5 = vrot.slane %v9183_v0, 4  ;;  %v9220_v26 = vshll.u32 %v9061_v33, 16  ;;  %v9212_v51 = vrot.slane %v9210_v23, 5  ;;  %v9216_v60 = vrot.slane %v9214_v20, 4  ;;  %v18058_v43 = vld [vmem:[#allocation2 + $0xa0] sm:$0xf] }
 0x6f7   : > { %18852 = vst [vmem:[#allocation11_spill] sm:$0xff] %v17885_v1  ;;  %14119 = vmatmul.mubr.msk.bf16.vlgmr.msra.gmra.mrb[0].mxu0 %vm1052_vm8, %v17885_v1  ;;  %v9194_v42 = vrot.slane %v9193_v18, 4  ;;  %v9207_v48 = vor.u32 %v9206_v17, %v9203_v53  ;;  %v9225_v10 = vshrl.u32 %v9062_v56, 16  ;;  %v9228_v47 = vshll.u32 %v9062_v56, 16  ;;  %13993 = vmatpush3.bf16.msra.mxu1 %v15253_v34  ;;  %v9068_v53 = vld [vmem:[#allocation2 + $0x54] sm:$0xf] }
 0x6f8   : > { %14151 = vmatpush3.bf16.msra.mxu0 %v17847_v29  ;;  %v9189_v32 = vsel %vm16064_vm11, %v9184_v5, %v9188_v11  ;;  %v9222_v38 = vrot.slane %v9220_v26, 5  ;;  %v9217_v25 = vor.u32 %v9216_v60, %v9212_v51  ;;  %v9234_v37 = vshll.u32 %v9063_v49, 16  ;;  %v17920_v17 = vld [vmem:[#allocation2 + $0x60] sm:$0xff]   ;;  %v17924_v60 = vld [vmem:[#allocation2 + $0x58] sm:$0xf] }
 0x6f9   : > { %v9199_v63 = vsel %vm16064_vm11, %v9194_v42, %v9198_v7  ;;  %14152 = vmatprep.subr.bf16.mxu0 %v15250_v58  ;;  %v9208_v29 = vrot.slane %v9207_v48, 4  ;;  %v9227_v14 = vrot.slane %v9225_v10, 4  ;;  %v9238_v8 = vshrl.u32 %v9063_v49, 16  ;;  %v17926_v56 = vld [vmem:[#allocation2 + $0x5c] sm:$0x1] }
 0x6fa   : > { %13963 = vmatmul.mubr.msk.bf16.gmra.mrb[4].mxu1 %vm1052_vm8, %v17871_v35  ;;  %v17902_v30 = vcombine.low %v9189_v32, %v9199_v63  ;;  %v9218_v27 = vrot.slane %v9217_v25, 4  ;;  %v9230_v54 = vrot.slane %v9228_v47, 5  ;;  %v9236_v40 = vrot.slane %v9234_v37, 5  ;;  %v9071_v25 = vld [vmem:[#allocation2 + $0x60] sm:$0xf] }
 0x6fb   : > { %13966 = vmatprep.mubr.msk.bf16.mxu1 %vm1052_vm8, %v17877_v62  ;;  %v9244_v50 = vshll.u32 %v9064_v39, 16  ;;  %v9213_v16 = vsel %vm16064_vm11, %v9208_v29, %v9212_v51  ;;  %v9240_v44 = vrot.slane %v9238_v8, 4  ;;  %v9249_v7 = vshrl.u32 %v9065_v61, 16  ;;  %v17934_v47 = vld [vmem:[#allocation2 + $0x64] sm:$0xf] }
 0x6fc   : > { %18853 = vst [vmem:[#allocation23_spill] sm:$0xff] %v17902_v30  ;;  %14122 = vmatprep.mubr.msk.bf16.mxu0 %vm1052_vm8, %v17902_v30  ;;  %14153 = vmatpush3.bf16.msra.mxu0 %v15250_v58  ;;  %v9223_v4 = vsel %vm16064_vm11, %v9218_v27, %v9222_v38  ;;  %v9231_v11 = vor.u32 %v9230_v54, %v9227_v14  ;;  %v9252_v58 = vshll.u32 %v9065_v61, 16  ;;  %v9258_v0 = vshll.u32 %v9066_v9, 16 }
 0x6fd   : > { %v9246_v59 = vrot.slane %v9244_v50, 5  ;;  %14154 = vmatprep.subr.bf16.mxu0 %v15254_v13  ;;  %v17912_v15 = vcombine.low %v9213_v16, %v9223_v4  ;;  %v9241_v22 = vor.u32 %v9240_v44, %v9236_v40  ;;  %v9251_v28 = vrot.slane %v9249_v7, 4  ;;  %v15257_v4 = vld [vmem:[#allocation3 + $0x12f8] sm:$0xff]  }
 0x6fe   : > { %v9232_v33 = vrot.slane %v9231_v11, 4  ;;  %v9262_v55 = vshrl.u32 %v9066_v9, 16  ;;  %v9268_v18 = vshll.u32 %v9067_v2, 16  ;;  %v9254_v20 = vrot.slane %v9252_v58, 5  ;;  %v17945_v11 = vld [vmem:[#allocation2 + $0x6c] sm:$0xff]  }
 0x6ff   : > { %18854 = vst [vmem:[#allocation32_spill] sm:$0xff] %v17912_v15  ;;  %14123 = vmatmul.mubr.msk.bf16.gmra.mrb[4].mxu0 %vm1052_vm8, %v17912_v15  ;;  %v9242_v23 = vrot.slane %v9241_v22, 4  ;;  %v9260_v5 = vrot.slane %v9258_v0, 5  ;;  %v9273_v48 = vshrl.u32 %v9068_v53, 16  ;;  %v9276_v38 = vshll.u32 %v9068_v53, 16  ;;  %18856 = vst [vmem:[#allocation34_spill] sm:$0xff] %v17945_v11 }
 0x700   : > { %v9237_v26 = vsel %vm16064_vm11, %v9232_v33, %v9236_v40  ;;  %v9264_v42 = vrot.slane %v9262_v55, 4  ;;  %v9270_v51 = vrot.slane %v9268_v18, 5  ;;  %14155 = vmatpush3.bf16.msra.mxu0 %v15254_v13  ;;  %v9255_v32 = vor.u32 %v9254_v20, %v9251_v28  ;;  %v17937_v13 = vld [vmem:[#allocation2 + $0x68] sm:$0x1]  ;;  %v17955_v55 = vld [vmem:[#allocation2 + $0x78] sm:$0xff]  }
 0x701   : > { %v9247_v34 = vsel %vm16064_vm11, %v9242_v23, %v9246_v59  ;;  %v9282_v10 = vshll.u32 %v17924_v60, 16  ;;  %v9286_v63 = vshrl.u32 %v17924_v60, 16  ;;  %v9275_v29 = vrot.slane %v9273_v48, 4  ;;  %14156 = vmatprep.subr.bf16.mxu0 %v15257_v4  ;;  %18858 = vst [vmem:[#allocation36_spill] sm:$0xff] %v17955_v55 }
 0x702   : > { %13967 = vmatmul.mubr.msk.bf16.gmra.mrb[8].mxu1 %vm1052_vm8, %v17898_v41  ;;  %v17930_v49 = vcombine.low %v9237_v26, %v9247_v34  ;;  %v9265_v39 = vor.u32 %v9264_v42, %v9260_v5  ;;  %v9256_v37 = vrot.slane %v9255_v32, 4  ;;  %v9278_v14 = vrot.slane %v9276_v38, 5  ;;  %v17964_v32 = vld [vmem:[#allocation2 + $0x84] sm:$0xff]  }
 0x703   : > { %13970 = vmatprep.mubr.msk.bf16.mxu1 %vm1052_vm8, %v17908_v36  ;;  %v9292_v8 = vshll.u32 %v17926_v56, 16  ;;  %v9284_v54 = vrot.slane %v9282_v10, 5  ;;  %v9288_v40 = vrot.slane %v9286_v63, 4  ;;  %v9297_v50 = vshrl.u32 %v9071_v25, 16  ;;  %18859 = vst [vmem:[#allocation37_spill] sm:$0xff] %v17964_v32 }
 0x704   : > { %18855 = vst [vmem:[#allocation33_spill] sm:$0xff] %v17930_v49  ;;  %14126 = vmatprep.mubr.msk.bf16.mxu0 %vm1052_vm8, %v17930_v49  ;;  %v9266_v27 = vrot.slane %v9265_v39, 4  ;;  %v9261_v16 = vsel %vm16064_vm11, %v9256_v37, %v9260_v5  ;;  %v9279_v44 = vor.u32 %v9278_v14, %v9275_v29  ;;  %v9300_v9 = vshll.u32 %v9071_v25, 16  ;;  %14157 = vmatpush3.bf16.msra.mxu0 %v15257_v4  ;;  %v15260_v5 = vld [vmem:[#allocation3 + $0x1210] sm:$0xff]   ;;  %v15266_v14 = vld [vmem:[#allocation3 + $0x1218] sm:$0xff]  }
 0x705   : > { %v9294_v61 = vrot.slane %v9292_v8, 5  ;;  %v9289_v2 = vor.u32 %v9288_v40, %v9284_v54  ;;  %v9299_v7 = vrot.slane %v9297_v50, 4  ;;  %v9306_v22 = vshll.u32 %v17934_v47, 16  ;;  %13994 = vmatprep.subr.bf16.mxu1 %v15260_v5  ;;  %v17984_v40 = vld [vmem:[#allocation2 + $0x90] sm:$0xff]   ;;  %v17988_v50 = vld [vmem:[#allocation2 + $0x9c] sm:$0xff]  }
 0x706   : > { %v9271_v59 = vsel %vm16064_vm11, %v9266_v27, %v9270_v51  ;;  %v9280_v0 = vrot.slane %v9279_v44, 4  ;;  %v9302_v33 = vrot.slane %v9300_v9, 5  ;;  %v9310_v28 = vshrl.u32 %v17934_v47, 16  ;;  %v15261_v51 = vld [vmem:[#allocation3 + $0x1240] sm:$0xff]   ;;  %13995 = vmatpush3.bf16.msra.mxu1 %v15260_v5  ;;  %18862 = vst [vmem:[#allocation40_spill] sm:$0xff] %v17984_v40  ;;  %18863 = vst [vmem:[#allocation41_spill] sm:$0xff] %v17988_v50 }
 0x707   : > { %v17950_v58 = vcombine.low %v9261_v16, %v9271_v59  ;;  %v9290_v18 = vrot.slane %v9289_v2, 4  ;;  %v9308_v23 = vrot.slane %v9306_v22, 5  ;;  %v9316_v20 = vshll.u32 %v17937_v13, 16  ;;  %14190 = vmatprep.subr.bf16.mxu0 %v15261_v51  ;;  %13996 = vmatprep.subr.bf16.mxu1 %v15266_v14  ;;  %v9074_v16 = vld [vmem:[#allocation2 + $0x6c] sm:$0xf]  ;;  %v15267_v22 = vld [vmem:[#allocation3 + $0x1248] sm:$0xff]  }
 0x708   : > { %v9285_v53 = vsel %vm16064_vm11, %v9280_v0, %v9284_v54  ;;  %v9303_v26 = vor.u32 %v9302_v33, %v9299_v7  ;;  %v9312_v42 = vrot.slane %v9310_v28, 4  ;;  %v18729_v37 = vrot.slane %v17840_v31, 5  ;;  %v18002_v2 = vld [vmem:[#allocation2 + $0x74] sm:$0x1]  ;;  %v9077_v7 = vld [vmem:[#allocation2 + $0x78] sm:$0xf] }
 0x709   : > { %18857 = vst [vmem:[#allocation35_spill] sm:$0xff] %v17950_v58  ;;  %14127 = vmatmul.mubr.msk.bf16.gmra.mrb[8].mxu0 %vm1052_vm8, %v17950_v58  ;;  %v9295_v34 = vsel %vm16064_vm11, %v9290_v18, %v9294_v61  ;;  %v9318_v10 = vrot.slane %v9316_v20, 5  ;;  %v10410_v8 = vrot.slane %v17844_v24, 5  ;;  %v17996_v24 = vld [vmem:[#allocation2 + $0x70] sm:$0xf]  ;;  %v9321_v61 = vshrl.u32 %v9074_v16, 16 }
 0x70a   : > { %13971 = vmatmul.mubr.msk.bf16.gmra.mrb[12].mxu1 %vm1052_vm8, %v17920_v17  ;;  %v17966_v48 = vcombine.low %v9285_v53, %v9295_v34  ;;  %v9304_v38 = vrot.slane %v9303_v26, 4  ;;  %v9313_v39 = vor.u32 %v9312_v42, %v9308_v23  ;;  %v10409_v54 = vrot.slane %v18729_v37, 4  ;;  %v18006_v28 = vld [vmem:[#allocation2 + $0x7c] sm:$0xf]  ;;  %v18012_v26 = vld [vmem:[#allocation3 + $0x12c0] sm:$0xff]  }
 0x70b   : > { %13974 = vmatprep.mubr.msk.bf16.mxu1 %vm1052_vm8, %v17945_v11  ;;  %13997 = vmatpush3.bf16.msra.mxu1 %v15266_v14  ;;  %v9324_v9 = vshll.u32 %v9074_v16, 16  ;;  %v9330_v4 = vshll.u32 %v17996_v24, 16  ;;  %v9334_v59 = vshrl.u32 %v17996_v24, 16  ;;  %v9323_v0 = vrot.slane %v9321_v61, 4 }
 0x70c   : > { %18860 = vst [vmem:[#allocation38_spill] sm:$0xff] %v17966_v48  ;;  %14130 = vmatprep.mubr.msk.bf16.mxu0 %vm1052_vm8, %v17966_v48  ;;  %v9309_v63 = vsel %vm16064_vm11, %v9304_v38, %v9308_v23  ;;  %v9314_v25 = vrot.slane %v9313_v39, 4  ;;  %v17992_v44 = vsel %vm16469_vm14, %v10409_v54, %v10410_v8  ;;  %v9345_v18 = vshrl.u32 %v9077_v7, 16  ;;  %v18008_v23 = vld [vmem:[#allocation2 + $0x80] sm:$0x1]  ;;  %v18016_v38 = vld [vmem:[#allocation2 + $0xa8] sm:$0xff]   ;;  %14030 = vmatprep.subr.bf16.mxu1 %v18012_v26 }
 0x70d   : > { %v9326_v33 = vrot.slane %v9324_v9, 5  ;;  %v9348_v20 = vshll.u32 %v9077_v7, 16  ;;  %v9354_v5 = vshll.u32 %v18006_v28, 16  ;;  %v9358_v53 = vshrl.u32 %v18006_v28, 16  ;;  %18864 = vst [vmem:[#allocation42_spill] sm:$0xff] %v18016_v38  ;;  %v18018_v39 = vld [vmem:[#allocation2 + $0xb4] sm:$0xff]  }
 0x70e   : > { %v9319_v29 = vsel %vm16064_vm11, %v9314_v25, %v9318_v10  ;;  %v18014_v42 = vrot.slane %v9330_v4, 5  ;;  %v9336_v34 = vrot.slane %v9334_v59, 4  ;;  %18865 = vst [vmem:[#allocation43_spill] sm:$0xff] %v18018_v39  ;;  %v9340_v10 = vshll.u32 %v18002_v2, 16  ;;  %v18027_v54 = vld [vmem:[#allocation2 + $0x88] sm:$0xf] }
 0x70f   : > { %v17980_v27 = vcombine.low %v9309_v63, %v9319_v29  ;;  %v9080_v63 = vld [vmem:[#allocation2 + $0x84] sm:$0xf]  ;;  %v9347_v25 = vrot.slane %v9345_v18, 4  ;;  %v9350_v29 = vrot.slane %v9348_v20, 5  ;;  %v18024_v14 = vrot.slane %v9354_v5, 5 }
 0x710   : > { %v9364_v8 = vshll.u32 %v18008_v23, 16  ;;  %v9327_v16 = vor.u32 %v9326_v33, %v9323_v0  ;;  %v9360_v61 = vrot.slane %v9358_v53, 4  ;;  %v9369_v9 = vshrl.u32 %v9080_v63, 16  ;;  %v15272_v20 = vld [vmem:[#allocation3 + $0x1250] sm:$0xff]   ;;  %v9083_v5 = vld [vmem:[#allocation2 + $0x90] sm:$0xf] }
 0x711   : > { %18861 = vst [vmem:[#allocation39_spill] sm:$0xff] %v17980_v27  ;;  %14131 = vmatmul.mubr.msk.bf16.gmra.mrb[12].mxu0 %vm1052_vm8, %v17980_v27  ;;  %v9337_v4 = vor.u32 %v9336_v34, %v18014_v42  ;;  %v9372_v59 = vshll.u32 %v9080_v63, 16  ;;  %v9378_v7 = vshll.u32 %v18027_v54, 16  ;;  %v9382_v18 = vshrl.u32 %v18027_v54, 16  ;;  %v18042_v63 = vld [vmem:[#allocation2 + $0x94] sm:$0xf] }
 0x712   : > { %13975 = vmatmul.mubr.msk.bf16.gmra.mrb[16].mxu1 %vm1052_vm8, %v17955_v55  ;;  %14158 = vmatprep.mubr.msk.bf16.mxu0 %vm1052_vm8, %v17885_v1  ;;  %v9371_v37 = vrot.slane %v9369_v9, 4  ;;  %v9351_v0 = vor.u32 %v9350_v29, %v9347_v25  ;;  %v9396_v1 = vshll.u32 %v9083_v5, 16  ;;  %v9361_v9 = vor.u32 %v9360_v61, %v18024_v14  ;;  %v9086_v25 = vld [vmem:[#allocation2 + $0x9c] sm:$0xf]  ;;  %v15274_v29 = vld [vmem:[#allocation3 + $0x1258] sm:$0xff]  }
 0x713   : > { %13978 = vmatprep.mubr.msk.bf16.mxu1 %vm1052_vm8, %v17964_v32  ;;  %v9374_v33 = vrot.slane %v9372_v59, 5  ;;  %v18040_v53 = vrot.slane %v9378_v7, 5  ;;  %v9384_v34 = vrot.slane %v9382_v18, 4  ;;  %v18046_v45 = vrot.slane %v9364_v8, 5  ;;  %v18048_v59 = vld [vmem:[#allocation2 + $0xc0] sm:$0xff]  }
 0x714   : > { %18866 = vst [vmem:[#allocation44_spill] sm:$0xff] %v18048_v59 }
 0x715   : > { %v9375_v7 = vor.u32 %v9374_v33, %v9371_v37  ;;  %v9385_v8 = vor.u32 %v9384_v34, %v18040_v53  ;;  %v9417_v37 = vshrl.u32 %v9086_v25, 16  ;;  %v9420_v33 = vshll.u32 %v9086_v25, 16  ;;  %v18073_v25 = vld [vmem:[#allocation2 + $0x98] sm:$0x1] }
 0x717   : > { %v9419_v55 = vrot.slane %v9417_v37, 4  ;;  %v9422_v11 = vrot.slane %v9420_v33, 5 }
 0x719   : > { %14159 = vmatmul.mubr.msk.bf16.vlgmr.msra.gmra.mrb[0].mxu0 %vm1052_vm8, %v17902_v30  ;;  %v9393_v30 = vshrl.u32 %v9083_v5, 16  ;;  %v9398_v5 = vrot.slane %v9396_v1, 5  ;;  %v9423_v33 = vor.u32 %v9422_v11, %v9419_v55 }
 0x71a   : > { %13979 = vmatmul.mubr.msk.bf16.gmra.mrb[20].mxu1 %vm1052_vm8, %v17984_v40  ;;  %14191 = vmatpush3.bf16.msra.mxu0 %v15261_v51  ;;  %v18036_v51 = vld [vmem:[#allocation2 + $0x8c] sm:$0x1]  ;;  %v9362_v40 = vrot.slane %v9361_v9, 4 }
 0x71b   : > { %13982 = vmatprep.mubr.msk.bf16.mxu1 %vm1052_vm8, %v17988_v50  ;;  %14162 = vmatprep.mubr.msk.bf16.mxu0 %vm1052_vm8, %v17912_v15  ;;  %v9342_v15 = vrot.slane %v9340_v10, 5  ;;  %v9338_v50 = vrot.slane %v9337_v4, 4  ;;  %v9388_v18 = vshll.u32 %v18036_v51, 16  ;;  %v9406_v10 = vshrl.u32 %v18042_v63, 16  ;;  %v18075_v9 = vld [vmem:[#allocation2 + $0xac] sm:$0xf] }
 0x71c   : > { %14192 = vmatprep.subr.bf16.mxu0 %v15267_v22  ;;  %v18055_v4 = vrot.slane %v9351_v0, 4  ;;  %v9395_v61 = vrot.slane %v9393_v30, 4  ;;  %v18064_v0 = vld [vmem:[#allocation3 + $0x12a0] sm:$0xff]  }
 0x71d   : > { %18867 = vst [vmem:[#allocation45_spill] sm:$0xff] %v18064_v0  ;;  %v9343_v30 = vsel %vm16064_vm11, %v9338_v50, %v9342_v15  ;;  %v9390_v34 = vrot.slane %v9388_v18, 5  ;;  %v9412_v50 = vshll.u32 %v18073_v25, 16 }
 0x71e   : > { %14193 = vmatpush3.bf16.msra.mxu0 %v15267_v22  ;;  %v9402_v22 = vshll.u32 %v18042_v63, 16 }
 0x71f   : > { %14194 = vmatprep.subr.bf16.mxu0 %v15272_v20 }
 0x720   : > { %v18062_v32 = vrot.slane %v9402_v22, 5  ;;  %v9386_v22 = vrot.slane %v9385_v8, 4  ;;  %v9357_v8 = vsel %vm16064_vm11, %v18055_v4, %v18024_v14  ;;  %v9454_v4 = vshrl.u32 %v18075_v9, 16 }
 0x721   : > { %14163 = vmatmul.mubr.msk.bf16.gmra.mrb[4].mxu0 %vm1052_vm8, %v17930_v49  ;;  %v9408_v49 = vrot.slane %v9406_v10, 4  ;;  %v9399_v10 = vor.u32 %v9398_v5, %v9395_v61  ;;  %v18091_v61 = vld [vmem:[#allocation2 + $0xa4] sm:$0x1]  ;;  %v9092_v5 = vld [vmem:[#allocation2 + $0xb4] sm:$0xf] }
 0x722   : > { %13983 = vmatmul.mubr.msk.bf16.gmra.mrb[24].mxu1 %vm1052_vm8, %v18016_v38  ;;  %v9328_v38 = vrot.slane %v9327_v16, 4  ;;  %v15270_v16 = vld [vmem:[#allocation2] sm:$0xff]   ;;  %14166 = vmatprep.mubr.msk.bf16.mxu0 %vm1052_vm8, %v17950_v58  ;;  %v9426_v58 = vshll.u32 %v18058_v43, 16  ;;  %v9391_v14 = vsel %vm16064_vm11, %v9386_v22, %v9390_v34  ;;  %v9436_v22 = vshll.u32 %v18091_v61, 16 }
 0x723   : > { %13986 = vmatprep.mubr.msk.bf16.mxu1 %vm1052_vm8, %v18018_v39  ;;  %14195 = vmatpush3.bf16.msra.mxu0 %v15272_v20  ;;  %v9089_v39 = vld [vmem:[#allocation2 + $0xa8] sm:$0xf]  ;;  %v9376_v20 = vrot.slane %v9375_v7, 4  ;;  %v9409_v15 = vor.u32 %v9408_v49, %v18062_v32  ;;  %v18110_v37 = vrot.slane %v9399_v10, 4  ;;  %v9095_v49 = vld [vmem:[#allocation2 + $0xc0] sm:$0xf] }
 0x724   : > { %14196 = vmatprep.subr.bf16.mxu0 %v15274_v29  ;;  %v9333_v1 = vsel %vm16064_vm11, %v9328_v38, %v18014_v42  ;;  %v9441_v42 = vshrl.u32 %v9089_v39, 16  ;;  %v9444_v38 = vshll.u32 %v9089_v39, 16  ;;  %v18082_v7 = vrot.slane %v9426_v58, 5 }
 0x725   : > { %v9450_v39 = vshll.u32 %v18075_v9, 16  ;;  %v9367_v58 = vsel %vm16064_vm11, %v9362_v40, %v18046_v45  ;;  %v15273_v40 = vld [vmem:[#allocation3 + $0x12c8] sm:$0xff]   ;;  %v9456_v11 = vrot.slane %v9454_v4, 4  ;;  %v9465_v55 = vshrl.u32 %v9092_v5, 16 }
 0x726   : > { %v9446_v45 = vrot.slane %v9444_v38, 5  ;;  %v18124_v38 = vld [vmem:[#allocation2 + $0xc4] sm:$0xf]  ;;  %v9424_v4 = vrot.slane %v9423_v33, 4 }
 0x727   : > { %14197 = vmatpush3.bf16.msra.mxu0 %v15274_v29  ;;  %v9381_v29 = vsel %vm16064_vm11, %v9376_v20, %v18040_v53  ;;  %v18114_v53 = vrot.slane %v9409_v15, 4  ;;  %v18116_v20 = vrot.slane %v9412_v50, 5  ;;  %v18122_v10 = vrot.slane %v9450_v39, 5  ;;  %18870 = vst [vmem:[#allocation48_spill] sm:$0xff] %v18124_v38 }
 0x728   : > { %14230 = vmatprep.subr.bf16.mxu0 %v18064_v0  ;;  %v18126_v15 = vcombine.low %v9357_v8, %v9367_v58  ;;  %v18128_v50 = vcombine.low %v9381_v29, %v9391_v14  ;;  %v9405_v39 = vsel %vm16064_vm11, %v18110_v37, %v18062_v32  ;;  %v9438_v58 = vrot.slane %v9436_v22, 5  ;;  %v18144_v29 = vld [vmem:[#allocation2 + $0xbc] sm:$0x1]  ;;  %v9098_v37 = vld [vmem:[#allocation2 + $0xcc] sm:$0xf] }
 0x729   : > { %14167 = vmatmul.mubr.msk.bf16.gmra.mrb[8].mxu0 %vm1052_vm8, %v17966_v48  ;;  %18872 = vst [vmem:[#allocation50_spill] sm:$0xff] %v18144_v29  ;;  %v9811_v14 = vshrl.u32 %v9095_v49, 16  ;;  %v9467_v48 = vrot.slane %v9465_v55, 4  ;;  %v9814_v0 = vshll.u32 %v9095_v49, 16  ;;  %v9824_v32 = vshrl.u32 %v18124_v38, 16 }
 0x72a   : > { %13987 = vmatmul.mubr.msk.bf16.gmra.mrb[28].mxu1 %vm1052_vm8, %v18048_v59  ;;  %v9430_v59 = vshrl.u32 %v18058_v43, 16  ;;  %14170 = vmatprep.mubr.msk.bf16.mxu0 %vm1052_vm8, %v17980_v27  ;;  %v15275_v27 = vld [vmem:[#allocation3 + $0x12d0] sm:$0xff]   ;;  %18871 = vst [vmem:[#allocation49_spill] sm:$0xff] %v18126_v15  ;;  %v9457_v33 = vor.u32 %v9456_v11, %v18122_v10  ;;  %v9429_v49 = vsel %vm16064_vm11, %v9424_v4, %v18082_v7  ;;  %v18164_v55 = vld [vmem:[#allocation2 + $0xc8] sm:$0x1]  ;;  %v9484_v4 = vshll.u32 %v18144_v29, 16 }
 0x72b   : > { %13998 = vmatprep.mubr.msk.bf16.mxu1 %vm1052_vm8, %v15270_v16  ;;  %v18085_v16 = vcombine.low %v9333_v1, %v9343_v30  ;;  %v9443_v1 = vrot.slane %v9441_v42, 4  ;;  %v18112_v30 = vld [vmem:[#allocation2 + $0xb8] sm:$0xf]  ;;  %v9468_v42 = vshll.u32 %v9092_v5, 16  ;;  %v9813_v11 = vrot.slane %v9811_v14, 4  ;;  %v18186_v29 = vld [vmem:[#allocation3 + $0x1220] sm:$0xff]  }
 0x72c   : > { %v9432_v18 = vrot.slane %v9430_v59, 4  ;;  %v18105_v59 = vld [vmem:[#allocation2 + $0xb0] sm:$0x1]  ;;  %18869 = vst [vmem:[#allocation47_spill] sm:$0xff] %v18112_v30  ;;  %v9458_v14 = vrot.slane %v9457_v33, 4  ;;  %v9830_v33 = vshll.u32 %v18164_v55, 16 }
 0x72d   : > { %18868 = vst [vmem:[#allocation46_spill] sm:$0xff] %v18085_v16  ;;  %v9447_v5 = vor.u32 %v9446_v45, %v9443_v1  ;;  %v9460_v8 = vshll.u32 %v18105_v59, 16  ;;  %v9470_v1 = vrot.slane %v9468_v42, 5  ;;  %v15277_v42 = vld [vmem:[#allocation3 + $0x12d8] sm:$0xff]  }
 0x72e   : > { %v9433_v34 = vor.u32 %v9432_v18, %v18082_v7  ;;  %v9474_v18 = vshll.u32 %v18112_v30, 16 }
 0x72f   : > { %v18162_v22 = vrot.slane %v9460_v8, 5 }
 0x730   : > { %v18151_v45 = vrot.slane %v9474_v18, 5  ;;  %v9816_v18 = vrot.slane %v9814_v0, 5  ;;  %v9471_v0 = vor.u32 %v9470_v1, %v9467_v48 }
 0x731   : > { %14171 = vmatmul.mubr.msk.bf16.gmra.mrb[12].mxu0 %vm1052_vm8, %v18085_v16  ;;  %v10067_v16 = vshrl.u32 %v9098_v37, 16 }
 0x732   : > { %13999 = vmatmul.mubr.msk.bf16.vlgmr.msra.gmra.mrb[0].mxu1 %vm1052_vm8, %v17832_v57  ;;  %v9478_v57 = vshrl.u32 %v18112_v30, 16  ;;  %v9820_v30 = vshll.u32 %v18124_v38, 16  ;;  %14174 = vmatprep.mubr.msk.bf16.mxu0 %vm1052_vm8, %v18126_v15 }
 0x733   : > { %14031 = vmatpush3.bf16.msra.mxu1 %v18012_v26  ;;  %14002 = vmatprep.mubr.msk.bf16.mxu1 %vm1052_vm8, %v17838_v46  ;;  %v9415_v26 = vsel %vm16064_vm11, %v18114_v53, %v18116_v20  ;;  %v9434_v46 = vrot.slane %v9433_v34, 4  ;;  %v18153_v20 = vld [vmem:[#allocation2 + $0xd0] sm:$0xf]  ;;  %v18160_v34 = vrot.slane %v9447_v5, 4  ;;  %v10070_v5 = vshll.u32 %v9098_v37, 16 }
 0x734   : > { %14032 = vmatprep.subr.bf16.mxu1 %v15273_v40  ;;  %v9480_v53 = vrot.slane %v9478_v57, 4  ;;  %18873 = vst [vmem:[#allocation51_spill] sm:$0xff] %v18153_v20  ;;  %v9826_v57 = vrot.slane %v9824_v32, 4  ;;  %v10076_v8 = vshll.u32 %v18153_v20, 16  ;;  %v18177_v32 = vld [vmem:[#allocation2 + $0xd4] sm:$0x1] }
 0x735   : > { %v9439_v7 = vsel %vm16064_vm11, %v9434_v46, %v9438_v58  ;;  %18874 = vst [vmem:[#allocation52_spill] sm:$0xff] %v18177_v32  ;;  %v10080_v15 = vshrl.u32 %v18153_v20, 16  ;;  %v10069_v46 = vrot.slane %v10067_v16, 4  ;;  %v10072_v58 = vrot.slane %v10070_v5, 5  ;;  %v18184_v37 = vld [vmem:[#allocation2 + $0x4] sm:$0xf] }
 0x736   : > { %v18182_v38 = vrot.slane %v10076_v8, 5  ;;  %v10324_v20 = vld [vmem:[#allocation2 + $0x18] sm:$0xe]  ;;  %v9453_v16 = vsel %vm16064_vm11, %v18160_v34, %v18122_v10  ;;  %v10086_v5 = vshll.u32 %v18177_v32, 16  ;;  %v18206_v34 = vld [vmem:[#allocation2 + $0x8] sm:$0x1] }
 0x737   : > { %14033 = vmatpush3.bf16.msra.mxu1 %v15273_v40  ;;  %v18166_v40 = vrot.slane %v9820_v30, 5  ;;  %v9481_v30 = vor.u32 %v9480_v53, %v18151_v45  ;;  %v10082_v1 = vrot.slane %v10080_v15, 4  ;;  %v10322_v53 = vld [vmem:[#allocation2] sm:$0xe]  ;;  %v9463_v15 = vsel %vm16064_vm11, %v9458_v14, %v18162_v22 }
 0x738   : > { %14034 = vmatprep.subr.bf16.mxu1 %v15275_v27  ;;  %v9832_v22 = vrot.slane %v9830_v33, 5  ;;  %v18875_v14 = vrot.slane %v17866_v52, 5  ;;  %v10396_v33 = vrot.slane %v18206_v34, 5 }
 0x739   : > { %v9827_v48 = vor.u32 %v9826_v57, %v18166_v40  ;;  %14175 = vmatmul.mubr.msk.bf16.gmra.mrb[16].mxu0 %vm1052_vm8, %v18128_v50  ;;  %v10073_v57 = vor.u32 %v10072_v58, %v10069_v46  ;;  %v10083_v10 = vor.u32 %v10082_v1, %v18182_v38  ;;  %v18876_v46 = vrot.slane %v17840_v31, 5 }
 0x73a   : > { %14003 = vmatmul.mubr.msk.bf16.gmra.mrb[4].mxu1 %vm1052_vm8, %v17852_v6  ;;  %v18180_v6 = vcombine.low %v9405_v39, %v9415_v26  ;;  %v18190_v39 = vcombine.low %v9429_v49, %v9439_v7  ;;  %v9486_v26 = vrot.slane %v9484_v4, 5  ;;  %v10393_v49 = vrot.slane %v18184_v37, 5 }
 0x73b   : > { %14006 = vmatprep.mubr.msk.bf16.mxu1 %vm1052_vm8, %v17871_v35  ;;  %14035 = vmatpush3.bf16.msra.mxu1 %v15275_v27  ;;  %v9817_v35 = vor.u32 %v9816_v18, %v9813_v11  ;;  %v10325_v27 = vld [vmem:[#allocation2 + $0x24] sm:$0xe]  ;;  %v9472_v11 = vrot.slane %v9471_v0, 4  ;;  %v9482_v18 = vrot.slane %v9481_v30, 4  ;;  %v12494_v7 = vrot.slane %v10324_v20, 9 }
 0x73c   : > { %14036 = vmatprep.subr.bf16.mxu1 %v15277_v42  ;;  %14178 = vmatprep.mubr.msk.bf16.mxu0 %vm1052_vm8, %v18180_v6  ;;  %v12495_v4 = vrot.slane %v10325_v27, 9  ;;  %v9828_v32 = vrot.slane %v9827_v48, 4  ;;  %v10416_v0 = vrot.slane %v18875_v14, 4  ;;  %v12492_v30 = vrot.slane %v10322_v53, 9  ;;  %v10329_v53 = vld [vmem:[#allocation2 + $0x54] sm:$0xe] }
 0x73d   : > { %v9818_v8 = vrot.slane %v9817_v35, 4  ;;  %v10408_v58 = vsel %vm16469_vm14, %v12494_v7, %v18876_v46  ;;  %v18877_v20 = vmov %v18875_v14  ;;  %v10395_v48 = vrot.slane %v10393_v49, 4  ;;  %v10330_v14 = vld [vmem:[#allocation2 + $0x60] sm:$0xe] }
 0x73e   : > { %v10415_v35 = vsel %vm16469_vm14, %v12495_v4, %v18877_v20  ;;  %v18878_v1 = vrot.slane %v17868_v3, 5  ;;  %v18231_v27 = vcombine.low %v9453_v16, %v9463_v15  ;;  %v10074_v52 = vrot.slane %v10073_v57, 4 }
 0x73f   : > { %14037 = vmatpush3.bf16.msra.mxu1 %v15277_v42  ;;  %v10088_v42 = vrot.slane %v10086_v5, 5  ;;  %v10084_v5 = vrot.slane %v10083_v10, 4  ;;  %v9823_v3 = vsel %vm16064_vm11, %v9818_v8, %v18166_v40  ;;  %v12499_v4 = vrot.slane %v10329_v53, 9 }
 0x740   : > { %14070 = vmatprep.subr.bf16.mxu1 %v18186_v29  ;;  %v10418_v31 = vsel %vm16469_vm14, %v10416_v0, %v18878_v1  ;;  %v10331_v0 = vld [vmem:[#allocation2 + $0x6c] sm:$0xe]  ;;  %v9833_v16 = vsel %vm16064_vm11, %v9828_v32, %v9832_v22  ;;  %v18249_v15 = vsel %vm16469_vm14, %v12492_v30, %v10393_v49  ;;  %v10079_v40 = vsel %vm16064_vm11, %v10074_v52, %v18182_v38  ;;  %v10332_v49 = vld [vmem:[#allocation2 + $0x78] sm:$0xe]  ;;  %v10333_v22 = vld [vmem:[#allocation2 + $0x84] sm:$0xe] }
 0x741   : > { %v18233_v7 = vcombine.low %v10415_v35, %v10418_v31  ;;  %14179 = vmatmul.mubr.msk.bf16.gmra.mrb[20].mxu0 %vm1052_vm8, %v18190_v39  ;;  %v10089_v32 = vsel %vm16064_vm11, %v10084_v5, %v10088_v42  ;;  %v12500_v8 = vrot.slane %v10330_v14, 9  ;;  %v18269_v30 = vcombine.low %v9823_v3, %v9833_v16  ;;  %v10334_v1 = vld [vmem:[#allocation2 + $0x90] sm:$0xe] }
 0x742   : > { %14007 = vmatmul.mubr.msk.bf16.gmra.mrb[8].mxu1 %vm1052_vm8, %v17877_v62  ;;  %v18225_v62 = vcombine.low %v10408_v58, %v17992_v44  ;;  %v9487_v44 = vsel %vm16064_vm11, %v9482_v18, %v9486_v26  ;;  %v10442_v26 = vrot.slane %v17924_v60, 5  ;;  %14182 = vmatprep.mubr.msk.bf16.mxu0 %vm1052_vm8, %v18231_v27  ;;  %v10445_v18 = vrot.slane %v17926_v56, 5 }
 0x743   : > { %14010 = vmatprep.mubr.msk.bf16.mxu1 %vm1052_vm8, %v17898_v41  ;;  %v9477_v41 = vsel %vm16064_vm11, %v9472_v11, %v18151_v45  ;;  %v18253_v45 = vsel %vm16469_vm14, %v10395_v48, %v10396_v33  ;;  %v10421_v11 = vrot.slane %v17881_v19, 5  ;;  %v10449_v42 = vrot.slane %v17934_v47, 5  ;;  %v18889_v19 = vld [vmem:[#allocation42_spill] sm:$0xff] }
 0x744   : > { %v18265_v57 = vcombine.low %v9477_v41, %v9487_v44  ;;  %v10443_v60 = vsel %vm16469_vm14, %v12499_v4, %v10442_v26  ;;  %v10444_v10 = vrot.slane %v10442_v26, 4  ;;  %v12508_v38 = vcombine.low %v18249_v15, %v18253_v45  ;;  %v10335_v4 = vld [vmem:[#allocation2 + $0x9c] sm:$0xe]  ;;  %v18883_v15 = vld [vmem:[#allocation37_spill] sm:$0xff] }
 0x745   : > { %v10452_v56 = vrot.slane %v17937_v13, 5  ;;  %v12471_v46 = vcombine.low %v10079_v40, %v10089_v32  ;;  %v12501_v20 = vrot.slane %v10331_v0, 9  ;;  %v10456_v35 = vrot.slane %v17996_v24, 5 }
 0x746   : > { %v10446_v58 = vsel %vm16469_vm14, %v10444_v10, %v10445_v18  ;;  %v10451_v33 = vrot.slane %v10449_v42, 4  ;;  %v10459_v47 = vrot.slane %v18002_v2, 5  ;;  %v10463_v53 = vrot.slane %v18006_v28, 5  ;;  %v10336_v18 = vld [vmem:[#allocation2 + $0xa8] sm:$0xe] }
 0x747   : > { %v18282_v48 = vcombine.low %v10443_v60, %v10446_v58  ;;  %v10457_v13 = vsel %vm16469_vm14, %v12501_v20, %v10456_v35  ;;  %v10458_v31 = vrot.slane %v10456_v35, 4  ;;  %v10466_v24 = vrot.slane %v18008_v23, 5 }
 0x748   : > { %v10453_v52 = vsel %vm16469_vm14, %v10451_v33, %v10452_v56  ;;  %v12503_v5 = vrot.slane %v10333_v22, 9  ;;  %v10470_v41 = vrot.slane %v18027_v54, 5  ;;  %v10465_v28 = vrot.slane %v10463_v53, 4  ;;  %v10337_v22 = vld [vmem:[#allocation2 + $0xb4] sm:$0xe] }
 0x749   : > { %14183 = vmatmul.mubr.msk.bf16.gmra.mrb[24].mxu0 %vm1052_vm8, %v18265_v57  ;;  %v10460_v44 = vsel %vm16469_vm14, %v10458_v31, %v10459_v47  ;;  %v10473_v0 = vrot.slane %v18036_v51, 5  ;;  %v12504_v26 = vrot.slane %v10334_v1, 9  ;;  %v10477_v40 = vrot.slane %v18042_v63, 5 }
 0x74a   : > { %14011 = vmatmul.mubr.msk.bf16.gmra.mrb[12].mxu1 %vm1052_vm8, %v17908_v36  ;;  %v10450_v36 = vsel %vm16469_vm14, %v12500_v8, %v10449_v42  ;;  %14186 = vmatprep.mubr.msk.bf16.mxu0 %vm1052_vm8, %v18269_v30  ;;  %v18304_v23 = vcombine.low %v10457_v13, %v10460_v44  ;;  %v10471_v54 = vsel %vm16469_vm14, %v12503_v5, %v10470_v41  ;;  %v10472_v14 = vrot.slane %v10470_v41, 4  ;;  %v18880_v42 = vld [vmem:[#allocation36_spill] sm:$0xff]  ;;  %v18881_v13 = vld [vmem:[#allocation47_spill] sm:$0xff]  ;;  %v18882_v44 = vld [vmem:[#allocation50_spill] sm:$0xff] }
 0x74b   : > { %14014 = vmatprep.mubr.msk.bf16.mxu1 %vm1052_vm8, %v17920_v17  ;;  %v12502_v17 = vrot.slane %v10332_v49, 9  ;;  %v18296_v2 = vcombine.low %v10450_v36, %v10453_v52  ;;  %v10467_v16 = vsel %vm16469_vm14, %v10465_v28, %v10466_v24  ;;  %v10480_v32 = vrot.slane %v18073_v25, 5  ;;  %v18879_v49 = vld [vmem:[#allocation34_spill] sm:$0xff] }
 0x74c   : > { %v10474_v10 = vsel %vm16469_vm14, %v10472_v14, %v10473_v0  ;;  %v12505_v8 = vrot.slane %v10335_v4, 9  ;;  %v10484_v51 = vrot.slane %v18058_v43, 5  ;;  %v10478_v63 = vsel %vm16469_vm14, %v12504_v26, %v10477_v40  ;;  %v10338_v14 = vld [vmem:[#allocation2 + $0xc0] sm:$0xe] }
 0x74d   : > { %v10464_v3 = vsel %vm16469_vm14, %v12502_v17, %v10463_v53  ;;  %v18322_v56 = vcombine.low %v10471_v54, %v10474_v10  ;;  %v10479_v25 = vrot.slane %v10477_v40, 4  ;;  %v10487_v58 = vrot.slane %v18091_v61, 5  ;;  %v9047_v17 = vld [vmem:[#allocation2] sm:$0xf] }
 0x74e   : > { %v18315_v60 = vcombine.low %v10464_v3, %v10467_v16  ;;  %v10485_v20 = vsel %vm16469_vm14, %v12505_v8, %v10484_v51  ;;  %v10486_v35 = vrot.slane %v10484_v51, 4  ;;  %v12506_v36 = vrot.slane %v10336_v18, 9 }
 0x74f   : > { %v10491_v33 = vrot.slane %v18075_v9, 5  ;;  %v10481_v43 = vsel %vm16469_vm14, %v10479_v25, %v10480_v32  ;;  %v10494_v47 = vrot.slane %v18105_v59, 5  ;;  %v12507_v1 = vrot.slane %v10337_v22, 9  ;;  %v10326_v9 = vld [vmem:[#allocation2 + $0x30] sm:$0xe]  ;;  %v18885_v22 = vld [vmem:[#allocation48_spill] sm:$0xff] }
 0x750   : > { %v10498_v31 = vrot.slane %v18881_v13, 5  ;;  %v18334_v53 = vcombine.low %v10478_v63, %v10481_v43  ;;  %v10488_v61 = vsel %vm16469_vm14, %v10486_v35, %v10487_v58  ;;  %v10501_v3 = vrot.slane %v18882_v44, 5  ;;  %v15292_v44 = vld [vmem:[#allocation2 + $0x4c] sm:$0xf] }
 0x751   : > { %v10492_v52 = vsel %vm16469_vm14, %v12506_v36, %v10491_v33  ;;  %v10493_v24 = vrot.slane %v10491_v33, 4  ;;  %14187 = vmatmul.mubr.msk.bf16.gmra.mrb[28].mxu0 %vm1052_vm8, %v12471_v46  ;;  %v18341_v5 = vcombine.low %v10485_v20, %v10488_v61  ;;  %v9105_v4 = vshrl.u32 %v9047_v17, 16  ;;  %v15278_v20 = vld [vmem:[#allocation3 + $0x12a8] sm:$0xff]  }
 0x752   : > { %14015 = vmatmul.mubr.msk.bf16.gmra.mrb[16].mxu1 %vm1052_vm8, %v18879_v49  ;;  %v10499_v59 = vsel %vm16469_vm14, %v12507_v1, %v10498_v31  ;;  %v10500_v41 = vrot.slane %v10498_v31, 4  ;;  %14198 = vmatprep.mubr.msk.bf16.mxu0 %vm1052_vm8, %v12508_v38  ;;  %v9108_v54 = vshll.u32 %v9047_v17, 16  ;;  %v9114_v46 = vshll.u32 %v18184_v37, 16  ;;  %v18884_v49 = vld [vmem:[#allocation40_spill] sm:$0xff]  ;;  %v18887_v17 = vld [vmem:[#allocation45_spill] sm:$0xff] }
 0x753   : > { %14018 = vmatprep.mubr.msk.bf16.mxu1 %vm1052_vm8, %v18880_v42  ;;  %v10495_v28 = vsel %vm16469_vm14, %v10493_v24, %v10494_v47  ;;  %v9118_v26 = vshrl.u32 %v18184_v37, 16  ;;  %v9124_v40 = vshll.u32 %v18206_v34, 16  ;;  %v9107_v38 = vrot.slane %v9105_v4, 4  ;;  %v15290_v34 = vld [vmem:[#allocation2 + $0x38] sm:$0x1]  ;;  %v18886_v1 = vld [vmem:[#allocation9_spill] sm:$0xff] }
 0x754   : > { %v18353_v0 = vcombine.low %v10492_v52, %v10495_v28  ;;  %v10502_v16 = vsel %vm16469_vm14, %v10500_v41, %v10501_v3  ;;  %v9110_v32 = vrot.slane %v9108_v54, 5  ;;  %v9116_v18 = vrot.slane %v9114_v46, 5  ;;  %v10327_v41 = vld [vmem:[#allocation2 + $0x3c] sm:$0xe]  ;;  %v15280_v28 = vld [vmem:[#allocation3 + $0x12b0] sm:$0xff]   ;;  %v18888_v54 = vld [vmem:[#allocation41_spill] sm:$0xff] }
 0x755   : > { %v18361_v45 = vcombine.low %v10499_v59, %v10502_v16  ;;  %v12496_v10 = vrot.slane %v10326_v9, 9  ;;  %v9120_v8 = vrot.slane %v9118_v26, 4  ;;  %v12544_v51 = vrot.slane %v10338_v14, 9  ;;  %v10328_v46 = vld [vmem:[#allocation2 + $0x48] sm:$0xe] }
 0x756   : > { %v10830_v42 = vrot.slane %v18885_v22, 5  ;;  %v10423_v37 = vrot.slane %v10421_v11, 4  ;;  %v10424_v63 = vrot.slane %v15290_v34, 5  ;;  %v9111_v25 = vor.u32 %v9110_v32, %v9107_v38  ;;  %v18890_v34 = vld [vmem:[#allocation43_spill] sm:$0xff] }
 0x757   : > { %v10833_v58 = vrot.slane %v18164_v55, 5  ;;  %v9121_v35 = vor.u32 %v9120_v8, %v9116_v18  ;;  %v9126_v36 = vrot.slane %v9124_v40, 5  ;;  %v15291_v55 = vld [vmem:[#allocation2 + $0x40] sm:$0xf]  ;;  %v10422_v9 = vsel %vm16469_vm14, %v12496_v10, %v10421_v11  ;;  %v15293_v40 = vld [vmem:[#allocation2 + $0x44] sm:$0x1] }
 0x758   : > { %v10831_v33 = vsel %vm16469_vm14, %v12544_v51, %v10830_v42  ;;  %v10832_v43 = vrot.slane %v10830_v42, 4  ;;  %v9112_v47 = vrot.slane %v9111_v25, 4  ;;  %v10428_v61 = vrot.slane %v15291_v55, 5  ;;  %v15282_v10 = vld [vmem:[#allocation3 + $0x12b8] sm:$0xff]   ;;  %v15295_v25 = vld [vmem:[#allocation2 + $0x18] sm:$0xff]  }
 0x759   : > { %14199 = vmatmul.mubr.msk.bf16.vlgmr.msra.gmra.mrb[0].mxu0 %vm1052_vm8, %v18886_v1  ;;  %v9122_v13 = vrot.slane %v9121_v35, 4  ;;  %v10425_v59 = vsel %vm16469_vm14, %v10423_v37, %v10424_v63  ;;  %v10435_v3 = vrot.slane %v15292_v44, 5  ;;  %v12497_v16 = vrot.slane %v10327_v41, 9  ;;  %v15284_v37 = vld [vmem:[#allocation3 + $0x1300] sm:$0xff]   ;;  %v15296_v35 = vld [vmem:[#allocation2 + $0x24] sm:$0xff]  }
 0x75a   : > { %14019 = vmatmul.mubr.msk.bf16.gmra.mrb[20].mxu1 %vm1052_vm8, %v18883_v15  ;;  %v10834_v31 = vsel %vm16469_vm14, %v10832_v43, %v10833_v58  ;;  %14231 = vmatpush3.bf16.msra.mxu0 %v18887_v17  ;;  %v9117_v52 = vsel %vm16064_vm11, %v9112_v47, %v9116_v18  ;;  %v18396_v11 = vcombine.low %v10422_v9, %v10425_v59  ;;  %v10430_v26 = vrot.slane %v10428_v61, 4  ;;  %v15285_v43 = vld [vmem:[#allocation3 + $0x1238] sm:$0xff]   ;;  %v15298_v47 = vld [vmem:[#allocation2 + $0x3c] sm:$0xff]  }
 0x75b   : > { %14022 = vmatprep.mubr.msk.bf16.mxu1 %vm1052_vm8, %v18884_v49  ;;  %14202 = vmatprep.mubr.msk.bf16.mxu0 %vm1052_vm8, %v18225_v62  ;;  %v18380_v24 = vcombine.low %v10831_v33, %v10834_v31  ;;  %v9127_v4 = vsel %vm16064_vm11, %v9122_v13, %v9126_v36  ;;  %v10431_v15 = vrot.slane %v15293_v40, 5  ;;  %v12498_v38 = vrot.slane %v10328_v46, 9  ;;  %v15297_v36 = vld [vmem:[#allocation2 + $0x30] sm:$0xff]   ;;  %v15283_v33 = vld [vmem:[#allocation3 + $0x1230] sm:$0xff]   ;;  %v15299_v13 = vld [vmem:[#allocation2 + $0x48] sm:$0xff]  }
 0x75c   : > { %14232 = vmatprep.subr.bf16.mxu0 %v15278_v20  ;;  %v18392_v14 = vcombine.low %v9117_v52, %v9127_v4  ;;  %v10437_v32 = vrot.slane %v10435_v3, 4  ;;  %v10438_v18 = vrot.slane %v15294_v12, 5  ;;  %v10429_v8 = vsel %vm16469_vm14, %v12497_v16, %v10428_v61  ;;  %v15301_v31 = vld [vmem:[#allocation2 + $0x54] sm:$0xff]   ;;  %v15302_v17 = vld [vmem:[#allocation2 + $0x60] sm:$0xff]   ;;  %v15303_v55 = vld [vmem:[#allocation2 + $0x6c] sm:$0xff]  }
 0x75d   : > { %v10432_v51 = vsel %vm16469_vm14, %v10430_v26, %v10431_v15  ;;  %v10436_v22 = vsel %vm16469_vm14, %v12498_v38, %v10435_v3  ;;  %v15304_v61 = vld [vmem:[#allocation2 + $0x78] sm:$0xff]   ;;  %v15305_v52 = vld [vmem:[#allocation2 + $0x84] sm:$0xff]   ;;  %v15287_v41 = vld [vmem:[#allocation2 + $0xcc] sm:$0xff]  }
 0x75e   : > { %14233 = vmatpush3.bf16.msra.mxu0 %v15278_v20  ;;  %v10439_v42 = vsel %vm16469_vm14, %v10437_v32, %v10438_v18  ;;  %v18412_v63 = vcombine.low %v10429_v8, %v10432_v51  ;;  %v15281_v20 = vld [vmem:[#allocation3 + $0x1228] sm:$0xff]   ;;  %v15289_v59 = vld [vmem:[#allocation3 + $0x1318] sm:$0xff]   ;;  %v15307_v4 = vld [vmem:[#allocation3 + $0x1290] sm:$0xff]  }
 0x75f   : > { %14234 = vmatprep.subr.bf16.mxu0 %v15280_v28  ;;  %v18415_v58 = vcombine.low %v10436_v22, %v10439_v42  ;;  %v15286_v9 = vld [vmem:[#allocation3 + $0x1308] sm:$0xff]   ;;  %v18892_v44 = vld [vmem:[#allocation10_spill] sm:$0xff]  ;;  %v18895_v46 = vld [vmem:[#allocation32_spill] sm:$0xff] }
 0x760   : > { %v18893_v3 = vld [vmem:[#allocation11_spill] sm:$0xff]  ;;  %v18897_v16 = vld [vmem:[#allocation35_spill] sm:$0xff]  ;;  %v18901_v38 = vld [vmem:[#allocation49_spill] sm:$0xff] }
 0x761   : > { %14203 = vmatmul.mubr.msk.bf16.gmra.mrb[4].mxu0 %vm1052_vm8, %v18233_v7  ;;  %v18898_v26 = vld [vmem:[#allocation38_spill] sm:$0xff]  ;;  %v18899_v40 = vld [vmem:[#allocation39_spill] sm:$0xff] }
 0x762   : > { %14023 = vmatmul.mubr.msk.bf16.gmra.mrb[24].mxu1 %vm1052_vm8, %v18888_v54  ;;  %14206 = vmatprep.mubr.msk.bf16.mxu0 %vm1052_vm8, %v18396_v11  ;;  %v18900_v15 = vld [vmem:[#allocation46_spill] sm:$0xff]  ;;  %v18579_v42 = vld [vmem:[#allocation5 + $0x10] ss:$0 sm:$0xff] }
 0x763   : > { %14026 = vmatprep.mubr.msk.bf16.mxu1 %vm1052_vm8, %v18889_v19  ;;  %14235 = vmatpush3.bf16.msra.mxu0 %v15280_v28  ;;  %v15306_v28 = vld [vmem:[#allocation3 + $0x1288] sm:$0xff]  }
 0x764   : > { %14236 = vmatprep.subr.bf16.mxu0 %v15282_v10 }
 0x767   : > { %14237 = vmatpush3.bf16.msra.mxu0 %v15282_v10 }
 0x768   : > { %14270 = vmatprep.subr.bf16.mxu0 %v15284_v37 }
 0x769   : > { %14207 = vmatmul.mubr.msk.bf16.gmra.mrb[8].mxu0 %vm1052_vm8, %v18412_v63 }
 0x76a   : > { %14027 = vmatmul.mubr.msk.bf16.gmra.mrb[28].mxu1 %vm1052_vm8, %v18890_v34  ;;  %14210 = vmatprep.mubr.msk.bf16.mxu0 %vm1052_vm8, %v18415_v58 }
 0x76b   : > { %14038 = vmatprep.mubr.msk.bf16.mxu1 %vm1052_vm8, %v15295_v25 }
 0x771   : > { %14211 = vmatmul.mubr.msk.bf16.gmra.mrb[12].mxu0 %vm1052_vm8, %v18282_v48 }
 0x772   : > { %14039 = vmatmul.mubr.msk.bf16.vlgmr.msra.gmra.mrb[0].mxu1 %vm1052_vm8, %v15296_v35  ;;  %14214 = vmatprep.mubr.msk.bf16.mxu0 %vm1052_vm8, %v18296_v2 }
 0x773   : > { %14071 = vmatpush3.bf16.msra.mxu1 %v18186_v29  ;;  %14042 = vmatprep.mubr.msk.bf16.mxu1 %vm1052_vm8, %v15297_v36  ;;  %v15300_v29 = vld [vmem:[#allocation3 + $0x1280] sm:$0xff]  }
 0x774   : > { %14072 = vmatprep.subr.bf16.mxu1 %v15281_v20 }
 0x777   : > { %14073 = vmatpush3.bf16.msra.mxu1 %v15281_v20 }
 0x778   : > { %14074 = vmatprep.subr.bf16.mxu1 %v15283_v33 }
 0x779   : > { %14215 = vmatmul.mubr.msk.bf16.gmra.mrb[16].mxu0 %vm1052_vm8, %v18304_v23 }
 0x77a   : > { %14043 = vmatmul.mubr.msk.bf16.gmra.mrb[4].mxu1 %vm1052_vm8, %v15298_v47  ;;  %14218 = vmatprep.mubr.msk.bf16.mxu0 %vm1052_vm8, %v18315_v60 }
 0x77b   : > { %14046 = vmatprep.mubr.msk.bf16.mxu1 %vm1052_vm8, %v15299_v13  ;;  %14075 = vmatpush3.bf16.msra.mxu1 %v15283_v33 }
 0x77c   : > { %14076 = vmatprep.subr.bf16.mxu1 %v15285_v43 }
 0x77f   : > { %14077 = vmatpush3.bf16.msra.mxu1 %v15285_v43 }
 0x780   : > { %14822 = vmatprep.subr.bf16.mxu1 %v15300_v29 }
 0x781   : > { %14219 = vmatmul.mubr.msk.bf16.gmra.mrb[20].mxu0 %vm1052_vm8, %v18322_v56 }
 0x782   : > { %14047 = vmatmul.mubr.msk.bf16.gmra.mrb[8].mxu1 %vm1052_vm8, %v15301_v31  ;;  %14222 = vmatprep.mubr.msk.bf16.mxu0 %vm1052_vm8, %v18334_v53 }
 0x783   : > { %14050 = vmatprep.mubr.msk.bf16.mxu1 %vm1052_vm8, %v15302_v17 }
 0x789   : > { %14223 = vmatmul.mubr.msk.bf16.gmra.mrb[24].mxu0 %vm1052_vm8, %v18341_v5 }
 0x78a   : > { %14051 = vmatmul.mubr.msk.bf16.gmra.mrb[12].mxu1 %vm1052_vm8, %v15303_v55  ;;  %14226 = vmatprep.mubr.msk.bf16.mxu0 %vm1052_vm8, %v18353_v0 }
 0x78b   : > { %14054 = vmatprep.mubr.msk.bf16.mxu1 %vm1052_vm8, %v15304_v61 }
 0x791   : > { %14227 = vmatmul.mubr.msk.bf16.gmra.mrb[28].mxu0 %vm1052_vm8, %v18361_v45 }
 0x792   : > { %14055 = vmatmul.mubr.msk.bf16.gmra.mrb[16].mxu1 %vm1052_vm8, %v15305_v52  ;;  %14238 = vmatprep.mubr.msk.bf16.mxu0 %vm1052_vm8, %v18886_v1  ;;  %v18891_v1 = vld [vmem:[#allocation44_spill] sm:$0xff] }
 0x793   : > { %14058 = vmatprep.mubr.msk.bf16.mxu1 %vm1052_vm8, %v18884_v49  ;;  %v15288_v49 = vld [vmem:[#allocation3 + $0x1310] sm:$0xff]  }
 0x799   : > { %14239 = vmatmul.mubr.msk.bf16.vlgmr.msra.gmra.mrb[0].mxu0 %vm1052_vm8, %v18225_v62 }
 0x79a   : > { %14059 = vmatmul.mubr.msk.bf16.gmra.mrb[20].mxu1 %vm1052_vm8, %v18888_v54  ;;  %14271 = vmatpush3.bf16.msra.mxu0 %v15284_v37  ;;  %v18894_v54 = vld [vmem:[#allocation23_spill] sm:$0xff] }
 0x79b   : > { %14062 = vmatprep.mubr.msk.bf16.mxu1 %vm1052_vm8, %v18889_v19  ;;  %14242 = vmatprep.mubr.msk.bf16.mxu0 %vm1052_vm8, %v18233_v7  ;;  %v18896_v19 = vld [vmem:[#allocation33_spill] sm:$0xff] }
 0x79c   : > { %14272 = vmatprep.subr.bf16.mxu0 %v15286_v9 }
 0x79e   : > { %14273 = vmatpush3.bf16.msra.mxu0 %v15286_v9 }
 0x79f   : > { %14274 = vmatprep.subr.bf16.mxu0 %v15288_v49 }
 0x7a1   : > { %14243 = vmatmul.mubr.msk.bf16.gmra.mrb[4].mxu0 %vm1052_vm8, %v18396_v11 }
 0x7a2   : > { %14063 = vmatmul.mubr.msk.bf16.gmra.mrb[24].mxu1 %vm1052_vm8, %v18890_v34  ;;  %14246 = vmatprep.mubr.msk.bf16.mxu0 %vm1052_vm8, %v18412_v63 }
 0x7a3   : > { %14066 = vmatprep.mubr.msk.bf16.mxu1 %vm1052_vm8, %v18891_v1  ;;  %14275 = vmatpush3.bf16.msra.mxu0 %v15288_v49 }
 0x7a4   : > { %14276 = vmatprep.subr.bf16.mxu0 %v15289_v59 }
 0x7a7   : > { %14277 = vmatpush3.bf16.msra.mxu0 %v15289_v59 }
 0x7a9   : > { %14247 = vmatmul.mubr.msk.bf16.gmra.mrb[8].mxu0 %vm1052_vm8, %v18415_v58 }
 0x7aa   : > { %14067 = vmatmul.mubr.msk.bf16.gmra.mrb[28].mxu1 %vm1052_vm8, %v15287_v41  ;;  %14250 = vmatprep.mubr.msk.bf16.mxu0 %vm1052_vm8, %v18282_v48 }
 0x7ab   : > { %14078 = vmatprep.mubr.msk.bf16.mxu1 %vm1052_vm8, %v18392_v14  ;;  %v15308_v14 = vld [vmem:[#allocation3 + $0x1298] sm:$0xff]  }
 0x7b1   : > { %14251 = vmatmul.mubr.msk.bf16.gmra.mrb[12].mxu0 %vm1052_vm8, %v18296_v2 }
 0x7b2   : > { %14079 = vmatmul.mubr.msk.bf16.vlgmr.msra.gmra.mrb[0].mxu1 %vm1052_vm8, %v18892_v44  ;;  %14254 = vmatprep.mubr.msk.bf16.mxu0 %vm1052_vm8, %v18304_v23 }
 0x7b3   : > { %14826 = vmatpush3.bf16.msra.mxu1 %v15300_v29  ;;  %14082 = vmatprep.mubr.msk.bf16.mxu1 %vm1052_vm8, %v18893_v3 }
 0x7b4   : > { %14823 = vmatprep.subr.bf16.mxu1 %v15306_v28 }
 0x7b7   : > { %14827 = vmatpush3.bf16.msra.mxu1 %v15306_v28 }
 0x7b8   : > { %14824 = vmatprep.subr.bf16.mxu1 %v15307_v4 }
 0x7b9   : > { %14255 = vmatmul.mubr.msk.bf16.gmra.mrb[16].mxu0 %vm1052_vm8, %v18315_v60 }
 0x7ba   : > { %14083 = vmatmul.mubr.msk.bf16.gmra.mrb[4].mxu1 %vm1052_vm8, %v18894_v54  ;;  %14258 = vmatprep.mubr.msk.bf16.mxu0 %vm1052_vm8, %v18322_v56 }
 0x7bb   : > { %14086 = vmatprep.mubr.msk.bf16.mxu1 %vm1052_vm8, %v18895_v46  ;;  %14828 = vmatpush3.bf16.msra.mxu1 %v15307_v4 }
 0x7bc   : > { %14825 = vmatprep.subr.bf16.mxu1 %v15308_v14 }
 0x7bf   : > { %14829 = vmatpush3.bf16.msra.mxu1 %v15308_v14 }
 0x7c1   : > { %14259 = vmatmul.mubr.msk.bf16.gmra.mrb[20].mxu0 %vm1052_vm8, %v18334_v53 }
 0x7c2   : > { %14087 = vmatmul.mubr.msk.bf16.gmra.mrb[8].mxu1 %vm1052_vm8, %v18896_v19  ;;  %14262 = vmatprep.mubr.msk.bf16.mxu0 %vm1052_vm8, %v18341_v5 }
 0x7c3   : > { %14090 = vmatprep.mubr.msk.bf16.mxu1 %vm1052_vm8, %v18897_v16 }
 0x7c9   : > { %14263 = vmatmul.mubr.msk.bf16.gmra.mrb[24].mxu0 %vm1052_vm8, %v18353_v0 }
 0x7ca   : > { %14091 = vmatmul.mubr.msk.bf16.gmra.mrb[12].mxu1 %vm1052_vm8, %v18898_v26  ;;  %14266 = vmatprep.mubr.msk.bf16.mxu0 %vm1052_vm8, %v18361_v45 }
 0x7cb   : > { %14094 = vmatprep.mubr.msk.bf16.mxu1 %vm1052_vm8, %v18899_v40 }
 0x7d1   : > { %14267 = vmatmul.mubr.msk.bf16.gmra.mrb[28].mxu0 %vm1052_vm8, %v18380_v24 }
 0x7d2   : > { %14095 = vmatmul.mubr.msk.bf16.gmra.mrb[16].mxu1 %vm1052_vm8, %v18900_v15  ;;  %14278 = vmatprep.mubr.msk.bf16.mxu0 %vm1052_vm8, %v18225_v62 }
 0x7d3   : > { %14098 = vmatprep.mubr.msk.bf16.mxu1 %vm1052_vm8, %v18901_v38 }
 0x7d9   : > { %14279 = vmatmul.mubr.msk.bf16.vlgmr.msra.gmra.mrb[0].mxu0 %vm1052_vm8, %v18233_v7 }
 0x7da   : > { %14099 = vmatmul.mubr.msk.bf16.gmra.mrb[20].mxu1 %vm1052_vm8, %v18128_v50  ;;  %14282 = vmatprep.mubr.msk.bf16.mxu0 %vm1052_vm8, %v18396_v11 }
 0x7db   : > { %14102 = vmatprep.mubr.msk.bf16.mxu1 %vm1052_vm8, %v18180_v6 }
 0x7e1   : > { %14283 = vmatmul.mubr.msk.bf16.gmra.mrb[4].mxu0 %vm1052_vm8, %v18412_v63 }
 0x7e2   : > { %14103 = vmatmul.mubr.msk.bf16.gmra.mrb[24].mxu1 %vm1052_vm8, %v18190_v39  ;;  %14286 = vmatprep.mubr.msk.bf16.mxu0 %vm1052_vm8, %v18415_v58 }
 0x7e3   : > { %14106 = vmatprep.mubr.msk.bf16.mxu1 %vm1052_vm8, %v18231_v27 }
 0x7e9   : > { %14287 = vmatmul.mubr.msk.bf16.gmra.mrb[8].mxu0 %vm1052_vm8, %v18282_v48  ;;  %v18903_v48 = vld [vmem:[#allocation52_spill] sm:$0xff] }
 0x7ea   : > { %14107 = vmatmul.mubr.msk.bf16.gmra.mrb[28].mxu1 %vm1052_vm8, %v18265_v57  ;;  %14290 = vmatprep.mubr.msk.bf16.mxu0 %vm1052_vm8, %v18296_v2  ;;  %v11075_v2 = vrot.slane %v18903_v48, 5 }
 0x7eb   : > { %14134 = vmatprep.mubr.msk.bf16.mxu1 %vm1052_vm8, %v18900_v15 }
 0x7f1   : > { %14291 = vmatmul.mubr.msk.bf16.gmra.mrb[12].mxu0 %vm1052_vm8, %v18304_v23 }
 0x7f2   : > { %14135 = vmatmul.mubr.msk.bf16.vlgmr.msra.gmra.mrb[16].mxu1 %vm1052_vm8, %v18901_v38  ;;  %14294 = vmatprep.mubr.msk.bf16.mxu0 %vm1052_vm8, %v18315_v60 }
 0x7f3   : > { %14138 = vmatprep.mubr.msk.bf16.mxu1 %vm1052_vm8, %v18128_v50  ;;  %v18902_v50 = vld [vmem:[#allocation51_spill] sm:$0xff] }
 0x7f9   : > { %14295 = vmatmul.mubr.msk.bf16.gmra.mrb[16].mxu0 %vm1052_vm8, %v18322_v56 }
 0x7fa   : > { %14139 = vmatmul.mubr.msk.bf16.gmra.mrb[20].mxu1 %vm1052_vm8, %v18180_v6  ;;  %14298 = vmatprep.mubr.msk.bf16.mxu0 %vm1052_vm8, %v18334_v53  ;;  %v11072_v6 = vrot.slane %v18902_v50, 5 }
 0x7fb   : > { %14142 = vmatprep.mubr.msk.bf16.mxu1 %vm1052_vm8, %v18190_v39  ;;  %v10339_v39 = vld [vmem:[#allocation2 + $0xcc] sm:$0xe] }
 0x7fc   : > { %v12566_v62 = vrot.slane %v10339_v39, 9  ;;  %v11074_v7 = vrot.slane %v11072_v6, 4 }
 0x801   : > { %14299 = vmatmul.mubr.msk.bf16.gmra.mrb[20].mxu0 %vm1052_vm8, %v18341_v5 }
 0x802   : > { %14143 = vmatmul.mubr.msk.bf16.gmra.mrb[24].mxu1 %vm1052_vm8, %v18231_v27  ;;  %14302 = vmatprep.mubr.msk.bf16.mxu0 %vm1052_vm8, %v18353_v0  ;;  %v11073_v27 = vsel %vm16469_vm14, %v12566_v62, %v11072_v6 }
 0x803   : > { %14146 = vmatprep.mubr.msk.bf16.mxu1 %vm1052_vm8, %v18265_v57  ;;  %v11076_v57 = vsel %vm16469_vm14, %v11074_v7, %v11075_v2 }
 0x804   : > { %v12567_v23 = vcombine.low %v11073_v27, %v11076_v57 }
 0x809   : > { %14303 = vmatmul.mubr.msk.bf16.gmra.mrb[24].mxu0 %vm1052_vm8, %v18361_v45 }
 0x80a   : > { %14147 = vmatmul.mubr.msk.bf16.gmra.mrb[28].mxu1 %vm1052_vm8, %v18269_v30  ;;  %14306 = vmatprep.mubr.msk.bf16.mxu0 %vm1052_vm8, %v18380_v24 }
 0x811   : > { %14307 = vmatmul.mubr.msk.bf16.gmra.mrb[28].mxu0 %vm1052_vm8, %v12567_v23 }
 0x885   : > { %v14080_v30 = vpop.f32.mrb[0].mxu1 }
 0x886   : > { %v9651_v60 = vpop.f32.mrb[1].mxu1 }
 0x887   : > { %v14081_v56 = vpop.f32.mrb[2].mxu1 }
 0x888   : > { %v9654_v53 = vpop.f32.mrb[3].mxu1 }
 0x88d   : > { %v14084_v5 = vpop.f32.mrb[4].mxu1 }
 0x88e   : > { %v9667_v0 = vpop.f32.mrb[5].mxu1 }
 0x88f   : > { %v14085_v11 = vpop.f32.mrb[6].mxu1 }
 0x890   : > { %v9670_v45 = vpop.f32.mrb[7].mxu1 }
 0x895   : > { %v14088_v32 = vpop.f32.mrb[8].mxu1 }
 0x896   : > { %v9683_v12 = vpop.f32.mrb[9].mxu1 }
 0x897   : > { %v14089_v24 = vpop.f32.mrb[10].mxu1 }
 0x898   : > { %v9686_v18 = vpop.f32.mrb[11].mxu1 }
 0x89d   : > { %v14092_v10 = vpop.f32.mrb[12].mxu1 }
 0x89e   : > { %v9699_v8 = vpop.f32.mrb[13].mxu1 }
 0x89f   : > { %v14093_v21 = vpop.f32.mrb[14].mxu1 }
 0x8a0   : > { %v18577_v51 = vpop.f32.mrb[15].mxu1 }
 0x8ac   : > { %v14280_v22 = vpop.f32.mrb[0].mxu0 }
 0x8ad   : > { %v14830_v37 = vadd.f32 %v14280_v22, %v14080_v30  ;;  %v11150_v34 = vpop.f32.mrb[1].mxu0 }
 0x8ae   : > { %v14831_v63 = vadd.f32 %v11150_v34, %v9651_v60  ;;  %v14281_v25 = vpop.f32.mrb[2].mxu0 }
 0x8af   : > { %v11319_v58 = vadd.f32 %v14830_v37, %v18579_v42  ;;  %v14832_v20 = vadd.f32 %v14281_v25, %v14081_v56  ;;  %v11153_v35 = vpop.f32.mrb[3].mxu0 }
 0x8b0   : > { %v11317_v36 = vadd.f32 %v14831_v63, %v18579_v42  ;;  %v14833_v33 = vadd.f32 %v11153_v35, %v9654_v53 }
 0x8b1   : > { %11351 = vst.msk [vmem:[%s15727_s26 + $0x10] sm:$0xff] %vm1052_vm8, %v11319_v58  ;;  %v11320_v43 = vadd.f32 %v14832_v20, %v18579_v42 }
 0x8b2   : > { %11349 = vst.msk [vmem:[%s15727_s26] sm:$0xff] %vm1052_vm8, %v11317_v36  ;;  %v11318_v47 = vadd.f32 %v14833_v33, %v18579_v42 }
 0x8b3   : > { %11352 = vst.msk [vmem:[%s15727_s26 + $0x18] sm:$0xff] %vm1052_vm8, %v11320_v43 }
 0x8b4   : > { %11350 = vst.msk [vmem:[%s15727_s26 + $0x8] sm:$0xff] %vm1052_vm8, %v11318_v47  ;;  %v14284_v13 = vpop.f32.mrb[4].mxu0 }
 0x8b5   : > { %v14834_v29 = vadd.f32 %v14284_v13, %v14084_v5  ;;  %v11166_v31 = vpop.f32.mrb[5].mxu0 }
 0x8b6   : > { %v14835_v17 = vadd.f32 %v11166_v31, %v9667_v0  ;;  %v14285_v55 = vpop.f32.mrb[6].mxu0 }
 0x8b7   : > { %v11323_v61 = vadd.f32 %v14834_v29, %v18579_v42  ;;  %v14836_v52 = vadd.f32 %v14285_v55, %v14085_v11  ;;  %v11169_v9 = vpop.f32.mrb[7].mxu0 }
 0x8b8   : > { %v11321_v49 = vadd.f32 %v14835_v17, %v18579_v42  ;;  %v14837_v1 = vadd.f32 %v11169_v9, %v9670_v45 }
 0x8b9   : > { %11355 = vst.msk [vmem:[%s15727_s26 + $0x30] sm:$0xff] %vm1052_vm8, %v11323_v61  ;;  %v11324_v59 = vadd.f32 %v14836_v52, %v18579_v42 }
 0x8ba   : > { %11353 = vst.msk [vmem:[%s15727_s26 + $0x20] sm:$0xff] %vm1052_vm8, %v11321_v49  ;;  %v11322_v41 = vadd.f32 %v14837_v1, %v18579_v42 }
 0x8bb   : > { %11356 = vst.msk [vmem:[%s15727_s26 + $0x38] sm:$0xff] %vm1052_vm8, %v11324_v59 }
 0x8bc   : > { %11354 = vst.msk [vmem:[%s15727_s26 + $0x28] sm:$0xff] %vm1052_vm8, %v11322_v41  ;;  %v14288_v44 = vpop.f32.mrb[8].mxu0 }
 0x8bd   : > { %v14838_v3 = vadd.f32 %v14288_v44, %v14088_v32  ;;  %v11182_v28 = vpop.f32.mrb[9].mxu0 }
 0x8be   : > { %v14839_v4 = vadd.f32 %v11182_v28, %v9683_v12  ;;  %v14289_v54 = vpop.f32.mrb[10].mxu0 }
 0x8bf   : > { %v11327_v46 = vadd.f32 %v14838_v3, %v18579_v42  ;;  %v14840_v14 = vadd.f32 %v14289_v54, %v14089_v24  ;;  %v11185_v19 = vpop.f32.mrb[11].mxu0 }
 0x8c0   : > { %v11325_v26 = vadd.f32 %v14839_v4, %v18579_v42  ;;  %v14841_v40 = vadd.f32 %v11185_v19, %v9686_v18 }
 0x8c1   : > { %11359 = vst.msk [vmem:[%s15727_s26 + $0x50] sm:$0xff] %vm1052_vm8, %v11327_v46  ;;  %v11328_v38 = vadd.f32 %v14840_v14, %v18579_v42 }
 0x8c2   : > { %11357 = vst.msk [vmem:[%s15727_s26 + $0x40] sm:$0xff] %vm1052_vm8, %v11325_v26  ;;  %v11326_v6 = vadd.f32 %v14841_v40, %v18579_v42 }
 0x8c3   : > { %11360 = vst.msk [vmem:[%s15727_s26 + $0x58] sm:$0xff] %vm1052_vm8, %v11328_v38 }
 0x8c4   : > { %11358 = vst.msk [vmem:[%s15727_s26 + $0x48] sm:$0xff] %vm1052_vm8, %v11326_v6  ;;  %v14292_v62 = vpop.f32.mrb[12].mxu0 }
 0x8c5   : > { %v14136_v16 = vpop.f32.mrb[16].mxu1  ;;  %v14842_v7 = vadd.f32 %v14292_v62, %v14092_v10  ;;  %v11198_v48 = vpop.f32.mrb[13].mxu0 }
 0x8c6   : > { %v9971_v15 = vpop.f32.mrb[17].mxu1  ;;  %v14843_v2 = vadd.f32 %v11198_v48, %v9699_v8  ;;  %v14293_v27 = vpop.f32.mrb[14].mxu0 }
 0x8c7   : > { %v14137_v50 = vpop.f32.mrb[18].mxu1  ;;  %v11331_v57 = vadd.f32 %v14842_v7, %v18579_v42  ;;  %v14844_v23 = vadd.f32 %v14293_v27, %v14093_v21  ;;  %v11201_v30 = vpop.f32.mrb[15].mxu0 }
 0x8c8   : > { %v9974_v39 = vpop.f32.mrb[19].mxu1  ;;  %v11329_v56 = vadd.f32 %v14843_v2, %v18579_v42  ;;  %v14845_v53 = vadd.f32 %v11201_v30, %v18577_v51 }
 0x8c9   : > { %11363 = vst.msk [vmem:[%s15727_s26 + $0x70] sm:$0xff] %vm1052_vm8, %v11331_v57  ;;  %v11332_v0 = vadd.f32 %v14844_v23, %v18579_v42 }
 0x8ca   : > { %11361 = vst.msk [vmem:[%s15727_s26 + $0x60] sm:$0xff] %vm1052_vm8, %v11329_v56  ;;  %v11330_v45 = vadd.f32 %v14845_v53, %v18579_v42 }
 0x8cb   : > { %11364 = vst.msk [vmem:[%s15727_s26 + $0x78] sm:$0xff] %vm1052_vm8, %v11332_v0 }
 0x8cc   : > { %11362 = vst.msk [vmem:[%s15727_s26 + $0x68] sm:$0xff] %vm1052_vm8, %v11330_v45  ;;  %v14296_v12 = vpop.f32.mrb[16].mxu0 }
 0x8cd   : > { %v14140_v60 = vpop.f32.mrb[20].mxu1  ;;  %v14846_v24 = vadd.f32 %v14296_v12, %v14136_v16  ;;  %v11214_v18 = vpop.f32.mrb[17].mxu0 }
 0x8ce   : > { %v9987_v5 = vpop.f32.mrb[21].mxu1  ;;  %v14847_v10 = vadd.f32 %v11214_v18, %v9971_v15  ;;  %v14297_v8 = vpop.f32.mrb[18].mxu0 }
 0x8cf   : > { %v14141_v11 = vpop.f32.mrb[22].mxu1  ;;  %v11335_v21 = vadd.f32 %v14846_v24, %v18579_v42  ;;  %v14848_v51 = vadd.f32 %v14297_v8, %v14137_v50  ;;  %v11217_v22 = vpop.f32.mrb[19].mxu0 }
 0x8d0   : > { %v9990_v32 = vpop.f32.mrb[23].mxu1  ;;  %v11333_v34 = vadd.f32 %v14847_v10, %v18579_v42  ;;  %v14849_v63 = vadd.f32 %v11217_v22, %v9974_v39 }
 0x8d1   : > { %11367 = vst.msk [vmem:[%s15727_s26 + $0x90] sm:$0xff] %vm1052_vm8, %v11335_v21  ;;  %v11336_v58 = vadd.f32 %v14848_v51, %v18579_v42 }
 0x8d2   : > { %11365 = vst.msk [vmem:[%s15727_s26 + $0x80] sm:$0xff] %vm1052_vm8, %v11333_v34  ;;  %v11334_v35 = vadd.f32 %v14849_v63, %v18579_v42 }
 0x8d3   : > { %11368 = vst.msk [vmem:[%s15727_s26 + $0x98] sm:$0xff] %vm1052_vm8, %v11336_v58 }
 0x8d4   : > { %11366 = vst.msk [vmem:[%s15727_s26 + $0x88] sm:$0xff] %vm1052_vm8, %v11334_v35  ;;  %v14300_v33 = vpop.f32.mrb[20].mxu0 }
 0x8d5   : > { %v14144_v37 = vpop.f32.mrb[24].mxu1  ;;  %v14850_v43 = vadd.f32 %v14300_v33, %v14140_v60  ;;  %v11230_v47 = vpop.f32.mrb[21].mxu0 }
 0x8d6   : > { %v10003_v25 = vpop.f32.mrb[25].mxu1  ;;  %v14851_v13 = vadd.f32 %v11230_v47, %v9987_v5  ;;  %v14301_v29 = vpop.f32.mrb[22].mxu0 }
 0x8d7   : > { %v14145_v20 = vpop.f32.mrb[26].mxu1  ;;  %v11339_v31 = vadd.f32 %v14850_v43, %v18579_v42  ;;  %v14852_v17 = vadd.f32 %v14301_v29, %v14141_v11  ;;  %v11233_v55 = vpop.f32.mrb[23].mxu0 }
 0x8d8   : > { %v10006_v36 = vpop.f32.mrb[27].mxu1  ;;  %v11337_v52 = vadd.f32 %v14851_v13, %v18579_v42  ;;  %v14853_v9 = vadd.f32 %v11233_v55, %v9990_v32 }
 0x8d9   : > { %11371 = vst.msk [vmem:[%s15727_s26 + $0xb0] sm:$0xff] %vm1052_vm8, %v11339_v31  ;;  %v11340_v1 = vadd.f32 %v14852_v17, %v18579_v42 }
 0x8da   : > { %11369 = vst.msk [vmem:[%s15727_s26 + $0xa0] sm:$0xff] %vm1052_vm8, %v11337_v52  ;;  %v11338_v41 = vadd.f32 %v14853_v9, %v18579_v42 }
 0x8db   : > { %11372 = vst.msk [vmem:[%s15727_s26 + $0xb8] sm:$0xff] %vm1052_vm8, %v11340_v1 }
 0x8dc   : > { %11370 = vst.msk [vmem:[%s15727_s26 + $0xa8] sm:$0xff] %vm1052_vm8, %v11338_v41  ;;  %v14304_v3 = vpop.f32.mrb[24].mxu0 }
 0x8dd   : > { %v14148_v61 = vpop.f32.mrb[28].mxu1  ;;  %v14854_v28 = vadd.f32 %v14304_v3, %v14144_v37  ;;  %v11246_v4 = vpop.f32.mrb[25].mxu0 }
 0x8de   : > { %v10019_v49 = vpop.f32.mrb[29].mxu1  ;;  %v14855_v54 = vadd.f32 %v11246_v4, %v10003_v25  ;;  %v14305_v46 = vpop.f32.mrb[26].mxu0 }
 0x8df   : > { %v14149_v59 = vpop.f32.mrb[30].mxu1  ;;  %v11343_v14 = vadd.f32 %v14854_v28, %v18579_v42  ;;  %v14856_v19 = vadd.f32 %v14305_v46, %v14145_v20  ;;  %v11249_v16 = vpop.f32.mrb[27].mxu0 }
 0x8e0   : > { %v10022_v44 = vpop.f32.mrb[31].mxu1  ;;  %v11341_v26 = vadd.f32 %v14855_v54, %v18579_v42  ;;  %v14857_v40 = vadd.f32 %v11249_v16, %v10006_v36 }
 0x8e1   : > { %11375 = vst.msk [vmem:[%s15727_s26 + $0xd0] sm:$0xff] %vm1052_vm8, %v11343_v14  ;;  %v11344_v15 = vadd.f32 %v14856_v19, %v18579_v42 }
 0x8e2   : > { %11373 = vst.msk [vmem:[%s15727_s26 + $0xc0] sm:$0xff] %vm1052_vm8, %v11341_v26  ;;  %v11342_v38 = vadd.f32 %v14857_v40, %v18579_v42 }
 0x8e3   : > { %11376 = vst.msk [vmem:[%s15727_s26 + $0xd8] sm:$0xff] %vm1052_vm8, %v11344_v15 }
 0x8e4   : > { %11374 = vst.msk [vmem:[%s15727_s26 + $0xc8] sm:$0xff] %vm1052_vm8, %v11342_v38  ;;  %v14308_v50 = vpop.f32.mrb[28].mxu0 }
 0x8e5   : > { %v14858_v6 = vadd.f32 %v14308_v50, %v14148_v61  ;;  %v11262_v39 = vpop.f32.mrb[29].mxu0 }
 0x8e6   : > { %v14859_v62 = vadd.f32 %v11262_v39, %v10019_v49  ;;  %v14309_v7 = vpop.f32.mrb[30].mxu0 }
 0x8e7   : > { %v11347_v48 = vadd.f32 %v14858_v6, %v18579_v42  ;;  %v14860_v2 = vadd.f32 %v14309_v7, %v14149_v59  ;;  %v11265_v27 = vpop.f32.mrb[31].mxu0 }
 0x8e8   : > { %v11345_v57 = vadd.f32 %v14859_v62, %v18579_v42  ;;  %v14861_v23 = vadd.f32 %v11265_v27, %v10022_v44 }
 0x8e9   : > { %11379 = vst.msk [vmem:[%s15727_s26 + $0xf0] sm:$0xff] %vm1052_vm8, %v11347_v48  ;;  %v11348_v30 = vadd.f32 %v14860_v2, %v18579_v42 }
 0x8ea   : > { %11377 = vst.msk [vmem:[%s15727_s26 + $0xe0] sm:$0xff] %vm1052_vm8, %v11345_v57  ;;  %v11346_v60 = vadd.f32 %v14861_v23, %v18579_v42 }
 0x8eb   : > { %11380 = vst.msk [vmem:[%s15727_s26 + $0xf8] sm:$0xff] %vm1052_vm8, %v11348_v30 }
 0x8ec   : > { %11378 = vst.msk [vmem:[%s15727_s26 + $0xe8] sm:$0xff] %vm1052_vm8, %v11346_v60 }
 0x8ed PF: > { %s15_s12 = sadd.s32 1, %s15383_s12  }
 0x8ee   : > { %p12_p10 = scmp.ge.s32.totalorder %s15_s12, 4  }
 0x8f0   :  { %14 = sbr.rel (!%p12_p10) target bundleno = 2 (0x2), region = 122 }
 0x8f7   :  { %11402 = vsyncpa [#allocation4], 1 }
 0x8f8   :  { %11404 = vsyncpa [#allocation4 + $0x1], 1 }
 0x8f9   :  { %11405 = vsyncpa [#allocation6], 1 }

</bundles_post_ra>
